<compile_context>
chip_gen: v6e
topology: v6e:2x2x1
jax: 0.10.0
libtpu: 0.0.40
codegen_flags: <defaults>
</compile_context>

<pallas_src>
import functools
import math

import jax
import jax.numpy as jnp
from jax.experimental import pallas as pl
from jax.experimental.pallas import tpu as pltpu


# ---------------------------- hardware-aware config ----------------------------

def _vmem_budget():
    """~65% of this generation's VMEM (~83 MiB v5e/v6e, ~41 MiB v7x)."""
    try:
        cap = pltpu.get_tpu_info().vmem_capacity_bytes
    except Exception:
        cap = 64 * 1024 * 1024            # conservative fallback (v7x-sized)
    return int(0.65 * cap)


_VMEM_BUDGET = _vmem_budget()


def _cp(dimension_semantics):
    return pltpu.CompilerParams(dimension_semantics=dimension_semantics,
                                vmem_limit_bytes=_VMEM_BUDGET)


def _probe_pipeline_mode():
    try:
        pl.BlockSpec((8, 128), lambda i: (0, 0), pipeline_mode=pl.Buffered(1))
        return True
    except Exception:
        return False


_HAS_PIPELINE_MODE = _probe_pipeline_mode()


def _const_spec(block_shape, index_map):
    """BlockSpec for a grid-invariant operand: single-buffer it (saves VMEM)."""
    if _HAS_PIPELINE_MODE:
        return pl.BlockSpec(block_shape, index_map, pipeline_mode=pl.Buffered(1))
    return pl.BlockSpec(block_shape, index_map)


def _row_tile(L, target):
    """Largest divisor of L <= target, preferring multiples of 256/128, then 8."""
    if L <= target:
        return L
    for step in (256, 128, 8):
        t = (target // step) * step
        while t >= step:
            if L % t == 0:
                return t
            t -= step
    # TODO(synk): pad ragged lengths instead of a full-length (VMEM-blowing) tile.
    return L


def _col_tile(N, target):
    if N <= target:
        return N
    for step in (256, 128):
        t = (target // step) * step
        while t >= step:
            if N % t == 0:
                return t
            t -= step
    return N


def _ff_col_tile(F_in, D):
    # Resident-weight FF path when W1 + W2 (bf16) comfortably fit (v5e/v6e at
    # SD3 dims); otherwise stream 512-wide chunks (v7x / larger models).
    if 2 * F_in * D * 2 <= 0.5 * _VMEM_BUDGET:
        return F_in
    return _col_tile(F_in, 512)


# ---------------------------- Pallas kernels ----------------------------

def _adaln_emb_kernel(t_ref, w_ref, b_ref, o_ref, silu_ref):
    # SiLU(temb) @ W + b with W = concat(norm1, norm1_context) weights (D, 12D).
    # Grid over output columns; SiLU(temb) computed once into VMEM scratch.
    @pl.when(pl.program_id(0) == 0)
    def _():
        t = t_ref[...]
        silu_ref[...] = (t * (1.0 / (1.0 + jnp.exp(-t)))).astype(silu_ref.dtype)

    o_ref[...] = (jnp.dot(silu_ref[...], w_ref[...],
                          preferred_element_type=jnp.float32)
                  + b_ref[...]).astype(o_ref.dtype)


def _ln_qkv_kernel(x_ref, scale_ref, shift_ref, w_ref, b_ref, q_ref, k_ref, v_ref):
    # LayerNorm(eps=1e-6, no affine) + AdaLN modulation fused into one QKV matmul.
    # 1/sqrt(head_dim) is pre-folded into the Q weight/bias.  q/k/v are emitted
    # as three separate lane-dense outputs (no XLA split afterwards).
    x = x_ref[...].astype(jnp.float32)
    mean = jnp.mean(x, axis=-1, keepdims=True)
    var = jnp.mean(jnp.square(x - mean), axis=-1, keepdims=True)
    xn = (x - mean) * jax.lax.rsqrt(var + 1e-6)
    xn = xn * (1.0 + scale_ref[...]) + shift_ref[...]
    y = (jnp.dot(xn.astype(w_ref.dtype), w_ref[...],
                 preferred_element_type=jnp.float32) + b_ref[...])
    inner = q_ref.shape[-1]
    q_ref[...] = y[:, :inner].astype(q_ref.dtype)
    k_ref[...] = y[:, inner:2 * inner].astype(k_ref.dtype)
    v_ref[...] = y[:, 2 * inner:].astype(v_ref.dtype)


def _flash_attn_kernel(q_ref, k_ref, v_ref, o_ref, m_s, l_s, acc_s,
                       *, num_heads, head_dim):
    # Flash-style online softmax over KV tiles.  q/k/v arrive head-MERGED
    # (rows, H*hd); per-head work uses static lane slices, and the output is
    # written head-merged (lane dense) so no XLA transpose/reshape follows.
    ki = pl.program_id(2)

    @pl.when(ki == 0)
    def _():
        m_s[...] = jnp.full_like(m_s, -jnp.inf)
        l_s[...] = jnp.zeros_like(l_s)
        acc_s[...] = jnp.zeros_like(acc_s)

    q = q_ref[...]                                   # (tq, H*hd) bf16 (scale folded)
    k = k_ref[...]                                   # (tk, H*hd) bf16
    v = v_ref[...]

    for h in range(num_heads):                       # static unroll over heads
        sl = slice(h * head_dim, (h + 1) * head_dim)
        hc = slice(h, h + 1)
        s = jax.lax.dot_general(q[:, sl], k[:, sl], (((1,), (1,)), ((), ())),
                                preferred_element_type=jnp.float32)   # (tq, tk)
        m_prev = m_s[:, hc]
        m_new = jnp.maximum(m_prev, jnp.max(s, axis=-1, keepdims=True))
        alpha = jnp.exp(m_prev - m_new)
        p = jnp.exp(s - m_new)
        l_s[:, hc] = alpha * l_s[:, hc] + jnp.sum(p, axis=-1, keepdims=True)
        acc_s[:, sl] = alpha * acc_s[:, sl] + jnp.dot(
            p.astype(v.dtype), v[:, sl], preferred_element_type=jnp.float32)
        m_s[:, hc] = m_new

    @pl.when(ki == pl.num_programs(2) - 1)
    def _():
        for h in range(num_heads):
            sl = slice(h * head_dim, (h + 1) * head_dim)
            o_ref[:, sl] = (acc_s[:, sl] *
                            pl.reciprocal(l_s[:, h:h + 1], approx=True)
                            ).astype(o_ref.dtype)


def _attn_out_ff_kernel(attn_ref, wo_ref, bo_ref, g_attn_ref, res_ref,
                        scale_ref, shift_ref, g_mlp_ref,
                        w1_ref, b1_ref, w2_ref, b2_ref,
                        o_ref, h_ref, xn_ref, acc_ref):
    # k==0 prologue: attention out-projection + gated attn residual + LayerNorm
    #                + MLP modulation, all kept in VMEM (no HBM round trip).
    # body        : W1 chunk + tanh-GELU + W2 chunk into an f32 accumulator.
    # k==last     : gated FF residual, single f32 store of the output block.
    kk = pl.program_id(2)

    @pl.when(kk == 0)
    def _():
        y = (jnp.dot(attn_ref[...], wo_ref[...],
                     preferred_element_type=jnp.float32) + bo_ref[...])
        h = res_ref[...].astype(jnp.float32) + g_attn_ref[...] * y
        h_ref[...] = h
        mean = jnp.mean(h, axis=-1, keepdims=True)
        var = jnp.mean(jnp.square(h - mean), axis=-1, keepdims=True)
        xn = (h - mean) * jax.lax.rsqrt(var + 1e-6)
        xn = xn * (1.0 + scale_ref[...]) + shift_ref[...]
        xn_ref[...] = xn.astype(xn_ref.dtype)
        acc_ref[...] = jnp.zeros_like(acc_ref)

    t = (jnp.dot(xn_ref[...], w1_ref[...],
                 preferred_element_type=jnp.float32) + b1_ref[...])
    c = 0.7978845608028654                           # sqrt(2/pi); tanh-approx GELU
    t = 0.5 * t * (1.0 + jnp.tanh(c * (t + 0.044715 * (t * t * t))))
    acc_ref[...] += jnp.dot(t.astype(w2_ref.dtype), w2_ref[...],
                            preferred_element_type=jnp.float32)

    @pl.when(kk == pl.num_programs(2) - 1)
    def _():
        o_ref[...] = (h_ref[...]
                      + g_mlp_ref[...] * (acc_ref[...] + b2_ref[...])
                      ).astype(o_ref.dtype)


# ---------------------------- wrappers ----------------------------

def adaln_embed(temb, w, b):
    B, D = temb.shape
    N = w.shape[1]
    tc = _col_tile(N, 3072)
    nc = N // tc
    return pl.pallas_call(
        _adaln_emb_kernel,
        out_shape=jax.ShapeDtypeStruct((B, N), jnp.float32),
        grid=(nc,),
        in_specs=[_const_spec((B, D), lambda c: (0, 0)),
                  pl.BlockSpec((D, tc), lambda c: (0, c)),
                  pl.BlockSpec((1, tc), lambda c: (0, c))],
        out_specs=pl.BlockSpec((B, tc), lambda c: (0, c)),
        scratch_shapes=[pltpu.VMEM((B, D), jnp.bfloat16)],
        compiler_params=_cp(("arbitrary",)),
    )(temb, w, b.reshape(1, N))


def ln_modulate_qkv(x, scale, shift, w, b):
    B, L, D = x.shape
    N = w.shape[1]
    inner = N // 3
    tm = _row_tile(L, 256)
    nm = L // tm
    return pl.pallas_call(
        _ln_qkv_kernel,
        out_shape=tuple(jax.ShapeDtypeStruct((B, L, inner), jnp.bfloat16)
                        for _ in range(3)),
        grid=(B, nm),
        in_specs=[pl.BlockSpec((None, tm, D), lambda b, i: (b, i, 0)),
                  pl.BlockSpec((None, 1, D), lambda b, i: (b, 0, 0)),
                  pl.BlockSpec((None, 1, D), lambda b, i: (b, 0, 0)),
                  _const_spec((D, N), lambda b, i: (0, 0)),
                  _const_spec((1, N), lambda b, i: (0, 0))],
        out_specs=tuple(pl.BlockSpec((None, tm, inner), lambda b, i: (b, i, 0))
                        for _ in range(3)),
        compiler_params=_cp(("parallel", "parallel")),
    )(x, scale[:, None, :], shift[:, None, :], w, b.reshape(1, N))


def attention(q, k, v, num_heads):
    # q/k/v: (B, L, H*hd) bf16, head-merged; output (B, Lq, H*hd) bf16 head-merged.
    B, Lq, inner = q.shape
    Lk = k.shape[1]
    hd = inner // num_heads
    tq = _row_tile(Lq, 256)
    tk = _row_tile(Lk, 512)
    kern = functools.partial(_flash_attn_kernel, num_heads=num_heads, head_dim=hd)
    return pl.pallas_call(
        kern,
        out_shape=jax.ShapeDtypeStruct((B, Lq, inner), jnp.bfloat16),
        grid=(B, Lq // tq, Lk // tk),
        in_specs=[pl.BlockSpec((None, tq, inner), lambda b, qi, ki: (b, qi, 0)),
                  pl.BlockSpec((None, tk, inner), lambda b, qi, ki: (b, ki, 0)),
                  pl.BlockSpec((None, tk, inner), lambda b, qi, ki: (b, ki, 0))],
        out_specs=pl.BlockSpec((None, tq, inner), lambda b, qi, ki: (b, qi, 0)),
        scratch_shapes=[pltpu.VMEM((tq, num_heads), jnp.float32),   # running max
                        pltpu.VMEM((tq, num_heads), jnp.float32),   # running sum
                        pltpu.VMEM((tq, inner), jnp.float32)],      # output acc
        compiler_params=_cp(("parallel", "parallel", "arbitrary")),
    )(q, k, v)


def attn_out_ff_fused(attn, wo, bo, gate_attn, residual,
                      scale_mlp, shift_mlp, gate_mlp, w1, b1, w2, b2):
    B, L, inner = attn.shape
    D = wo.shape[1]
    F_in = w1.shape[1]
    tm = _row_tile(L, 512)
    nm = L // tm
    tk = _ff_col_tile(F_in, D)
    nk = F_in // tk

    def _chunk_spec(shape, index_map):
        # Single-buffer the FF weights too when they are grid-invariant (nk == 1).
        return _const_spec(shape, index_map) if nk == 1 else pl.BlockSpec(shape, index_map)

    return pl.pallas_call(
        _attn_out_ff_kernel,
        out_shape=jax.ShapeDtypeStruct((B, L, D), jnp.float32),
        grid=(B, nm, nk),
        in_specs=[pl.BlockSpec((None, tm, inner), lambda b, i, k: (b, i, 0)),  # attn out
                  _const_spec((inner, D), lambda b, i, k: (0, 0)),             # W_out
                  _const_spec((1, D), lambda b, i, k: (0, 0)),                 # b_out
                  pl.BlockSpec((None, 1, D), lambda b, i, k: (b, 0, 0)),       # gate_msa
                  pl.BlockSpec((None, tm, D), lambda b, i, k: (b, i, 0)),      # residual
                  pl.BlockSpec((None, 1, D), lambda b, i, k: (b, 0, 0)),       # scale_mlp
                  pl.BlockSpec((None, 1, D), lambda b, i, k: (b, 0, 0)),       # shift_mlp
                  pl.BlockSpec((None, 1, D), lambda b, i, k: (b, 0, 0)),       # gate_mlp
                  _chunk_spec((D, tk), lambda b, i, k: (0, k)),                # W1 chunk
                  _chunk_spec((1, tk), lambda b, i, k: (0, k)),                # b1 chunk
                  _chunk_spec((tk, D), lambda b, i, k: (k, 0)),                # W2 chunk
                  _const_spec((1, D), lambda b, i, k: (0, 0))],                # b2
        out_specs=pl.BlockSpec((None, tm, D), lambda b, i, k: (b, i, 0)),
        scratch_shapes=[pltpu.VMEM((tm, D), jnp.float32),    # post-attn hidden (VMEM only)
                        pltpu.VMEM((tm, D), jnp.bfloat16),   # LN+modulated FF input
                        pltpu.VMEM((tm, D), jnp.float32)],   # FF f32 accumulator
        compiler_params=_cp(("parallel", "parallel", "arbitrary")),
    )(attn, wo, bo.reshape(1, D), gate_attn[:, None, :], residual,
      scale_mlp[:, None, :], shift_mlp[:, None, :], gate_mlp[:, None, :],
      w1, b1.reshape(1, F_in), w2, b2.reshape(1, D))


# ---------------------------- parameters ----------------------------

def init_params(key, dim, num_heads):
    """Synthetic params; weights pre-concatenated for the fused kernels, the
    1/sqrt(head_dim) attention scale folded into the Q weight/bias in f32 before
    the bf16 cast, weights bf16 / biases f32, layout (in_features, out_features)."""
    inner = dim
    ff_inner = 4 * dim
    q_scale = 1.0 / math.sqrt(inner // num_heads)
    keys = iter(jax.random.split(key, 40))

    def lin(fan_in, fan_out):
        kw, kb = jax.random.split(next(keys))
        w = jax.random.normal(kw, (fan_in, fan_out), jnp.float32) / math.sqrt(fan_in)
        b = 0.01 * jax.random.normal(kb, (fan_out,), jnp.float32)
        return w, b

    n1_w, n1_b = lin(dim, 6 * dim)            # AdaLayerNormZero (hidden)
    n1c_w, n1c_b = lin(dim, 6 * dim)          # AdaLayerNormZero (context)
    q_w, q_b = lin(dim, inner)
    k_w, k_b = lin(dim, inner)
    v_w, v_b = lin(dim, inner)
    aq_w, aq_b = lin(dim, inner)
    ak_w, ak_b = lin(dim, inner)
    av_w, av_b = lin(dim, inner)
    to_out_w, to_out_b = lin(inner, dim)
    to_add_out_w, to_add_out_b = lin(inner, dim)
    ff_w1, ff_b1 = lin(dim, ff_inner)
    ff_w2, ff_b2 = lin(ff_inner, dim)
    ffc_w1, ffc_b1 = lin(dim, ff_inner)
    ffc_w2, ffc_b2 = lin(ff_inner, dim)

    bf = lambda w: w.astype(jnp.bfloat16)
    return {
        "adaln_w": bf(jnp.concatenate([n1_w, n1c_w], axis=1)),
        "adaln_b": jnp.concatenate([n1_b, n1c_b], axis=0),
        "qkv_w": bf(jnp.concatenate([q_w * q_scale, k_w, v_w], axis=1)),
        "qkv_b": jnp.concatenate([q_b * q_scale, k_b, v_b], axis=0),
        "add_qkv_w": bf(jnp.concatenate([aq_w * q_scale, ak_w, av_w], axis=1)),
        "add_qkv_b": jnp.concatenate([aq_b * q_scale, ak_b, av_b], axis=0),
        "to_out_w": bf(to_out_w), "to_out_b": to_out_b,
        "to_add_out_w": bf(to_add_out_w), "to_add_out_b": to_add_out_b,
        "ff_w1": bf(ff_w1), "ff_b1": ff_b1, "ff_w2": bf(ff_w2), "ff_b2": ff_b2,
        "ffc_w1": bf(ffc_w1), "ffc_b1": ffc_b1, "ffc_w2": bf(ffc_w2), "ffc_b2": ffc_b2,
    }


# ---------------------------- forward ----------------------------

@functools.partial(jax.jit, static_argnames=("num_heads", "token_merge"))
def _block_impl(p, hidden_states, encoder_hidden_states, temb, *, num_heads, token_merge):
    B, Lx, D = hidden_states.shape
    inner = D

    # AdaLN-Zero for both streams: one SiLU + (D, 12D) matmul, column-tiled.
    emb = adaln_embed(temb, p["adaln_w"], p["adaln_b"])
    (shift_msa, scale_msa, gate_msa, shift_mlp, scale_mlp, gate_mlp,
     c_shift_msa, c_scale_msa, c_gate_msa,
     c_shift_mlp, c_scale_mlp, c_gate_mlp) = jnp.split(emb, 12, axis=-1)

    # LN + modulation fused into the concatenated QKV projection (q/k/v split in-kernel).
    q_x, k_x, v_x = ln_modulate_qkv(hidden_states, scale_msa, shift_msa,
                                    p["qkv_w"], p["qkv_b"])
    q_c, k_c, v_c = ln_modulate_qkv(encoder_hidden_states, c_scale_msa, c_shift_msa,
                                    p["add_qkv_w"], p["add_qkv_b"])

    if token_merge:  # static host-side decision matching `timestep[0].item() > 500`
        Hs = Ws = int(math.isqrt(Lx))

        def pool(t):  # F.avg_pool2d(kernel=2, stride=2) over the spatial token grid
            t = t.astype(jnp.float32).reshape(B, Hs // 2, 2, Ws // 2, 2, inner)
            return t.mean(axis=(2, 4)).reshape(B, -1, inner).astype(jnp.bfloat16)

        k_x = pool(k_x)
        v_x = pool(v_x)

    q = jnp.concatenate([q_x, q_c], axis=1)
    k = jnp.concatenate([k_x, k_c], axis=1)
    v = jnp.concatenate([v_x, v_c], axis=1)

    # Flash attention over KV tiles; output already head-merged (B, Lq, H*hd).
    attn = attention(q, k, v, num_heads)
    x_attn, c_attn = attn[:, :Lx], attn[:, Lx:]

    # out-projection + gated attn residual + LN + modulation + FF + gated FF
    # residual, fully fused per stream (post-attn hidden states stay in VMEM).
    hidden_out = attn_out_ff_fused(
        x_attn, p["to_out_w"], p["to_out_b"], gate_msa, hidden_states,
        scale_mlp, shift_mlp, gate_mlp,
        p["ff_w1"], p["ff_b1"], p["ff_w2"], p["ff_b2"])
    encoder_out = attn_out_ff_fused(
        c_attn, p["to_add_out_w"], p["to_add_out_b"], c_gate_msa, encoder_hidden_states,
        c_scale_mlp, c_shift_mlp, c_gate_mlp,
        p["ffc_w1"], p["ffc_b1"], p["ffc_w2"], p["ffc_b2"])

    return encoder_out, hidden_out


def joint_transformer_block(p, hidden_states, encoder_hidden_states, temb, timestep,
                            num_heads):
    # Host-side static decision matching PyTorch's `timestep[0].item() > 500`.
    token_merge = bool(timestep[0] > 500)
    return _block_impl(p, hidden_states, encoder_hidden_states, temb,
                       num_heads=num_heads, token_merge=token_merge)


# ---------------------------- main ----------------------------

if __name__ == "__main__":
    # Small shapes consistent with the module:
    # dim = attention_head_dim = 32, num_attention_heads = 4 (head_dim = 8),
    # image tokens Lx = 64 (8x8 grid -> 2x2 token-merge pool valid),
    # context tokens Lc = 8, batch B = 2.
    B, Lx, Lc, D, HEADS = 2, 64, 8, 32, 4

    key = jax.random.PRNGKey(0)
    kp, kx, kc, kt = jax.random.split(key, 4)

    params = init_params(kp, D, HEADS)
    hidden_states = jax.random.normal(kx, (B, Lx, D), jnp.float32)
    encoder_hidden_states = jax.random.normal(kc, (B, Lc, D), jnp.float32)
    temb = jax.random.normal(kt, (B, D), jnp.float32)
    timestep = jnp.full((B,), 800.0, jnp.float32)   # > 500 -> token-merge branch

    enc_out, hid_out = joint_transformer_block(
        params, hidden_states, encoder_hidden_states, temb, timestep, HEADS)
    jax.block_until_ready((enc_out, hid_out))

    assert hid_out.shape == (B, Lx, D) and enc_out.shape == (B, Lc, D)
    assert bool(jnp.all(jnp.isfinite(hid_out))) and bool(jnp.all(jnp.isfinite(enc_out)))
    print("KERNEL_OK")
</pallas_src>

<mosaic_0001>
module attributes {stable_mosaic.version = 11 : i64} {
  func.func @_adaln_emb_kernel(%arg0: i32, %arg1: memref<2x32xf32, #tpu.memory_space<vmem>>, %arg2: memref<32x384xbf16, #tpu.memory_space<vmem>>, %arg3: memref<1x384xf32, #tpu.memory_space<vmem>>, %arg4: memref<2x384xf32, #tpu.memory_space<vmem>>, %arg5: memref<2x32xbf16, #tpu.memory_space<vmem>>) attributes {dimension_semantics = [#tpu.dimension_semantics<arbitrary>], iteration_bounds = array<i64: 1>, scalar_prefetch = 0 : i64, scratch_operands = 1 : i64, tpu.core_type = #tpu.core_type<tc>, window_params = [{pipeline_mode = #tpu.pipeline_mode<synchronous>, transform_indices = @transform_0, window_bounds = array<i64: 2, 32>}, {transform_indices = @transform_1, window_bounds = array<i64: 32, 384>}, {transform_indices = @transform_2, window_bounds = array<i64: 1, 384>}, {transform_indices = @transform_3, window_bounds = array<i64: 2, 384>}]} {
    %c0_i32 = arith.constant 0 : i32
    %0 = arith.cmpi eq, %arg0, %c0_i32 : i32
    %1 = arith.extui %0 : i1 to i32
    %c0_i32_0 = arith.constant 0 : i32
    %2 = arith.cmpi ne, %1, %c0_i32_0 : i32
    scf.if %2 {
      %c0_8 = arith.constant 0 : index
      %c0_9 = arith.constant 0 : index
      %10 = vector.load %arg1[%c0_8, %c0_9] : memref<2x32xf32, #tpu.memory_space<vmem>>, vector<2x32xf32>
      %cst_10 = arith.constant 0.000000e+00 : f32
      %11 = vector.broadcast %cst_10 : f32 to vector<2x32xf32>
      %12 = arith.subf %11, %10 : vector<2x32xf32>
      %13 = math.exp %12 : vector<2x32xf32>
      %cst_11 = arith.constant 1.000000e+00 : f32
      %14 = vector.broadcast %cst_11 : f32 to vector<2x32xf32>
      %15 = arith.addf %14, %13 : vector<2x32xf32>
      %cst_12 = arith.constant 1.000000e+00 : f32
      %16 = vector.broadcast %cst_12 : f32 to vector<2x32xf32>
      %17 = arith.divf %16, %15 : vector<2x32xf32>
      %18 = arith.mulf %10, %17 : vector<2x32xf32>
      %19 = arith.truncf %18 : vector<2x32xf32> to vector<2x32xbf16>
      %c0_13 = arith.constant 0 : index
      %c0_14 = arith.constant 0 : index
      %20 = vector.load %arg5[%c0_13, %c0_14] : memref<2x32xbf16, #tpu.memory_space<vmem>>, vector<2x32xbf16>
      tpu.vector_store %arg5[%c0_13, %c0_14], %19 {strides = array<i32>} : memref<2x32xbf16, #tpu.memory_space<vmem>>, vector<2x32xbf16>,
    } else {
    }
    %c0 = arith.constant 0 : index
    %c0_1 = arith.constant 0 : index
    %3 = vector.load %arg5[%c0, %c0_1] : memref<2x32xbf16, #tpu.memory_space<vmem>>, vector<2x32xbf16>
    %c0_2 = arith.constant 0 : index
    %c0_3 = arith.constant 0 : index
    %4 = vector.load %arg2[%c0_2, %c0_3] : memref<32x384xbf16, #tpu.memory_space<vmem>>, vector<32x384xbf16>
    %cst = arith.constant dense<0.000000e+00> : vector<2x384xf32>
    %5 = tpu.matmul %3, %4, %cst {dimension_numbers = #tpu.dot_dimension_numbers<[1], [0], [0], [1], [0, 0, 1, 1], [], []>} : vector<2x32xbf16>, vector<32x384xbf16>, vector<2x384xf32> -> vector<2x384xf32>
    %c0_4 = arith.constant 0 : index
    %c0_5 = arith.constant 0 : index
    %6 = vector.load %arg3[%c0_4, %c0_5] : memref<1x384xf32, #tpu.memory_space<vmem>>, vector<1x384xf32>
    %7 = vector.broadcast %6 : vector<1x384xf32> to vector<2x384xf32>
    %8 = arith.addf %5, %7 : vector<2x384xf32>
    %c0_6 = arith.constant 0 : index
    %c0_7 = arith.constant 0 : index
    %9 = vector.load %arg4[%c0_6, %c0_7] : memref<2x384xf32, #tpu.memory_space<vmem>>, vector<2x384xf32>
    tpu.vector_store %arg4[%c0_6, %c0_7], %8 {strides = array<i32>} : memref<2x384xf32, #tpu.memory_space<vmem>>, vector<2x384xf32>,
    return
  }
  func.func @transform_0(%arg0: i32) -> (i32, i32) {
    %c0_i32 = arith.constant 0 : i32
    %c0_i32_0 = arith.constant 0 : i32
    %c0_i32_1 = arith.constant 0 : i32
    return %c0_i32, %c0_i32_0 : i32, i32
  }
  func.func @transform_1(%arg0: i32) -> (i32, i32) {
    %c0_i32 = arith.constant 0 : i32
    %c0_i32_0 = arith.constant 0 : i32
    return %c0_i32, %arg0 : i32, i32
  }
  func.func @transform_2(%arg0: i32) -> (i32, i32) {
    %c0_i32 = arith.constant 0 : i32
    %c0_i32_0 = arith.constant 0 : i32
    return %c0_i32, %arg0 : i32, i32
  }
  func.func @transform_3(%arg0: i32) -> (i32, i32) {
    %c0_i32 = arith.constant 0 : i32
    %c0_i32_0 = arith.constant 0 : i32
    return %c0_i32, %arg0 : i32, i32
  }
}

module attributes {stable_mosaic.version = 11 : i64} {
  func.func @_ln_qkv_kernel(%arg0: i32, %arg1: i32, %arg2: memref<1x8x32xf32, #tpu.memory_space<vmem>>, %arg3: memref<1x1x32xf32, #tpu.memory_space<vmem>>, %arg4: memref<1x1x32xf32, #tpu.memory_space<vmem>>, %arg5: memref<32x96xbf16, #tpu.memory_space<vmem>>, %arg6: memref<1x96xf32, #tpu.memory_space<vmem>>, %arg7: memref<1x8x32xbf16, #tpu.memory_space<vmem>>, %arg8: memref<1x8x32xbf16, #tpu.memory_space<vmem>>, %arg9: memref<1x8x32xbf16, #tpu.memory_space<vmem>>) attributes {dimension_semantics = [#tpu.dimension_semantics<parallel>, #tpu.dimension_semantics<parallel>], iteration_bounds = array<i64: 2, 1>, scalar_prefetch = 0 : i64, scratch_operands = 0 : i64, tpu.core_type = #tpu.core_type<tc>, window_params = [{transform_indices = @transform_0, window_bounds = array<i64: 1, 8, 32>}, {transform_indices = @transform_1, window_bounds = array<i64: 1, 1, 32>}, {transform_indices = @transform_2, window_bounds = array<i64: 1, 1, 32>}, {pipeline_mode = #tpu.pipeline_mode<synchronous>, transform_indices = @transform_3, window_bounds = array<i64: 32, 96>}, {pipeline_mode = #tpu.pipeline_mode<synchronous>, transform_indices = @transform_4, window_bounds = array<i64: 1, 96>}, {transform_indices = @transform_5, window_bounds = array<i64: 1, 8, 32>}, {transform_indices = @transform_6, window_bounds = array<i64: 1, 8, 32>}, {transform_indices = @transform_7, window_bounds = array<i64: 1, 8, 32>}]} {
    %c0 = arith.constant 0 : index
    %c0_0 = arith.constant 0 : index
    %c0_1 = arith.constant 0 : index
    %0 = vector.load %arg2[%c0, %c0_0, %c0_1] : memref<1x8x32xf32, #tpu.memory_space<vmem>>, vector<1x8x32xf32>
    %1 = vector.shape_cast %0 : vector<1x8x32xf32> to vector<8x32xf32>
    %cst = arith.constant dense<0.000000e+00> : vector<8xf32>
    %2 = vector.multi_reduction <add>, %1, %cst [1] : vector<8x32xf32> to vector<8xf32>
    %3 = vector.shape_cast %2 : vector<8xf32> to vector<8x1xf32>
    %cst_2 = arith.constant 3.200000e+01 : f32
    %4 = vector.broadcast %cst_2 : f32 to vector<8x1xf32>
    %5 = arith.divf %3, %4 : vector<8x1xf32>
    %6 = vector.broadcast %5 : vector<8x1xf32> to vector<8x32xf32>
    %7 = arith.subf %1, %6 : vector<8x32xf32>
    %8 = arith.mulf %7, %7 : vector<8x32xf32>
    %cst_3 = arith.constant dense<0.000000e+00> : vector<8xf32>
    %9 = vector.multi_reduction <add>, %8, %cst_3 [1] : vector<8x32xf32> to vector<8xf32>
    %10 = vector.shape_cast %9 : vector<8xf32> to vector<8x1xf32>
    %cst_4 = arith.constant 3.200000e+01 : f32
    %11 = vector.broadcast %cst_4 : f32 to vector<8x1xf32>
    %12 = arith.divf %10, %11 : vector<8x1xf32>
    %13 = vector.broadcast %5 : vector<8x1xf32> to vector<8x32xf32>
    %14 = arith.subf %1, %13 : vector<8x32xf32>
    %cst_5 = arith.constant 9.99999997E-7 : f32
    %15 = vector.broadcast %cst_5 : f32 to vector<8x1xf32>
    %16 = arith.addf %12, %15 : vector<8x1xf32>
    %17 = math.rsqrt %16 : vector<8x1xf32>
    %18 = vector.broadcast %17 : vector<8x1xf32> to vector<8x32xf32>
    %19 = arith.mulf %14, %18 : vector<8x32xf32>
    %c0_6 = arith.constant 0 : index
    %c0_7 = arith.constant 0 : index
    %c0_8 = arith.constant 0 : index
    %20 = vector.load %arg3[%c0_6, %c0_7, %c0_8] : memref<1x1x32xf32, #tpu.memory_space<vmem>>, vector<1x1x32xf32>
    %21 = vector.shape_cast %20 : vector<1x1x32xf32> to vector<1x32xf32>
    %cst_9 = arith.constant 1.000000e+00 : f32
    %22 = vector.broadcast %cst_9 : f32 to vector<1x32xf32>
    %23 = arith.addf %22, %21 : vector<1x32xf32>
    %24 = vector.broadcast %23 : vector<1x32xf32> to vector<8x32xf32>
    %25 = arith.mulf %19, %24 : vector<8x32xf32>
    %c0_10 = arith.constant 0 : index
    %c0_11 = arith.constant 0 : index
    %c0_12 = arith.constant 0 : index
    %26 = vector.load %arg4[%c0_10, %c0_11, %c0_12] : memref<1x1x32xf32, #tpu.memory_space<vmem>>, vector<1x1x32xf32>
    %27 = vector.shape_cast %26 : vector<1x1x32xf32> to vector<1x32xf32>
    %28 = vector.broadcast %27 : vector<1x32xf32> to vector<8x32xf32>
    %29 = arith.addf %25, %28 : vector<8x32xf32>
    %30 = arith.truncf %29 : vector<8x32xf32> to vector<8x32xbf16>
    %c0_13 = arith.constant 0 : index
    %c0_14 = arith.constant 0 : index
    %31 = vector.load %arg5[%c0_13, %c0_14] : memref<32x96xbf16, #tpu.memory_space<vmem>>, vector<32x96xbf16>
    %cst_15 = arith.constant dense<0.000000e+00> : vector<8x96xf32>
    %32 = tpu.matmul %30, %31, %cst_15 {dimension_numbers = #tpu.dot_dimension_numbers<[1], [0], [0], [1], [0, 0, 1, 1], [], []>} : vector<8x32xbf16>, vector<32x96xbf16>, vector<8x96xf32> -> vector<8x96xf32>
    %c0_16 = arith.constant 0 : index
    %c0_17 = arith.constant 0 : index
    %33 = vector.load %arg6[%c0_16, %c0_17] : memref<1x96xf32, #tpu.memory_space<vmem>>, vector<1x96xf32>
    %34 = vector.broadcast %33 : vector<1x96xf32> to vector<8x96xf32>
    %35 = arith.addf %32, %34 : vector<8x96xf32>
    %36 = vector.extract_strided_slice %35 {offsets = [0, 0], sizes = [8, 32], strides = [1, 1]} : vector<8x96xf32> to vector<8x32xf32>
    %37 = arith.truncf %36 : vector<8x32xf32> to vector<8x32xbf16>
    %c0_18 = arith.constant 0 : index
    %c0_19 = arith.constant 0 : index
    %c0_20 = arith.constant 0 : index
    %38 = vector.load %arg7[%c0_18, %c0_19, %c0_20] : memref<1x8x32xbf16, #tpu.memory_space<vmem>>, vector<1x8x32xbf16>
    %39 = vector.shape_cast %38 : vector<1x8x32xbf16> to vector<8x32xbf16>
    %40 = vector.shape_cast %37 : vector<8x32xbf16> to vector<1x8x32xbf16>
    tpu.vector_store %arg7[%c0_18, %c0_19, %c0_20], %40 {strides = array<i32>} : memref<1x8x32xbf16, #tpu.memory_space<vmem>>, vector<1x8x32xbf16>,
    %41 = vector.extract_strided_slice %35 {offsets = [0, 32], sizes = [8, 32], strides = [1, 1]} : vector<8x96xf32> to vector<8x32xf32>
    %42 = arith.truncf %41 : vector<8x32xf32> to vector<8x32xbf16>
    %c0_21 = arith.constant 0 : index
    %c0_22 = arith.constant 0 : index
    %c0_23 = arith.constant 0 : index
    %43 = vector.load %arg8[%c0_21, %c0_22, %c0_23] : memref<1x8x32xbf16, #tpu.memory_space<vmem>>, vector<1x8x32xbf16>
    %44 = vector.shape_cast %43 : vector<1x8x32xbf16> to vector<8x32xbf16>
    %45 = vector.shape_cast %42 : vector<8x32xbf16> to vector<1x8x32xbf16>
    tpu.vector_store %arg8[%c0_21, %c0_22, %c0_23], %45 {strides = array<i32>} : memref<1x8x32xbf16, #tpu.memory_space<vmem>>, vector<1x8x32xbf16>,
    %46 = vector.extract_strided_slice %35 {offsets = [0, 64], sizes = [8, 32], strides = [1, 1]} : vector<8x96xf32> to vector<8x32xf32>
    %47 = arith.truncf %46 : vector<8x32xf32> to vector<8x32xbf16>
    %c0_24 = arith.constant 0 : index
    %c0_25 = arith.constant 0 : index
    %c0_26 = arith.constant 0 : index
    %48 = vector.load %arg9[%c0_24, %c0_25, %c0_26] : memref<1x8x32xbf16, #tpu.memory_space<vmem>>, vector<1x8x32xbf16>
    %49 = vector.shape_cast %48 : vector<1x8x32xbf16> to vector<8x32xbf16>
    %50 = vector.shape_cast %47 : vector<8x32xbf16> to vector<1x8x32xbf16>
    tpu.vector_store %arg9[%c0_24, %c0_25, %c0_26], %50 {strides = array<i32>} : memref<1x8x32xbf16, #tpu.memory_space<vmem>>, vector<1x8x32xbf16>,
    return
  }
  func.func @transform_0(%arg0: i32, %arg1: i32) -> (i32, i32, i32) {
    %c0_i32 = arith.constant 0 : i32
    %c0_i32_0 = arith.constant 0 : i32
    return %arg0, %arg1, %c0_i32 : i32, i32, i32
  }
  func.func @transform_1(%arg0: i32, %arg1: i32) -> (i32, i32, i32) {
    %c0_i32 = arith.constant 0 : i32
    %c0_i32_0 = arith.constant 0 : i32
    %c0_i32_1 = arith.constant 0 : i32
    return %arg0, %c0_i32, %c0_i32_0 : i32, i32, i32
  }
  func.func @transform_2(%arg0: i32, %arg1: i32) -> (i32, i32, i32) {
    %c0_i32 = arith.constant 0 : i32
    %c0_i32_0 = arith.constant 0 : i32
    %c0_i32_1 = arith.constant 0 : i32
    return %arg0, %c0_i32, %c0_i32_0 : i32, i32, i32
  }
  func.func @transform_3(%arg0: i32, %arg1: i32) -> (i32, i32) {
    %c0_i32 = arith.constant 0 : i32
    %c0_i32_0 = arith.constant 0 : i32
    %c0_i32_1 = arith.constant 0 : i32
    return %c0_i32, %c0_i32_0 : i32, i32
  }
  func.func @transform_4(%arg0: i32, %arg1: i32) -> (i32, i32) {
    %c0_i32 = arith.constant 0 : i32
    %c0_i32_0 = arith.constant 0 : i32
    %c0_i32_1 = arith.constant 0 : i32
    return %c0_i32, %c0_i32_0 : i32, i32
  }
  func.func @transform_5(%arg0: i32, %arg1: i32) -> (i32, i32, i32) {
    %c0_i32 = arith.constant 0 : i32
    %c0_i32_0 = arith.constant 0 : i32
    return %arg0, %arg1, %c0_i32 : i32, i32, i32
  }
  func.func @transform_6(%arg0: i32, %arg1: i32) -> (i32, i32, i32) {
    %c0_i32 = arith.constant 0 : i32
    %c0_i32_0 = arith.constant 0 : i32
    return %arg0, %arg1, %c0_i32 : i32, i32, i32
  }
  func.func @transform_7(%arg0: i32, %arg1: i32) -> (i32, i32, i32) {
    %c0_i32 = arith.constant 0 : i32
    %c0_i32_0 = arith.constant 0 : i32
    return %arg0, %arg1, %c0_i32 : i32, i32, i32
  }
}

module attributes {stable_mosaic.version = 11 : i64} {
  func.func @_ln_qkv_kernel(%arg0: i32, %arg1: i32, %arg2: memref<1x64x32xf32, #tpu.memory_space<vmem>>, %arg3: memref<1x1x32xf32, #tpu.memory_space<vmem>>, %arg4: memref<1x1x32xf32, #tpu.memory_space<vmem>>, %arg5: memref<32x96xbf16, #tpu.memory_space<vmem>>, %arg6: memref<1x96xf32, #tpu.memory_space<vmem>>, %arg7: memref<1x64x32xbf16, #tpu.memory_space<vmem>>, %arg8: memref<1x64x32xbf16, #tpu.memory_space<vmem>>, %arg9: memref<1x64x32xbf16, #tpu.memory_space<vmem>>) attributes {dimension_semantics = [#tpu.dimension_semantics<parallel>, #tpu.dimension_semantics<parallel>], iteration_bounds = array<i64: 2, 1>, scalar_prefetch = 0 : i64, scratch_operands = 0 : i64, tpu.core_type = #tpu.core_type<tc>, window_params = [{transform_indices = @transform_0, window_bounds = array<i64: 1, 64, 32>}, {transform_indices = @transform_1, window_bounds = array<i64: 1, 1, 32>}, {transform_indices = @transform_2, window_bounds = array<i64: 1, 1, 32>}, {pipeline_mode = #tpu.pipeline_mode<synchronous>, transform_indices = @transform_3, window_bounds = array<i64: 32, 96>}, {pipeline_mode = #tpu.pipeline_mode<synchronous>, transform_indices = @transform_4, window_bounds = array<i64: 1, 96>}, {transform_indices = @transform_5, window_bounds = array<i64: 1, 64, 32>}, {transform_indices = @transform_6, window_bounds = array<i64: 1, 64, 32>}, {transform_indices = @transform_7, window_bounds = array<i64: 1, 64, 32>}]} {
    %c0 = arith.constant 0 : index
    %c0_0 = arith.constant 0 : index
    %c0_1 = arith.constant 0 : index
    %0 = vector.load %arg2[%c0, %c0_0, %c0_1] : memref<1x64x32xf32, #tpu.memory_space<vmem>>, vector<1x64x32xf32>
    %1 = vector.shape_cast %0 : vector<1x64x32xf32> to vector<64x32xf32>
    %cst = arith.constant dense<0.000000e+00> : vector<64xf32>
    %2 = vector.multi_reduction <add>, %1, %cst [1] : vector<64x32xf32> to vector<64xf32>
    %3 = vector.shape_cast %2 : vector<64xf32> to vector<64x1xf32>
    %cst_2 = arith.constant 3.200000e+01 : f32
    %4 = vector.broadcast %cst_2 : f32 to vector<64x1xf32>
    %5 = arith.divf %3, %4 : vector<64x1xf32>
    %6 = vector.broadcast %5 : vector<64x1xf32> to vector<64x32xf32>
    %7 = arith.subf %1, %6 : vector<64x32xf32>
    %8 = arith.mulf %7, %7 : vector<64x32xf32>
    %cst_3 = arith.constant dense<0.000000e+00> : vector<64xf32>
    %9 = vector.multi_reduction <add>, %8, %cst_3 [1] : vector<64x32xf32> to vector<64xf32>
    %10 = vector.shape_cast %9 : vector<64xf32> to vector<64x1xf32>
    %cst_4 = arith.constant 3.200000e+01 : f32
    %11 = vector.broadcast %cst_4 : f32 to vector<64x1xf32>
    %12 = arith.divf %10, %11 : vector<64x1xf32>
    %13 = vector.broadcast %5 : vector<64x1xf32> to vector<64x32xf32>
    %14 = arith.subf %1, %13 : vector<64x32xf32>
    %cst_5 = arith.constant 9.99999997E-7 : f32
    %15 = vector.broadcast %cst_5 : f32 to vector<64x1xf32>
    %16 = arith.addf %12, %15 : vector<64x1xf32>
    %17 = math.rsqrt %16 : vector<64x1xf32>
    %18 = vector.broadcast %17 : vector<64x1xf32> to vector<64x32xf32>
    %19 = arith.mulf %14, %18 : vector<64x32xf32>
    %c0_6 = arith.constant 0 : index
    %c0_7 = arith.constant 0 : index
    %c0_8 = arith.constant 0 : index
    %20 = vector.load %arg3[%c0_6, %c0_7, %c0_8] : memref<1x1x32xf32, #tpu.memory_space<vmem>>, vector<1x1x32xf32>
    %21 = vector.shape_cast %20 : vector<1x1x32xf32> to vector<1x32xf32>
    %cst_9 = arith.constant 1.000000e+00 : f32
    %22 = vector.broadcast %cst_9 : f32 to vector<1x32xf32>
    %23 = arith.addf %22, %21 : vector<1x32xf32>
    %24 = vector.broadcast %23 : vector<1x32xf32> to vector<64x32xf32>
    %25 = arith.mulf %19, %24 : vector<64x32xf32>
    %c0_10 = arith.constant 0 : index
    %c0_11 = arith.constant 0 : index
    %c0_12 = arith.constant 0 : index
    %26 = vector.load %arg4[%c0_10, %c0_11, %c0_12] : memref<1x1x32xf32, #tpu.memory_space<vmem>>, vector<1x1x32xf32>
    %27 = vector.shape_cast %26 : vector<1x1x32xf32> to vector<1x32xf32>
    %28 = vector.broadcast %27 : vector<1x32xf32> to vector<64x32xf32>
    %29 = arith.addf %25, %28 : vector<64x32xf32>
    %30 = arith.truncf %29 : vector<64x32xf32> to vector<64x32xbf16>
    %c0_13 = arith.constant 0 : index
    %c0_14 = arith.constant 0 : index
    %31 = vector.load %arg5[%c0_13, %c0_14] : memref<32x96xbf16, #tpu.memory_space<vmem>>, vector<32x96xbf16>
    %cst_15 = arith.constant dense<0.000000e+00> : vector<64x96xf32>
    %32 = tpu.matmul %30, %31, %cst_15 {dimension_numbers = #tpu.dot_dimension_numbers<[1], [0], [0], [1], [0, 0, 1, 1], [], []>} : vector<64x32xbf16>, vector<32x96xbf16>, vector<64x96xf32> -> vector<64x96xf32>
    %c0_16 = arith.constant 0 : index
    %c0_17 = arith.constant 0 : index
    %33 = vector.load %arg6[%c0_16, %c0_17] : memref<1x96xf32, #tpu.memory_space<vmem>>, vector<1x96xf32>
    %34 = vector.broadcast %33 : vector<1x96xf32> to vector<64x96xf32>
    %35 = arith.addf %32, %34 : vector<64x96xf32>
    %36 = vector.extract_strided_slice %35 {offsets = [0, 0], sizes = [64, 32], strides = [1, 1]} : vector<64x96xf32> to vector<64x32xf32>
    %37 = arith.truncf %36 : vector<64x32xf32> to vector<64x32xbf16>
    %c0_18 = arith.constant 0 : index
    %c0_19 = arith.constant 0 : index
    %c0_20 = arith.constant 0 : index
    %38 = vector.load %arg7[%c0_18, %c0_19, %c0_20] : memref<1x64x32xbf16, #tpu.memory_space<vmem>>, vector<1x64x32xbf16>
    %39 = vector.shape_cast %38 : vector<1x64x32xbf16> to vector<64x32xbf16>
    %40 = vector.shape_cast %37 : vector<64x32xbf16> to vector<1x64x32xbf16>
    tpu.vector_store %arg7[%c0_18, %c0_19, %c0_20], %40 {strides = array<i32>} : memref<1x64x32xbf16, #tpu.memory_space<vmem>>, vector<1x64x32xbf16>,
    %41 = vector.extract_strided_slice %35 {offsets = [0, 32], sizes = [64, 32], strides = [1, 1]} : vector<64x96xf32> to vector<64x32xf32>
    %42 = arith.truncf %41 : vector<64x32xf32> to vector<64x32xbf16>
    %c0_21 = arith.constant 0 : index
    %c0_22 = arith.constant 0 : index
    %c0_23 = arith.constant 0 : index
    %43 = vector.load %arg8[%c0_21, %c0_22, %c0_23] : memref<1x64x32xbf16, #tpu.memory_space<vmem>>, vector<1x64x32xbf16>
    %44 = vector.shape_cast %43 : vector<1x64x32xbf16> to vector<64x32xbf16>
    %45 = vector.shape_cast %42 : vector<64x32xbf16> to vector<1x64x32xbf16>
    tpu.vector_store %arg8[%c0_21, %c0_22, %c0_23], %45 {strides = array<i32>} : memref<1x64x32xbf16, #tpu.memory_space<vmem>>, vector<1x64x32xbf16>,
    %46 = vector.extract_strided_slice %35 {offsets = [0, 64], sizes = [64, 32], strides = [1, 1]} : vector<64x96xf32> to vector<64x32xf32>
    %47 = arith.truncf %46 : vector<64x32xf32> to vector<64x32xbf16>
    %c0_24 = arith.constant 0 : index
    %c0_25 = arith.constant 0 : index
    %c0_26 = arith.constant 0 : index
    %48 = vector.load %arg9[%c0_24, %c0_25, %c0_26] : memref<1x64x32xbf16, #tpu.memory_space<vmem>>, vector<1x64x32xbf16>
    %49 = vector.shape_cast %48 : vector<1x64x32xbf16> to vector<64x32xbf16>
    %50 = vector.shape_cast %47 : vector<64x32xbf16> to vector<1x64x32xbf16>
    tpu.vector_store %arg9[%c0_24, %c0_25, %c0_26], %50 {strides = array<i32>} : memref<1x64x32xbf16, #tpu.memory_space<vmem>>, vector<1x64x32xbf16>,
    return
  }
  func.func @transform_0(%arg0: i32, %arg1: i32) -> (i32, i32, i32) {
    %c0_i32 = arith.constant 0 : i32
    %c0_i32_0 = arith.constant 0 : i32
    return %arg0, %arg1, %c0_i32 : i32, i32, i32
  }
  func.func @transform_1(%arg0: i32, %arg1: i32) -> (i32, i32, i32) {
    %c0_i32 = arith.constant 0 : i32
    %c0_i32_0 = arith.constant 0 : i32
    %c0_i32_1 = arith.constant 0 : i32
    return %arg0, %c0_i32, %c0_i32_0 : i32, i32, i32
  }
  func.func @transform_2(%arg0: i32, %arg1: i32) -> (i32, i32, i32) {
    %c0_i32 = arith.constant 0 : i32
    %c0_i32_0 = arith.constant 0 : i32
    %c0_i32_1 = arith.constant 0 : i32
    return %arg0, %c0_i32, %c0_i32_0 : i32, i32, i32
  }
  func.func @transform_3(%arg0: i32, %arg1: i32) -> (i32, i32) {
    %c0_i32 = arith.constant 0 : i32
    %c0_i32_0 = arith.constant 0 : i32
    %c0_i32_1 = arith.constant 0 : i32
    return %c0_i32, %c0_i32_0 : i32, i32
  }
  func.func @transform_4(%arg0: i32, %arg1: i32) -> (i32, i32) {
    %c0_i32 = arith.constant 0 : i32
    %c0_i32_0 = arith.constant 0 : i32
    %c0_i32_1 = arith.constant 0 : i32
    return %c0_i32, %c0_i32_0 : i32, i32
  }
  func.func @transform_5(%arg0: i32, %arg1: i32) -> (i32, i32, i32) {
    %c0_i32 = arith.constant 0 : i32
    %c0_i32_0 = arith.constant 0 : i32
    return %arg0, %arg1, %c0_i32 : i32, i32, i32
  }
  func.func @transform_6(%arg0: i32, %arg1: i32) -> (i32, i32, i32) {
    %c0_i32 = arith.constant 0 : i32
    %c0_i32_0 = arith.constant 0 : i32
    return %arg0, %arg1, %c0_i32 : i32, i32, i32
  }
  func.func @transform_7(%arg0: i32, %arg1: i32) -> (i32, i32, i32) {
    %c0_i32 = arith.constant 0 : i32
    %c0_i32_0 = arith.constant 0 : i32
    return %arg0, %arg1, %c0_i32 : i32, i32, i32
  }
}

module attributes {stable_mosaic.version = 11 : i64} {
  func.func @_flash_attn_kernel(%arg0: i32, %arg1: i32, %arg2: i32, %arg3: memref<1x72x32xbf16, #tpu.memory_space<vmem>>, %arg4: memref<1x24x32xbf16, #tpu.memory_space<vmem>>, %arg5: memref<1x24x32xbf16, #tpu.memory_space<vmem>>, %arg6: memref<1x72x32xbf16, #tpu.memory_space<vmem>>, %arg7: memref<72x4xf32, #tpu.memory_space<vmem>>, %arg8: memref<72x4xf32, #tpu.memory_space<vmem>>, %arg9: memref<72x32xf32, #tpu.memory_space<vmem>>) attributes {dimension_semantics = [#tpu.dimension_semantics<parallel>, #tpu.dimension_semantics<parallel>, #tpu.dimension_semantics<arbitrary>], iteration_bounds = array<i64: 2, 1, 1>, scalar_prefetch = 0 : i64, scratch_operands = 3 : i64, tpu.core_type = #tpu.core_type<tc>, window_params = [{transform_indices = @transform_0, window_bounds = array<i64: 1, 72, 32>}, {transform_indices = @transform_1, window_bounds = array<i64: 1, 24, 32>}, {transform_indices = @transform_2, window_bounds = array<i64: 1, 24, 32>}, {transform_indices = @transform_3, window_bounds = array<i64: 1, 72, 32>}]} {
    %c0_i32 = arith.constant 0 : i32
    %0 = arith.cmpi eq, %arg2, %c0_i32 : i32
    %1 = arith.extui %0 : i1 to i32
    %c0_i32_0 = arith.constant 0 : i32
    %2 = arith.cmpi ne, %1, %c0_i32_0 : i32
    scf.if %2 {
      %cst_68 = arith.constant 0xFF800000 : f32
      %120 = vector.broadcast %cst_68 : f32 to vector<72x4xf32>
      %c0_69 = arith.constant 0 : index
      %c0_70 = arith.constant 0 : index
      %121 = vector.load %arg7[%c0_69, %c0_70] : memref<72x4xf32, #tpu.memory_space<vmem>>, vector<72x4xf32>
      tpu.vector_store %arg7[%c0_69, %c0_70], %120 {strides = array<i32>} : memref<72x4xf32, #tpu.memory_space<vmem>>, vector<72x4xf32>,
      %cst_71 = arith.constant 0.000000e+00 : f32
      %122 = vector.broadcast %cst_71 : f32 to vector<72x4xf32>
      %c0_72 = arith.constant 0 : index
      %c0_73 = arith.constant 0 : index
      %123 = vector.load %arg8[%c0_72, %c0_73] : memref<72x4xf32, #tpu.memory_space<vmem>>, vector<72x4xf32>
      tpu.vector_store %arg8[%c0_72, %c0_73], %122 {strides = array<i32>} : memref<72x4xf32, #tpu.memory_space<vmem>>, vector<72x4xf32>,
      %cst_74 = arith.constant 0.000000e+00 : f32
      %124 = vector.broadcast %cst_74 : f32 to vector<72x32xf32>
      %c0_75 = arith.constant 0 : index
      %c0_76 = arith.constant 0 : index
      %125 = vector.load %arg9[%c0_75, %c0_76] : memref<72x32xf32, #tpu.memory_space<vmem>>, vector<72x32xf32>
      tpu.vector_store %arg9[%c0_75, %c0_76], %124 {strides = array<i32>} : memref<72x32xf32, #tpu.memory_space<vmem>>, vector<72x32xf32>,
    } else {
    }
    %c0 = arith.constant 0 : index
    %c0_1 = arith.constant 0 : index
    %c0_2 = arith.constant 0 : index
    %3 = vector.load %arg3[%c0, %c0_1, %c0_2] : memref<1x72x32xbf16, #tpu.memory_space<vmem>>, vector<1x72x32xbf16>
    %4 = vector.shape_cast %3 : vector<1x72x32xbf16> to vector<72x32xbf16>
    %c0_3 = arith.constant 0 : index
    %c0_4 = arith.constant 0 : index
    %c0_5 = arith.constant 0 : index
    %5 = vector.load %arg4[%c0_3, %c0_4, %c0_5] : memref<1x24x32xbf16, #tpu.memory_space<vmem>>, vector<1x24x32xbf16>
    %6 = vector.shape_cast %5 : vector<1x24x32xbf16> to vector<24x32xbf16>
    %c0_6 = arith.constant 0 : index
    %c0_7 = arith.constant 0 : index
    %c0_8 = arith.constant 0 : index
    %7 = vector.load %arg5[%c0_6, %c0_7, %c0_8] : memref<1x24x32xbf16, #tpu.memory_space<vmem>>, vector<1x24x32xbf16>
    %8 = vector.shape_cast %7 : vector<1x24x32xbf16> to vector<24x32xbf16>
    %9 = vector.extract_strided_slice %4 {offsets = [0, 0], sizes = [72, 8], strides = [1, 1]} : vector<72x32xbf16> to vector<72x8xbf16>
    %10 = vector.extract_strided_slice %6 {offsets = [0, 0], sizes = [24, 8], strides = [1, 1]} : vector<24x32xbf16> to vector<24x8xbf16>
    %cst = arith.constant dense<0.000000e+00> : vector<72x24xf32>
    %11 = tpu.matmul %9, %10, %cst {dimension_numbers = #tpu.dot_dimension_numbers<[1], [1], [0], [0], [0, 0, 1, 0], [], []>} : vector<72x8xbf16>, vector<24x8xbf16>, vector<72x24xf32> -> vector<72x24xf32>
    %c0_9 = arith.constant 0 : index
    %c0_10 = arith.constant 0 : index
    %12 = vector.load %arg7[%c0_9, %c0_10] : memref<72x4xf32, #tpu.memory_space<vmem>>, vector<72x1xf32>
    %cst_11 = arith.constant dense<0xFF800000> : vector<72xf32>
    %13 = vector.multi_reduction <maximumf>, %11, %cst_11 [1] : vector<72x24xf32> to vector<72xf32>
    %14 = vector.shape_cast %13 : vector<72xf32> to vector<72x1xf32>
    %15 = arith.maximumf %12, %14 : vector<72x1xf32>
    %16 = arith.subf %12, %15 : vector<72x1xf32>
    %17 = math.exp %16 : vector<72x1xf32>
    %18 = vector.broadcast %15 : vector<72x1xf32> to vector<72x24xf32>
    %19 = arith.subf %11, %18 : vector<72x24xf32>
    %20 = math.exp %19 : vector<72x24xf32>
    %c0_12 = arith.constant 0 : index
    %c0_13 = arith.constant 0 : index
    %21 = vector.load %arg8[%c0_12, %c0_13] : memref<72x4xf32, #tpu.memory_space<vmem>>, vector<72x1xf32>
    %22 = arith.mulf %17, %21 : vector<72x1xf32>
    %cst_14 = arith.constant dense<0.000000e+00> : vector<72xf32>
    %23 = vector.multi_reduction <add>, %20, %cst_14 [1] : vector<72x24xf32> to vector<72xf32>
    %24 = vector.shape_cast %23 : vector<72xf32> to vector<72x1xf32>
    %25 = arith.addf %22, %24 : vector<72x1xf32>
    %c0_15 = arith.constant 0 : index
    %c0_16 = arith.constant 0 : index
    %26 = vector.load %arg8[%c0_15, %c0_16] : memref<72x4xf32, #tpu.memory_space<vmem>>, vector<72x1xf32>
    tpu.vector_store %arg8[%c0_15, %c0_16], %25 {strides = array<i32>} : memref<72x4xf32, #tpu.memory_space<vmem>>, vector<72x1xf32>,
    %c0_17 = arith.constant 0 : index
    %c0_18 = arith.constant 0 : index
    %27 = vector.load %arg9[%c0_17, %c0_18] : memref<72x32xf32, #tpu.memory_space<vmem>>, vector<72x8xf32>
    %28 = vector.broadcast %17 : vector<72x1xf32> to vector<72x8xf32>
    %29 = arith.mulf %28, %27 : vector<72x8xf32>
    %30 = arith.truncf %20 : vector<72x24xf32> to vector<72x24xbf16>
    %31 = vector.extract_strided_slice %8 {offsets = [0, 0], sizes = [24, 8], strides = [1, 1]} : vector<24x32xbf16> to vector<24x8xbf16>
    %cst_19 = arith.constant dense<0.000000e+00> : vector<72x8xf32>
    %32 = tpu.matmul %30, %31, %cst_19 {dimension_numbers = #tpu.dot_dimension_numbers<[1], [0], [0], [1], [0, 0, 1, 1], [], []>} : vector<72x24xbf16>, vector<24x8xbf16>, vector<72x8xf32> -> vector<72x8xf32>
    %33 = arith.addf %29, %32 : vector<72x8xf32>
    %c0_20 = arith.constant 0 : index
    %c0_21 = arith.constant 0 : index
    %34 = vector.load %arg9[%c0_20, %c0_21] : memref<72x32xf32, #tpu.memory_space<vmem>>, vector<72x8xf32>
    tpu.vector_store %arg9[%c0_20, %c0_21], %33 {strides = array<i32>} : memref<72x32xf32, #tpu.memory_space<vmem>>, vector<72x8xf32>,
    %c0_22 = arith.constant 0 : index
    %c0_23 = arith.constant 0 : index
    %35 = vector.load %arg7[%c0_22, %c0_23] : memref<72x4xf32, #tpu.memory_space<vmem>>, vector<72x1xf32>
    tpu.vector_store %arg7[%c0_22, %c0_23], %15 {strides = array<i32>} : memref<72x4xf32, #tpu.memory_space<vmem>>, vector<72x1xf32>,
    %36 = vector.extract_strided_slice %4 {offsets = [0, 8], sizes = [72, 8], strides = [1, 1]} : vector<72x32xbf16> to vector<72x8xbf16>
    %37 = vector.extract_strided_slice %6 {offsets = [0, 8], sizes = [24, 8], strides = [1, 1]} : vector<24x32xbf16> to vector<24x8xbf16>
    %cst_24 = arith.constant dense<0.000000e+00> : vector<72x24xf32>
    %38 = tpu.matmul %36, %37, %cst_24 {dimension_numbers = #tpu.dot_dimension_numbers<[1], [1], [0], [0], [0, 0, 1, 0], [], []>} : vector<72x8xbf16>, vector<24x8xbf16>, vector<72x24xf32> -> vector<72x24xf32>
    %c0_25 = arith.constant 0 : index
    %c1 = arith.constant 1 : index
    %39 = vector.load %arg7[%c0_25, %c1] : memref<72x4xf32, #tpu.memory_space<vmem>>, vector<72x1xf32>
    %cst_26 = arith.constant dense<0xFF800000> : vector<72xf32>
    %40 = vector.multi_reduction <maximumf>, %38, %cst_26 [1] : vector<72x24xf32> to vector<72xf32>
    %41 = vector.shape_cast %40 : vector<72xf32> to vector<72x1xf32>
    %42 = arith.maximumf %39, %41 : vector<72x1xf32>
    %43 = arith.subf %39, %42 : vector<72x1xf32>
    %44 = math.exp %43 : vector<72x1xf32>
    %45 = vector.broadcast %42 : vector<72x1xf32> to vector<72x24xf32>
    %46 = arith.subf %38, %45 : vector<72x24xf32>
    %47 = math.exp %46 : vector<72x24xf32>
    %c0_27 = arith.constant 0 : index
    %c1_28 = arith.constant 1 : index
    %48 = vector.load %arg8[%c0_27, %c1_28] : memref<72x4xf32, #tpu.memory_space<vmem>>, vector<72x1xf32>
    %49 = arith.mulf %44, %48 : vector<72x1xf32>
    %cst_29 = arith.constant dense<0.000000e+00> : vector<72xf32>
    %50 = vector.multi_reduction <add>, %47, %cst_29 [1] : vector<72x24xf32> to vector<72xf32>
    %51 = vector.shape_cast %50 : vector<72xf32> to vector<72x1xf32>
    %52 = arith.addf %49, %51 : vector<72x1xf32>
    %c0_30 = arith.constant 0 : index
    %c1_31 = arith.constant 1 : index
    %53 = vector.load %arg8[%c0_30, %c1_31] : memref<72x4xf32, #tpu.memory_space<vmem>>, vector<72x1xf32>
    tpu.vector_store %arg8[%c0_30, %c1_31], %52 {strides = array<i32>} : memref<72x4xf32, #tpu.memory_space<vmem>>, vector<72x1xf32>,
    %c0_32 = arith.constant 0 : index
    %c8 = arith.constant 8 : index
    %54 = vector.load %arg9[%c0_32, %c8] : memref<72x32xf32, #tpu.memory_space<vmem>>, vector<72x8xf32>
    %55 = vector.broadcast %44 : vector<72x1xf32> to vector<72x8xf32>
    %56 = arith.mulf %55, %54 : vector<72x8xf32>
    %57 = arith.truncf %47 : vector<72x24xf32> to vector<72x24xbf16>
    %58 = vector.extract_strided_slice %8 {offsets = [0, 8], sizes = [24, 8], strides = [1, 1]} : vector<24x32xbf16> to vector<24x8xbf16>
    %cst_33 = arith.constant dense<0.000000e+00> : vector<72x8xf32>
    %59 = tpu.matmul %57, %58, %cst_33 {dimension_numbers = #tpu.dot_dimension_numbers<[1], [0], [0], [1], [0, 0, 1, 1], [], []>} : vector<72x24xbf16>, vector<24x8xbf16>, vector<72x8xf32> -> vector<72x8xf32>
    %60 = arith.addf %56, %59 : vector<72x8xf32>
    %c0_34 = arith.constant 0 : index
    %c8_35 = arith.constant 8 : index
    %61 = vector.load %arg9[%c0_34, %c8_35] : memref<72x32xf32, #tpu.memory_space<vmem>>, vector<72x8xf32>
    tpu.vector_store %arg9[%c0_34, %c8_35], %60 {strides = array<i32>} : memref<72x32xf32, #tpu.memory_space<vmem>>, vector<72x8xf32>,
    %c0_36 = arith.constant 0 : index
    %c1_37 = arith.constant 1 : index
    %62 = vector.load %arg7[%c0_36, %c1_37] : memref<72x4xf32, #tpu.memory_space<vmem>>, vector<72x1xf32>
    tpu.vector_store %arg7[%c0_36, %c1_37], %42 {strides = array<i32>} : memref<72x4xf32, #tpu.memory_space<vmem>>, vector<72x1xf32>,
    %63 = vector.extract_strided_slice %4 {offsets = [0, 16], sizes = [72, 8], strides = [1, 1]} : vector<72x32xbf16> to vector<72x8xbf16>
    %64 = vector.extract_strided_slice %6 {offsets = [0, 16], sizes = [24, 8], strides = [1, 1]} : vector<24x32xbf16> to vector<24x8xbf16>
    %cst_38 = arith.constant dense<0.000000e+00> : vector<72x24xf32>
    %65 = tpu.matmul %63, %64, %cst_38 {dimension_numbers = #tpu.dot_dimension_numbers<[1], [1], [0], [0], [0, 0, 1, 0], [], []>} : vector<72x8xbf16>, vector<24x8xbf16>, vector<72x24xf32> -> vector<72x24xf32>
    %c0_39 = arith.constant 0 : index
    %c2 = arith.constant 2 : index
    %66 = vector.load %arg7[%c0_39, %c2] : memref<72x4xf32, #tpu.memory_space<vmem>>, vector<72x1xf32>
    %cst_40 = arith.constant dense<0xFF800000> : vector<72xf32>
    %67 = vector.multi_reduction <maximumf>, %65, %cst_40 [1] : vector<72x24xf32> to vector<72xf32>
    %68 = vector.shape_cast %67 : vector<72xf32> to vector<72x1xf32>
    %69 = arith.maximumf %66, %68 : vector<72x1xf32>
    %70 = arith.subf %66, %69 : vector<72x1xf32>
    %71 = math.exp %70 : vector<72x1xf32>
    %72 = vector.broadcast %69 : vector<72x1xf32> to vector<72x24xf32>
    %73 = arith.subf %65, %72 : vector<72x24xf32>
    %74 = math.exp %73 : vector<72x24xf32>
    %c0_41 = arith.constant 0 : index
    %c2_42 = arith.constant 2 : index
    %75 = vector.load %arg8[%c0_41, %c2_42] : memref<72x4xf32, #tpu.memory_space<vmem>>, vector<72x1xf32>
    %76 = arith.mulf %71, %75 : vector<72x1xf32>
    %cst_43 = arith.constant dense<0.000000e+00> : vector<72xf32>
    %77 = vector.multi_reduction <add>, %74, %cst_43 [1] : vector<72x24xf32> to vector<72xf32>
    %78 = vector.shape_cast %77 : vector<72xf32> to vector<72x1xf32>
    %79 = arith.addf %76, %78 : vector<72x1xf32>
    %c0_44 = arith.constant 0 : index
    %c2_45 = arith.constant 2 : index
    %80 = vector.load %arg8[%c0_44, %c2_45] : memref<72x4xf32, #tpu.memory_space<vmem>>, vector<72x1xf32>
    tpu.vector_store %arg8[%c0_44, %c2_45], %79 {strides = array<i32>} : memref<72x4xf32, #tpu.memory_space<vmem>>, vector<72x1xf32>,
    %c0_46 = arith.constant 0 : index
    %c16 = arith.constant 16 : index
    %81 = vector.load %arg9[%c0_46, %c16] : memref<72x32xf32, #tpu.memory_space<vmem>>, vector<72x8xf32>
    %82 = vector.broadcast %71 : vector<72x1xf32> to vector<72x8xf32>
    %83 = arith.mulf %82, %81 : vector<72x8xf32>
    %84 = arith.truncf %74 : vector<72x24xf32> to vector<72x24xbf16>
    %85 = vector.extract_strided_slice %8 {offsets = [0, 16], sizes = [24, 8], strides = [1, 1]} : vector<24x32xbf16> to vector<24x8xbf16>
    %cst_47 = arith.constant dense<0.000000e+00> : vector<72x8xf32>
    %86 = tpu.matmul %84, %85, %cst_47 {dimension_numbers = #tpu.dot_dimension_numbers<[1], [0], [0], [1], [0, 0, 1, 1], [], []>} : vector<72x24xbf16>, vector<24x8xbf16>, vector<72x8xf32> -> vector<72x8xf32>
    %87 = arith.addf %83, %86 : vector<72x8xf32>
    %c0_48 = arith.constant 0 : index
    %c16_49 = arith.constant 16 : index
    %88 = vector.load %arg9[%c0_48, %c16_49] : memref<72x32xf32, #tpu.memory_space<vmem>>, vector<72x8xf32>
    tpu.vector_store %arg9[%c0_48, %c16_49], %87 {strides = array<i32>} : memref<72x32xf32, #tpu.memory_space<vmem>>, vector<72x8xf32>,
    %c0_50 = arith.constant 0 : index
    %c2_51 = arith.constant 2 : index
    %89 = vector.load %arg7[%c0_50, %c2_51] : memref<72x4xf32, #tpu.memory_space<vmem>>, vector<72x1xf32>
    tpu.vector_store %arg7[%c0_50, %c2_51], %69 {strides = array<i32>} : memref<72x4xf32, #tpu.memory_space<vmem>>, vector<72x1xf32>,
    %90 = vector.extract_strided_slice %4 {offsets = [0, 24], sizes = [72, 8], strides = [1, 1]} : vector<72x32xbf16> to vector<72x8xbf16>
    %91 = vector.extract_strided_slice %6 {offsets = [0, 24], sizes = [24, 8], strides = [1, 1]} : vector<24x32xbf16> to vector<24x8xbf16>
    %cst_52 = arith.constant dense<0.000000e+00> : vector<72x24xf32>
    %92 = tpu.matmul %90, %91, %cst_52 {dimension_numbers = #tpu.dot_dimension_numbers<[1], [1], [0], [0], [0, 0, 1, 0], [], []>} : vector<72x8xbf16>, vector<24x8xbf16>, vector<72x24xf32> -> vector<72x24xf32>
    %c0_53 = arith.constant 0 : index
    %c3 = arith.constant 3 : index
    %93 = vector.load %arg7[%c0_53, %c3] : memref<72x4xf32, #tpu.memory_space<vmem>>, vector<72x1xf32>
    %cst_54 = arith.constant dense<0xFF800000> : vector<72xf32>
    %94 = vector.multi_reduction <maximumf>, %92, %cst_54 [1] : vector<72x24xf32> to vector<72xf32>
    %95 = vector.shape_cast %94 : vector<72xf32> to vector<72x1xf32>
    %96 = arith.maximumf %93, %95 : vector<72x1xf32>
    %97 = arith.subf %93, %96 : vector<72x1xf32>
    %98 = math.exp %97 : vector<72x1xf32>
    %99 = vector.broadcast %96 : vector<72x1xf32> to vector<72x24xf32>
    %100 = arith.subf %92, %99 : vector<72x24xf32>
    %101 = math.exp %100 : vector<72x24xf32>
    %c0_55 = arith.constant 0 : index
    %c3_56 = arith.constant 3 : index
    %102 = vector.load %arg8[%c0_55, %c3_56] : memref<72x4xf32, #tpu.memory_space<vmem>>, vector<72x1xf32>
    %103 = arith.mulf %98, %102 : vector<72x1xf32>
    %cst_57 = arith.constant dense<0.000000e+00> : vector<72xf32>
    %104 = vector.multi_reduction <add>, %101, %cst_57 [1] : vector<72x24xf32> to vector<72xf32>
    %105 = vector.shape_cast %104 : vector<72xf32> to vector<72x1xf32>
    %106 = arith.addf %103, %105 : vector<72x1xf32>
    %c0_58 = arith.constant 0 : index
    %c3_59 = arith.constant 3 : index
    %107 = vector.load %arg8[%c0_58, %c3_59] : memref<72x4xf32, #tpu.memory_space<vmem>>, vector<72x1xf32>
    tpu.vector_store %arg8[%c0_58, %c3_59], %106 {strides = array<i32>} : memref<72x4xf32, #tpu.memory_space<vmem>>, vector<72x1xf32>,
    %c0_60 = arith.constant 0 : index
    %c24 = arith.constant 24 : index
    %108 = vector.load %arg9[%c0_60, %c24] : memref<72x32xf32, #tpu.memory_space<vmem>>, vector<72x8xf32>
    %109 = vector.broadcast %98 : vector<72x1xf32> to vector<72x8xf32>
    %110 = arith.mulf %109, %108 : vector<72x8xf32>
    %111 = arith.truncf %101 : vector<72x24xf32> to vector<72x24xbf16>
    %112 = vector.extract_strided_slice %8 {offsets = [0, 24], sizes = [24, 8], strides = [1, 1]} : vector<24x32xbf16> to vector<24x8xbf16>
    %cst_61 = arith.constant dense<0.000000e+00> : vector<72x8xf32>
    %113 = tpu.matmul %111, %112, %cst_61 {dimension_numbers = #tpu.dot_dimension_numbers<[1], [0], [0], [1], [0, 0, 1, 1], [], []>} : vector<72x24xbf16>, vector<24x8xbf16>, vector<72x8xf32> -> vector<72x8xf32>
    %114 = arith.addf %110, %113 : vector<72x8xf32>
    %c0_62 = arith.constant 0 : index
    %c24_63 = arith.constant 24 : index
    %115 = vector.load %arg9[%c0_62, %c24_63] : memref<72x32xf32, #tpu.memory_space<vmem>>, vector<72x8xf32>
    tpu.vector_store %arg9[%c0_62, %c24_63], %114 {strides = array<i32>} : memref<72x32xf32, #tpu.memory_space<vmem>>, vector<72x8xf32>,
    %c0_64 = arith.constant 0 : index
    %c3_65 = arith.constant 3 : index
    %116 = vector.load %arg7[%c0_64, %c3_65] : memref<72x4xf32, #tpu.memory_space<vmem>>, vector<72x1xf32>
    tpu.vector_store %arg7[%c0_64, %c3_65], %96 {strides = array<i32>} : memref<72x4xf32, #tpu.memory_space<vmem>>, vector<72x1xf32>,
    %c0_i32_66 = arith.constant 0 : i32
    %117 = arith.cmpi eq, %arg2, %c0_i32_66 : i32
    %118 = arith.extui %117 : i1 to i32
    %c0_i32_67 = arith.constant 0 : i32
    %119 = arith.cmpi ne, %118, %c0_i32_67 : i32
    scf.if %119 {
      %c0_68 = arith.constant 0 : index
      %c0_69 = arith.constant 0 : index
      %120 = vector.load %arg9[%c0_68, %c0_69] : memref<72x32xf32, #tpu.memory_space<vmem>>, vector<72x8xf32>
      %c0_70 = arith.constant 0 : index
      %c0_71 = arith.constant 0 : index
      %121 = vector.load %arg8[%c0_70, %c0_71] : memref<72x4xf32, #tpu.memory_space<vmem>>, vector<72x1xf32>
      %122 = tpu.reciprocal %121 {approx = true} : vector<72x1xf32> -> vector<72x1xf32>
      %123 = vector.broadcast %122 : vector<72x1xf32> to vector<72x8xf32>
      %124 = arith.mulf %120, %123 : vector<72x8xf32>
      %125 = arith.truncf %124 : vector<72x8xf32> to vector<72x8xbf16>
      %c0_72 = arith.constant 0 : index
      %c0_73 = arith.constant 0 : index
      %c0_74 = arith.constant 0 : index
      %126 = vector.load %arg6[%c0_72, %c0_73, %c0_74] : memref<1x72x32xbf16, #tpu.memory_space<vmem>>, vector<1x72x8xbf16>
      %127 = vector.shape_cast %126 : vector<1x72x8xbf16> to vector<72x8xbf16>
      %128 = vector.shape_cast %125 : vector<72x8xbf16> to vector<1x72x8xbf16>
      tpu.vector_store %arg6[%c0_72, %c0_73, %c0_74], %128 {strides = array<i32>} : memref<1x72x32xbf16, #tpu.memory_space<vmem>>, vector<1x72x8xbf16>,
      %c0_75 = arith.constant 0 : index
      %c8_76 = arith.constant 8 : index
      %129 = vector.load %arg9[%c0_75, %c8_76] : memref<72x32xf32, #tpu.memory_space<vmem>>, vector<72x8xf32>
      %c0_77 = arith.constant 0 : index
      %c1_78 = arith.constant 1 : index
      %130 = vector.load %arg8[%c0_77, %c1_78] : memref<72x4xf32, #tpu.memory_space<vmem>>, vector<72x1xf32>
      %131 = tpu.reciprocal %130 {approx = true} : vector<72x1xf32> -> vector<72x1xf32>
      %132 = vector.broadcast %131 : vector<72x1xf32> to vector<72x8xf32>
      %133 = arith.mulf %129, %132 : vector<72x8xf32>
      %134 = arith.truncf %133 : vector<72x8xf32> to vector<72x8xbf16>
      %c0_79 = arith.constant 0 : index
      %c0_80 = arith.constant 0 : index
      %c8_81 = arith.constant 8 : index
      %135 = vector.load %arg6[%c0_79, %c0_80, %c8_81] : memref<1x72x32xbf16, #tpu.memory_space<vmem>>, vector<1x72x8xbf16>
      %136 = vector.shape_cast %135 : vector<1x72x8xbf16> to vector<72x8xbf16>
      %137 = vector.shape_cast %134 : vector<72x8xbf16> to vector<1x72x8xbf16>
      tpu.vector_store %arg6[%c0_79, %c0_80, %c8_81], %137 {strides = array<i32>} : memref<1x72x32xbf16, #tpu.memory_space<vmem>>, vector<1x72x8xbf16>,
      %c0_82 = arith.constant 0 : index
      %c16_83 = arith.constant 16 : index
      %138 = vector.load %arg9[%c0_82, %c16_83] : memref<72x32xf32, #tpu.memory_space<vmem>>, vector<72x8xf32>
      %c0_84 = arith.constant 0 : index
      %c2_85 = arith.constant 2 : index
      %139 = vector.load %arg8[%c0_84, %c2_85] : memref<72x4xf32, #tpu.memory_space<vmem>>, vector<72x1xf32>
      %140 = tpu.reciprocal %139 {approx = true} : vector<72x1xf32> -> vector<72x1xf32>
      %141 = vector.broadcast %140 : vector<72x1xf32> to vector<72x8xf32>
      %142 = arith.mulf %138, %141 : vector<72x8xf32>
      %143 = arith.truncf %142 : vector<72x8xf32> to vector<72x8xbf16>
      %c0_86 = arith.constant 0 : index
      %c0_87 = arith.constant 0 : index
      %c16_88 = arith.constant 16 : index
      %144 = vector.load %arg6[%c0_86, %c0_87, %c16_88] : memref<1x72x32xbf16, #tpu.memory_space<vmem>>, vector<1x72x8xbf16>
      %145 = vector.shape_cast %144 : vector<1x72x8xbf16> to vector<72x8xbf16>
      %146 = vector.shape_cast %143 : vector<72x8xbf16> to vector<1x72x8xbf16>
      tpu.vector_store %arg6[%c0_86, %c0_87, %c16_88], %146 {strides = array<i32>} : memref<1x72x32xbf16, #tpu.memory_space<vmem>>, vector<1x72x8xbf16>,
      %c0_89 = arith.constant 0 : index
      %c24_90 = arith.constant 24 : index
      %147 = vector.load %arg9[%c0_89, %c24_90] : memref<72x32xf32, #tpu.memory_space<vmem>>, vector<72x8xf32>
      %c0_91 = arith.constant 0 : index
      %c3_92 = arith.constant 3 : index
      %148 = vector.load %arg8[%c0_91, %c3_92] : memref<72x4xf32, #tpu.memory_space<vmem>>, vector<72x1xf32>
      %149 = tpu.reciprocal %148 {approx = true} : vector<72x1xf32> -> vector<72x1xf32>
      %150 = vector.broadcast %149 : vector<72x1xf32> to vector<72x8xf32>
      %151 = arith.mulf %147, %150 : vector<72x8xf32>
      %152 = arith.truncf %151 : vector<72x8xf32> to vector<72x8xbf16>
      %c0_93 = arith.constant 0 : index
      %c0_94 = arith.constant 0 : index
      %c24_95 = arith.constant 24 : index
      %153 = vector.load %arg6[%c0_93, %c0_94, %c24_95] : memref<1x72x32xbf16, #tpu.memory_space<vmem>>, vector<1x72x8xbf16>
      %154 = vector.shape_cast %153 : vector<1x72x8xbf16> to vector<72x8xbf16>
      %155 = vector.shape_cast %152 : vector<72x8xbf16> to vector<1x72x8xbf16>
      tpu.vector_store %arg6[%c0_93, %c0_94, %c24_95], %155 {strides = array<i32>} : memref<1x72x32xbf16, #tpu.memory_space<vmem>>, vector<1x72x8xbf16>,
    } else {
    }
    return
  }
  func.func @transform_0(%arg0: i32, %arg1: i32, %arg2: i32) -> (i32, i32, i32) {
    %c0_i32 = arith.constant 0 : i32
    %c0_i32_0 = arith.constant 0 : i32
    return %arg0, %arg1, %c0_i32 : i32, i32, i32
  }
  func.func @transform_1(%arg0: i32, %arg1: i32, %arg2: i32) -> (i32, i32, i32) {
    %c0_i32 = arith.constant 0 : i32
    %c0_i32_0 = arith.constant 0 : i32
    return %arg0, %arg2, %c0_i32 : i32, i32, i32
  }
  func.func @transform_2(%arg0: i32, %arg1: i32, %arg2: i32) -> (i32, i32, i32) {
    %c0_i32 = arith.constant 0 : i32
    %c0_i32_0 = arith.constant 0 : i32
    return %arg0, %arg2, %c0_i32 : i32, i32, i32
  }
  func.func @transform_3(%arg0: i32, %arg1: i32, %arg2: i32) -> (i32, i32, i32) {
    %c0_i32 = arith.constant 0 : i32
    %c0_i32_0 = arith.constant 0 : i32
    return %arg0, %arg1, %c0_i32 : i32, i32, i32
  }
}

module attributes {stable_mosaic.version = 11 : i64} {
  func.func @_attn_out_ff_kernel(%arg0: i32, %arg1: i32, %arg2: i32, %arg3: memref<1x64x32xbf16, #tpu.memory_space<vmem>>, %arg4: memref<32x32xbf16, #tpu.memory_space<vmem>>, %arg5: memref<1x32xf32, #tpu.memory_space<vmem>>, %arg6: memref<1x1x32xf32, #tpu.memory_space<vmem>>, %arg7: memref<1x64x32xf32, #tpu.memory_space<vmem>>, %arg8: memref<1x1x32xf32, #tpu.memory_space<vmem>>, %arg9: memref<1x1x32xf32, #tpu.memory_space<vmem>>, %arg10: memref<1x1x32xf32, #tpu.memory_space<vmem>>, %arg11: memref<32x128xbf16, #tpu.memory_space<vmem>>, %arg12: memref<1x128xf32, #tpu.memory_space<vmem>>, %arg13: memref<128x32xbf16, #tpu.memory_space<vmem>>, %arg14: memref<1x32xf32, #tpu.memory_space<vmem>>, %arg15: memref<1x64x32xf32, #tpu.memory_space<vmem>>, %arg16: memref<64x32xf32, #tpu.memory_space<vmem>>, %arg17: memref<64x32xbf16, #tpu.memory_space<vmem>>, %arg18: memref<64x32xf32, #tpu.memory_space<vmem>>) attributes {dimension_semantics = [#tpu.dimension_semantics<parallel>, #tpu.dimension_semantics<parallel>, #tpu.dimension_semantics<arbitrary>], iteration_bounds = array<i64: 2, 1, 1>, scalar_prefetch = 0 : i64, scratch_operands = 3 : i64, tpu.core_type = #tpu.core_type<tc>, window_params = [{transform_indices = @transform_0, window_bounds = array<i64: 1, 64, 32>}, {pipeline_mode = #tpu.pipeline_mode<synchronous>, transform_indices = @transform_1, window_bounds = array<i64: 32, 32>}, {pipeline_mode = #tpu.pipeline_mode<synchronous>, transform_indices = @transform_2, window_bounds = array<i64: 1, 32>}, {transform_indices = @transform_3, window_bounds = array<i64: 1, 1, 32>}, {transform_indices = @transform_4, window_bounds = array<i64: 1, 64, 32>}, {transform_indices = @transform_5, window_bounds = array<i64: 1, 1, 32>}, {transform_indices = @transform_6, window_bounds = array<i64: 1, 1, 32>}, {transform_indices = @transform_7, window_bounds = array<i64: 1, 1, 32>}, {pipeline_mode = #tpu.pipeline_mode<synchronous>, transform_indices = @transform_8, window_bounds = array<i64: 32, 128>}, {pipeline_mode = #tpu.pipeline_mode<synchronous>, transform_indices = @transform_9, window_bounds = array<i64: 1, 128>}, {pipeline_mode = #tpu.pipeline_mode<synchronous>, transform_indices = @transform_10, window_bounds = array<i64: 128, 32>}, {pipeline_mode = #tpu.pipeline_mode<synchronous>, transform_indices = @transform_11, window_bounds = array<i64: 1, 32>}, {transform_indices = @transform_12, window_bounds = array<i64: 1, 64, 32>}]} {
    %c0_i32 = arith.constant 0 : i32
    %0 = arith.cmpi eq, %arg2, %c0_i32 : i32
    %1 = arith.extui %0 : i1 to i32
    %c0_i32_0 = arith.constant 0 : i32
    %2 = arith.cmpi ne, %1, %c0_i32_0 : i32
    scf.if %2 {
      %c0_19 = arith.constant 0 : index
      %c0_20 = arith.constant 0 : index
      %c0_21 = arith.constant 0 : index
      %31 = vector.load %arg3[%c0_19, %c0_20, %c0_21] : memref<1x64x32xbf16, #tpu.memory_space<vmem>>, vector<1x64x32xbf16>
      %32 = vector.shape_cast %31 : vector<1x64x32xbf16> to vector<64x32xbf16>
      %c0_22 = arith.constant 0 : index
      %c0_23 = arith.constant 0 : index
      %33 = vector.load %arg4[%c0_22, %c0_23] : memref<32x32xbf16, #tpu.memory_space<vmem>>, vector<32x32xbf16>
      %cst_24 = arith.constant dense<0.000000e+00> : vector<64x32xf32>
      %34 = tpu.matmul %32, %33, %cst_24 {dimension_numbers = #tpu.dot_dimension_numbers<[1], [0], [0], [1], [0, 0, 1, 1], [], []>} : vector<64x32xbf16>, vector<32x32xbf16>, vector<64x32xf32> -> vector<64x32xf32>
      %c0_25 = arith.constant 0 : index
      %c0_26 = arith.constant 0 : index
      %35 = vector.load %arg5[%c0_25, %c0_26] : memref<1x32xf32, #tpu.memory_space<vmem>>, vector<1x32xf32>
      %36 = vector.broadcast %35 : vector<1x32xf32> to vector<64x32xf32>
      %37 = arith.addf %34, %36 : vector<64x32xf32>
      %c0_27 = arith.constant 0 : index
      %c0_28 = arith.constant 0 : index
      %c0_29 = arith.constant 0 : index
      %38 = vector.load %arg7[%c0_27, %c0_28, %c0_29] : memref<1x64x32xf32, #tpu.memory_space<vmem>>, vector<1x64x32xf32>
      %39 = vector.shape_cast %38 : vector<1x64x32xf32> to vector<64x32xf32>
      %c0_30 = arith.constant 0 : index
      %c0_31 = arith.constant 0 : index
      %c0_32 = arith.constant 0 : index
      %40 = vector.load %arg6[%c0_30, %c0_31, %c0_32] : memref<1x1x32xf32, #tpu.memory_space<vmem>>, vector<1x1x32xf32>
      %41 = vector.shape_cast %40 : vector<1x1x32xf32> to vector<1x32xf32>
      %42 = vector.broadcast %41 : vector<1x32xf32> to vector<64x32xf32>
      %43 = arith.mulf %42, %37 : vector<64x32xf32>
      %44 = arith.addf %39, %43 : vector<64x32xf32>
      %c0_33 = arith.constant 0 : index
      %c0_34 = arith.constant 0 : index
      %45 = vector.load %arg16[%c0_33, %c0_34] : memref<64x32xf32, #tpu.memory_space<vmem>>, vector<64x32xf32>
      tpu.vector_store %arg16[%c0_33, %c0_34], %44 {strides = array<i32>} : memref<64x32xf32, #tpu.memory_space<vmem>>, vector<64x32xf32>,
      %cst_35 = arith.constant dense<0.000000e+00> : vector<64xf32>
      %46 = vector.multi_reduction <add>, %44, %cst_35 [1] : vector<64x32xf32> to vector<64xf32>
      %47 = vector.shape_cast %46 : vector<64xf32> to vector<64x1xf32>
      %cst_36 = arith.constant 3.200000e+01 : f32
      %48 = vector.broadcast %cst_36 : f32 to vector<64x1xf32>
      %49 = arith.divf %47, %48 : vector<64x1xf32>
      %50 = vector.broadcast %49 : vector<64x1xf32> to vector<64x32xf32>
      %51 = arith.subf %44, %50 : vector<64x32xf32>
      %52 = arith.mulf %51, %51 : vector<64x32xf32>
      %cst_37 = arith.constant dense<0.000000e+00> : vector<64xf32>
      %53 = vector.multi_reduction <add>, %52, %cst_37 [1] : vector<64x32xf32> to vector<64xf32>
      %54 = vector.shape_cast %53 : vector<64xf32> to vector<64x1xf32>
      %cst_38 = arith.constant 3.200000e+01 : f32
      %55 = vector.broadcast %cst_38 : f32 to vector<64x1xf32>
      %56 = arith.divf %54, %55 : vector<64x1xf32>
      %57 = vector.broadcast %49 : vector<64x1xf32> to vector<64x32xf32>
      %58 = arith.subf %44, %57 : vector<64x32xf32>
      %cst_39 = arith.constant 9.99999997E-7 : f32
      %59 = vector.broadcast %cst_39 : f32 to vector<64x1xf32>
      %60 = arith.addf %56, %59 : vector<64x1xf32>
      %61 = math.rsqrt %60 : vector<64x1xf32>
      %62 = vector.broadcast %61 : vector<64x1xf32> to vector<64x32xf32>
      %63 = arith.mulf %58, %62 : vector<64x32xf32>
      %c0_40 = arith.constant 0 : index
      %c0_41 = arith.constant 0 : index
      %c0_42 = arith.constant 0 : index
      %64 = vector.load %arg8[%c0_40, %c0_41, %c0_42] : memref<1x1x32xf32, #tpu.memory_space<vmem>>, vector<1x1x32xf32>
      %65 = vector.shape_cast %64 : vector<1x1x32xf32> to vector<1x32xf32>
      %cst_43 = arith.constant 1.000000e+00 : f32
      %66 = vector.broadcast %cst_43 : f32 to vector<1x32xf32>
      %67 = arith.addf %66, %65 : vector<1x32xf32>
      %68 = vector.broadcast %67 : vector<1x32xf32> to vector<64x32xf32>
      %69 = arith.mulf %63, %68 : vector<64x32xf32>
      %c0_44 = arith.constant 0 : index
      %c0_45 = arith.constant 0 : index
      %c0_46 = arith.constant 0 : index
      %70 = vector.load %arg9[%c0_44, %c0_45, %c0_46] : memref<1x1x32xf32, #tpu.memory_space<vmem>>, vector<1x1x32xf32>
      %71 = vector.shape_cast %70 : vector<1x1x32xf32> to vector<1x32xf32>
      %72 = vector.broadcast %71 : vector<1x32xf32> to vector<64x32xf32>
      %73 = arith.addf %69, %72 : vector<64x32xf32>
      %74 = arith.truncf %73 : vector<64x32xf32> to vector<64x32xbf16>
      %c0_47 = arith.constant 0 : index
      %c0_48 = arith.constant 0 : index
      %75 = vector.load %arg17[%c0_47, %c0_48] : memref<64x32xbf16, #tpu.memory_space<vmem>>, vector<64x32xbf16>
      tpu.vector_store %arg17[%c0_47, %c0_48], %74 {strides = array<i32>} : memref<64x32xbf16, #tpu.memory_space<vmem>>, vector<64x32xbf16>,
      %cst_49 = arith.constant 0.000000e+00 : f32
      %76 = vector.broadcast %cst_49 : f32 to vector<64x32xf32>
      %c0_50 = arith.constant 0 : index
      %c0_51 = arith.constant 0 : index
      %77 = vector.load %arg18[%c0_50, %c0_51] : memref<64x32xf32, #tpu.memory_space<vmem>>, vector<64x32xf32>
      tpu.vector_store %arg18[%c0_50, %c0_51], %76 {strides = array<i32>} : memref<64x32xf32, #tpu.memory_space<vmem>>, vector<64x32xf32>,
    } else {
    }
    %c0 = arith.constant 0 : index
    %c0_1 = arith.constant 0 : index
    %3 = vector.load %arg17[%c0, %c0_1] : memref<64x32xbf16, #tpu.memory_space<vmem>>, vector<64x32xbf16>
    %c0_2 = arith.constant 0 : index
    %c0_3 = arith.constant 0 : index
    %4 = vector.load %arg11[%c0_2, %c0_3] : memref<32x128xbf16, #tpu.memory_space<vmem>>, vector<32x128xbf16>
    %cst = arith.constant dense<0.000000e+00> : vector<64x128xf32>
    %5 = tpu.matmul %3, %4, %cst {dimension_numbers = #tpu.dot_dimension_numbers<[1], [0], [0], [1], [0, 0, 1, 1], [], []>} : vector<64x32xbf16>, vector<32x128xbf16>, vector<64x128xf32> -> vector<64x128xf32>
    %c0_4 = arith.constant 0 : index
    %c0_5 = arith.constant 0 : index
    %6 = vector.load %arg12[%c0_4, %c0_5] : memref<1x128xf32, #tpu.memory_space<vmem>>, vector<1x128xf32>
    %7 = vector.broadcast %6 : vector<1x128xf32> to vector<64x128xf32>
    %8 = arith.addf %5, %7 : vector<64x128xf32>
    %cst_6 = arith.constant 5.000000e-01 : f32
    %9 = vector.broadcast %cst_6 : f32 to vector<64x128xf32>
    %10 = arith.mulf %9, %8 : vector<64x128xf32>
    %11 = arith.mulf %8, %8 : vector<64x128xf32>
    %12 = arith.mulf %11, %8 : vector<64x128xf32>
    %cst_7 = arith.constant 4.471500e-02 : f32
    %13 = vector.broadcast %cst_7 : f32 to vector<64x128xf32>
    %14 = arith.mulf %13, %12 : vector<64x128xf32>
    %15 = arith.addf %8, %14 : vector<64x128xf32>
    %cst_8 = arith.constant 0.797884583 : f32
    %16 = vector.broadcast %cst_8 : f32 to vector<64x128xf32>
    %17 = arith.mulf %16, %15 : vector<64x128xf32>
    %18 = math.tanh %17 : vector<64x128xf32>
    %cst_9 = arith.constant 1.000000e+00 : f32
    %19 = vector.broadcast %cst_9 : f32 to vector<64x128xf32>
    %20 = arith.addf %19, %18 : vector<64x128xf32>
    %21 = arith.mulf %10, %20 : vector<64x128xf32>
    %c0_10 = arith.constant 0 : index
    %c0_11 = arith.constant 0 : index
    %22 = vector.load %arg18[%c0_10, %c0_11] : memref<64x32xf32, #tpu.memory_space<vmem>>, vector<64x32xf32>
    %23 = arith.truncf %21 : vector<64x128xf32> to vector<64x128xbf16>
    %c0_12 = arith.constant 0 : index
    %c0_13 = arith.constant 0 : index
    %24 = vector.load %arg13[%c0_12, %c0_13] : memref<128x32xbf16, #tpu.memory_space<vmem>>, vector<128x32xbf16>
    %cst_14 = arith.constant dense<0.000000e+00> : vector<64x32xf32>
    %25 = tpu.matmul %23, %24, %cst_14 {dimension_numbers = #tpu.dot_dimension_numbers<[1], [0], [0], [1], [0, 0, 1, 1], [], []>} : vector<64x128xbf16>, vector<128x32xbf16>, vector<64x32xf32> -> vector<64x32xf32>
    %26 = arith.addf %22, %25 : vector<64x32xf32>
    %c0_15 = arith.constant 0 : index
    %c0_16 = arith.constant 0 : index
    %27 = vector.load %arg18[%c0_15, %c0_16] : memref<64x32xf32, #tpu.memory_space<vmem>>, vector<64x32xf32>
    tpu.vector_store %arg18[%c0_15, %c0_16], %26 {strides = array<i32>} : memref<64x32xf32, #tpu.memory_space<vmem>>, vector<64x32xf32>,
    %c0_i32_17 = arith.constant 0 : i32
    %28 = arith.cmpi eq, %arg2, %c0_i32_17 : i32
    %29 = arith.extui %28 : i1 to i32
    %c0_i32_18 = arith.constant 0 : i32
    %30 = arith.cmpi ne, %29, %c0_i32_18 : i32
    scf.if %30 {
      %c0_19 = arith.constant 0 : index
      %c0_20 = arith.constant 0 : index
      %31 = vector.load %arg16[%c0_19, %c0_20] : memref<64x32xf32, #tpu.memory_space<vmem>>, vector<64x32xf32>
      %c0_21 = arith.constant 0 : index
      %c0_22 = arith.constant 0 : index
      %c0_23 = arith.constant 0 : index
      %32 = vector.load %arg10[%c0_21, %c0_22, %c0_23] : memref<1x1x32xf32, #tpu.memory_space<vmem>>, vector<1x1x32xf32>
      %33 = vector.shape_cast %32 : vector<1x1x32xf32> to vector<1x32xf32>
      %c0_24 = arith.constant 0 : index
      %c0_25 = arith.constant 0 : index
      %34 = vector.load %arg18[%c0_24, %c0_25] : memref<64x32xf32, #tpu.memory_space<vmem>>, vector<64x32xf32>
      %c0_26 = arith.constant 0 : index
      %c0_27 = arith.constant 0 : index
      %35 = vector.load %arg14[%c0_26, %c0_27] : memref<1x32xf32, #tpu.memory_space<vmem>>, vector<1x32xf32>
      %36 = vector.broadcast %35 : vector<1x32xf32> to vector<64x32xf32>
      %37 = arith.addf %34, %36 : vector<64x32xf32>
      %38 = vector.broadcast %33 : vector<1x32xf32> to vector<64x32xf32>
      %39 = arith.mulf %38, %37 : vector<64x32xf32>
      %40 = arith.addf %31, %39 : vector<64x32xf32>
      %c0_28 = arith.constant 0 : index
      %c0_29 = arith.constant 0 : index
      %c0_30 = arith.constant 0 : index
      %41 = vector.load %arg15[%c0_28, %c0_29, %c0_30] : memref<1x64x32xf32, #tpu.memory_space<vmem>>, vector<1x64x32xf32>
      %42 = vector.shape_cast %41 : vector<1x64x32xf32> to vector<64x32xf32>
      %43 = vector.shape_cast %40 : vector<64x32xf32> to vector<1x64x32xf32>
      tpu.vector_store %arg15[%c0_28, %c0_29, %c0_30], %43 {strides = array<i32>} : memref<1x64x32xf32, #tpu.memory_space<vmem>>, vector<1x64x32xf32>,
    } else {
    }
    return
  }
  func.func @transform_0(%arg0: i32, %arg1: i32, %arg2: i32) -> (i32, i32, i32) {
    %c0_i32 = arith.constant 0 : i32
    %c0_i32_0 = arith.constant 0 : i32
    return %arg0, %arg1, %c0_i32 : i32, i32, i32
  }
  func.func @transform_1(%arg0: i32, %arg1: i32, %arg2: i32) -> (i32, i32) {
    %c0_i32 = arith.constant 0 : i32
    %c0_i32_0 = arith.constant 0 : i32
    %c0_i32_1 = arith.constant 0 : i32
    return %c0_i32, %c0_i32_0 : i32, i32
  }
  func.func @transform_2(%arg0: i32, %arg1: i32, %arg2: i32) -> (i32, i32) {
    %c0_i32 = arith.constant 0 : i32
    %c0_i32_0 = arith.constant 0 : i32
    %c0_i32_1 = arith.constant 0 : i32
    return %c0_i32, %c0_i32_0 : i32, i32
  }
  func.func @transform_3(%arg0: i32, %arg1: i32, %arg2: i32) -> (i32, i32, i32) {
    %c0_i32 = arith.constant 0 : i32
    %c0_i32_0 = arith.constant 0 : i32
    %c0_i32_1 = arith.constant 0 : i32
    return %arg0, %c0_i32, %c0_i32_0 : i32, i32, i32
  }
  func.func @transform_4(%arg0: i32, %arg1: i32, %arg2: i32) -> (i32, i32, i32) {
    %c0_i32 = arith.constant 0 : i32
    %c0_i32_0 = arith.constant 0 : i32
    return %arg0, %arg1, %c0_i32 : i32, i32, i32
  }
  func.func @transform_5(%arg0: i32, %arg1: i32, %arg2: i32) -> (i32, i32, i32) {
    %c0_i32 = arith.constant 0 : i32
    %c0_i32_0 = arith.constant 0 : i32
    %c0_i32_1 = arith.constant 0 : i32
    return %arg0, %c0_i32, %c0_i32_0 : i32, i32, i32
  }
  func.func @transform_6(%arg0: i32, %arg1: i32, %arg2: i32) -> (i32, i32, i32) {
    %c0_i32 = arith.constant 0 : i32
    %c0_i32_0 = arith.constant 0 : i32
    %c0_i32_1 = arith.constant 0 : i32
    return %arg0, %c0_i32, %c0_i32_0 : i32, i32, i32
  }
  func.func @transform_7(%arg0: i32, %arg1: i32, %arg2: i32) -> (i32, i32, i32) {
    %c0_i32 = arith.constant 0 : i32
    %c0_i32_0 = arith.constant 0 : i32
    %c0_i32_1 = arith.constant 0 : i32
    return %arg0, %c0_i32, %c0_i32_0 : i32, i32, i32
  }
  func.func @transform_8(%arg0: i32, %arg1: i32, %arg2: i32) -> (i32, i32) {
    %c0_i32 = arith.constant 0 : i32
    %c0_i32_0 = arith.constant 0 : i32
    return %c0_i32, %arg2 : i32, i32
  }
  func.func @transform_9(%arg0: i32, %arg1: i32, %arg2: i32) -> (i32, i32) {
    %c0_i32 = arith.constant 0 : i32
    %c0_i32_0 = arith.constant 0 : i32
    return %c0_i32, %arg2 : i32, i32
  }
  func.func @transform_10(%arg0: i32, %arg1: i32, %arg2: i32) -> (i32, i32) {
    %c0_i32 = arith.constant 0 : i32
    %c0_i32_0 = arith.constant 0 : i32
    return %arg2, %c0_i32 : i32, i32
  }
  func.func @transform_11(%arg0: i32, %arg1: i32, %arg2: i32) -> (i32, i32) {
    %c0_i32 = arith.constant 0 : i32
    %c0_i32_0 = arith.constant 0 : i32
    %c0_i32_1 = arith.constant 0 : i32
    return %c0_i32, %c0_i32_0 : i32, i32
  }
  func.func @transform_12(%arg0: i32, %arg1: i32, %arg2: i32) -> (i32, i32, i32) {
    %c0_i32 = arith.constant 0 : i32
    %c0_i32_0 = arith.constant 0 : i32
    return %arg0, %arg1, %c0_i32 : i32, i32, i32
  }
}

module attributes {stable_mosaic.version = 11 : i64} {
  func.func @_attn_out_ff_kernel(%arg0: i32, %arg1: i32, %arg2: i32, %arg3: memref<1x8x32xbf16, #tpu.memory_space<vmem>>, %arg4: memref<32x32xbf16, #tpu.memory_space<vmem>>, %arg5: memref<1x32xf32, #tpu.memory_space<vmem>>, %arg6: memref<1x1x32xf32, #tpu.memory_space<vmem>>, %arg7: memref<1x8x32xf32, #tpu.memory_space<vmem>>, %arg8: memref<1x1x32xf32, #tpu.memory_space<vmem>>, %arg9: memref<1x1x32xf32, #tpu.memory_space<vmem>>, %arg10: memref<1x1x32xf32, #tpu.memory_space<vmem>>, %arg11: memref<32x128xbf16, #tpu.memory_space<vmem>>, %arg12: memref<1x128xf32, #tpu.memory_space<vmem>>, %arg13: memref<128x32xbf16, #tpu.memory_space<vmem>>, %arg14: memref<1x32xf32, #tpu.memory_space<vmem>>, %arg15: memref<1x8x32xf32, #tpu.memory_space<vmem>>, %arg16: memref<8x32xf32, #tpu.memory_space<vmem>>, %arg17: memref<8x32xbf16, #tpu.memory_space<vmem>>, %arg18: memref<8x32xf32, #tpu.memory_space<vmem>>) attributes {dimension_semantics = [#tpu.dimension_semantics<parallel>, #tpu.dimension_semantics<parallel>, #tpu.dimension_semantics<arbitrary>], iteration_bounds = array<i64: 2, 1, 1>, scalar_prefetch = 0 : i64, scratch_operands = 3 : i64, tpu.core_type = #tpu.core_type<tc>, window_params = [{transform_indices = @transform_0, window_bounds = array<i64: 1, 8, 32>}, {pipeline_mode = #tpu.pipeline_mode<synchronous>, transform_indices = @transform_1, window_bounds = array<i64: 32, 32>}, {pipeline_mode = #tpu.pipeline_mode<synchronous>, transform_indices = @transform_2, window_bounds = array<i64: 1, 32>}, {transform_indices = @transform_3, window_bounds = array<i64: 1, 1, 32>}, {transform_indices = @transform_4, window_bounds = array<i64: 1, 8, 32>}, {transform_indices = @transform_5, window_bounds = array<i64: 1, 1, 32>}, {transform_indices = @transform_6, window_bounds = array<i64: 1, 1, 32>}, {transform_indices = @transform_7, window_bounds = array<i64: 1, 1, 32>}, {pipeline_mode = #tpu.pipeline_mode<synchronous>, transform_indices = @transform_8, window_bounds = array<i64: 32, 128>}, {pipeline_mode = #tpu.pipeline_mode<synchronous>, transform_indices = @transform_9, window_bounds = array<i64: 1, 128>}, {pipeline_mode = #tpu.pipeline_mode<synchronous>, transform_indices = @transform_10, window_bounds = array<i64: 128, 32>}, {pipeline_mode = #tpu.pipeline_mode<synchronous>, transform_indices = @transform_11, window_bounds = array<i64: 1, 32>}, {transform_indices = @transform_12, window_bounds = array<i64: 1, 8, 32>}]} {
    %c0_i32 = arith.constant 0 : i32
    %0 = arith.cmpi eq, %arg2, %c0_i32 : i32
    %1 = arith.extui %0 : i1 to i32
    %c0_i32_0 = arith.constant 0 : i32
    %2 = arith.cmpi ne, %1, %c0_i32_0 : i32
    scf.if %2 {
      %c0_19 = arith.constant 0 : index
      %c0_20 = arith.constant 0 : index
      %c0_21 = arith.constant 0 : index
      %31 = vector.load %arg3[%c0_19, %c0_20, %c0_21] : memref<1x8x32xbf16, #tpu.memory_space<vmem>>, vector<1x8x32xbf16>
      %32 = vector.shape_cast %31 : vector<1x8x32xbf16> to vector<8x32xbf16>
      %c0_22 = arith.constant 0 : index
      %c0_23 = arith.constant 0 : index
      %33 = vector.load %arg4[%c0_22, %c0_23] : memref<32x32xbf16, #tpu.memory_space<vmem>>, vector<32x32xbf16>
      %cst_24 = arith.constant dense<0.000000e+00> : vector<8x32xf32>
      %34 = tpu.matmul %32, %33, %cst_24 {dimension_numbers = #tpu.dot_dimension_numbers<[1], [0], [0], [1], [0, 0, 1, 1], [], []>} : vector<8x32xbf16>, vector<32x32xbf16>, vector<8x32xf32> -> vector<8x32xf32>
      %c0_25 = arith.constant 0 : index
      %c0_26 = arith.constant 0 : index
      %35 = vector.load %arg5[%c0_25, %c0_26] : memref<1x32xf32, #tpu.memory_space<vmem>>, vector<1x32xf32>
      %36 = vector.broadcast %35 : vector<1x32xf32> to vector<8x32xf32>
      %37 = arith.addf %34, %36 : vector<8x32xf32>
      %c0_27 = arith.constant 0 : index
      %c0_28 = arith.constant 0 : index
      %c0_29 = arith.constant 0 : index
      %38 = vector.load %arg7[%c0_27, %c0_28, %c0_29] : memref<1x8x32xf32, #tpu.memory_space<vmem>>, vector<1x8x32xf32>
      %39 = vector.shape_cast %38 : vector<1x8x32xf32> to vector<8x32xf32>
      %c0_30 = arith.constant 0 : index
      %c0_31 = arith.constant 0 : index
      %c0_32 = arith.constant 0 : index
      %40 = vector.load %arg6[%c0_30, %c0_31, %c0_32] : memref<1x1x32xf32, #tpu.memory_space<vmem>>, vector<1x1x32xf32>
      %41 = vector.shape_cast %40 : vector<1x1x32xf32> to vector<1x32xf32>
      %42 = vector.broadcast %41 : vector<1x32xf32> to vector<8x32xf32>
      %43 = arith.mulf %42, %37 : vector<8x32xf32>
      %44 = arith.addf %39, %43 : vector<8x32xf32>
      %c0_33 = arith.constant 0 : index
      %c0_34 = arith.constant 0 : index
      %45 = vector.load %arg16[%c0_33, %c0_34] : memref<8x32xf32, #tpu.memory_space<vmem>>, vector<8x32xf32>
      tpu.vector_store %arg16[%c0_33, %c0_34], %44 {strides = array<i32>} : memref<8x32xf32, #tpu.memory_space<vmem>>, vector<8x32xf32>,
      %cst_35 = arith.constant dense<0.000000e+00> : vector<8xf32>
      %46 = vector.multi_reduction <add>, %44, %cst_35 [1] : vector<8x32xf32> to vector<8xf32>
      %47 = vector.shape_cast %46 : vector<8xf32> to vector<8x1xf32>
      %cst_36 = arith.constant 3.200000e+01 : f32
      %48 = vector.broadcast %cst_36 : f32 to vector<8x1xf32>
      %49 = arith.divf %47, %48 : vector<8x1xf32>
      %50 = vector.broadcast %49 : vector<8x1xf32> to vector<8x32xf32>
      %51 = arith.subf %44, %50 : vector<8x32xf32>
      %52 = arith.mulf %51, %51 : vector<8x32xf32>
      %cst_37 = arith.constant dense<0.000000e+00> : vector<8xf32>
      %53 = vector.multi_reduction <add>, %52, %cst_37 [1] : vector<8x32xf32> to vector<8xf32>
      %54 = vector.shape_cast %53 : vector<8xf32> to vector<8x1xf32>
      %cst_38 = arith.constant 3.200000e+01 : f32
      %55 = vector.broadcast %cst_38 : f32 to vector<8x1xf32>
      %56 = arith.divf %54, %55 : vector<8x1xf32>
      %57 = vector.broadcast %49 : vector<8x1xf32> to vector<8x32xf32>
      %58 = arith.subf %44, %57 : vector<8x32xf32>
      %cst_39 = arith.constant 9.99999997E-7 : f32
      %59 = vector.broadcast %cst_39 : f32 to vector<8x1xf32>
      %60 = arith.addf %56, %59 : vector<8x1xf32>
      %61 = math.rsqrt %60 : vector<8x1xf32>
      %62 = vector.broadcast %61 : vector<8x1xf32> to vector<8x32xf32>
      %63 = arith.mulf %58, %62 : vector<8x32xf32>
      %c0_40 = arith.constant 0 : index
      %c0_41 = arith.constant 0 : index
      %c0_42 = arith.constant 0 : index
      %64 = vector.load %arg8[%c0_40, %c0_41, %c0_42] : memref<1x1x32xf32, #tpu.memory_space<vmem>>, vector<1x1x32xf32>
      %65 = vector.shape_cast %64 : vector<1x1x32xf32> to vector<1x32xf32>
      %cst_43 = arith.constant 1.000000e+00 : f32
      %66 = vector.broadcast %cst_43 : f32 to vector<1x32xf32>
      %67 = arith.addf %66, %65 : vector<1x32xf32>
      %68 = vector.broadcast %67 : vector<1x32xf32> to vector<8x32xf32>
      %69 = arith.mulf %63, %68 : vector<8x32xf32>
      %c0_44 = arith.constant 0 : index
      %c0_45 = arith.constant 0 : index
      %c0_46 = arith.constant 0 : index
      %70 = vector.load %arg9[%c0_44, %c0_45, %c0_46] : memref<1x1x32xf32, #tpu.memory_space<vmem>>, vector<1x1x32xf32>
      %71 = vector.shape_cast %70 : vector<1x1x32xf32> to vector<1x32xf32>
      %72 = vector.broadcast %71 : vector<1x32xf32> to vector<8x32xf32>
      %73 = arith.addf %69, %72 : vector<8x32xf32>
      %74 = arith.truncf %73 : vector<8x32xf32> to vector<8x32xbf16>
      %c0_47 = arith.constant 0 : index
      %c0_48 = arith.constant 0 : index
      %75 = vector.load %arg17[%c0_47, %c0_48] : memref<8x32xbf16, #tpu.memory_space<vmem>>, vector<8x32xbf16>
      tpu.vector_store %arg17[%c0_47, %c0_48], %74 {strides = array<i32>} : memref<8x32xbf16, #tpu.memory_space<vmem>>, vector<8x32xbf16>,
      %cst_49 = arith.constant 0.000000e+00 : f32
      %76 = vector.broadcast %cst_49 : f32 to vector<8x32xf32>
      %c0_50 = arith.constant 0 : index
      %c0_51 = arith.constant 0 : index
      %77 = vector.load %arg18[%c0_50, %c0_51] : memref<8x32xf32, #tpu.memory_space<vmem>>, vector<8x32xf32>
      tpu.vector_store %arg18[%c0_50, %c0_51], %76 {strides = array<i32>} : memref<8x32xf32, #tpu.memory_space<vmem>>, vector<8x32xf32>,
    } else {
    }
    %c0 = arith.constant 0 : index
    %c0_1 = arith.constant 0 : index
    %3 = vector.load %arg17[%c0, %c0_1] : memref<8x32xbf16, #tpu.memory_space<vmem>>, vector<8x32xbf16>
    %c0_2 = arith.constant 0 : index
    %c0_3 = arith.constant 0 : index
    %4 = vector.load %arg11[%c0_2, %c0_3] : memref<32x128xbf16, #tpu.memory_space<vmem>>, vector<32x128xbf16>
    %cst = arith.constant dense<0.000000e+00> : vector<8x128xf32>
    %5 = tpu.matmul %3, %4, %cst {dimension_numbers = #tpu.dot_dimension_numbers<[1], [0], [0], [1], [0, 0, 1, 1], [], []>} : vector<8x32xbf16>, vector<32x128xbf16>, vector<8x128xf32> -> vector<8x128xf32>
    %c0_4 = arith.constant 0 : index
    %c0_5 = arith.constant 0 : index
    %6 = vector.load %arg12[%c0_4, %c0_5] : memref<1x128xf32, #tpu.memory_space<vmem>>, vector<1x128xf32>
    %7 = vector.broadcast %6 : vector<1x128xf32> to vector<8x128xf32>
    %8 = arith.addf %5, %7 : vector<8x128xf32>
    %cst_6 = arith.constant 5.000000e-01 : f32
    %9 = vector.broadcast %cst_6 : f32 to vector<8x128xf32>
    %10 = arith.mulf %9, %8 : vector<8x128xf32>
    %11 = arith.mulf %8, %8 : vector<8x128xf32>
    %12 = arith.mulf %11, %8 : vector<8x128xf32>
    %cst_7 = arith.constant 4.471500e-02 : f32
    %13 = vector.broadcast %cst_7 : f32 to vector<8x128xf32>
    %14 = arith.mulf %13, %12 : vector<8x128xf32>
    %15 = arith.addf %8, %14 : vector<8x128xf32>
    %cst_8 = arith.constant 0.797884583 : f32
    %16 = vector.broadcast %cst_8 : f32 to vector<8x128xf32>
    %17 = arith.mulf %16, %15 : vector<8x128xf32>
    %18 = math.tanh %17 : vector<8x128xf32>
    %cst_9 = arith.constant 1.000000e+00 : f32
    %19 = vector.broadcast %cst_9 : f32 to vector<8x128xf32>
    %20 = arith.addf %19, %18 : vector<8x128xf32>
    %21 = arith.mulf %10, %20 : vector<8x128xf32>
    %c0_10 = arith.constant 0 : index
    %c0_11 = arith.constant 0 : index
    %22 = vector.load %arg18[%c0_10, %c0_11] : memref<8x32xf32, #tpu.memory_space<vmem>>, vector<8x32xf32>
    %23 = arith.truncf %21 : vector<8x128xf32> to vector<8x128xbf16>
    %c0_12 = arith.constant 0 : index
    %c0_13 = arith.constant 0 : index
    %24 = vector.load %arg13[%c0_12, %c0_13] : memref<128x32xbf16, #tpu.memory_space<vmem>>, vector<128x32xbf16>
    %cst_14 = arith.constant dense<0.000000e+00> : vector<8x32xf32>
    %25 = tpu.matmul %23, %24, %cst_14 {dimension_numbers = #tpu.dot_dimension_numbers<[1], [0], [0], [1], [0, 0, 1, 1], [], []>} : vector<8x128xbf16>, vector<128x32xbf16>, vector<8x32xf32> -> vector<8x32xf32>
    %26 = arith.addf %22, %25 : vector<8x32xf32>
    %c0_15 = arith.constant 0 : index
    %c0_16 = arith.constant 0 : index
    %27 = vector.load %arg18[%c0_15, %c0_16] : memref<8x32xf32, #tpu.memory_space<vmem>>, vector<8x32xf32>
    tpu.vector_store %arg18[%c0_15, %c0_16], %26 {strides = array<i32>} : memref<8x32xf32, #tpu.memory_space<vmem>>, vector<8x32xf32>,
    %c0_i32_17 = arith.constant 0 : i32
    %28 = arith.cmpi eq, %arg2, %c0_i32_17 : i32
    %29 = arith.extui %28 : i1 to i32
    %c0_i32_18 = arith.constant 0 : i32
    %30 = arith.cmpi ne, %29, %c0_i32_18 : i32
    scf.if %30 {
      %c0_19 = arith.constant 0 : index
      %c0_20 = arith.constant 0 : index
      %31 = vector.load %arg16[%c0_19, %c0_20] : memref<8x32xf32, #tpu.memory_space<vmem>>, vector<8x32xf32>
      %c0_21 = arith.constant 0 : index
      %c0_22 = arith.constant 0 : index
      %c0_23 = arith.constant 0 : index
      %32 = vector.load %arg10[%c0_21, %c0_22, %c0_23] : memref<1x1x32xf32, #tpu.memory_space<vmem>>, vector<1x1x32xf32>
      %33 = vector.shape_cast %32 : vector<1x1x32xf32> to vector<1x32xf32>
      %c0_24 = arith.constant 0 : index
      %c0_25 = arith.constant 0 : index
      %34 = vector.load %arg18[%c0_24, %c0_25] : memref<8x32xf32, #tpu.memory_space<vmem>>, vector<8x32xf32>
      %c0_26 = arith.constant 0 : index
      %c0_27 = arith.constant 0 : index
      %35 = vector.load %arg14[%c0_26, %c0_27] : memref<1x32xf32, #tpu.memory_space<vmem>>, vector<1x32xf32>
      %36 = vector.broadcast %35 : vector<1x32xf32> to vector<8x32xf32>
      %37 = arith.addf %34, %36 : vector<8x32xf32>
      %38 = vector.broadcast %33 : vector<1x32xf32> to vector<8x32xf32>
      %39 = arith.mulf %38, %37 : vector<8x32xf32>
      %40 = arith.addf %31, %39 : vector<8x32xf32>
      %c0_28 = arith.constant 0 : index
      %c0_29 = arith.constant 0 : index
      %c0_30 = arith.constant 0 : index
      %41 = vector.load %arg15[%c0_28, %c0_29, %c0_30] : memref<1x8x32xf32, #tpu.memory_space<vmem>>, vector<1x8x32xf32>
      %42 = vector.shape_cast %41 : vector<1x8x32xf32> to vector<8x32xf32>
      %43 = vector.shape_cast %40 : vector<8x32xf32> to vector<1x8x32xf32>
      tpu.vector_store %arg15[%c0_28, %c0_29, %c0_30], %43 {strides = array<i32>} : memref<1x8x32xf32, #tpu.memory_space<vmem>>, vector<1x8x32xf32>,
    } else {
    }
    return
  }
  func.func @transform_0(%arg0: i32, %arg1: i32, %arg2: i32) -> (i32, i32, i32) {
    %c0_i32 = arith.constant 0 : i32
    %c0_i32_0 = arith.constant 0 : i32
    return %arg0, %arg1, %c0_i32 : i32, i32, i32
  }
  func.func @transform_1(%arg0: i32, %arg1: i32, %arg2: i32) -> (i32, i32) {
    %c0_i32 = arith.constant 0 : i32
    %c0_i32_0 = arith.constant 0 : i32
    %c0_i32_1 = arith.constant 0 : i32
    return %c0_i32, %c0_i32_0 : i32, i32
  }
  func.func @transform_2(%arg0: i32, %arg1: i32, %arg2: i32) -> (i32, i32) {
    %c0_i32 = arith.constant 0 : i32
    %c0_i32_0 = arith.constant 0 : i32
    %c0_i32_1 = arith.constant 0 : i32
    return %c0_i32, %c0_i32_0 : i32, i32
  }
  func.func @transform_3(%arg0: i32, %arg1: i32, %arg2: i32) -> (i32, i32, i32) {
    %c0_i32 = arith.constant 0 : i32
    %c0_i32_0 = arith.constant 0 : i32
    %c0_i32_1 = arith.constant 0 : i32
    return %arg0, %c0_i32, %c0_i32_0 : i32, i32, i32
  }
  func.func @transform_4(%arg0: i32, %arg1: i32, %arg2: i32) -> (i32, i32, i32) {
    %c0_i32 = arith.constant 0 : i32
    %c0_i32_0 = arith.constant 0 : i32
    return %arg0, %arg1, %c0_i32 : i32, i32, i32
  }
  func.func @transform_5(%arg0: i32, %arg1: i32, %arg2: i32) -> (i32, i32, i32) {
    %c0_i32 = arith.constant 0 : i32
    %c0_i32_0 = arith.constant 0 : i32
    %c0_i32_1 = arith.constant 0 : i32
    return %arg0, %c0_i32, %c0_i32_0 : i32, i32, i32
  }
  func.func @transform_6(%arg0: i32, %arg1: i32, %arg2: i32) -> (i32, i32, i32) {
    %c0_i32 = arith.constant 0 : i32
    %c0_i32_0 = arith.constant 0 : i32
    %c0_i32_1 = arith.constant 0 : i32
    return %arg0, %c0_i32, %c0_i32_0 : i32, i32, i32
  }
  func.func @transform_7(%arg0: i32, %arg1: i32, %arg2: i32) -> (i32, i32, i32) {
    %c0_i32 = arith.constant 0 : i32
    %c0_i32_0 = arith.constant 0 : i32
    %c0_i32_1 = arith.constant 0 : i32
    return %arg0, %c0_i32, %c0_i32_0 : i32, i32, i32
  }
  func.func @transform_8(%arg0: i32, %arg1: i32, %arg2: i32) -> (i32, i32) {
    %c0_i32 = arith.constant 0 : i32
    %c0_i32_0 = arith.constant 0 : i32
    return %c0_i32, %arg2 : i32, i32
  }
  func.func @transform_9(%arg0: i32, %arg1: i32, %arg2: i32) -> (i32, i32) {
    %c0_i32 = arith.constant 0 : i32
    %c0_i32_0 = arith.constant 0 : i32
    return %c0_i32, %arg2 : i32, i32
  }
  func.func @transform_10(%arg0: i32, %arg1: i32, %arg2: i32) -> (i32, i32) {
    %c0_i32 = arith.constant 0 : i32
    %c0_i32_0 = arith.constant 0 : i32
    return %arg2, %c0_i32 : i32, i32
  }
  func.func @transform_11(%arg0: i32, %arg1: i32, %arg2: i32) -> (i32, i32) {
    %c0_i32 = arith.constant 0 : i32
    %c0_i32_0 = arith.constant 0 : i32
    %c0_i32_1 = arith.constant 0 : i32
    return %c0_i32, %c0_i32_0 : i32, i32
  }
  func.func @transform_12(%arg0: i32, %arg1: i32, %arg2: i32) -> (i32, i32, i32) {
    %c0_i32 = arith.constant 0 : i32
    %c0_i32_0 = arith.constant 0 : i32
    return %arg0, %arg1, %c0_i32 : i32, i32, i32
  }
}

</mosaic_0001>

<bundles_post_ra>
// kernel: _block_impl.6
= control target key start
LH: loop header
LB: loop body
LE: loop exit
PB: predicated region body
PF: predicated region fallthrough
CT: control target
= control target key end

     0   :  { %8 = vsyncpa [#allocation4], 0  ;;  %s273_s12 = smov [#allocation3]   ;;  %s312_s0 = inlined_call_operand.vmem [shape: f32[2,32], index: 0, kind: input, shape index: {}]   ;;  %s313_s1 = inlined_call_operand.hbm [shape: bf16[32,384], index: 1, kind: input, shape index: {}]   ;;  %s314_s2 = inlined_call_operand.vmem [shape: f32[1,384], index: 2, kind: input, shape index: {}]   ;;  %s315_s3 = inlined_call_operand.vmem [shape: f32[2,384], index: 3, kind: output, shape index: {}]  }
   0x1   :  { %s16_s13 = sshll.u32 %s273_s12, 4  ;;  %s17_s13 = int_to_ptr.vmem [resolvable:$true] %s16_s13 }
   0x2   :  { %s259_s14 = scalar_lea.vmem %s17_s13, 768  ;;  %p264_p1 = scmp.lt.s32.totalorder %s17_s13, %s17_s13 }
   0x3   :  { %p260_p0 = scmp.ne.s32.totalorder %s17_s13, %s259_s14  ;;  %p265_p2 = scmp.lt.s32.totalorder %s259_s14, %s259_s14 }
   0x5   :  { %p266_p3 = por %p265_p2, %p264_p1 }
   0x7   :  { %p267_p4 = pnand %p266_p3, %p260_p0 }
   0x9   :  { %270 = shalt.err (!%p267_p4)
}
   0xa   :  { %s274_s15 = smov 192   ;;  %s275_s16 = smov 12  }
   0xb   :  { %22 = dma.hbm_to_vmem [thread:$0]  %s313_s1, 768, %s17_s13, [#allocation4], %s274_s15, %s274_s15, %s275_s16  }
   0xc   :  { %271 = dma.done.wait [#allocation4], 768  }
   0xd   :  { %272 = vsyncadd [#allocation4], 4294966528  ;;  %v276_v0 = vmov 0.0   ;;  %v277_v1 = vmov 0   ;;  %vm278_vm0 = vmmov 0   ;;  %vm42_vm1 = vcmask 253952  }
   0xe   :  { %224 = vmatprep.subr.bf16.mxu1 %v276_v0  ;;  %138 = vmatprep.mubr.bf16.mxu0 %v277_v1  ;;  %v239_v2 = vld [vmem:[#allocation3 + $0x1c] ss:$12 sps:$4 sm:$0xff]   ;;  %v241_v3 = vld [vmem:[#allocation3 + $0x18] ss:$12 sps:$4 sm:$0xff]   ;;  %v242_v4 = vld [vmem:[#allocation3 + $0x20] ss:$12 sps:$4 sm:$0xff]   ;;  %v55_v17 = vlaneseq }
   0xf   :  { %228 = vmatprep.mubr.msk.bf16.mxu1 %vm278_vm0, %v276_v0  ;;  %118 = vmatprep.subr.bf16.mxu0 %v239_v2  ;;  %v243_v5 = vld [vmem:[#allocation3 + $0x4] ss:$12 sps:$4 sm:$0xff]   ;;  %v245_v6 = vld [vmem:[#allocation3] ss:$12 sps:$4 sm:$0xff]   ;;  %v246_v7 = vld [vmem:[#allocation3 + $0x8] ss:$12 sps:$4 sm:$0xff]  }
  0x10   :  { %119 = vmatpush1.bf16.msra.mxu0 %v241_v3  ;;  %225 = vmatpush3.bf16.msra.mxu1 %v242_v4  ;;  %v33_v8 = vld [vmem:[%s312_s0] sm:$0x3]  ;;  %vm102_vm2 = vcmask 261120   ;;  %v56_v18 = vshrl.u32 %v55_v17, 7  ;;  %v279_v20 = vmov 1983009808  }
  0x11   :  { %120 = vmatprep.subr.bf16.mxu0 %v243_v5  ;;  %226 = vmatprep.subr.bf16.mxu1 %v276_v0  ;;  %v34_v9 = vsub.f32 0.0, %v33_v8  ;;  %v192_v21 = vunpack.c.l.s4 %v279_v20  ;;  %v53_v24 = vld [vmem:[%s314_s2] sm:$0x7] }
  0x12   :  { %v65_v19 = vsub.s32 2, %v56_v18  ;;  %v57_v22 = vsub.s32 0, %v56_v18  ;;  %v61_v23 = vsub.s32 1, %v56_v18 }
  0x13   :  { %v35_v10 = vmul.f32 1.442695, %v34_v9  ;;  %v193_v26 = vunpack.c.0.s8 %v192_v21 }
  0x14   :  { %121 = vmatpush1.bf16.msra.mxu0 %v245_v6  ;;  %227 = vmatpush3.bf16.msra.mxu1 %v246_v7  ;;  %v66_v25 = vrot.slane %v53_v24, %v65_v19  ;;  %v58_v27 = vrot.slane %v53_v24, %v57_v22  ;;  %v62_v28 = vrot.slane %v53_v24, %v61_v23 }
  0x15   :  { %247 = vpow2.f32 %v35_v10  ;;  %v196_v32 = vsub.s32 %v193_v26, %v56_v18 }
  0x22   :  { %v248_v11 = vpop.eup %247 }
  0x23   :  { %v37_v12 = vadd.f32 1.0, %v248_v11 }
  0x25   :  { %249 = vrcp.f32 %v37_v12 }
  0x32   :  { %v250_v13 = vpop.eup %249 }
  0x33   :  { %v40_v14 = vmul.f32 %v250_v13, %v33_v8 }
  0x35   :  { %v41_v15 = vpack.c.bf16 %v40_v14, %v40_v14 }
  0x37   :  { %43 = vst.msk [vmem:[#allocation2] sm:$0x1] %vm42_vm1, %v41_v15 }
  0x3e   :  { %v44_v16 = vld [vmem:[#allocation2] sm:$0x1] }
  0x3f   :  { %219 = vmatmul.mubr.msk.bf16.vlgmr.msra.gmra.mxu0 %vm102_vm2, %v44_v16  ;;  %229 = vmatmul.mubr.msk.bf16.vlgmr.msra.gmra.mxu1 %vm102_vm2, %v44_v16 }
  0xff   :  { %v140_v29 = vpop.f32.mrf.mxu0  ;;  %v181_v30 = vpop.f32.mrf.mxu1 }
 0x100   :  { %v182_v31 = vadd.f32 %v181_v30, %v66_v25  ;;  %v141_v35 = vadd.f32 %v140_v29, %v58_v27 }
 0x101   :  { %v142_v33 = vpop.f32.mrf.mxu0  ;;  %v230_v34 = vpop.f32.mrf.mxu1 }
 0x102   :  { %v143_v36 = vadd.f32 %v142_v33, %v62_v28  ;;  %v204_v39 = vrot.slane %v182_v31, %v196_v32 }
 0x103   :  { %v144_v37 = vpop.f32.mrf.mxu0  ;;  %v184_v38 = vpop.f32.mrf.mxu1 }
 0x104   :  { %v190_v40 = vcombine.low %v141_v35, %v143_v36 }
 0x105   :  { %v145_v41 = vpop.f32.mrf.mxu0  ;;  %v231_v42 = vpop.f32.mrf.mxu1 }
 0x106   :  { %v197_v43 = vrot.slane %v190_v40, %v196_v32 }
 0x108   :  { %v205_v44 = vcombine.low %v197_v43, %v204_v39 }
 0x10a   :  { %207 = vst [vmem:[%s315_s3] sm:$0x3f] %v205_v44 }
 0x10b   :  { %212 = vsyncpa [#allocation4], 1 }

// kernel: _block_impl.8
= control target key start
LH: loop header
LB: loop body
LE: loop exit
PB: predicated region body
PF: predicated region fallthrough
CT: control target
= control target key end

     0   :  { %s788_s24 = smov 0   ;;  %s790_s25 = smov 0   ;;  %s851_s0 = inlined_call_operand.vmem [shape: f32[2,8,32], index: 0, kind: input, shape index: {}]   ;;  %s852_s1 = inlined_call_operand.vmem [shape: f32[2,1,32], index: 1, kind: input, shape index: {}]   ;;  %s853_s2 = inlined_call_operand.vmem [shape: f32[2,1,32], index: 2, kind: input, shape index: {}]   ;;  %s854_s3 = inlined_call_operand.vmem [shape: bf16[32,96], index: 3, kind: input, shape index: {}]   ;;  %s855_s4 = inlined_call_operand.vmem [shape: f32[1,96], index: 4, kind: input, shape index: {}]   ;;  %s856_s5 = inlined_call_operand.vmem [shape: bf16[2,8,32], index: 5, kind: output, shape index: {0}]   ;;  %s857_s6 = inlined_call_operand.vmem [shape: bf16[2,8,32], index: 6, kind: output, shape index: {1}]   ;;  %s858_s7 = inlined_call_operand.vmem [shape: bf16[2,8,32], index: 7, kind: output, shape index: {2}]  }
   0x1   :  { %s792_s26 = smov 0  }
   0x2 LB: > { %s30_s27 = sadd.s32 1, %s738_s25  ;;  %p663_p0 = scmp.ge.s32.totalorder %s742_s26, 1  ;;  %s742_s26 = sphi %s792_s26, %s18_s26   ;;  %s738_s25 = sphi %s790_s25, %s860_s25   ;;  %s734_s24 = sphi %s788_s24, %s859_s24  }
   0x3   : > { %p32_p1 = scmp.ge.s32.totalorder %s30_s27, 2  ;;  %p280_p2 = scmp.lt.s32.totalorder %s742_s26, 3 }
   0x5   : > { %s862_s27 = smov (%p32_p1, %s30_s27), 0  ;;  %p281_p3 = pnand %p663_p0, %p280_p2 }
   0x6   : > { %p336_p4 = scmp.lt.s32.totalorder (!%p281_p3), %s734_s24, 1  ;;  %s746_s29 = smov (!%p281_p3), 96  }
   0x7   : > { %284 = sbr.rel (%p281_p3) target bundleno = 643 (0x283), region = 40  ;;  %s747_s30 = smov (!%p281_p3), 64  }
   0xc   : > { %s864_s24 = smov (!%p336_p4, %s734_s24), 1  ;;  %vm372_vm0 = vcmask 261120   ;;  %v716_v7 = vld [vmem:[%s854_s3 + $0x8] sm:$0xff]   ;;  %v744_v8 = vmov 0.0   ;;  %vm745_vm1 = vmmov 0   ;;  %v717_v9 = vld [vmem:[%s854_s3] sm:$0xff]   ;;  %v390_v13 = vlaneseq }
   0xd   : > { %s664_s28 = sshll.u32 %s864_s24, 3  ;;  %680 = vmatprep.subr.bf16.mxu0 %v744_v8  ;;  %684 = vmatprep.mubr.msk.bf16.mxu0 %vm745_vm1, %v744_v8  ;;  %s345_s15 = scalar_lea.vmem %s852_s1, %s864_s24  ;;  %v669_v25 = vld [vmem:[%s855_s4] ss:$0 sm:$0xff]  ;;  %vm472_vm2 = vcmask 257024  }
   0xe   : > { %s342_s8 = scalar_lea.vmem %s851_s0, %s664_s28  ;;  %681 = vmatpush3.bf16.msra.mxu0 %v716_v7  ;;  %v391_v14 = vshrl.u32 %v390_v13, 7  ;;  %v387_v15 = vld [vmem:[%s345_s15] sm:$0x1]  ;;  %s348_s18 = scalar_lea.vmem %s853_s2, %s864_s24 }
   0xf   : > { %v371_v0 = vld [vmem:[%s342_s8] sm:$0xff]  ;;  %682 = vmatprep.subr.bf16.mxu0 %v744_v8  ;;  %v388_v16 = vadd.f32 1.0, %v387_v15  ;;  %s665_s21 = sshll.u32 %s864_s24, 2 }
  0x10   : > { %v373_v1 = vsel %vm372_vm0, %v371_v0, 0.0  ;;  %v392_v17 = vsub.s32 0, %v391_v14  ;;  %v668_v21 = vld [vmem:[%s348_s18] ss:$0 sm:$0xff]  ;;  %s355_s28 = scalar_lea.vmem %s856_s5, %s665_s21  ;;  %s362_s24 = scalar_lea.vmem %s857_s6, %s665_s21 }
  0x11   : > { %374 = vadd.xlane.f32.xlu0 %v373_v1  ;;  %s369_s12 = scalar_lea.vmem %s858_s7, %s665_s21 }
  0x12   : > { %683 = vmatpush3.bf16.msra.mxu0 %v717_v9  ;;  %v393_v18 = vrot.slane %v388_v16, %v392_v17 }
  0x9a   : > { %v375_v2 = vpop.xlane.xlu0 %374 }
  0x9b   : > { %v377_v3 = vmul.f32 0.03125, %v375_v2 }
  0x9d   : > { %v378_v4 = vsub.f32 %v371_v0, %v377_v3 }
  0x9f   : > { %v379_v5 = vmul.f32 %v378_v4, %v378_v4 }
  0xa1   : > { %v380_v6 = vsel %vm372_vm0, %v379_v5, 0.0 }
  0xa2   : > { %381 = vadd.xlane.f32.xlu0 %v380_v6 }
 0x12b   : > { %v382_v10 = vpop.xlane.xlu0 %381 }
 0x12c   : > { %v383_v11 = vmul.f32 0.03125, %v382_v10 }
 0x12e   : > { %v384_v12 = vadd.f32 1e-06, %v383_v11 }
 0x130   : > { %718 = vrsqrt.f32 %v384_v12 }
 0x13d   : > { %v719_v19 = vpop.eup %718 }
 0x13e   : > { %v386_v20 = vmul.f32 %v719_v19, %v378_v4 }
 0x140   : > { %v395_v22 = vmul.f32 %v393_v18, %v386_v20 }
 0x142   : > { %v403_v23 = vadd.f32 %v668_v21, %v395_v22 }
 0x144   : > { %v404_v24 = vpack.c.bf16 %v403_v23, %v403_v23 }
 0x146   : > { %685 = vmatmul.mubr.msk.bf16.vlgmr.msra.gmra.mxu0 %vm372_vm0, %v404_v24 }
 0x206   : > { %v465_v26 = vpop.f32.mrf.mxu0 }
 0x207   : > { %v466_v27 = vadd.f32 %v669_v25, %v465_v26 }
 0x208   : > { %v686_v28 = vpop.f32.mrf.mxu0 }
 0x209   : > { %v471_v29 = vpack.c.bf16 %v466_v27, %v466_v27 }
 0x20a   : > { %v468_v30 = vpop.f32.mrf.mxu0 }
 0x20b   : > { %477 = vrot.lane.b32.xlu1 %v471_v29, %s746_s29  ;;  %473 = vst.msk [vmem:[%s355_s28] sm:$0xf] %vm472_vm2, %v471_v29 }
 0x20c   : > { %v687_v31 = vpop.f32.mrf.mxu0 }
 0x20f   : > { %481 = vrot.lane.b32.xlu1 %v471_v29, %s747_s30 }
 0x27d   : > { %v478_v32 = vpop.permute.xlu1 %477 }
 0x27e   : > { %480 = vst.msk [vmem:[%s362_s24] sm:$0xf] %vm472_vm2, %v478_v32 }
 0x281   : > { %v482_v33 = vpop.permute.xlu1 %481 }
 0x282   : > { %484 = vst.msk [vmem:[%s369_s12] sm:$0xf] %vm472_vm2, %v482_v33 }
 0x283 PF: > { %s18_s26 = sadd.s32 1, %s742_s26   ;;  %s859_s24 = smov %s738_s25 }
 0x284   : > { %p15_p5 = scmp.ge.s32.totalorder %s18_s26, 4   ;;  %s860_s25 = smov %s862_s27 }
 0x286   :  { %17 = sbr.rel (!%p15_p5) target bundleno = 2 (0x2), region = 100 }

// kernel: _block_impl.7
= control target key start
LH: loop header
LB: loop body
LE: loop exit
PB: predicated region body
PF: predicated region fallthrough
CT: control target
= control target key end

     0   :  { %s1128_s24 = smov 0   ;;  %s1130_s25 = smov 0   ;;  %s1295_s0 = inlined_call_operand.vmem [shape: f32[2,64,32], index: 0, kind: input, shape index: {}]   ;;  %s1296_s1 = inlined_call_operand.vmem [shape: f32[2,1,32], index: 1, kind: input, shape index: {}]   ;;  %s1297_s2 = inlined_call_operand.vmem [shape: f32[2,1,32], index: 2, kind: input, shape index: {}]   ;;  %s1298_s3 = inlined_call_operand.vmem [shape: bf16[32,96], index: 3, kind: input, shape index: {}]   ;;  %s1299_s4 = inlined_call_operand.vmem [shape: f32[1,96], index: 4, kind: input, shape index: {}]   ;;  %s1300_s5 = inlined_call_operand.vmem [shape: bf16[2,64,32], index: 5, kind: output, shape index: {0}]   ;;  %s1301_s6 = inlined_call_operand.vmem [shape: bf16[2,64,32], index: 6, kind: output, shape index: {1}]   ;;  %s1302_s7 = inlined_call_operand.vmem [shape: bf16[2,64,32], index: 7, kind: output, shape index: {2}]  }
   0x1   :  { %s1132_s26 = smov 0  }
   0x2 LB: > { %s30_s27 = sadd.s32 1, %s1080_s25  ;;  %p957_p0 = scmp.ge.s32.totalorder %s1084_s26, 1  ;;  %s1084_s26 = sphi %s1132_s26, %s18_s26   ;;  %s1080_s25 = sphi %s1130_s25, %s1304_s25   ;;  %s1076_s24 = sphi %s1128_s24, %s1303_s24  }
   0x3   : > { %p32_p1 = scmp.ge.s32.totalorder %s30_s27, 2  ;;  %p283_p2 = scmp.lt.s32.totalorder %s1084_s26, 3 }
   0x5   : > { %s1306_s27 = smov (%p32_p1, %s30_s27), 0  ;;  %p284_p3 = pnand %p957_p0, %p283_p2 }
   0x6   : > { %p348_p4 = scmp.lt.s32.totalorder (!%p284_p3), %s1076_s24, 1  ;;  %s1087_s29 = smov (!%p284_p3), 64  }
   0x7   : > { %287 = sbr.rel (%p284_p3) target bundleno = 683 (0x2ab), region = 40 }
   0xc   : > { %s1308_s24 = smov (!%p348_p4, %s1076_s24), 1  ;;  %vm402_vm0 = vcmask 261120   ;;  %v1044_v56 = vld [vmem:[%s1298_s3 + $0x8] sm:$0xff]   ;;  %v1045_v57 = vld [vmem:[%s1298_s3] sm:$0xff]   ;;  %vm675_vm1 = vcmask 257024  }
   0xd   : > { %s984_s28 = sshll.u32 %s1308_s24, 6  ;;  %1002 = vmatprep.subr.bf16.mxu0 %v1044_v56  ;;  %1014 = vmatprep.subr.bf16.mxu1 %v1044_v56  ;;  %s359_s15 = scalar_lea.vmem %s1296_s1, %s1308_s24 }
   0xe   : > { %s355_s8 = scalar_lea.vmem %s1295_s0, %s984_s28  ;;  %1003 = vmatpush3.bf16.msra.mxu0 %v1044_v56  ;;  %1016 = vmatpush3.bf16.msra.mxu1 %v1044_v56  ;;  %s362_s18 = scalar_lea.vmem %s1297_s2, %s1308_s24 }
   0xf   : > { %v394_v0 = vld [vmem:[%s355_s8] sm:$0xff]  ;;  %v395_v2 = vld [vmem:[%s355_s8 + $0x8] sm:$0xff]  ;;  %v396_v8 = vld [vmem:[%s355_s8 + $0x10] sm:$0xff]  ;;  %1004 = vmatprep.subr.bf16.mxu0 %v1045_v57  ;;  %1015 = vmatprep.subr.bf16.mxu1 %v1045_v57  ;;  %s1230_s21 = sshll.u32 %s1308_s24, 5  ;;  %s1086_s24 = smov 96  }
  0x10   : > { %v398_v1 = vld [vmem:[%s355_s8 + $0x20] sm:$0xff]  ;;  %v403_v3 = vsel %vm402_vm0, %v394_v0, 0.0  ;;  %v399_v5 = vld [vmem:[%s355_s8 + $0x28] sm:$0xff]  ;;  %v406_v6 = vsel %vm402_vm0, %v395_v2, 0.0  ;;  %v397_v9 = vld [vmem:[%s355_s8 + $0x18] sm:$0xff]  ;;  %v409_v10 = vsel %vm402_vm0, %v396_v8, 0.0  ;;  %s1236_s28 = scalar_lea.vmem %s1300_s5, %s1230_s21  ;;  %s381_s9 = scalar_lea.vmem %s1301_s6, %s1230_s21 }
  0x11   : > { %v415_v4 = vsel %vm402_vm0, %v398_v1, 0.0  ;;  %404 = vadd.xlane.f32.xlu0 %v403_v3  ;;  %v418_v7 = vsel %vm402_vm0, %v399_v5, 0.0  ;;  %v412_v11 = vsel %vm402_vm0, %v397_v9, 0.0  ;;  %v400_v12 = vld [vmem:[%s355_s8 + $0x30] sm:$0xff]  ;;  %v401_v13 = vld [vmem:[%s355_s8 + $0x38] sm:$0xff]  ;;  %s391_s12 = scalar_lea.vmem %s1302_s7, %s1230_s21 }
  0x12   : > { %416 = vadd.xlane.f32.xlu1 %v415_v4  ;;  %v421_v14 = vsel %vm402_vm0, %v400_v12, 0.0  ;;  %v424_v15 = vsel %vm402_vm0, %v401_v13, 0.0  ;;  %1005 = vmatpush3.bf16.msra.mxu0 %v1045_v57 }
  0x13   : > { %1017 = vmatpush3.bf16.msra.mxu1 %v1045_v57 }
  0x15   : > { %407 = vadd.xlane.f32.xlu0 %v406_v6 }
  0x16   : > { %419 = vadd.xlane.f32.xlu1 %v418_v7 }
  0x19   : > { %410 = vadd.xlane.f32.xlu0 %v409_v10 }
  0x1a   : > { %413 = vadd.xlane.f32.xlu1 %v412_v11  ;;  %v508_v11 = vld [vmem:[%s359_s15] sm:$0x1] }
  0x1d   : > { %422 = vadd.xlane.f32.xlu0 %v421_v14 }
  0x1e   : > { %425 = vadd.xlane.f32.xlu1 %v424_v15 }
  0x9a   : > { %v405_v16 = vpop.xlane.xlu0 %404 }
  0x9b   : > { %v417_v17 = vpop.xlane.xlu1 %416  ;;  %v428_v18 = vmul.f32 0.03125, %v405_v16  ;;  %v509_v16 = vadd.f32 1.0, %v508_v11 }
  0x9c   : > { %v432_v19 = vmul.f32 0.03125, %v417_v17 }
  0x9d   : > { %v1160_v20 = vsub.f32 %v394_v0, %v428_v18 }
  0x9e   : > { %v1162_v21 = vsub.f32 %v398_v1, %v432_v19  ;;  %v408_v22 = vpop.xlane.xlu0 %407  ;;  %v511_v1 = vlaneseq }
  0x9f   : > { %v420_v23 = vpop.xlane.xlu1 %419  ;;  %v429_v24 = vmul.f32 0.03125, %v408_v22  ;;  %v444_v26 = vmul.f32 %v1160_v20, %v1160_v20 }
  0xa0   : > { %v433_v25 = vmul.f32 0.03125, %v420_v23  ;;  %v448_v27 = vmul.f32 %v1162_v21, %v1162_v21 }
  0xa1   : > { %v1168_v28 = vsub.f32 %v395_v2, %v429_v24  ;;  %v452_v30 = vsel %vm402_vm0, %v444_v26, 0.0 }
  0xa2   : > { %v1170_v29 = vsub.f32 %v399_v5, %v433_v25  ;;  %453 = vadd.xlane.f32.xlu0 %v452_v30  ;;  %v411_v31 = vpop.xlane.xlu0 %410  ;;  %v464_v33 = vsel %vm402_vm0, %v448_v27, 0.0 }
  0xa3   : > { %v414_v32 = vpop.xlane.xlu1 %413  ;;  %v430_v34 = vmul.f32 0.03125, %v411_v31  ;;  %v445_v36 = vmul.f32 %v1168_v28, %v1168_v28 }
  0xa4   : > { %v431_v35 = vmul.f32 0.03125, %v414_v32  ;;  %v449_v37 = vmul.f32 %v1170_v29, %v1170_v29 }
  0xa5   : > { %v1178_v38 = vsub.f32 %v396_v8, %v430_v34  ;;  %v455_v40 = vsel %vm402_vm0, %v445_v36, 0.0  ;;  %v512_v8 = vshrl.u32 %v511_v1, 7  ;;  %v966_v34 = vld [vmem:[%s362_s18] ss:$0 sm:$0xff] }
  0xa6   : > { %v1180_v39 = vsub.f32 %v397_v9, %v431_v35  ;;  %465 = vadd.xlane.f32.xlu0 %v464_v33  ;;  %456 = vadd.xlane.f32.xlu1 %v455_v40  ;;  %v423_v41 = vpop.xlane.xlu0 %422  ;;  %v467_v43 = vsel %vm402_vm0, %v449_v37, 0.0 }
  0xa7   : > { %v426_v42 = vpop.xlane.xlu1 %425  ;;  %v434_v44 = vmul.f32 0.03125, %v423_v41  ;;  %v446_v46 = vmul.f32 %v1178_v38, %v1178_v38  ;;  %v513_v17 = vsub.s32 0, %v512_v8 }
  0xa8   : > { %v435_v45 = vmul.f32 0.03125, %v426_v42  ;;  %v447_v47 = vmul.f32 %v1180_v39, %v1180_v39 }
  0xa9   : > { %v1188_v48 = vsub.f32 %v400_v12, %v434_v44  ;;  %v458_v50 = vsel %vm402_vm0, %v446_v46, 0.0  ;;  %v514_v25 = vrot.slane %v509_v16, %v513_v17 }
  0xaa   : > { %v1190_v49 = vsub.f32 %v401_v13, %v435_v45  ;;  %468 = vadd.xlane.f32.xlu1 %v467_v43  ;;  %459 = vadd.xlane.f32.xlu0 %v458_v50  ;;  %v461_v51 = vsel %vm402_vm0, %v447_v47, 0.0 }
  0xab   : > { %v450_v52 = vmul.f32 %v1188_v48, %v1188_v48 }
  0xac   : > { %v451_v53 = vmul.f32 %v1190_v49, %v1190_v49 }
  0xad   : > { %v470_v54 = vsel %vm402_vm0, %v450_v52, 0.0 }
  0xae   : > { %462 = vadd.xlane.f32.xlu1 %v461_v51  ;;  %471 = vadd.xlane.f32.xlu0 %v470_v54  ;;  %v473_v55 = vsel %vm402_vm0, %v451_v53, 0.0 }
  0xb2   : > { %474 = vadd.xlane.f32.xlu1 %v473_v55 }
 0x12b   : > { %v454_v58 = vpop.xlane.xlu0 %453 }
 0x12c   : > { %v476_v59 = vmul.f32 0.03125, %v454_v58 }
 0x12e   : > { %v484_v60 = vadd.f32 1e-06, %v476_v59 }
 0x12f   : > { %v457_v61 = vpop.xlane.xlu1 %456  ;;  %v466_v62 = vpop.xlane.xlu0 %465 }
 0x130   : > { %1046 = vrsqrt.f32 %v484_v60  ;;  %v477_v63 = vmul.f32 0.03125, %v457_v61  ;;  %v480_v0 = vmul.f32 0.03125, %v466_v62 }
 0x132   : > { %v485_v2 = vadd.f32 1e-06, %v477_v63  ;;  %v488_v3 = vadd.f32 1e-06, %v480_v0 }
 0x133   : > { %v469_v4 = vpop.xlane.xlu1 %468  ;;  %v460_v5 = vpop.xlane.xlu0 %459 }
 0x134   : > { %1048 = vrsqrt.f32 %v485_v2  ;;  %v481_v6 = vmul.f32 0.03125, %v469_v4  ;;  %v478_v7 = vmul.f32 0.03125, %v460_v5 }
 0x135   : > { %1050 = vrsqrt.f32 %v488_v3 }
 0x136   : > { %v489_v9 = vadd.f32 1e-06, %v481_v6  ;;  %v486_v10 = vadd.f32 1e-06, %v478_v7 }
 0x137   : > { %v463_v12 = vpop.xlane.xlu1 %462  ;;  %v472_v13 = vpop.xlane.xlu0 %471 }
 0x138   : > { %1052 = vrsqrt.f32 %v489_v9  ;;  %v479_v14 = vmul.f32 0.03125, %v463_v12  ;;  %v482_v15 = vmul.f32 0.03125, %v472_v13 }
 0x139   : > { %1054 = vrsqrt.f32 %v486_v10 }
 0x13a   : > { %v487_v18 = vadd.f32 1e-06, %v479_v14  ;;  %v490_v19 = vadd.f32 1e-06, %v482_v15 }
 0x13b   : > { %v475_v22 = vpop.xlane.xlu1 %474 }
 0x13c   : > { %1056 = vrsqrt.f32 %v487_v18  ;;  %v483_v23 = vmul.f32 0.03125, %v475_v22 }
 0x13d   : > { %v1047_v24 = vpop.eup %1046  ;;  %1058 = vrsqrt.f32 %v490_v19 }
 0x13e   : > { %v491_v26 = vadd.f32 1e-06, %v483_v23  ;;  %v500_v27 = vmul.f32 %v1047_v24, %v1160_v20 }
 0x140   : > { %1060 = vrsqrt.f32 %v491_v26  ;;  %v516_v33 = vmul.f32 %v514_v25, %v500_v27 }
 0x141   : > { %v1049_v30 = vpop.eup %1048 }
 0x142   : > { %v1051_v31 = vpop.eup %1050  ;;  %v501_v32 = vmul.f32 %v1049_v30, %v1168_v28  ;;  %v531_v41 = vadd.f32 %v966_v34, %v516_v33 }
 0x143   : > { %v504_v35 = vmul.f32 %v1051_v31, %v1162_v21 }
 0x144   : > { %v517_v36 = vmul.f32 %v514_v25, %v501_v32 }
 0x145   : > { %v1053_v37 = vpop.eup %1052  ;;  %v520_v43 = vmul.f32 %v514_v25, %v504_v35 }
 0x146   : > { %v1055_v40 = vpop.eup %1054  ;;  %v532_v42 = vadd.f32 %v966_v34, %v517_v36  ;;  %v505_v20 = vmul.f32 %v1053_v37, %v1170_v29 }
 0x147   : > { %v502_v44 = vmul.f32 %v1055_v40, %v1178_v38  ;;  %v535_v28 = vadd.f32 %v966_v34, %v520_v43 }
 0x148   : > { %v539_v45 = vpack.c.bf16 %v532_v42, %v531_v41  ;;  %v521_v46 = vmul.f32 %v514_v25, %v505_v20 }
 0x149   : > { %v1057_v47 = vpop.eup %1056  ;;  %v518_v52 = vmul.f32 %v514_v25, %v502_v44 }
 0x14a   : > { %v1059_v50 = vpop.eup %1058  ;;  %1006 = vmatprep.mubr.msk.bf16.mxu0 %vm402_vm0, %v539_v45  ;;  %v536_v51 = vadd.f32 %v966_v34, %v521_v46  ;;  %v503_v21 = vmul.f32 %v1057_v47, %v1180_v39 }
 0x14b   : > { %v506_v53 = vmul.f32 %v1059_v50, %v1188_v48  ;;  %v533_v38 = vadd.f32 %v966_v34, %v518_v52  ;;  %v967_v48 = vld [vmem:[%s1299_s4] ss:$0 sm:$0xff] }
 0x14c   : > { %v541_v54 = vpack.c.bf16 %v536_v51, %v535_v28  ;;  %v519_v55 = vmul.f32 %v514_v25, %v503_v21 }
 0x14d   : > { %v1061_v29 = vpop.eup %1060  ;;  %v522_v58 = vmul.f32 %v514_v25, %v506_v53 }
 0x14e   : > { %1010 = vmatprep.mubr.msk.bf16.mxu1 %vm402_vm0, %v541_v54  ;;  %v534_v56 = vadd.f32 %v966_v34, %v519_v55  ;;  %v507_v57 = vmul.f32 %v1061_v29, %v1190_v49 }
 0x14f   : > { %v537_v61 = vadd.f32 %v966_v34, %v522_v58 }
 0x150   : > { %v540_v59 = vpack.c.bf16 %v534_v56, %v533_v38  ;;  %v523_v60 = vmul.f32 %v514_v25, %v507_v57 }
 0x152   : > { %1007 = vmatmul.mubr.msk.bf16.vlgmr.msra.gmra.mxu0 %vm402_vm0, %v540_v59  ;;  %v538_v39 = vadd.f32 %v966_v34, %v523_v60 }
 0x154   : > { %v542_v62 = vpack.c.bf16 %v538_v39, %v537_v61 }
 0x156   : > { %1011 = vmatmul.mubr.msk.bf16.vlgmr.msra.gmra.mxu1 %vm402_vm0, %v542_v62 }
 0x212   : > { %v1008_v63 = vpop.f32.mrf.mxu0 }
 0x213   : > { %v621_v0 = vadd.f32 %v1008_v63, %v967_v48 }
 0x214   : > { %v612_v49 = vpop.f32.mrf.mxu0 }
 0x215   : > { %v990_v1 = vpack.c.bf16 %v621_v0, %v621_v0  ;;  %v613_v2 = vadd.f32 %v967_v48, %v612_v49 }
 0x216   : > { %v1009_v3 = vpop.f32.mrf.mxu0  ;;  %v1012_v4 = vpop.f32.mrf.mxu1 }
 0x217   : > { %678 = vst.msk [vmem:[%s1236_s28 + $0x8] sm:$0xf] %vm675_vm1, %v990_v1  ;;  %v988_v5 = vpack.c.bf16 %v613_v2, %v613_v2  ;;  %v624_v6 = vadd.f32 %v1009_v3, %v967_v48  ;;  %v637_v7 = vadd.f32 %v1012_v4, %v967_v48  ;;  %688 = vrot.lane.b32.xlu1 %v990_v1, %s1086_s24 }
 0x218   : > { %v615_v8 = vpop.f32.mrf.mxu0  ;;  %v628_v9 = vpop.f32.mrf.mxu1 }
 0x219   : > { %676 = vst.msk [vmem:[%s1236_s28] sm:$0xf] %vm675_vm1, %v988_v5  ;;  %v991_v10 = vpack.c.bf16 %v624_v6, %v624_v6  ;;  %v994_v11 = vpack.c.bf16 %v637_v7, %v637_v7  ;;  %v616_v12 = vadd.f32 %v967_v48, %v615_v8  ;;  %v629_v13 = vadd.f32 %v967_v48, %v628_v9 }
 0x21a   : > { %v1013_v14 = vpop.f32.mrf.mxu1 }
 0x21b   : > { %679 = vst.msk [vmem:[%s1236_s28 + $0xc] sm:$0xf] %vm675_vm1, %v991_v10  ;;  %682 = vst.msk [vmem:[%s1236_s28 + $0x18] sm:$0xf] %vm675_vm1, %v994_v11  ;;  %v989_v15 = vpack.c.bf16 %v616_v12, %v616_v12  ;;  %v992_v16 = vpack.c.bf16 %v629_v13, %v629_v13  ;;  %v640_v17 = vadd.f32 %v1013_v14, %v967_v48  ;;  %690 = vrot.lane.b32.xlu1 %v991_v10, %s1086_s24 }
 0x21c   : > { %696 = vrot.lane.b32.xlu0 %v994_v11, %s1086_s24  ;;  %v631_v18 = vpop.f32.mrf.mxu1 }
 0x21d   : > { %677 = vst.msk [vmem:[%s1236_s28 + $0x4] sm:$0xf] %vm675_vm1, %v989_v15  ;;  %680 = vst.msk [vmem:[%s1236_s28 + $0x10] sm:$0xf] %vm675_vm1, %v992_v16  ;;  %v995_v19 = vpack.c.bf16 %v640_v17, %v640_v17  ;;  %v632_v22 = vadd.f32 %v967_v48, %v631_v18 }
 0x21f   : > { %683 = vst.msk [vmem:[%s1236_s28 + $0x1c] sm:$0xf] %vm675_vm1, %v995_v19  ;;  %v993_v23 = vpack.c.bf16 %v632_v22, %v632_v22  ;;  %698 = vrot.lane.b32.xlu1 %v995_v19, %s1086_s24 }
 0x220   : > { %720 = vrot.lane.b32.xlu0 %v990_v1, %s1087_s29 }
 0x221   : > { %681 = vst.msk [vmem:[%s1236_s28 + $0x14] sm:$0xf] %vm675_vm1, %v993_v23 }
 0x223   : > { %722 = vrot.lane.b32.xlu1 %v991_v10, %s1087_s29 }
 0x224   : > { %684 = vrot.lane.b32.xlu0 %v988_v5, %s1086_s24 }
 0x227   : > { %686 = vrot.lane.b32.xlu1 %v989_v15, %s1086_s24 }
 0x228   : > { %692 = vrot.lane.b32.xlu0 %v992_v16, %s1086_s24 }
 0x22b   : > { %694 = vrot.lane.b32.xlu1 %v993_v23, %s1086_s24 }
 0x22c   : > { %716 = vrot.lane.b32.xlu0 %v988_v5, %s1087_s29 }
 0x22f   : > { %718 = vrot.lane.b32.xlu1 %v989_v15, %s1087_s29 }
 0x230   : > { %724 = vrot.lane.b32.xlu0 %v992_v16, %s1087_s29 }
 0x233   : > { %726 = vrot.lane.b32.xlu1 %v993_v23, %s1087_s29 }
 0x234   : > { %728 = vrot.lane.b32.xlu0 %v994_v11, %s1087_s29 }
 0x237   : > { %730 = vrot.lane.b32.xlu1 %v995_v19, %s1087_s29 }
 0x289   : > { %v689_v24 = vpop.permute.xlu1 %688 }
 0x28a   : > { %710 = vst.msk [vmem:[%s381_s9 + $0x8] sm:$0xf] %vm675_vm1, %v689_v24 }
 0x28d   : > { %v691_v25 = vpop.permute.xlu1 %690 }
 0x28e   : > { %v697_v26 = vpop.permute.xlu0 %696  ;;  %711 = vst.msk [vmem:[%s381_s9 + $0xc] sm:$0xf] %vm675_vm1, %v691_v25 }
 0x28f   : > { %714 = vst.msk [vmem:[%s381_s9 + $0x18] sm:$0xf] %vm675_vm1, %v697_v26 }
 0x291   : > { %v699_v30 = vpop.permute.xlu1 %698 }
 0x292   : > { %v721_v27 = vpop.permute.xlu0 %720  ;;  %715 = vst.msk [vmem:[%s381_s9 + $0x1c] sm:$0xf] %vm675_vm1, %v699_v30 }
 0x293   : > { %742 = vst.msk [vmem:[%s391_s12 + $0x8] sm:$0xf] %vm675_vm1, %v721_v27 }
 0x295   : > { %v723_v32 = vpop.permute.xlu1 %722 }
 0x296   : > { %v685_v31 = vpop.permute.xlu0 %684  ;;  %743 = vst.msk [vmem:[%s391_s12 + $0xc] sm:$0xf] %vm675_vm1, %v723_v32 }
 0x297   : > { %708 = vst.msk [vmem:[%s381_s9] sm:$0xf] %vm675_vm1, %v685_v31 }
 0x299   : > { %v687_v33 = vpop.permute.xlu1 %686 }
 0x29a   : > { %v693_v34 = vpop.permute.xlu0 %692  ;;  %709 = vst.msk [vmem:[%s381_s9 + $0x4] sm:$0xf] %vm675_vm1, %v687_v33 }
 0x29b   : > { %712 = vst.msk [vmem:[%s381_s9 + $0x10] sm:$0xf] %vm675_vm1, %v693_v34 }
 0x29d   : > { %v695_v35 = vpop.permute.xlu1 %694 }
 0x29e   : > { %v717_v36 = vpop.permute.xlu0 %716  ;;  %713 = vst.msk [vmem:[%s381_s9 + $0x14] sm:$0xf] %vm675_vm1, %v695_v35 }
 0x29f   : > { %740 = vst.msk [vmem:[%s391_s12] sm:$0xf] %vm675_vm1, %v717_v36 }
 0x2a1   : > { %v719_v37 = vpop.permute.xlu1 %718 }
 0x2a2   : > { %v725_v40 = vpop.permute.xlu0 %724  ;;  %741 = vst.msk [vmem:[%s391_s12 + $0x4] sm:$0xf] %vm675_vm1, %v719_v37 }
 0x2a3   : > { %744 = vst.msk [vmem:[%s391_s12 + $0x10] sm:$0xf] %vm675_vm1, %v725_v40 }
 0x2a5   : > { %v727_v41 = vpop.permute.xlu1 %726 }
 0x2a6   : > { %v729_v42 = vpop.permute.xlu0 %728  ;;  %745 = vst.msk [vmem:[%s391_s12 + $0x14] sm:$0xf] %vm675_vm1, %v727_v41 }
 0x2a7   : > { %746 = vst.msk [vmem:[%s391_s12 + $0x18] sm:$0xf] %vm675_vm1, %v729_v42 }
 0x2a9   : > { %v731_v20 = vpop.permute.xlu1 %730 }
 0x2aa   : > { %747 = vst.msk [vmem:[%s391_s12 + $0x1c] sm:$0xf] %vm675_vm1, %v731_v20 }
 0x2ab PF: > { %s18_s26 = sadd.s32 1, %s1084_s26   ;;  %s1303_s24 = smov %s1080_s25 }
 0x2ac   : > { %p15_p5 = scmp.ge.s32.totalorder %s18_s26, 4   ;;  %s1304_s25 = smov %s1306_s27 }
 0x2ae   :  { %17 = sbr.rel (!%p15_p5) target bundleno = 2 (0x2), region = 100 }

// kernel: _block_impl.11
= control target key start
LH: loop header
LB: loop body
LE: loop exit
PB: predicated region body
PF: predicated region fallthrough
CT: control target
= control target key end

     0   :  { %s1583_s0 = inlined_call_operand.vmem [shape: bf16[2,8,32], index: 0, kind: input, shape index: {}]   ;;  %s1584_s1 = inlined_call_operand.vmem [shape: bf16[32,32], index: 1, kind: input, shape index: {}]   ;;  %s1585_s2 = inlined_call_operand.vmem [shape: f32[1,32], index: 2, kind: input, shape index: {}]   ;;  %s1586_s3 = inlined_call_operand.vmem [shape: f32[2,1,32], index: 3, kind: input, shape index: {}]   ;;  %s1587_s4 = inlined_call_operand.vmem [shape: f32[2,8,32], index: 4, kind: input, shape index: {}]   ;;  %s1588_s5 = inlined_call_operand.vmem [shape: f32[2,1,32], index: 5, kind: input, shape index: {}]   ;;  %s1589_s6 = inlined_call_operand.vmem [shape: f32[2,1,32], index: 6, kind: input, shape index: {}]   ;;  %s1590_s7 = inlined_call_operand.vmem [shape: f32[2,1,32], index: 7, kind: input, shape index: {}]   ;;  %s1591_s8 = inlined_call_operand.vmem [shape: bf16[32,128], index: 8, kind: input, shape index: {}]   ;;  %s1592_s9 = inlined_call_operand.vmem [shape: f32[1,128], index: 9, kind: input, shape index: {}]   ;;  %s1593_s10 = inlined_call_operand.vmem [shape: bf16[128,32], index: 10, kind: input, shape index: {}]   ;;  %s1594_s11 = inlined_call_operand.vmem [shape: f32[1,32], index: 11, kind: input, shape index: {}]   ;;  %s1595_s12 = inlined_call_operand.hbm [shape: f32[2,8,32], index: 12, kind: output, shape index: {}]  }
   0x1   :  { %1599 = sst [smem:[#allocation12_spill]] %s1583_s0 }
   0x2   :  { %1600 = sst [smem:[#allocation13_spill]] %s1584_s1 }
   0x3   :  { %17 = vsyncpa [#allocation6], 0 }
   0x4   :  { %19 = vsyncpa [#allocation6 + $0x1], 0  ;;  %s1392_s21 = smov 0   ;;  %s1394_s22 = smov 0  }
   0x5   :  { %s1396_s23 = smov 0   ;;  %s1398_s24 = smov 0  }
   0x6   :  { %s1400_s25 = smov 0   ;;  %s1402_s26 = smov 0  }
   0x7 LB: > { %1601 = sst [smem:[#allocation8_spill]] %s1310_s23  ;;  %s1087_s27 = sadd.s32 4294967295, %s1322_s26   ;;  %s1322_s26 = sphi %s1402_s26, %s25_s26   ;;  %s1318_s25 = sphi %s1400_s25, %s1612_s25   ;;  %s1314_s24 = sphi %s1398_s24, %s1611_s24   ;;  %s1310_s23 = sphi %s1396_s23, %s1610_s23   ;;  %s1306_s22 = sphi %s1394_s22, %s1614_s22   ;;  %s1302_s21 = sphi %s1392_s21, %s1613_s21  }
   0x8   : > { %1602 = sst [smem:[#allocation9_spill]] %s1318_s25  ;;  %s1088_s28 = sadd.s32 4294967294, %s1322_s26  }
   0x9   : > { %s44_s29 = sadd.s32 1, %s1318_s25  ;;  %s354_s30 = sadd.s32 1, %s1310_s23 }
   0xa   : > { %p46_p0 = scmp.ge.s32.totalorder %s44_s29, 2  ;;  %p364_p1 = scmp.ne.s32.totalorder %s1310_s23, %s1306_s22 }
   0xb   : > { %p365_p2 = scmp.eq.s32.totalorder %s1087_s27, 1  ;;  %p370_p3 = scmp.ne.s32.totalorder %s1306_s22, %s1302_s21 }
   0xc   : > { %s1616_s29 = smov (%p46_p0, %s44_s29), 0  ;;  %p371_p5 = scmp.eq.s32.totalorder %s1088_s28, 1 }
   0xd   : > { %1603 = sst [smem:[#allocation10_spill]] %s1616_s29  ;;  %p1432_p4 = por %p365_p2, %p364_p1 }
   0xe   : > { %s349_s14 = ssub.s32 %s1318_s25, %s1616_s29  ;;  %p1094_p6 = scmp.ge.s32.totalorder %s1322_s26, 1 }
   0xf   : > { %p352_p7 = scmp.eq.s32.totalorder %s349_s14, 0  ;;  %p1439_p8 = por %p371_p5, %p370_p3 }
  0x10   : > { %p464_p9 = scmp.lt.s32.totalorder %s1322_s26, 3 }
  0x11   : > { %s1445_s16 = scalar_select %p352_p7, %s1310_s23, %s354_s30  }
  0x12   : > { %p465_p10 = pnand %p1094_p6, %p464_p9 }
  0x13   : > { %1606 = sst [smem:[#allocation11_spill]] %s1445_s16  ;;  %p539_p11 = scmp.lt.s32.totalorder (!%p465_p10), %s1314_s24, 1 }
  0x14   : > { %468 = sbr.rel (%p465_p10) target bundleno = 998 (0x3e6), region = 68  ;;  %s1607_s1 = sld [smem:[#allocation13_spill]] (!%p465_p10) }
  0x15   : > { %s1608_s0 = sld [smem:[#allocation12_spill]] (!%p465_p10)  ;;  %s536_s16 = sand.u32 (!%p465_p10), 1, %s1306_s22  }
  0x16   : > { %s1095_s30 = sshll.u32 (!%p465_p10), %s536_s16, 3 }
  0x19   : > { %v1324_v1 = vmov 0.0   ;;  %vm1325_vm0 = vmmov 0   ;;  %vm607_vm1 = vcmask 261120   ;;  %s1462_s27 = scalar_select %p539_p11, %s1314_s24, 1  ;;  %v1098_v4 = vld [vmem:[%s1585_s2] ss:$0 sm:$0xff]  ;;  %v679_v25 = vlaneseq }
  0x1a   : > { %v1230_v0 = vld [vmem:[%s1607_s1 + $0x8] sm:$0xff]   ;;  %1137 = vmatprep.subr.bf16.mxu1 %v1324_v1  ;;  %1153 = vmatprep.subr.bf16.mxu0 %v1324_v1  ;;  %v1231_v2 = vld [vmem:[%s1607_s1] sm:$0xff]   ;;  %696 = vst.msk [vmem:[#allocation4] sm:$0xff] %vm607_vm1, %v1324_v1  ;;  %vm694_vm2 = vcmask 257024   ;;  %v1234_v38 = vld [vmem:[%s1593_s10 + $0x38] sm:$0xff]  }
  0x1b   : > { %1138 = vmatpush3.bf16.msra.mxu1 %v1230_v0  ;;  %1141 = vmatprep.mubr.msk.bf16.mxu1 %vm1325_vm0, %v1324_v1  ;;  %s1096_s28 = sshll.u32 %s1462_s27, 2  ;;  %s1097_s18 = sshll.u32 %s1462_s27, 3  ;;  %v1232_v20 = vld [vmem:[%s1591_s8 + $0x8] sm:$0xff]   ;;  %v1233_v21 = vld [vmem:[%s1591_s8] sm:$0xff]   ;;  %v680_v26 = vshrl.u32 %v679_v25, 7  ;;  %v1235_v39 = vld [vmem:[%s1593_s10 + $0x30] sm:$0xff]  }
  0x1c   : > { %1139 = vmatprep.subr.bf16.mxu1 %v1324_v1  ;;  %1169 = vmatprep.mubr.msk.bf16.mxu0 %vm1325_vm0, %v1324_v1  ;;  %s545_s17 = scalar_lea.vmem %s1608_s0, %s1096_s28  ;;  %s548_s1 = scalar_lea.vmem %s1586_s3, %s1462_s27  ;;  %v1236_v40 = vld [vmem:[%s1593_s10 + $0x28] sm:$0xff]   ;;  %v1237_v41 = vld [vmem:[%s1593_s10 + $0x20] sm:$0xff]   ;;  %v1238_v42 = vld [vmem:[%s1593_s10 + $0x18] sm:$0xff]  }
  0x1d   : > { %v583_v3 = vld [vmem:[%s545_s17] sm:$0xf]  ;;  %s555_s28 = scalar_lea.vmem %s1587_s4, %s1097_s18  ;;  %s558_s14 = scalar_lea.vmem %s1588_s5, %s1462_s27  ;;  %v681_v29 = vsub.s32 0, %v680_v26  ;;  %1154 = vmatpush3.bf16.msra.mxu0 %v1234_v38  ;;  %v1239_v43 = vld [vmem:[%s1593_s10 + $0x10] sm:$0xff]   ;;  %v1240_v44 = vld [vmem:[%s1593_s10 + $0x8] sm:$0xff]  }
  0x1e   : > { %v1102_v6 = vld [vmem:[%s548_s1] ss:$0 sm:$0xff]  ;;  %s561_s19 = scalar_lea.vmem %s1589_s6, %s1462_s27  ;;  %1155 = vmatprep.subr.bf16.mxu0 %v1324_v1  ;;  %s564_s18 = scalar_lea.vmem %s1590_s7, %s1462_s27 }
  0x1f   : > { %1140 = vmatpush3.bf16.msra.mxu1 %v1231_v2  ;;  %v651_v9 = vld [vmem:[%s555_s28] sm:$0xff]  ;;  %s1119_s28 = sshll.u32 %s1314_s24, 7  ;;  %s538_s1 = scalar_lea.vmem [#allocation5], %s1095_s30 }
  0x20   : > { %1145 = vmatprep.subr.bf16.mxu1 %v1324_v1  ;;  %v676_v27 = vld [vmem:[%s558_s14] sm:$0x1]  ;;  %s920_s23 = sshll.u32 %s538_s1, 4  ;;  %s918_s0 = scalar_lea.hbm %s1595_s12, %s1119_s28  ;;  %s921_s23 = int_to_ptr.vmem [resolvable:$true] %s920_s23 }
  0x21   : > { %v677_v28 = vadd.f32 1.0, %v676_v27  ;;  %v1103_v33 = vld [vmem:[%s561_s19] ss:$0 sm:$0xff]  ;;  %1156 = vmatpush3.bf16.msra.mxu0 %v1235_v39  ;;  %v774_v62 = vld [vmem:[#allocation4] sm:$0xff]  ;;  %s906_s27 = scalar_lea.sflag [#allocation6], %s536_s16  ;;  %s1246_s14 = scalar_lea.vmem %s921_s23, 128 }
  0x22   : > { %1142 = vmatmul.mubr.msk.bf16.vlgmr.msra.gmra.mxu1 %vm607_vm1, %v583_v3  ;;  %1157 = vmatprep.subr.bf16.mxu0 %v1324_v1  ;;  %v1241_v45 = vld [vmem:[%s1593_s10] sm:$0xff]   ;;  %p1247_p12 = scmp.ne.s32.totalorder %s921_s23, %s1246_s14  ;;  %s1326_s17 = smov [#allocation5]  }
  0x23   : > { %1149 = vmatprep.mubr.msk.bf16.mxu1 %vm1325_vm0, %v1324_v1  ;;  %1146 = vmatpush3.bf16.msra.mxu1 %v1232_v20  ;;  %v682_v30 = vrot.slane %v677_v28, %v681_v29  ;;  %v1104_v46 = vld [vmem:[%s1592_s9] ss:$0 sm:$0xff]  ;;  %s1250_s24 = sshll.u32 %s1326_s17, 4  ;;  %s1251_s24 = int_to_ptr.vmem [resolvable:$false] %s1250_s24 }
  0x24   : > { %1147 = vmatprep.subr.bf16.mxu1 %v1324_v1  ;;  %p1248_p13 = pnand %p1247_p12, %p1432_p4  ;;  %s1252_s30 = scalar_lea.vmem %s1251_s24, 256 }
  0x25   : > { %1158 = vmatpush3.bf16.msra.mxu0 %v1236_v40  ;;  %p1253_p1 = scmp.lt.s32.totalorder %s921_s23, %s1251_s24  ;;  %p1254_p2 = scmp.lt.s32.totalorder %s1252_s30, %s1246_s14 }
  0x26   : > { %1159 = vmatprep.subr.bf16.mxu0 %v1324_v1  ;;  %p1249_p0 = pneg %p1248_p13 }
  0x27   : > { %1148 = vmatpush3.bf16.msra.mxu1 %v1233_v21  ;;  %p1255_p3 = por %p1254_p2, %p1253_p1 }
  0x29   : > { %1160 = vmatpush3.bf16.msra.mxu0 %v1237_v41  ;;  %p1256_p5 = pnand %p1255_p3, %p1249_p0 }
  0x2a   : > { %1161 = vmatprep.subr.bf16.mxu0 %v1324_v1 }
  0x2d   : > { %1162 = vmatpush3.bf16.msra.mxu0 %v1238_v42 }
  0x2e   : > { %1163 = vmatprep.subr.bf16.mxu0 %v1324_v1 }
  0x31   : > { %1164 = vmatpush3.bf16.msra.mxu0 %v1239_v43 }
  0x32   : > { %1165 = vmatprep.subr.bf16.mxu0 %v1324_v1 }
  0x35   : > { %1166 = vmatpush3.bf16.msra.mxu0 %v1240_v44 }
  0x36   : > { %1167 = vmatprep.subr.bf16.mxu0 %v1324_v1 }
  0x39   : > { %1168 = vmatpush3.bf16.msra.mxu0 %v1241_v45 }
  0xe2   : > { %v645_v5 = vpop.f32.mrf.mxu1 }
  0xe3   : > { %v646_v7 = vadd.f32 %v1098_v4, %v645_v5  ;;  %v1116_v4 = vld [vmem:[%s1594_s11] ss:$0 sm:$0xff] }
  0xe4   : > { %v1143_v8 = vpop.f32.mrf.mxu1  ;;  %v1117_v5 = vld [vmem:[%s564_s18] ss:$0 sm:$0xff] }
  0xe5   : > { %v659_v10 = vmul.f32 %v1102_v6, %v646_v7 }
  0xe6   : > { %v648_v11 = vpop.f32.mrf.mxu1 }
  0xe7   : > { %v660_v12 = vadd.f32 %v659_v10, %v651_v9 }
  0xe8   : > { %v1144_v13 = vpop.f32.mrf.mxu1 }
  0xe9   : > { %v662_v14 = vsel %vm607_vm1, %v660_v12, 0.0  ;;  %661 = vst.msk [vmem:[#allocation2] sm:$0xff] %vm607_vm1, %v660_v12 }
  0xea   : > { %663 = vadd.xlane.f32.xlu0 %v662_v14 }
  0xf0   : > { %v885_v9 = vld [vmem:[#allocation2] sm:$0xff] }
 0x173   : > { %v664_v15 = vpop.xlane.xlu0 %663 }
 0x174   : > { %v666_v16 = vmul.f32 0.03125, %v664_v15 }
 0x176   : > { %v667_v17 = vsub.f32 %v660_v12, %v666_v16 }
 0x178   : > { %v668_v18 = vmul.f32 %v667_v17, %v667_v17 }
 0x17a   : > { %v669_v19 = vsel %vm607_vm1, %v668_v18, 0.0 }
 0x17b   : > { %670 = vadd.xlane.f32.xlu0 %v669_v19 }
 0x204   : > { %v671_v22 = vpop.xlane.xlu0 %670 }
 0x205   : > { %v672_v23 = vmul.f32 0.03125, %v671_v22 }
 0x207   : > { %v673_v24 = vadd.f32 1e-06, %v672_v23 }
 0x209   : > { %1242 = vrsqrt.f32 %v673_v24 }
 0x216   : > { %v1243_v31 = vpop.eup %1242 }
 0x217   : > { %v675_v32 = vmul.f32 %v1243_v31, %v667_v17 }
 0x219   : > { %v684_v34 = vmul.f32 %v682_v30, %v675_v32 }
 0x21b   : > { %v692_v35 = vadd.f32 %v1103_v33, %v684_v34 }
 0x21d   : > { %v693_v36 = vpack.c.bf16 %v692_v35, %v692_v35 }
 0x21f   : > { %695 = vst.msk [vmem:[#allocation3] sm:$0xf] %vm694_vm2, %v693_v36 }
 0x226   : > { %v697_v37 = vld [vmem:[#allocation3] sm:$0xf] }
 0x227   : > { %1150 = vmatmul.mubr.msk.bf16.vlgmr.msra.gmra.mxu1 %vm607_vm1, %v697_v37 }
 0x2e7   : > { %v759_v47 = vpop.f32.mrf.mxu1 }
 0x2e8   : > { %v760_v48 = vadd.f32 %v1104_v46, %v759_v47 }
 0x2e9   : > { %v1151_v49 = vpop.f32.mrf.mxu1 }
 0x2ea   : > { %v766_v50 = vmul.f32 %v760_v48, %v760_v48  ;;  %v765_v58 = vmul.f32 0.5, %v760_v48 }
 0x2eb   : > { %v762_v51 = vpop.f32.mrf.mxu1 }
 0x2ec   : > { %v767_v52 = vmul.f32 %v766_v50, %v760_v48 }
 0x2ed   : > { %v1152_v53 = vpop.f32.mrf.mxu1 }
 0x2ee   : > { %v768_v54 = vmul.f32 0.044715, %v767_v52 }
 0x2f0   : > { %v769_v55 = vadd.f32 %v768_v54, %v760_v48 }
 0x2f2   : > { %v770_v56 = vmul.f32 0.7978846, %v769_v55 }
 0x2f4   : > { %1244 = vtanh.f32 %v770_v56 }
 0x301   : > { %v1245_v57 = vpop.eup %1244 }
 0x302   : > { %v772_v59 = vadd.f32 1.0, %v1245_v57 }
 0x304   : > { %v773_v60 = vmul.f32 %v772_v59, %v765_v58 }
 0x306   : > { %v775_v61 = vpack.c.bf16 %v773_v60, %v773_v60 }
 0x308   : > { %1170 = vmatmul.mubr.bf16.vlgmr.msra.gmra.mxu0 %v775_v61 }
 0x3c8   : > { %v874_v63 = vpop.f32.mrf.mxu0 }
 0x3c9   : > { %v880_v0 = vadd.f32 %v874_v63, %v774_v62 }
 0x3ca   : > { %v1171_v1 = vpop.f32.mrf.mxu0 }
 0x3cb   : > { %881 = vst.msk [vmem:[#allocation4] sm:$0xff] %vm607_vm1, %v880_v0 }
 0x3cc   : > { %v877_v2 = vpop.f32.mrf.mxu0 }
 0x3ce   : > { %v1172_v3 = vpop.f32.mrf.mxu0 }
 0x3d2   : > { %v887_v6 = vld [vmem:[#allocation4] sm:$0xff] }
 0x3d3   : > { %v895_v7 = vadd.f32 %v1116_v4, %v887_v6 }
 0x3d5   : > { %v902_v8 = vmul.f32 %v1117_v5, %v895_v7 }
 0x3d7   : > { %v903_v10 = vadd.f32 %v902_v8, %v885_v9 }
 0x3d9   : > { %904 = vst.msk [vmem:[%s538_s1] sm:$0xff] %vm607_vm1, %v903_v10 }
 0x3da   : > { %1259 = shalt.err (!%p1256_p5)
}
 0x3db   : > { %s1260_s18 = scalar_lea.hbm %s918_s0, 128  ;;  %s1264_s20 = scalar_lea.hbm %s1595_s12, 256 }
 0x3dc   : > { %p1261_p6 = scmp.ne.s32.totalorder %s918_s0, %s1260_s18  ;;  %p1265_p10 = scmp.lt.s32.totalorder %s918_s0, %s1595_s12 }
 0x3dd   : > { %p1266_p11 = scmp.lt.s32.totalorder %s1264_s20, %s1260_s18 }
 0x3de   : > { %p1262_p7 = pnand %p1261_p6, %p1432_p4 }
 0x3df   : > { %p1267_p12 = por %p1266_p11, %p1265_p10 }
 0x3e0   : > { %p1263_p9 = pneg %p1262_p7 }
 0x3e2   : > { %p1268_p13 = pnand %p1267_p12, %p1263_p9 }
 0x3e4   : > { %1271 = shalt.err (!%p1268_p13)
}
 0x3e5   : > { %1173 = dma.vmem_to_hbm [thread:$0]  (%p1432_p4), %s921_s23, 128, %s918_s0, %s906_s27  }
 0x3e6 PF: > { %p1179_p0 = scmp.ge.s32.totalorder %s1322_s26, 2  ;;  %s932_s25 = sand.u32 1, %s1302_s21  }
 0x3e7   : > { %s933_s29 = scalar_lea.sflag [#allocation6], %s932_s25 }
 0x3e8   : > { %p1176_p1 = pnand %p1179_p0, %p1439_p8 }
 0x3ea   : > { %p1177_p2 = pneg %p1176_p1 }
 0x3ec   : > { %1297 = dma.done.wait (%p1177_p2), %s933_s29, 128  }
 0x3ed   : > { %1299 = vsyncadd (%p1177_p2), %s933_s29, 4294967168  ;;  %s25_s26 = sadd.s32 1, %s1322_s26   ;;  %s1609_s14 = sld [smem:[#allocation8_spill]] }
 0x3ee   : > { %p22_p3 = scmp.ge.s32.totalorder %s25_s26, 4   ;;  %s1610_s23 = sld [smem:[#allocation11_spill]] }
 0x3ef   : > { %s1611_s24 = sld [smem:[#allocation9_spill]]  ;;  %s1613_s21 = smov %s1306_s22 }
 0x3f0   : > { %s1612_s25 = sld [smem:[#allocation10_spill]]  ;;  %24 = sbr.rel (!%p22_p3) target bundleno = 7 (0x7), region = 135 }
 0x3f3   : > { %s1614_s22 = smov %s1609_s14 }
 0x3f5   :  { %938 = vsyncpa [#allocation6], 1 }
 0x3f6   :  { %940 = vsyncpa [#allocation6 + $0x1], 1 }

// kernel: _block_impl.10
= control target key start
LH: loop header
LB: loop body
LE: loop exit
PB: predicated region body
PF: predicated region fallthrough
CT: control target
= control target key end

     0   :  { %s1880_s21 = smov 0   ;;  %s1882_s22 = smov 0   ;;  %s2137_s0 = inlined_call_operand.vmem [shape: bf16[2,64,32], index: 0, kind: input, shape index: {}]   ;;  %s2138_s1 = inlined_call_operand.vmem [shape: bf16[32,32], index: 1, kind: input, shape index: {}]   ;;  %s2139_s2 = inlined_call_operand.vmem [shape: f32[1,32], index: 2, kind: input, shape index: {}]   ;;  %s2140_s3 = inlined_call_operand.vmem [shape: f32[2,1,32], index: 3, kind: input, shape index: {}]   ;;  %s2141_s4 = inlined_call_operand.vmem [shape: f32[2,64,32], index: 4, kind: input, shape index: {}]   ;;  %s2142_s5 = inlined_call_operand.vmem [shape: f32[2,1,32], index: 5, kind: input, shape index: {}]   ;;  %s2143_s6 = inlined_call_operand.vmem [shape: f32[2,1,32], index: 6, kind: input, shape index: {}]   ;;  %s2144_s7 = inlined_call_operand.vmem [shape: f32[2,1,32], index: 7, kind: input, shape index: {}]   ;;  %s2145_s8 = inlined_call_operand.vmem [shape: bf16[32,128], index: 8, kind: input, shape index: {}]   ;;  %s2146_s9 = inlined_call_operand.vmem [shape: f32[1,128], index: 9, kind: input, shape index: {}]   ;;  %s2147_s10 = inlined_call_operand.vmem [shape: bf16[128,32], index: 10, kind: input, shape index: {}]   ;;  %s2148_s11 = inlined_call_operand.vmem [shape: f32[1,32], index: 11, kind: input, shape index: {}]   ;;  %s2149_s12 = inlined_call_operand.vmem [shape: f32[2,64,32], index: 12, kind: output, shape index: {}]  }
   0x1   :  { %s1884_s23 = smov 0  }
   0x2 LB: > { %s41_s24 = sadd.s32 1, %s1808_s22  ;;  %p1579_p0 = scmp.ge.s32.totalorder %s1812_s23, 1  ;;  %s1812_s23 = sphi %s1884_s23, %s22_s23   ;;  %s1808_s22 = sphi %s1882_s22, %s2151_s22   ;;  %s1804_s21 = sphi %s1880_s21, %s2150_s21  }
   0x3   : > { %p43_p1 = scmp.ge.s32.totalorder %s41_s24, 2  ;;  %p467_p2 = scmp.lt.s32.totalorder %s1812_s23, 3 }
   0x5   : > { %s2153_s24 = smov (%p43_p1, %s41_s24), 0  ;;  %p468_p3 = pnand %p1579_p0, %p467_p2 }
   0x6   : > { %p551_p4 = scmp.lt.s32.totalorder (!%p468_p3), %s1804_s21, 1 }
   0x7   : > { %471 = sbr.rel (%p468_p3) target bundleno = 1004 (0x3ec), region = 68 }
   0xc   : > { %v1738_v0 = vld [vmem:[%s2138_s1 + $0x8] sm:$0xff]   ;;  %v1739_v1 = vld [vmem:[%s2138_s1] sm:$0xff]   ;;  %s2155_s21 = smov (!%p551_p4, %s1804_s21), 1  ;;  %vm661_vm0 = vcmask 261120   ;;  %vm946_vm1 = vcmask 257024  }
   0xd   : > { %1665 = vmatprep.subr.bf16.mxu1 %v1738_v0  ;;  %s1630_s29 = sshll.u32 %s2155_s21, 5  ;;  %s1631_s15 = sshll.u32 %s2155_s21, 6  ;;  %v1586_v6 = vld [vmem:[%s2139_s2] ss:$0 sm:$0xff] }
   0xe   : > { %1666 = vmatpush3.bf16.msra.mxu1 %v1738_v0  ;;  %s558_s14 = scalar_lea.vmem %s2137_s0, %s1630_s29  ;;  %s562_s18 = scalar_lea.vmem %s2140_s3, %s2155_s21 }
   0xf   : > { %1667 = vmatprep.subr.bf16.mxu1 %v1739_v1  ;;  %v1740_v2 = vld [vmem:[%s558_s14] sm:$0xff]   ;;  %v1741_v3 = vld [vmem:[%s558_s14 + $0x8] sm:$0xff]   ;;  %v1742_v4 = vld [vmem:[%s558_s14 + $0x10] sm:$0xff]   ;;  %s1927_s27 = scalar_lea.vmem %s2141_s4, %s1631_s15  ;;  %s575_s17 = scalar_lea.vmem %s2142_s5, %s2155_s21 }
  0x10   : > { %1669 = vmatprep.mubr.msk.bf16.mxu1 %vm661_vm0, %v1740_v2  ;;  %v1743_v5 = vld [vmem:[%s558_s14 + $0x18] sm:$0xff]   ;;  %v1597_v8 = vld [vmem:[%s562_s18] ss:$0 sm:$0xff]  ;;  %v741_v11 = vld [vmem:[%s1927_s27 + $0x10] sm:$0xff]  ;;  %s578_s20 = scalar_lea.vmem %s2143_s6, %s2155_s21  ;;  %s581_s14 = scalar_lea.vmem %s2144_s7, %s2155_s21 }
  0x11   : > { %v739_v15 = vld [vmem:[%s1927_s27] sm:$0xff]  ;;  %v742_v19 = vld [vmem:[%s1927_s27 + $0x18] sm:$0xff]  ;;  %v740_v25 = vld [vmem:[%s1927_s27 + $0x8] sm:$0xff] }
  0x12   : > { %1668 = vmatpush3.bf16.msra.mxu1 %v1739_v1  ;;  %v745_v31 = vld [vmem:[%s1927_s27 + $0x30] sm:$0xff]  ;;  %v743_v37 = vld [vmem:[%s1927_s27 + $0x20] sm:$0xff]  ;;  %v746_v43 = vld [vmem:[%s1927_s27 + $0x38] sm:$0xff] }
  0x13   : > { %v744_v48 = vld [vmem:[%s1927_s27 + $0x28] sm:$0xff] }
  0x15   : > { %1670 = vmatmul.mubr.msk.bf16.vlgmr.msra.gmra.mxu1 %vm661_vm0, %v1741_v3 }
  0x16   : > { %1673 = vmatprep.mubr.msk.bf16.mxu1 %vm661_vm0, %v1742_v4 }
  0x1d   : > { %1674 = vmatmul.mubr.msk.bf16.gmra.mxu1 %vm661_vm0, %v1743_v5 }
  0xd5   : > { %v1671_v7 = vpop.f32.mrf.mxu1 }
  0xd6   : > { %v717_v9 = vadd.f32 %v1671_v7, %v1586_v6 }
  0xd7   : > { %v708_v10 = vpop.f32.mrf.mxu1 }
  0xd8   : > { %v756_v12 = vmul.f32 %v1597_v8, %v717_v9  ;;  %v709_v13 = vadd.f32 %v1586_v6, %v708_v10 }
  0xd9   : > { %v1672_v14 = vpop.f32.mrf.mxu1 }
  0xda   : > { %v754_v16 = vmul.f32 %v1597_v8, %v709_v13  ;;  %v720_v17 = vadd.f32 %v1672_v14, %v1586_v6  ;;  %v764_v18 = vadd.f32 %v756_v12, %v741_v11 }
  0xdb   : > { %v711_v20 = vpop.f32.mrf.mxu1 }
  0xdc   : > { %v757_v21 = vmul.f32 %v1597_v8, %v720_v17  ;;  %v712_v22 = vadd.f32 %v1586_v6, %v711_v20  ;;  %v784_v23 = vsel %vm661_vm0, %v764_v18, 0.0  ;;  %772 = vst.msk [vmem:[#allocation2 + $0x10] sm:$0xff] %vm661_vm0, %v764_v18  ;;  %v762_v24 = vadd.f32 %v754_v16, %v739_v15 }
  0xdd   : > { %785 = vadd.xlane.f32.xlu1 %v784_v23  ;;  %v1675_v26 = vpop.f32.mrf.mxu1 }
  0xde   : > { %v765_v27 = vadd.f32 %v757_v21, %v742_v19  ;;  %v755_v28 = vmul.f32 %v1597_v8, %v712_v22  ;;  %v733_v29 = vadd.f32 %v1675_v26, %v1586_v6  ;;  %v778_v30 = vsel %vm661_vm0, %v762_v24, 0.0  ;;  %770 = vst.msk [vmem:[#allocation2] sm:$0xff] %vm661_vm0, %v762_v24 }
  0xdf   : > { %v724_v32 = vpop.f32.mrf.mxu1  ;;  %779 = vadd.xlane.f32.xlu0 %v778_v30 }
  0xe0   : > { %773 = vst.msk [vmem:[#allocation2 + $0x18] sm:$0xff] %vm661_vm0, %v765_v27  ;;  %v763_v33 = vadd.f32 %v755_v28, %v740_v25  ;;  %v760_v34 = vmul.f32 %v1597_v8, %v733_v29  ;;  %v725_v35 = vadd.f32 %v1586_v6, %v724_v32  ;;  %v787_v36 = vsel %vm661_vm0, %v765_v27, 0.0  ;;  %v1744_v32 = vld [vmem:[%s2145_s8 + $0x8] sm:$0xff]  }
  0xe1   : > { %788 = vadd.xlane.f32.xlu1 %v787_v36  ;;  %v1676_v38 = vpop.f32.mrf.mxu1  ;;  %1677 = vmatprep.subr.bf16.mxu1 %v1744_v32 }
  0xe2   : > { %771 = vst.msk [vmem:[#allocation2 + $0x8] sm:$0xff] %vm661_vm0, %v763_v33  ;;  %v768_v39 = vadd.f32 %v760_v34, %v745_v31  ;;  %v758_v40 = vmul.f32 %v1597_v8, %v725_v35  ;;  %v736_v41 = vadd.f32 %v1676_v38, %v1586_v6  ;;  %v781_v42 = vsel %vm661_vm0, %v763_v33, 0.0  ;;  %1678 = vmatpush3.bf16.msra.mxu1 %v1744_v32 }
  0xe3   : > { %v727_v44 = vpop.f32.mrf.mxu1  ;;  %782 = vadd.xlane.f32.xlu0 %v781_v42 }
  0xe4   : > { %776 = vst.msk [vmem:[#allocation2 + $0x30] sm:$0xff] %vm661_vm0, %v768_v39  ;;  %v766_v45 = vadd.f32 %v758_v40, %v743_v37  ;;  %v761_v46 = vmul.f32 %v1597_v8, %v736_v41  ;;  %v728_v47 = vadd.f32 %v1586_v6, %v727_v44  ;;  %v796_v54 = vsel %vm661_vm0, %v768_v39, 0.0 }
  0xe6   : > { %774 = vst.msk [vmem:[#allocation2 + $0x20] sm:$0xff] %vm661_vm0, %v766_v45  ;;  %v769_v49 = vadd.f32 %v761_v46, %v746_v43  ;;  %v759_v50 = vmul.f32 %v1597_v8, %v728_v47  ;;  %v790_v51 = vsel %vm661_vm0, %v766_v45, 0.0  ;;  %v883_v46 = vld [vmem:[%s575_s17] sm:$0x1] }
  0xe7   : > { %791 = vadd.xlane.f32.xlu0 %v790_v51 }
  0xe8   : > { %777 = vst.msk [vmem:[#allocation2 + $0x38] sm:$0xff] %vm661_vm0, %v769_v49  ;;  %v767_v52 = vadd.f32 %v759_v50, %v744_v48  ;;  %v799_v55 = vsel %vm661_vm0, %v769_v49, 0.0 }
  0xea   : > { %775 = vst.msk [vmem:[#allocation2 + $0x28] sm:$0xff] %vm661_vm0, %v767_v52  ;;  %v793_v53 = vsel %vm661_vm0, %v767_v52, 0.0 }
  0xeb   : > { %794 = vadd.xlane.f32.xlu1 %v793_v53  ;;  %797 = vadd.xlane.f32.xlu0 %v796_v54 }
  0xef   : > { %800 = vadd.xlane.f32.xlu1 %v799_v55 }
 0x166   : > { %v786_v56 = vpop.xlane.xlu1 %785 }
 0x167   : > { %v805_v57 = vmul.f32 0.03125, %v786_v56 }
 0x168   : > { %v780_v58 = vpop.xlane.xlu0 %779 }
 0x169   : > { %v803_v59 = vmul.f32 0.03125, %v780_v58  ;;  %v1953_v61 = vsub.f32 %v764_v18, %v805_v57 }
 0x16a   : > { %v789_v60 = vpop.xlane.xlu1 %788 }
 0x16b   : > { %v1955_v62 = vsub.f32 %v762_v24, %v803_v59  ;;  %v806_v63 = vmul.f32 0.03125, %v789_v60  ;;  %v821_v6 = vmul.f32 %v1953_v61, %v1953_v61 }
 0x16c   : > { %v783_v0 = vpop.xlane.xlu0 %782 }
 0x16d   : > { %v804_v1 = vmul.f32 0.03125, %v783_v0  ;;  %v819_v2 = vmul.f32 %v1955_v62, %v1955_v62  ;;  %v1959_v3 = vsub.f32 %v765_v27, %v806_v63  ;;  %v833_v11 = vsel %vm661_vm0, %v821_v6, 0.0  ;;  %v1598_v6 = vld [vmem:[%s578_s20] ss:$0 sm:$0xff]  ;;  %s2108_s20 = scalar_lea.vmem %s2149_s12, %s1631_s15 }
 0x16f   : > { %v1961_v4 = vsub.f32 %v763_v33, %v804_v1  ;;  %v827_v5 = vsel %vm661_vm0, %v819_v2, 0.0  ;;  %v822_v13 = vmul.f32 %v1959_v3, %v1959_v3  ;;  %v1745_v33 = vld [vmem:[%s2145_s8] sm:$0xff]  }
 0x170   : > { %828 = vadd.xlane.f32.xlu0 %v827_v5  ;;  %v792_v7 = vpop.xlane.xlu0 %791  ;;  %1679 = vmatprep.subr.bf16.mxu1 %v1745_v33 }
 0x171   : > { %v807_v8 = vmul.f32 0.03125, %v792_v7  ;;  %v820_v9 = vmul.f32 %v1961_v4, %v1961_v4  ;;  %v836_v21 = vsel %vm661_vm0, %v822_v13, 0.0  ;;  %1680 = vmatpush3.bf16.msra.mxu1 %v1745_v33 }
 0x173   : > { %v1968_v10 = vsub.f32 %v766_v45, %v807_v8  ;;  %v830_v12 = vsel %vm661_vm0, %v820_v9, 0.0 }
 0x174   : > { %v795_v14 = vpop.xlane.xlu1 %794  ;;  %834 = vadd.xlane.f32.xlu0 %v833_v11  ;;  %831 = vadd.xlane.f32.xlu1 %v830_v12  ;;  %v798_v15 = vpop.xlane.xlu0 %797 }
 0x175   : > { %v808_v16 = vmul.f32 0.03125, %v795_v14  ;;  %v809_v17 = vmul.f32 0.03125, %v798_v15  ;;  %v823_v18 = vmul.f32 %v1968_v10, %v1968_v10 }
 0x177   : > { %v1976_v19 = vsub.f32 %v767_v52, %v808_v16  ;;  %v1978_v20 = vsub.f32 %v768_v39, %v809_v17  ;;  %v839_v22 = vsel %vm661_vm0, %v823_v18, 0.0  ;;  %v886_v39 = vlaneseq }
 0x178   : > { %v801_v23 = vpop.xlane.xlu1 %800  ;;  %837 = vadd.xlane.f32.xlu1 %v836_v21  ;;  %840 = vadd.xlane.f32.xlu0 %v839_v22  ;;  %v884_v52 = vadd.f32 1.0, %v883_v46  ;;  %v1751_v46 = vld [vmem:[%s2147_s10 + $0x30] sm:$0xff]  }
 0x179   : > { %v810_v24 = vmul.f32 0.03125, %v801_v23  ;;  %v824_v25 = vmul.f32 %v1976_v19, %v1976_v19  ;;  %v825_v26 = vmul.f32 %v1978_v20, %v1978_v20  ;;  %v887_v47 = vshrl.u32 %v886_v39, 7 }
 0x17b   : > { %v1986_v27 = vsub.f32 %v769_v49, %v810_v24  ;;  %v842_v28 = vsel %vm661_vm0, %v824_v25, 0.0  ;;  %v845_v29 = vsel %vm661_vm0, %v825_v26, 0.0  ;;  %v888_v55 = vsub.s32 0, %v887_v47  ;;  %v1752_v47 = vld [vmem:[%s2147_s10 + $0x28] sm:$0xff]  }
 0x17c   : > { %843 = vadd.xlane.f32.xlu1 %v842_v28  ;;  %846 = vadd.xlane.f32.xlu0 %v845_v29 }
 0x17d   : > { %v826_v30 = vmul.f32 %v1986_v27, %v1986_v27  ;;  %v889_v63 = vrot.slane %v884_v52, %v888_v55  ;;  %v1757_v52 = vld [vmem:[%s2147_s10] sm:$0xff]  }
 0x17f   : > { %v848_v31 = vsel %vm661_vm0, %v826_v30, 0.0 }
 0x180   : > { %849 = vadd.xlane.f32.xlu1 %v848_v31 }
 0x1f9   : > { %v829_v34 = vpop.xlane.xlu0 %828 }
 0x1fa   : > { %v851_v35 = vmul.f32 0.03125, %v829_v34 }
 0x1fc   : > { %v859_v36 = vadd.f32 1e-06, %v851_v35 }
 0x1fd   : > { %v832_v37 = vpop.xlane.xlu1 %831  ;;  %v835_v38 = vpop.xlane.xlu0 %834 }
 0x1fe   : > { %1758 = vrsqrt.f32 %v859_v36  ;;  %v852_v40 = vmul.f32 0.03125, %v832_v37  ;;  %v853_v41 = vmul.f32 0.03125, %v835_v38 }
 0x200   : > { %v860_v42 = vadd.f32 1e-06, %v852_v40  ;;  %v861_v43 = vadd.f32 1e-06, %v853_v41 }
 0x201   : > { %v838_v44 = vpop.xlane.xlu1 %837  ;;  %v841_v45 = vpop.xlane.xlu0 %840 }
 0x202   : > { %1760 = vrsqrt.f32 %v860_v42  ;;  %v854_v48 = vmul.f32 0.03125, %v838_v44  ;;  %v855_v49 = vmul.f32 0.03125, %v841_v45  ;;  %v1750_v45 = vld [vmem:[%s2147_s10 + $0x38] sm:$0xff]  }
 0x203   : > { %1762 = vrsqrt.f32 %v861_v43  ;;  %1689 = vmatprep.subr.bf16.mxu0 %v1750_v45 }
 0x204   : > { %v862_v50 = vadd.f32 1e-06, %v854_v48  ;;  %v863_v51 = vadd.f32 1e-06, %v855_v49  ;;  %1690 = vmatpush3.bf16.msra.mxu0 %v1750_v45  ;;  %v1753_v48 = vld [vmem:[%s2147_s10 + $0x20] sm:$0xff]   ;;  %v1754_v49 = vld [vmem:[%s2147_s10 + $0x18] sm:$0xff]  }
 0x205   : > { %v844_v53 = vpop.xlane.xlu1 %843  ;;  %v847_v54 = vpop.xlane.xlu0 %846  ;;  %1691 = vmatprep.subr.bf16.mxu0 %v1751_v46 }
 0x206   : > { %1764 = vrsqrt.f32 %v862_v50  ;;  %v856_v56 = vmul.f32 0.03125, %v844_v53  ;;  %v857_v57 = vmul.f32 0.03125, %v847_v54  ;;  %v1755_v50 = vld [vmem:[%s2147_s10 + $0x10] sm:$0xff]   ;;  %v1814_v53 = vmov 0.0   ;;  %v1607_v54 = vld [vmem:[%s2146_s9] ss:$0 sm:$0xff] }
 0x207   : > { %1766 = vrsqrt.f32 %v863_v51  ;;  %v1756_v51 = vld [vmem:[%s2147_s10 + $0x8] sm:$0xff]   ;;  %957 = vst.msk [vmem:[#allocation4 + $0x10] sm:$0xff] %vm661_vm0, %v1814_v53  ;;  %955 = vst.msk [vmem:[#allocation4] sm:$0xff] %vm661_vm0, %v1814_v53 }
 0x208   : > { %v864_v58 = vadd.f32 1e-06, %v856_v56  ;;  %v865_v59 = vadd.f32 1e-06, %v857_v57  ;;  %1692 = vmatpush3.bf16.msra.mxu0 %v1751_v46  ;;  %956 = vst.msk [vmem:[#allocation4 + $0x8] sm:$0xff] %vm661_vm0, %v1814_v53  ;;  %958 = vst.msk [vmem:[#allocation4 + $0x18] sm:$0xff] %vm661_vm0, %v1814_v53 }
 0x209   : > { %v850_v60 = vpop.xlane.xlu1 %849  ;;  %1693 = vmatprep.subr.bf16.mxu0 %v1752_v47  ;;  %959 = vst.msk [vmem:[#allocation4 + $0x20] sm:$0xff] %vm661_vm0, %v1814_v53  ;;  %960 = vst.msk [vmem:[#allocation4 + $0x28] sm:$0xff] %vm661_vm0, %v1814_v53 }
 0x20a   : > { %1768 = vrsqrt.f32 %v864_v58  ;;  %v858_v0 = vmul.f32 0.03125, %v850_v60  ;;  %961 = vst.msk [vmem:[#allocation4 + $0x30] sm:$0xff] %vm661_vm0, %v1814_v53  ;;  %962 = vst.msk [vmem:[#allocation4 + $0x38] sm:$0xff] %vm661_vm0, %v1814_v53 }
 0x20b   : > { %v1759_v1 = vpop.eup %1758  ;;  %1770 = vrsqrt.f32 %v865_v59 }
 0x20c   : > { %v875_v2 = vmul.f32 %v1759_v1, %v1955_v62  ;;  %v866_v5 = vadd.f32 1e-06, %v858_v0  ;;  %1694 = vmatpush3.bf16.msra.mxu0 %v1752_v47 }
 0x20d   : > { %1695 = vmatprep.subr.bf16.mxu0 %v1753_v48 }
 0x20e   : > { %v891_v7 = vmul.f32 %v889_v63, %v875_v2  ;;  %1772 = vrsqrt.f32 %v866_v5 }
 0x20f   : > { %v1761_v8 = vpop.eup %1760 }
 0x210   : > { %v1763_v9 = vpop.eup %1762  ;;  %v906_v11 = vadd.f32 %v1598_v6, %v891_v7  ;;  %v876_v12 = vmul.f32 %v1761_v8, %v1961_v4  ;;  %1696 = vmatpush3.bf16.msra.mxu0 %v1753_v48 }
 0x211   : > { %v877_v13 = vmul.f32 %v1763_v9, %v1953_v61  ;;  %1697 = vmatprep.subr.bf16.mxu0 %v1754_v49 }
 0x212   : > { %v1633_v14 = vpack.c.bf16 %v906_v11, %v906_v11  ;;  %v892_v15 = vmul.f32 %v889_v63, %v876_v12 }
 0x213   : > { %v1765_v16 = vpop.eup %1764  ;;  %v893_v17 = vmul.f32 %v889_v63, %v877_v13 }
 0x214   : > { %v1767_v18 = vpop.eup %1766  ;;  %947 = vst.msk [vmem:[#allocation3] sm:$0xf] %vm946_vm1, %v1633_v14  ;;  %v907_v62 = vadd.f32 %v1598_v6, %v892_v15  ;;  %v878_v21 = vmul.f32 %v1765_v16, %v1959_v3  ;;  %1698 = vmatpush3.bf16.msra.mxu0 %v1754_v49 }
 0x215   : > { %v908_v22 = vadd.f32 %v1598_v6, %v893_v17  ;;  %v879_v23 = vmul.f32 %v1767_v18, %v1968_v10  ;;  %1699 = vmatprep.subr.bf16.mxu0 %v1755_v50 }
 0x216   : > { %v1634_v24 = vpack.c.bf16 %v907_v62, %v907_v62  ;;  %v894_v25 = vmul.f32 %v889_v63, %v878_v21 }
 0x217   : > { %v1769_v26 = vpop.eup %1768  ;;  %v1635_v4 = vpack.c.bf16 %v908_v22, %v908_v22  ;;  %v895_v28 = vmul.f32 %v889_v63, %v879_v23 }
 0x218   : > { %v1771_v29 = vpop.eup %1770  ;;  %948 = vst.msk [vmem:[#allocation3 + $0x4] sm:$0xf] %vm946_vm1, %v1634_v24  ;;  %v909_v61 = vadd.f32 %v1598_v6, %v894_v25  ;;  %v880_v30 = vmul.f32 %v1769_v26, %v1976_v19  ;;  %1700 = vmatpush3.bf16.msra.mxu0 %v1755_v50 }
 0x219   : > { %949 = vst.msk [vmem:[#allocation3 + $0x8] sm:$0xf] %vm946_vm1, %v1635_v4  ;;  %v910_v31 = vadd.f32 %v1598_v6, %v895_v28  ;;  %v881_v32 = vmul.f32 %v1771_v29, %v1978_v20  ;;  %1701 = vmatprep.subr.bf16.mxu0 %v1756_v51 }
 0x21a   : > { %v1636_v3 = vpack.c.bf16 %v909_v61, %v909_v61  ;;  %v896_v33 = vmul.f32 %v889_v63, %v880_v30 }
 0x21b   : > { %v1773_v34 = vpop.eup %1772  ;;  %v1637_v10 = vpack.c.bf16 %v910_v31, %v910_v31  ;;  %v897_v35 = vmul.f32 %v889_v63, %v881_v32 }
 0x21c   : > { %950 = vst.msk [vmem:[#allocation3 + $0xc] sm:$0xf] %vm946_vm1, %v1636_v3  ;;  %v911_v36 = vadd.f32 %v1598_v6, %v896_v33  ;;  %v882_v37 = vmul.f32 %v1773_v34, %v1986_v27  ;;  %1702 = vmatpush3.bf16.msra.mxu0 %v1756_v51 }
 0x21d   : > { %951 = vst.msk [vmem:[#allocation3 + $0x10] sm:$0xf] %vm946_vm1, %v1637_v10  ;;  %v912_v38 = vadd.f32 %v1598_v6, %v897_v35  ;;  %1703 = vmatprep.subr.bf16.mxu0 %v1757_v52 }
 0x21e   : > { %v1638_v39 = vpack.c.bf16 %v911_v36, %v911_v36  ;;  %v898_v19 = vmul.f32 %v889_v63, %v882_v37 }
 0x21f   : > { %v1639_v40 = vpack.c.bf16 %v912_v38, %v912_v38  ;;  %v1746_v41 = vld [vmem:[#allocation3] sm:$0xff]  }
 0x220   : > { %952 = vst.msk [vmem:[#allocation3 + $0x14] sm:$0xf] %vm946_vm1, %v1638_v39  ;;  %v913_v20 = vadd.f32 %v1598_v6, %v898_v19  ;;  %1681 = vmatprep.mubr.msk.bf16.mxu1 %vm661_vm0, %v1746_v41  ;;  %1704 = vmatpush3.bf16.msra.mxu0 %v1757_v52 }
 0x221   : > { %953 = vst.msk [vmem:[#allocation3 + $0x18] sm:$0xf] %vm946_vm1, %v1639_v40 }
 0x222   : > { %v1640_v42 = vpack.c.bf16 %v913_v20, %v913_v20 }
 0x223   : > { %v1747_v43 = vld [vmem:[#allocation3 + $0x8] sm:$0xff]  }
 0x224   : > { %954 = vst.msk [vmem:[#allocation3 + $0x1c] sm:$0xf] %vm946_vm1, %v1640_v42  ;;  %1682 = vmatmul.mubr.msk.bf16.vlgmr.msra.gmra.mxu1 %vm661_vm0, %v1747_v43 }
 0x227   : > { %v1748_v27 = vld [vmem:[#allocation3 + $0x10] sm:$0xff]  }
 0x228   : > { %1685 = vmatprep.mubr.msk.bf16.mxu1 %vm661_vm0, %v1748_v27 }
 0x22b   : > { %v1749_v44 = vld [vmem:[#allocation3 + $0x18] sm:$0xff]  }
 0x22c   : > { %1686 = vmatmul.mubr.msk.bf16.gmra.mxu1 %vm661_vm0, %v1749_v44 }
 0x2e4   : > { %v1683_v55 = vpop.f32.mrf.mxu1 }
 0x2e5   : > { %v2062_v56 = vadd.f32 %v1683_v55, %v1607_v54 }
 0x2e6   : > { %v1061_v57 = vpop.f32.mrf.mxu1 }
 0x2e7   : > { %v1102_v58 = vmul.f32 %v2062_v56, %v2062_v56  ;;  %v2066_v59 = vadd.f32 %v1607_v54, %v1061_v57 }
 0x2e8   : > { %v1684_v60 = vpop.f32.mrf.mxu1 }
 0x2e9   : > { %v1110_v63 = vmul.f32 %v1102_v58, %v2062_v56  ;;  %v1100_v0 = vmul.f32 %v2066_v59, %v2066_v59  ;;  %v1073_v1 = vadd.f32 %v1684_v60, %v1607_v54  ;;  %v1092_v55 = vmul.f32 0.5, %v2066_v59 }
 0x2ea   : > { %v1064_v2 = vpop.f32.mrf.mxu1  ;;  %v1094_v60 = vmul.f32 0.5, %v2062_v56 }
 0x2eb   : > { %v1118_v5 = vmul.f32 0.044715, %v1110_v63  ;;  %v1108_v6 = vmul.f32 %v1100_v0, %v2066_v59  ;;  %v1103_v7 = vmul.f32 %v1073_v1, %v1073_v1  ;;  %v1065_v8 = vadd.f32 %v1607_v54, %v1064_v2 }
 0x2ec   : > { %v1687_v9 = vpop.f32.mrf.mxu1  ;;  %v1095_v53 = vmul.f32 0.5, %v1073_v1 }
 0x2ed   : > { %v1126_v11 = vadd.f32 %v1118_v5, %v2062_v56  ;;  %v1116_v12 = vmul.f32 0.044715, %v1108_v6  ;;  %v1111_v13 = vmul.f32 %v1103_v7, %v1073_v1  ;;  %v1101_v14 = vmul.f32 %v1065_v8, %v1065_v8 }
 0x2ee   : > { %v2073_v15 = vadd.f32 %v1687_v9, %v1607_v54  ;;  %v1077_v16 = vpop.f32.mrf.mxu1  ;;  %v1093_v57 = vmul.f32 0.5, %v1065_v8 }
 0x2ef   : > { %v1134_v17 = vmul.f32 0.7978846, %v1126_v11  ;;  %v1119_v18 = vmul.f32 0.044715, %v1111_v13  ;;  %v1109_v62 = vmul.f32 %v1101_v14, %v1065_v8  ;;  %v2075_v21 = vadd.f32 %v1607_v54, %v1077_v16 }
 0x2f0   : > { %v1106_v22 = vmul.f32 %v2073_v15, %v2073_v15  ;;  %v1688_v23 = vpop.f32.mrf.mxu1  ;;  %v1124_v24 = vadd.f32 %v1116_v12, %v2066_v59 }
 0x2f1   : > { %v1127_v25 = vadd.f32 %v1119_v18, %v1073_v1  ;;  %v1117_v26 = vmul.f32 0.044715, %v1109_v62  ;;  %v1104_v4 = vmul.f32 %v2075_v21, %v2075_v21  ;;  %1774 = vtanh.f32 %v1134_v17 }
 0x2f2   : > { %v1114_v28 = vmul.f32 %v1106_v22, %v2073_v15  ;;  %v1089_v29 = vadd.f32 %v1688_v23, %v1607_v54  ;;  %v1080_v61 = vpop.f32.mrf.mxu1  ;;  %v1132_v30 = vmul.f32 0.7978846, %v1124_v24  ;;  %v1098_v18 = vmul.f32 0.5, %v2073_v15 }
 0x2f3   : > { %v1135_v31 = vmul.f32 0.7978846, %v1127_v25  ;;  %v1112_v32 = vmul.f32 %v1104_v4, %v2075_v21  ;;  %v1081_v3 = vadd.f32 %v1607_v54, %v1080_v61  ;;  %v1125_v33 = vadd.f32 %v1117_v26, %v1065_v8  ;;  %v1166_v4 = vld [vmem:[#allocation4 + $0x10] sm:$0xff] }
 0x2f4   : > { %v1122_v34 = vmul.f32 0.044715, %v1114_v28  ;;  %v1107_v10 = vmul.f32 %v1089_v29, %v1089_v29  ;;  %1776 = vtanh.f32 %v1132_v30  ;;  %v1099_v1 = vmul.f32 0.5, %v1089_v29 }
 0x2f5   : > { %1778 = vtanh.f32 %v1135_v31  ;;  %v1120_v35 = vmul.f32 0.044715, %v1112_v32  ;;  %v1105_v36 = vmul.f32 %v1081_v3, %v1081_v3  ;;  %v1133_v37 = vmul.f32 0.7978846, %v1125_v33  ;;  %v1167_v31 = vld [vmem:[#allocation4 + $0x18] sm:$0xff] }
 0x2f6   : > { %v1130_v38 = vadd.f32 %v1122_v34, %v2073_v15  ;;  %v1115_v39 = vmul.f32 %v1107_v10, %v1089_v29  ;;  %v1096_v8 = vmul.f32 0.5, %v2075_v21  ;;  %v1097_v17 = vmul.f32 0.5, %v1081_v3  ;;  %v1165_v15 = vld [vmem:[#allocation4 + $0x8] sm:$0xff]  ;;  %v1170_v34 = vld [vmem:[#allocation4 + $0x30] sm:$0xff] }
 0x2f7   : > { %v1128_v19 = vadd.f32 %v1120_v35, %v2075_v21  ;;  %v1113_v40 = vmul.f32 %v1105_v36, %v1081_v3  ;;  %1780 = vtanh.f32 %v1133_v37  ;;  %v1626_v35 = vld [vmem:[%s2148_s11] ss:$0 sm:$0xff] }
 0x2f8   : > { %v1138_v41 = vmul.f32 0.7978846, %v1130_v38  ;;  %v1123_v20 = vmul.f32 0.044715, %v1115_v39  ;;  %v1168_v37 = vld [vmem:[#allocation4 + $0x20] sm:$0xff] }
 0x2f9   : > { %v1136_v42 = vmul.f32 0.7978846, %v1128_v19  ;;  %v1121_v43 = vmul.f32 0.044715, %v1113_v40  ;;  %v1627_v39 = vld [vmem:[%s581_s14] ss:$0 sm:$0xff] }
 0x2fa   : > { %v1131_v27 = vadd.f32 %v1123_v20, %v1089_v29  ;;  %v1164_v29 = vld [vmem:[#allocation4] sm:$0xff] }
 0x2fb   : > { %1782 = vtanh.f32 %v1136_v42  ;;  %v1129_v44 = vadd.f32 %v1121_v43, %v1081_v3 }
 0x2fc   : > { %1784 = vtanh.f32 %v1138_v41  ;;  %v1139_v45 = vmul.f32 0.7978846, %v1131_v27  ;;  %v1171_v41 = vld [vmem:[#allocation4 + $0x38] sm:$0xff] }
 0x2fd   : > { %v1137_v46 = vmul.f32 0.7978846, %v1129_v44  ;;  %v1169_v44 = vld [vmem:[#allocation4 + $0x28] sm:$0xff] }
 0x2fe   : > { %1786 = vtanh.f32 %v1139_v45  ;;  %v1775_v47 = vpop.eup %1774 }
 0x2ff   : > { %1788 = vtanh.f32 %v1137_v46  ;;  %v1150_v54 = vadd.f32 1.0, %v1775_v47 }
 0x301   : > { %v1777_v48 = vpop.eup %1776  ;;  %v1158_v6 = vmul.f32 %v1150_v54, %v1094_v60 }
 0x302   : > { %v1779_v49 = vpop.eup %1778  ;;  %v1148_v50 = vadd.f32 1.0, %v1777_v48  ;;  %v1326_v48 = vld [vmem:[#allocation2 + $0x10] sm:$0xff] }
 0x303   : > { %v1151_v51 = vadd.f32 1.0, %v1779_v49 }
 0x304   : > { %v1781_v52 = vpop.eup %1780  ;;  %v1156_v0 = vmul.f32 %v1148_v50, %v1092_v55  ;;  %v1324_v55 = vld [vmem:[#allocation2] sm:$0xff] }
 0x305   : > { %v1149_v58 = vadd.f32 1.0, %v1781_v52  ;;  %v1159_v63 = vmul.f32 %v1151_v51, %v1095_v53 }
 0x307   : > { %v1157_v2 = vmul.f32 %v1149_v58, %v1093_v57  ;;  %v1173_v11 = vpack.c.bf16 %v1159_v63, %v1158_v6 }
 0x308   : > { %v1783_v5 = vpop.eup %1782 }
 0x309   : > { %v1785_v7 = vpop.eup %1784  ;;  %v1172_v9 = vpack.c.bf16 %v1157_v2, %v1156_v0  ;;  %v1152_v13 = vadd.f32 1.0, %v1783_v5  ;;  %v1327_v0 = vld [vmem:[#allocation2 + $0x18] sm:$0xff] }
 0x30a   : > { %v1154_v16 = vadd.f32 1.0, %v1785_v7 }
 0x30b   : > { %v1787_v12 = vpop.eup %1786  ;;  %1705 = vmatprep.mubr.bf16.mxu0 %v1172_v9  ;;  %v1160_v22 = vmul.f32 %v1152_v13, %v1096_v8  ;;  %v1325_v9 = vld [vmem:[#allocation2 + $0x8] sm:$0xff] }
 0x30c   : > { %v1789_v14 = vpop.eup %1788  ;;  %1706 = vmatmul.mubr.bf16.vlgmr.msra.gmra.mxu0 %v1173_v11  ;;  %v1155_v59 = vadd.f32 1.0, %v1787_v12  ;;  %v1162_v24 = vmul.f32 %v1154_v16, %v1098_v18 }
 0x30d   : > { %v1153_v56 = vadd.f32 1.0, %v1789_v14 }
 0x30e   : > { %v1163_v62 = vmul.f32 %v1155_v59, %v1099_v1  ;;  %v1330_v1 = vld [vmem:[#allocation2 + $0x30] sm:$0xff] }
 0x30f   : > { %v1161_v23 = vmul.f32 %v1153_v56, %v1097_v17  ;;  %v1328_v56 = vld [vmem:[#allocation2 + $0x20] sm:$0xff] }
 0x310   : > { %v1175_v26 = vpack.c.bf16 %v1163_v62, %v1162_v24  ;;  %v1331_v24 = vld [vmem:[#allocation2 + $0x38] sm:$0xff] }
 0x311   : > { %v1174_v25 = vpack.c.bf16 %v1161_v23, %v1160_v22 }
 0x313   : > { %1709 = vmatprep.mubr.bf16.mxu0 %v1174_v25 }
 0x314   : > { %1710 = vmatmul.mubr.bf16.gmra.mxu0 %v1175_v26 }
 0x3cc   : > { %v1707_v28 = vpop.f32.mrf.mxu0 }
 0x3cd   : > { %v1307_v61 = vadd.f32 %v1707_v28, %v1166_v4  ;;  %v1329_v4 = vld [vmem:[#allocation2 + $0x28] sm:$0xff] }
 0x3ce   : > { %v1274_v30 = vpop.f32.mrf.mxu0 }
 0x3cf   : > { %1315 = vst.msk [vmem:[#allocation4 + $0x10] sm:$0xff] %vm661_vm0, %v1307_v61  ;;  %v1305_v21 = vadd.f32 %v1274_v30, %v1164_v29 }
 0x3d0   : > { %v1708_v32 = vpop.f32.mrf.mxu0 }
 0x3d1   : > { %1313 = vst.msk [vmem:[#allocation4] sm:$0xff] %vm661_vm0, %v1305_v21  ;;  %v1308_v3 = vadd.f32 %v1708_v32, %v1167_v31 }
 0x3d2   : > { %v1277_v33 = vpop.f32.mrf.mxu0 }
 0x3d3   : > { %1316 = vst.msk [vmem:[#allocation4 + $0x18] sm:$0xff] %vm661_vm0, %v1308_v3  ;;  %v1306_v10 = vadd.f32 %v1277_v33, %v1165_v15 }
 0x3d4   : > { %v1711_v36 = vpop.f32.mrf.mxu0 }
 0x3d5   : > { %1314 = vst.msk [vmem:[#allocation4 + $0x8] sm:$0xff] %vm661_vm0, %v1306_v10  ;;  %v1311_v38 = vadd.f32 %v1711_v36, %v1170_v34 }
 0x3d6   : > { %v1335_v19 = vld [vmem:[#allocation4 + $0x10] sm:$0xff]  ;;  %v1290_v40 = vpop.f32.mrf.mxu0 }
 0x3d7   : > { %v1350_v20 = vadd.f32 %v1626_v35, %v1335_v19  ;;  %1319 = vst.msk [vmem:[#allocation4 + $0x30] sm:$0xff] %vm661_vm0, %v1311_v38  ;;  %v1309_v42 = vadd.f32 %v1290_v40, %v1168_v37 }
 0x3d8   : > { %v1333_v43 = vld [vmem:[#allocation4] sm:$0xff]  ;;  %v1712_v27 = vpop.f32.mrf.mxu0 }
 0x3d9   : > { %v1364_v45 = vmul.f32 %v1627_v39, %v1350_v20  ;;  %v1348_v46 = vadd.f32 %v1626_v35, %v1333_v43  ;;  %1317 = vst.msk [vmem:[#allocation4 + $0x20] sm:$0xff] %vm661_vm0, %v1309_v42  ;;  %v1312_v47 = vadd.f32 %v1712_v27, %v1171_v41 }
 0x3da   : > { %v1336_v49 = vld [vmem:[#allocation4 + $0x18] sm:$0xff]  ;;  %v1293_v50 = vpop.f32.mrf.mxu0 }
 0x3db   : > { %v1372_v51 = vadd.f32 %v1364_v45, %v1326_v48  ;;  %v1362_v52 = vmul.f32 %v1627_v39, %v1348_v46  ;;  %v1351_v53 = vadd.f32 %v1626_v35, %v1336_v49  ;;  %1320 = vst.msk [vmem:[#allocation4 + $0x38] sm:$0xff] %vm661_vm0, %v1312_v47  ;;  %v1310_v54 = vadd.f32 %v1293_v50, %v1169_v44 }
 0x3dc   : > { %v1334_v57 = vld [vmem:[#allocation4 + $0x8] sm:$0xff] }
 0x3dd   : > { %1380 = vst.msk [vmem:[%s2108_s20 + $0x10] sm:$0xff] %vm661_vm0, %v1372_v51  ;;  %v1370_v58 = vadd.f32 %v1362_v52, %v1324_v55  ;;  %v1365_v60 = vmul.f32 %v1627_v39, %v1351_v53  ;;  %v1349_v63 = vadd.f32 %v1626_v35, %v1334_v57  ;;  %1318 = vst.msk [vmem:[#allocation4 + $0x28] sm:$0xff] %vm661_vm0, %v1310_v54 }
 0x3de   : > { %v1339_v2 = vld [vmem:[#allocation4 + $0x30] sm:$0xff] }
 0x3df   : > { %1378 = vst.msk [vmem:[%s2108_s20] sm:$0xff] %vm661_vm0, %v1370_v58  ;;  %v1373_v5 = vadd.f32 %v1365_v60, %v1327_v0  ;;  %v1363_v6 = vmul.f32 %v1627_v39, %v1349_v63  ;;  %v1354_v7 = vadd.f32 %v1626_v35, %v1339_v2 }
 0x3e0   : > { %v1337_v11 = vld [vmem:[#allocation4 + $0x20] sm:$0xff] }
 0x3e1   : > { %1381 = vst.msk [vmem:[%s2108_s20 + $0x18] sm:$0xff] %vm661_vm0, %v1373_v5  ;;  %v1371_v12 = vadd.f32 %v1363_v6, %v1325_v9  ;;  %v1368_v13 = vmul.f32 %v1627_v39, %v1354_v7  ;;  %v1352_v14 = vadd.f32 %v1626_v35, %v1337_v11 }
 0x3e2   : > { %v1340_v16 = vld [vmem:[#allocation4 + $0x38] sm:$0xff] }
 0x3e3   : > { %1379 = vst.msk [vmem:[%s2108_s20 + $0x8] sm:$0xff] %vm661_vm0, %v1371_v12  ;;  %v1376_v59 = vadd.f32 %v1368_v13, %v1330_v1  ;;  %v1366_v8 = vmul.f32 %v1627_v39, %v1352_v14  ;;  %v1355_v17 = vadd.f32 %v1626_v35, %v1340_v16 }
 0x3e4   : > { %v1338_v18 = vld [vmem:[#allocation4 + $0x28] sm:$0xff] }
 0x3e5   : > { %1384 = vst.msk [vmem:[%s2108_s20 + $0x30] sm:$0xff] %vm661_vm0, %v1376_v59  ;;  %v1374_v62 = vadd.f32 %v1366_v8, %v1328_v56  ;;  %v1369_v22 = vmul.f32 %v1627_v39, %v1355_v17  ;;  %v1353_v23 = vadd.f32 %v1626_v35, %v1338_v18 }
 0x3e7   : > { %1382 = vst.msk [vmem:[%s2108_s20 + $0x20] sm:$0xff] %vm661_vm0, %v1374_v62  ;;  %v1377_v25 = vadd.f32 %v1369_v22, %v1331_v24  ;;  %v1367_v26 = vmul.f32 %v1627_v39, %v1353_v23 }
 0x3e9   : > { %1385 = vst.msk [vmem:[%s2108_s20 + $0x38] sm:$0xff] %vm661_vm0, %v1377_v25  ;;  %v1375_v28 = vadd.f32 %v1367_v26, %v1329_v4 }
 0x3eb   : > { %1383 = vst.msk [vmem:[%s2108_s20 + $0x28] sm:$0xff] %vm661_vm0, %v1375_v28 }
 0x3ec PF: > { %s22_s23 = sadd.s32 1, %s1812_s23   ;;  %s2150_s21 = smov %s1808_s22 }
 0x3ed   : > { %p19_p5 = scmp.ge.s32.totalorder %s22_s23, 4   ;;  %s2151_s22 = smov %s2153_s24 }
 0x3ef   :  { %21 = sbr.rel (!%p19_p5) target bundleno = 2 (0x2), region = 130 }

// kernel: _block_impl.9
= control target key start
LH: loop header
LB: loop body
LE: loop exit
PB: predicated region body
PF: predicated region fallthrough
CT: control target
= control target key end

     0   :  { %s3829_s12 = smov 0   ;;  %s3831_s13 = smov 0   ;;  %s5204_s0 = inlined_call_operand.vmem [shape: bf16[2,72,32], index: 0, kind: input, shape index: {}]   ;;  %s5205_s1 = inlined_call_operand.vmem [shape: bf16[2,24,32], index: 1, kind: input, shape index: {}]   ;;  %s5206_s2 = inlined_call_operand.vmem [shape: bf16[2,24,32], index: 2, kind: input, shape index: {}]   ;;  %s5207_s3 = inlined_call_operand.vmem [shape: bf16[2,72,32], index: 3, kind: output, shape index: {}]  }
   0x1   :  { %s3833_s14 = smov 0  }
   0x2 LB: > { %s32_s15 = sadd.s32 1, %s3790_s13  ;;  %p3138_p0 = scmp.ge.s32.totalorder %s3794_s14, 1  ;;  %s3794_s14 = sphi %s3833_s14, %s13_s14   ;;  %s3790_s13 = sphi %s3831_s13, %s5263_s13   ;;  %s3786_s12 = sphi %s3829_s12, %s5262_s12  }
   0x3   : > { %p34_p1 = scmp.ge.s32.totalorder %s32_s15, 2  ;;  %p199_p2 = scmp.lt.s32.totalorder %s3794_s14, 3 }
   0x5   : > { %s5265_s15 = smov (%p34_p1, %s32_s15), 0  ;;  %p200_p3 = pnand %p3138_p0, %p199_p2 }
   0x7   : > { %203 = sbr.rel (%p200_p3) target bundleno = 1570 (0x622), region = 32 }
   0xc   : > { %p250_p4 = scmp.lt.s32.totalorder %s3786_s12, 1  ;;  %v5212_v0 = vmov 0.0   ;;  %vm3797_vm0 = vmmov 0   ;;  %vm369_vm1 = vcmask 64512   ;;  %vm294_vm2 = vcmask 31744   ;;  %s3800_s27 = smov 120  }
   0xd   : > { %3322 = vmatprep.subr.bf16.mxu0 %v5212_v0  ;;  %3326 = vmatprep.mubr.msk.bf16.mxu0 %vm3797_vm0, %v5212_v0  ;;  %v3798_v10 = vmov -inf   ;;  %304 = vst.msk [vmem:[#allocation3] sm:$0xff] %vm294_vm2, %v5212_v0  ;;  %305 = vst.msk [vmem:[#allocation3 + $0x8] sm:$0xff] %vm294_vm2, %v5212_v0  ;;  %vm472_vm3 = vcmask 195584   ;;  %v5210_v22 = vmov 0   ;;  %vm662_vm4 = vcmask 7168  }
   0xe   : > { %s5267_s12 = smov (!%p250_p4, %s3786_s12), 1  ;;  %3346 = vmatprep.subr.bf16.mxu1 %v5212_v0  ;;  %3350 = vmatprep.mubr.msk.bf16.mxu1 %vm3797_vm0, %v5212_v0  ;;  %295 = vst.msk [vmem:[#allocation2] sm:$0xff] %vm294_vm2, %v3798_v10  ;;  %296 = vst.msk [vmem:[#allocation2 + $0x8] sm:$0xff] %vm294_vm2, %v3798_v10  ;;  %vm764_vm5 = vcmask 1043456   ;;  %vm313_vm6 = vcmask 261120   ;;  %s3801_s28 = smov 112  }
   0xf   : > { %s3514_s16 = smul.u32 36, %s5267_s12  ;;  %297 = vst.msk [vmem:[#allocation2 + $0x10] sm:$0xff] %vm294_vm2, %v3798_v10  ;;  %298 = vst.msk [vmem:[#allocation2 + $0x18] sm:$0xff] %vm294_vm2, %v3798_v10  ;;  %3553 = vset.pattern.permute.xlu1 %v5210_v22  ;;  %3554 = vset.pattern.permute.xlu0 %v5210_v22  ;;  %s3802_s29 = smov 104   ;;  %vm1172_vm7 = vcmask 15368   ;;  %vm1714_vm8 = vcmask 23568  }
  0x10   : > { %s3515_s17 = smul.u32 12, %s5267_s12  ;;  %299 = vst.msk [vmem:[#allocation2 + $0x20] sm:$0xff] %vm294_vm2, %v3798_v10  ;;  %300 = vst.msk [vmem:[#allocation2 + $0x28] sm:$0xff] %vm294_vm2, %v3798_v10  ;;  %vm2256_vm9 = vcmask 31768   ;;  %s3806_s30 = smov 8   ;;  %vm1390_vm10 = vcmask 130112  }
  0x11   : > { %s257_s20 = scalar_lea.vmem %s5204_s0, %s3514_s16  ;;  %301 = vst.msk [vmem:[#allocation2 + $0x30] sm:$0xff] %vm294_vm2, %v3798_v10  ;;  %302 = vst.msk [vmem:[#allocation2 + $0x38] sm:$0xff] %vm294_vm2, %v3798_v10  ;;  %s3807_s4 = smov 16   ;;  %vm1932_vm11 = vcmask 195712   ;;  %vm2474_vm12 = vcmask 261312   ;;  %vm2614_vm13 = vcmask 60416  }
  0x12   : > { %s267_s23 = scalar_lea.vmem %s5205_s1, %s3515_s17  ;;  %v3877_v5 = vld [vmem:[%s257_s20] sm:$0xff]   ;;  %v3883_v6 = vld [vmem:[%s257_s20 + $0x8] sm:$0xff]   ;;  %v3889_v7 = vld [vmem:[%s257_s20 + $0x10] sm:$0xff]   ;;  %303 = vst.msk [vmem:[#allocation2 + $0x40] sm:$0xff] %vm294_vm2, %v3798_v10  ;;  %s3977_s26 = scalar_lea.vmem %s5206_s2, %s3515_s17  ;;  %vm2742_vm14 = vcmask 126016   ;;  %vm2870_vm15 = vcmask 191616  }
  0x13   : > { %v3867_v1 = vld [vmem:[%s267_s23 + $0x8] ss:$0 sps:$4 sm:$0xff]   ;;  %v3872_v3 = vld [vmem:[%s267_s23] sm:$0xff]   ;;  %v3895_v8 = vld [vmem:[%s257_s20 + $0x18] sm:$0xff]   ;;  %306 = vst.msk [vmem:[#allocation3 + $0x10] sm:$0xff] %vm294_vm2, %v5212_v0  ;;  %s3808_s5 = smov 24   ;;  %s5081_s8 = scalar_lea.vmem %s5207_s3, %s3514_s16 }
  0x14   : > { %v389_v2 = vsel %vm369_vm1, %v3867_v1, 0  ;;  %v386_v4 = vsel %vm369_vm1, %v3872_v3, 0  ;;  %v3901_v9 = vld [vmem:[%s257_s20 + $0x20] ss:$0 sps:$4 sm:$0xff]   ;;  %307 = vst.msk [vmem:[#allocation3 + $0x18] sm:$0xff] %vm294_vm2, %v5212_v0  ;;  %308 = vst.msk [vmem:[#allocation3 + $0x20] sm:$0xff] %vm294_vm2, %v5212_v0 }
  0x15   : > { %3323 = vmatpush3.bf16.xpose.msra.mxu0 %v389_v2  ;;  %309 = vst.msk [vmem:[#allocation3 + $0x28] sm:$0xff] %vm294_vm2, %v5212_v0  ;;  %310 = vst.msk [vmem:[#allocation3 + $0x30] sm:$0xff] %vm294_vm2, %v5212_v0  ;;  %v463_v41 = vld [vmem:[#allocation2] sm:$0xff]  ;;  %v3979_v44 = vld [vmem:[#allocation2 + $0x8] sm:$0xff] }
  0x16   : > { %3324 = vmatprep.subr.bf16.mxu0 %v5212_v0  ;;  %311 = vst.msk [vmem:[#allocation3 + $0x38] sm:$0xff] %vm294_vm2, %v5212_v0  ;;  %312 = vst.msk [vmem:[#allocation3 + $0x40] sm:$0xff] %vm294_vm2, %v5212_v0  ;;  %v465_v47 = vld [vmem:[#allocation2 + $0x10] sm:$0xff]  ;;  %v466_v50 = vld [vmem:[#allocation2 + $0x18] sm:$0xff] }
  0x17   : > { %v3988_v55 = vld [vmem:[%s3977_s26 + $0x8] ss:$0 sps:$4 sm:$0xff]   ;;  %v3990_v56 = vld [vmem:[#allocation2 + $0x20] sm:$0xff]  ;;  %316 = vst.msk [vmem:[#allocation4 + $0x10] sm:$0xff] %vm313_vm6, %v5212_v0  ;;  %314 = vst.msk [vmem:[#allocation4] sm:$0xff] %vm313_vm6, %v5212_v0 }
  0x18   : > { %v766_v58 = vsel %vm764_vm5, %v3988_v55, 0  ;;  %315 = vst.msk [vmem:[#allocation4 + $0x8] sm:$0xff] %vm313_vm6, %v5212_v0  ;;  %317 = vst.msk [vmem:[#allocation4 + $0x18] sm:$0xff] %vm313_vm6, %v5212_v0  ;;  %v468_v63 = vld [vmem:[#allocation2 + $0x28] sm:$0xff]  ;;  %v4009_v2 = vld [vmem:[%s3977_s26] sm:$0xff]  }
  0x19   : > { %3347 = vmatpush3.bf16.msra.mxu1 %v766_v58  ;;  %318 = vst.msk [vmem:[#allocation4 + $0x20] sm:$0xff] %vm313_vm6, %v5212_v0  ;;  %319 = vst.msk [vmem:[#allocation4 + $0x28] sm:$0xff] %vm313_vm6, %v5212_v0 }
  0x1a   : > { %3348 = vmatprep.subr.bf16.mxu1 %v5212_v0  ;;  %320 = vst.msk [vmem:[#allocation4 + $0x30] sm:$0xff] %vm313_vm6, %v5212_v0  ;;  %321 = vst.msk [vmem:[#allocation4 + $0x38] sm:$0xff] %vm313_vm6, %v5212_v0 }
  0x1b   : > { %322 = vst.msk [vmem:[#allocation4 + $0x40] sm:$0xff] %vm313_vm6, %v5212_v0 }
  0x1d   : > { %3325 = vmatpush3.bf16.xpose.msra.mxu0 %v386_v4  ;;  %3349 = vmatpush3.bf16.msra.mxu1 %v4009_v2 }
  0x1e   : > { %3394 = vmatprep.subr.bf16.mxu0 %v5212_v0  ;;  %3370 = vmatprep.subr.bf16.mxu1 %v5212_v0 }
  0x24   : > { %3327 = vmatmul.mubr.msk.bf16.vlgmr.msra.gmra.mxu0 %vm369_vm1, %v3877_v5 }
  0x25   : > { %3330 = vmatprep.mubr.msk.bf16.mxu0 %vm3797_vm0, %v5212_v0 }
  0x2c   : > { %3331 = vmatmul.mubr.msk.bf16.gmra.mxu0 %vm369_vm1, %v3883_v6 }
  0x2d   : > { %3334 = vmatprep.mubr.msk.bf16.mxu0 %vm3797_vm0, %v5212_v0 }
  0x34   : > { %3335 = vmatmul.mubr.msk.bf16.gmra.mxu0 %vm369_vm1, %v3889_v7 }
  0x35   : > { %3338 = vmatprep.mubr.msk.bf16.mxu0 %vm3797_vm0, %v5212_v0 }
  0x3c   : > { %3339 = vmatmul.mubr.msk.bf16.gmra.mxu0 %vm369_vm1, %v3895_v8 }
  0x3d   : > { %3342 = vmatprep.mubr.msk.bf16.mxu0 %vm3797_vm0, %v5212_v0 }
  0x44   : > { %3343 = vmatmul.mubr.msk.bf16.gmra.mxu0 %vm369_vm1, %v3901_v9 }
  0x45   : > { %3398 = vmatprep.mubr.msk.bf16.mxu0 %vm3797_vm0, %v5212_v0 }
  0xe4   : > { %v3934_v11 = vpop.f32.mrf.mxu0 }
  0xe5   : > { %v473_v12 = vsel %vm472_vm3, %v3934_v11, -inf }
  0xe6   : > { %474 = vmax.xlane.f32.xlu0 %v473_v12  ;;  %v3328_v13 = vpop.f32.mrf.mxu0 }
  0xe7   : > { %v469_v13 = vld [vmem:[#allocation2 + $0x30] sm:$0xff] }
  0xe8   : > { %v3938_v14 = vpop.f32.mrf.mxu0 }
  0xe9   : > { %v476_v15 = vsel %vm472_vm3, %v3938_v14, -inf }
  0xea   : > { %477 = vmax.xlane.f32.xlu0 %v476_v15  ;;  %v3329_v16 = vpop.f32.mrf.mxu0 }
  0xec   : > { %v3942_v17 = vpop.f32.mrf.mxu0 }
  0xed   : > { %v479_v18 = vsel %vm472_vm3, %v3942_v17, -inf }
  0xee   : > { %480 = vmax.xlane.f32.xlu1 %v479_v18  ;;  %v3332_v19 = vpop.f32.mrf.mxu0 }
  0xef   : > { %v470_v19 = vld [vmem:[#allocation2 + $0x38] sm:$0xff] }
  0xf0   : > { %v3946_v20 = vpop.f32.mrf.mxu0 }
  0xf1   : > { %v482_v21 = vsel %vm472_vm3, %v3946_v20, -inf }
  0xf2   : > { %483 = vmax.xlane.f32.xlu1 %v482_v21  ;;  %v3333_v23 = vpop.f32.mrf.mxu0 }
  0xf4   : > { %v3952_v24 = vpop.f32.mrf.mxu0 }
  0xf5   : > { %v485_v25 = vsel %vm472_vm3, %v3952_v24, -inf }
  0xf6   : > { %486 = vmax.xlane.f32.xlu0 %v485_v25  ;;  %v3336_v26 = vpop.f32.mrf.mxu0 }
  0xf8   : > { %v3956_v27 = vpop.f32.mrf.mxu0 }
  0xf9   : > { %v488_v28 = vsel %vm472_vm3, %v3956_v27, -inf }
  0xfa   : > { %489 = vmax.xlane.f32.xlu1 %v488_v28  ;;  %v3337_v29 = vpop.f32.mrf.mxu0  ;;  %v471_v28 = vld [vmem:[#allocation2 + $0x40] sm:$0xff] }
  0xfc   : > { %v3960_v30 = vpop.f32.mrf.mxu0 }
  0xfd   : > { %v491_v31 = vsel %vm472_vm3, %v3960_v30, -inf }
  0xfe   : > { %492 = vmax.xlane.f32.xlu0 %v491_v31  ;;  %v3340_v32 = vpop.f32.mrf.mxu0 }
 0x100   : > { %v3964_v33 = vpop.f32.mrf.mxu0 }
 0x101   : > { %v494_v34 = vsel %vm472_vm3, %v3964_v33, -inf }
 0x102   : > { %495 = vmax.xlane.f32.xlu1 %v494_v34  ;;  %v3341_v35 = vpop.f32.mrf.mxu0 }
 0x104   : > { %v3968_v36 = vpop.f32.mrf.mxu0 }
 0x105   : > { %v497_v37 = vsel %vm472_vm3, %v3968_v36, -inf }
 0x106   : > { %498 = vmax.xlane.f32.xlu0 %v497_v37  ;;  %v3344_v38 = vpop.f32.mrf.mxu0 }
 0x108   : > { %v460_v39 = vpop.f32.mrf.mxu0 }
 0x10a   : > { %v3345_v40 = vpop.f32.mrf.mxu0 }
 0x16f   : > { %v475_v42 = vpop.xlane.xlu0 %474 }
 0x170   : > { %v500_v43 = vmax.f32 %v463_v41, %v475_v42 }
 0x172   : > { %858 = vst.msk [vmem:[#allocation2] sm:$0xff] %vm662_vm4, %v500_v43  ;;  %538 = vperm.xlu1 %3553, %v500_v43   ;;  %v509_v60 = vsub.f32 %v463_v41, %v500_v43 }
 0x173   : > { %v478_v45 = vpop.xlane.xlu0 %477 }
 0x174   : > { %v501_v46 = vmax.f32 %v3979_v44, %v478_v45  ;;  %v518_v10 = vmul.f32 1.442695, %v509_v60 }
 0x176   : > { %859 = vst.msk [vmem:[#allocation2 + $0x8] sm:$0xff] %vm662_vm4, %v501_v46  ;;  %543 = vperm.xlu0 %3554, %v501_v46   ;;  %v510_v16 = vsub.f32 %v3979_v44, %v501_v46 }
 0x177   : > { %v481_v48 = vpop.xlane.xlu1 %480 }
 0x178   : > { %v502_v49 = vmax.f32 %v465_v47, %v481_v48  ;;  %v520_v25 = vmul.f32 1.442695, %v510_v16 }
 0x17a   : > { %v511_v51 = vsub.f32 %v465_v47, %v502_v49  ;;  %860 = vst.msk [vmem:[#allocation2 + $0x10] sm:$0xff] %vm662_vm4, %v502_v49  ;;  %548 = vperm.xlu1 %3553, %v502_v49   ;;  %879 = vrot.lane.b32.xlu0 %v3867_v1, %s3800_s27 }
 0x17b   : > { %v484_v52 = vpop.xlane.xlu1 %483 }
 0x17c   : > { %v522_v53 = vmul.f32 1.442695, %v511_v51  ;;  %v503_v54 = vmax.f32 %v466_v50, %v484_v52 }
 0x17e   : > { %3608 = vpow2.f32 %v522_v53  ;;  %v512_v57 = vsub.f32 %v466_v50, %v503_v54  ;;  %861 = vst.msk [vmem:[#allocation2 + $0x18] sm:$0xff] %vm662_vm4, %v503_v54  ;;  %553 = vperm.xlu1 %3553, %v503_v54  }
 0x17f   : > { %v487_v59 = vpop.xlane.xlu0 %486 }
 0x180   : > { %v524_v61 = vmul.f32 1.442695, %v512_v57  ;;  %v3996_v62 = vmax.f32 %v3990_v56, %v487_v59 }
 0x182   : > { %3610 = vpow2.f32 %v524_v61  ;;  %862 = vst.msk [vmem:[#allocation2 + $0x20] sm:$0xff] %vm662_vm4, %v3996_v62  ;;  %558 = vperm.xlu1 %3553, %v3996_v62   ;;  %v513_v40 = vsub.f32 %v3990_v56, %v3996_v62 }
 0x183   : > { %v490_v4 = vpop.xlane.xlu1 %489  ;;  %3612 = vpow2.f32 %v518_v10 }
 0x184   : > { %v505_v12 = vmax.f32 %v468_v63, %v490_v4  ;;  %3614 = vpow2.f32 %v520_v25  ;;  %v526_v43 = vmul.f32 1.442695, %v513_v40 }
 0x186   : > { %863 = vst.msk [vmem:[#allocation2 + $0x28] sm:$0xff] %vm662_vm4, %v505_v12  ;;  %563 = vperm.xlu1 %3553, %v505_v12   ;;  %v514_v37 = vsub.f32 %v468_v63, %v505_v12 }
 0x187   : > { %v493_v15 = vpop.xlane.xlu0 %492 }
 0x188   : > { %v506_v18 = vmax.f32 %v469_v13, %v493_v15  ;;  %v528_v38 = vmul.f32 1.442695, %v514_v37 }
 0x18a   : > { %864 = vst.msk [vmem:[#allocation2 + $0x30] sm:$0xff] %vm662_vm4, %v506_v18  ;;  %568 = vperm.xlu1 %3553, %v506_v18   ;;  %v515_v39 = vsub.f32 %v469_v13, %v506_v18  ;;  %3616 = vpow2.f32 %v528_v38 }
 0x18b   : > { %v4019_v21 = vpop.eup %3608  ;;  %v496_v23 = vpop.xlane.xlu1 %495 }
 0x18c   : > { %v507_v26 = vmax.f32 %v470_v19, %v496_v23  ;;  %693 = vperm.xlu0 %3554, %v4019_v21   ;;  %v530_v41 = vmul.f32 1.442695, %v515_v39 }
 0x18e   : > { %865 = vst.msk [vmem:[#allocation2 + $0x38] sm:$0xff] %vm662_vm4, %v507_v26  ;;  %573 = vperm.xlu1 %3553, %v507_v26   ;;  %v516_v44 = vsub.f32 %v470_v19, %v507_v26  ;;  %3618 = vpow2.f32 %v530_v41 }
 0x18f   : > { %v4023_v29 = vpop.eup %3610  ;;  %v499_v31 = vpop.xlane.xlu0 %498  ;;  %3620 = vpow2.f32 %v526_v43 }
 0x190   : > { %v508_v32 = vmax.f32 %v471_v28, %v499_v31  ;;  %698 = vperm.xlu0 %3554, %v4023_v29   ;;  %v4029_v34 = vpop.eup %3612 }
 0x191   : > { %v4038_v35 = vpop.eup %3614 }
 0x192   : > { %866 = vst.msk [vmem:[#allocation2 + $0x40] sm:$0xff] %vm662_vm4, %v508_v32  ;;  %578 = vperm.xlu1 %3553, %v508_v32   ;;  %v517_v42 = vsub.f32 %v471_v28, %v508_v32 }
 0x194   : > { %871 = vrot.lane.b32.xlu0 %v3889_v7, %s3800_s27  ;;  %v534_v45 = vmul.f32 1.442695, %v517_v42 }
 0x196   : > { %683 = vperm.xlu1 %3553, %v4029_v34   ;;  %3622 = vpow2.f32 %v534_v45 }
 0x198   : > { %873 = vrot.lane.b32.xlu0 %v3895_v8, %s3800_s27 }
 0x19a   : > { %877 = vrot.lane.b32.xlu1 %v3872_v3, %s3800_s27 }
 0x19c   : > { %1419 = vrot.lane.b32.xlu0 %v3872_v3, %s3801_s28 }
 0x19e   : > { %688 = vperm.xlu1 %3553, %v4038_v35  }
 0x1a0   : > { %1409 = vrot.lane.b32.xlu0 %v3877_v5, %s3801_s28 }
 0x1a2   : > { %867 = vrot.lane.b32.xlu1 %v3877_v5, %s3800_s27 }
 0x1a4   : > { %1411 = vrot.lane.b32.xlu0 %v3883_v6, %s3801_s28 }
 0x1a6   : > { %869 = vrot.lane.b32.xlu1 %v3883_v6, %s3800_s27 }
 0x1a8   : > { %1413 = vrot.lane.b32.xlu0 %v3889_v7, %s3801_s28 }
 0x1aa   : > { %1421 = vrot.lane.b32.xlu1 %v3867_v1, %s3801_s28 }
 0x1ac   : > { %1415 = vrot.lane.b32.xlu0 %v3895_v8, %s3801_s28 }
 0x1ae   : > { %875 = vrot.lane.b32.xlu1 %v3901_v9, %s3800_s27 }
 0x1b0   : > { %1963 = vrot.lane.b32.xlu0 %v3867_v1, %s3802_s29  ;;  %v532_v1 = vmul.f32 1.442695, %v516_v44 }
 0x1b2   : > { %1953 = vrot.lane.b32.xlu1 %v3883_v6, %s3802_s29  ;;  %3624 = vpow2.f32 %v532_v1  ;;  %v4077_v6 = vpop.eup %3616 }
 0x1b4   : > { %1417 = vrot.lane.b32.xlu0 %v3901_v9, %s3801_s28 }
 0x1b6   : > { %1955 = vrot.lane.b32.xlu1 %v3889_v7, %s3802_s29 }
 0x1b8   : > { %1961 = vrot.lane.b32.xlu0 %v3872_v3, %s3802_s29  ;;  %v4082_v3 = vpop.eup %3618 }
 0x1b9   : > { %v4085_v7 = vpop.eup %3620 }
 0x1ba   : > { %1957 = vrot.lane.b32.xlu1 %v3895_v8, %s3802_s29 }
 0x1bc   : > { %1951 = vrot.lane.b32.xlu0 %v3877_v5, %s3802_s29  ;;  %v4088_v5 = vpop.eup %3622 }
 0x1be   : > { %1252 = vrot.lane.b32.xlu1 %v3988_v55, %s3800_s27 }
 0x1bf   : > { %v4091_v8 = vpop.eup %3624 }
 0x1c0   : > { %1959 = vrot.lane.b32.xlu0 %v3901_v9, %s3802_s29 }
 0x1c2   : > { %708 = vperm.xlu1 %3553, %v4077_v6  }
 0x1c4   : > { %1250 = vrot.lane.b32.xlu0 %v4009_v2, %s3800_s27 }
 0x1c6   : > { %713 = vperm.xlu1 %3553, %v4082_v3  }
 0x1c8   : > { %703 = vperm.xlu0 %3554, %v4085_v7  }
 0x1ca   : > { %723 = vperm.xlu1 %3553, %v4088_v5  }
 0x1cc   : > { %718 = vperm.xlu0 %3554, %v4091_v8  }
 0x1ed   : > { %v539_v9 = vpop.permute.xlu1 %538 }
 0x1ee   : > { %v581_v46 = vsub.f32 %v3934_v11, %v539_v9 }
 0x1f0   : > { %v590_v47 = vmul.f32 1.442695, %v581_v46 }
 0x1f1   : > { %v544_v48 = vpop.permute.xlu0 %543 }
 0x1f2   : > { %3626 = vpow2.f32 %v590_v47  ;;  %v582_v49 = vsub.f32 %v3938_v14, %v544_v48 }
 0x1f4   : > { %v592_v50 = vmul.f32 1.442695, %v582_v49 }
 0x1f5   : > { %v549_v51 = vpop.permute.xlu1 %548  ;;  %v880_v61 = vpop.permute.xlu0 %879 }
 0x1f6   : > { %3628 = vpow2.f32 %v592_v50  ;;  %v583_v52 = vsub.f32 %v3942_v17, %v549_v51  ;;  %v900_v2 = vsel %vm369_vm1, %v880_v61, 0 }
 0x1f8   : > { %v594_v53 = vmul.f32 1.442695, %v583_v52 }
 0x1f9   : > { %v554_v54 = vpop.permute.xlu1 %553 }
 0x1fa   : > { %3630 = vpow2.f32 %v594_v53  ;;  %v584_v55 = vsub.f32 %v3946_v20, %v554_v54 }
 0x1fc   : > { %v596_v56 = vmul.f32 1.442695, %v584_v55 }
 0x1fd   : > { %v559_v57 = vpop.permute.xlu1 %558 }
 0x1fe   : > { %3632 = vpow2.f32 %v596_v56  ;;  %v585_v11 = vsub.f32 %v3952_v24, %v559_v57 }
 0x1ff   : > { %v3627_v58 = vpop.eup %3626 }
 0x200   : > { %v598_v59 = vmul.f32 1.442695, %v585_v11  ;;  %v626_v60 = vsel %vm472_vm3, %v3627_v58, 0.0 }
 0x201   : > { %v564_v14 = vpop.permute.xlu1 %563  ;;  %627 = vadd.xlane.f32.xlu1 %v626_v60 }
 0x202   : > { %3634 = vpow2.f32 %v598_v59  ;;  %v586_v17 = vsub.f32 %v3956_v27, %v564_v14 }
 0x203   : > { %v3629_v62 = vpop.eup %3628 }
 0x204   : > { %v600_v63 = vmul.f32 1.442695, %v586_v17  ;;  %v629_v20 = vsel %vm472_vm3, %v3629_v62, 0.0  ;;  %v735_v4 = vpack.c.bf16 %v3629_v62, %v3627_v58 }
 0x205   : > { %v569_v10 = vpop.permute.xlu1 %568  ;;  %630 = vadd.xlane.f32.xlu0 %v629_v20 }
 0x206   : > { %3636 = vpow2.f32 %v600_v63  ;;  %v587_v24 = vsub.f32 %v3960_v30, %v569_v10  ;;  %3351 = vmatmul.mubr.msk.bf16.vlgmr.msra.gmra.mxu1 %vm472_vm3, %v735_v4 }
 0x207   : > { %v3631_v12 = vpop.eup %3630  ;;  %v4105_v13 = vpop.permute.xlu0 %693  ;;  %3371 = vmatpush3.bf16.xpose.msra.mxu1 %v900_v2  ;;  %3354 = vmatprep.mubr.msk.bf16.mxu1 %vm3797_vm0, %v5212_v0 }
 0x208   : > { %v602_v27 = vmul.f32 1.442695, %v587_v24  ;;  %v632_v15 = vsel %vm472_vm3, %v3631_v12, 0.0  ;;  %3372 = vmatprep.subr.bf16.mxu1 %v5212_v0 }
 0x209   : > { %v574_v16 = vpop.permute.xlu1 %573  ;;  %633 = vadd.xlane.f32.xlu0 %v632_v15 }
 0x20a   : > { %3638 = vpow2.f32 %v602_v27  ;;  %v588_v18 = vsub.f32 %v3964_v33, %v574_v16 }
 0x20b   : > { %v3633_v30 = vpop.eup %3632  ;;  %v4112_v19 = vpop.permute.xlu0 %698 }
 0x20c   : > { %v604_v23 = vmul.f32 1.442695, %v588_v18  ;;  %v635_v25 = vsel %vm472_vm3, %v3633_v30, 0.0  ;;  %v736_v26 = vpack.c.bf16 %v3633_v30, %v3631_v12 }
 0x20d   : > { %v579_v28 = vpop.permute.xlu1 %578  ;;  %636 = vadd.xlane.f32.xlu1 %v635_v25 }
 0x20e   : > { %3640 = vpow2.f32 %v604_v23  ;;  %v589_v31 = vsub.f32 %v3968_v36, %v579_v28  ;;  %3355 = vmatmul.mubr.msk.bf16.gmra.mxu1 %vm472_vm3, %v736_v26  ;;  %v608_v26 = vld [vmem:[#allocation3] sm:$0xff] }
 0x20f   : > { %v3635_v32 = vpop.eup %3634  ;;  %v4117_v37 = vpop.permute.xlu0 %871  ;;  %3358 = vmatprep.mubr.msk.bf16.mxu1 %vm3797_vm0, %v5212_v0  ;;  %v617_v28 = vmul.f32 %v4029_v34, %v608_v26 }
 0x210   : > { %v606_v33 = vmul.f32 1.442695, %v589_v31  ;;  %v638_v38 = vsel %vm472_vm3, %v3635_v32, 0.0 }
 0x211   : > { %v4122_v39 = vpop.permute.xlu1 %683  ;;  %639 = vadd.xlane.f32.xlu0 %v638_v38 }
 0x212   : > { %3642 = vpow2.f32 %v606_v33 }
 0x213   : > { %v3637_v40 = vpop.eup %3636  ;;  %v874_v41 = vpop.permute.xlu0 %873 }
 0x214   : > { %v641_v42 = vsel %vm472_vm3, %v3637_v40, 0.0  ;;  %v737_v36 = vpack.c.bf16 %v3637_v40, %v3635_v32 }
 0x215   : > { %v878_v43 = vpop.permute.xlu1 %877  ;;  %642 = vadd.xlane.f32.xlu1 %v641_v42 }
 0x216   : > { %v897_v44 = vsel %vm369_vm1, %v878_v43, 0  ;;  %3359 = vmatmul.mubr.msk.bf16.gmra.mxu1 %vm472_vm3, %v737_v36  ;;  %v611_v43 = vld [vmem:[#allocation3 + $0x18] sm:$0xff] }
 0x217   : > { %v3639_v45 = vpop.eup %3638  ;;  %v1420_v1 = vpop.permute.xlu0 %1419  ;;  %3362 = vmatprep.mubr.msk.bf16.mxu1 %vm3797_vm0, %v5212_v0  ;;  %3373 = vmatpush3.bf16.xpose.msra.mxu1 %v897_v44 }
 0x218   : > { %v644_v9 = vsel %vm472_vm3, %v3639_v45, 0.0  ;;  %3418 = vmatprep.subr.bf16.mxu1 %v5212_v0  ;;  %v1439_v2 = vsel %vm369_vm1, %v1420_v1, 0  ;;  %v612_v1 = vld [vmem:[#allocation3 + $0x20] sm:$0xff] }
 0x219   : > { %v4131_v46 = vpop.permute.xlu1 %688  ;;  %645 = vadd.xlane.f32.xlu0 %v644_v9 }
 0x21b   : > { %v3641_v47 = vpop.eup %3640  ;;  %v1410_v48 = vpop.permute.xlu0 %1409 }
 0x21c   : > { %v647_v49 = vsel %vm472_vm3, %v3641_v47, 0.0  ;;  %v738_v50 = vpack.c.bf16 %v3641_v47, %v3639_v45  ;;  %v620_v45 = vmul.f32 %v4023_v29, %v611_v43  ;;  %v679_v43 = vld [vmem:[#allocation4 + $0x38] sm:$0xff] }
 0x21d   : > { %v868_v51 = vpop.permute.xlu1 %867  ;;  %648 = vadd.xlane.f32.xlu1 %v647_v49 }
 0x21e   : > { %3363 = vmatmul.mubr.msk.bf16.gmra.mxu1 %vm472_vm3, %v738_v50 }
 0x21f   : > { %v3643_v52 = vpop.eup %3642  ;;  %v1412_v53 = vpop.permute.xlu0 %1411  ;;  %3366 = vmatprep.mubr.msk.bf16.mxu1 %vm3797_vm0, %v5212_v0 }
 0x220   : > { %v650_v54 = vsel %vm472_vm3, %v3643_v52, 0.0  ;;  %v739_v57 = vpack.c.bf16 %v3643_v52, %v3643_v52 }
 0x221   : > { %v870_v55 = vpop.permute.xlu1 %869  ;;  %651 = vadd.xlane.f32.xlu0 %v650_v54 }
 0x223   : > { %v1414_v56 = vpop.permute.xlu0 %1413 }
 0x225   : > { %v1422_v11 = vpop.permute.xlu1 %1421 }
 0x226   : > { %3367 = vmatmul.mubr.msk.bf16.gmra.mxu1 %vm472_vm3, %v739_v57  ;;  %v1442_v14 = vsel %vm369_vm1, %v1422_v11, 0  ;;  %v616_v11 = vld [vmem:[#allocation3 + $0x40] sm:$0xff] }
 0x227   : > { %v1416_v58 = vpop.permute.xlu0 %1415  ;;  %3374 = vmatprep.mubr.msk.bf16.mxu1 %vm3797_vm0, %v5212_v0 }
 0x229   : > { %v876_v59 = vpop.permute.xlu1 %875 }
 0x22b   : > { %v1964_v60 = vpop.permute.xlu0 %1963 }
 0x22c   : > { %v1984_v15 = vsel %vm369_vm1, %v1964_v60, 0 }
 0x22d   : > { %v1954_v61 = vpop.permute.xlu1 %1953 }
 0x22e   : > { %3375 = vmatmul.mubr.msk.bf16.vlgmr.msra.gmra.mxu1 %vm369_vm1, %v868_v51  ;;  %v614_v51 = vld [vmem:[#allocation3 + $0x30] sm:$0xff] }
 0x22f   : > { %v1418_v17 = vpop.permute.xlu0 %1417  ;;  %3378 = vmatprep.mubr.msk.bf16.mxu1 %vm3797_vm0, %v5212_v0  ;;  %3419 = vmatpush3.bf16.xpose.msra.mxu1 %v1442_v14  ;;  %v672_v14 = vld [vmem:[#allocation4] sm:$0xff] }
 0x230   : > { %3420 = vmatprep.subr.bf16.mxu1 %v5212_v0 }
 0x231   : > { %v1956_v62 = vpop.permute.xlu1 %1955 }
 0x233   : > { %v1962_v63 = vpop.permute.xlu0 %1961 }
 0x234   : > { %v1981_v16 = vsel %vm369_vm1, %v1962_v63, 0 }
 0x235   : > { %v4147_v20 = vpop.permute.xlu1 %1957 }
 0x236   : > { %3379 = vmatmul.mubr.msk.bf16.gmra.mxu1 %vm369_vm1, %v870_v55  ;;  %v615_v55 = vld [vmem:[#allocation3 + $0x38] sm:$0xff] }
 0x237   : > { %v1952_v4 = vpop.permute.xlu0 %1951  ;;  %3382 = vmatprep.mubr.msk.bf16.mxu1 %vm3797_vm0, %v5212_v0  ;;  %3421 = vmatpush3.bf16.xpose.msra.mxu1 %v1439_v2  ;;  %v674_v2 = vld [vmem:[#allocation4 + $0x10] sm:$0xff] }
 0x238   : > { %3466 = vmatprep.subr.bf16.mxu1 %v5212_v0 }
 0x239   : > { %v1253_v10 = vpop.permute.xlu1 %1252 }
 0x23a   : > { %v1271_v24 = vsel %vm764_vm5, %v1253_v10, 0 }
 0x23b   : > { %v4154_v12 = vpop.permute.xlu0 %1959  ;;  %3395 = vmatpush3.bf16.msra.mxu0 %v1271_v24  ;;  %v675_v24 = vld [vmem:[#allocation4 + $0x18] sm:$0xff] }
 0x23c   : > { %3396 = vmatprep.subr.bf16.mxu0 %v5212_v0 }
 0x23d   : > { %v4186_v18 = vpop.permute.xlu1 %708 }
 0x23e   : > { %3383 = vmatmul.mubr.msk.bf16.gmra.mxu1 %vm369_vm1, %v4117_v37  ;;  %v609_v37 = vld [vmem:[#allocation3 + $0x8] sm:$0xff] }
 0x23f   : > { %v1251_v27 = vpop.permute.xlu0 %1250  ;;  %3386 = vmatprep.mubr.msk.bf16.mxu1 %vm3797_vm0, %v5212_v0  ;;  %v618_v38 = vmul.f32 %v4038_v35, %v609_v37  ;;  %v677_v37 = vld [vmem:[#allocation4 + $0x28] sm:$0xff] }
 0x240   : > { %3397 = vmatpush3.bf16.msra.mxu0 %v1251_v27 }
 0x241   : > { %3442 = vmatprep.subr.bf16.mxu0 %v5212_v0  ;;  %v4191_v30 = vpop.permute.xlu1 %713 }
 0x243   : > { %v4193_v23 = vpop.permute.xlu0 %703 }
 0x245   : > { %v4195_v25 = vpop.permute.xlu1 %723 }
 0x246   : > { %3387 = vmatmul.mubr.msk.bf16.gmra.mxu1 %vm369_vm1, %v874_v41  ;;  %v610_v41 = vld [vmem:[#allocation3 + $0x10] sm:$0xff] }
 0x247   : > { %3390 = vmatprep.mubr.msk.bf16.mxu1 %vm3797_vm0, %v5212_v0  ;;  %v4201_v31 = vpop.permute.xlu0 %718  ;;  %v619_v34 = vmul.f32 %v4019_v21, %v610_v41  ;;  %v621_v21 = vmul.f32 %v4085_v7, %v612_v1  ;;  %v678_v41 = vld [vmem:[#allocation4 + $0x30] sm:$0xff]  ;;  %v680_v1 = vld [vmem:[#allocation4 + $0x40] sm:$0xff] }
 0x24e   : > { %3391 = vmatmul.mubr.msk.bf16.gmra.mxu1 %vm369_vm1, %v876_v59 }
 0x24f   : > { %3422 = vmatprep.mubr.msk.bf16.mxu1 %vm3797_vm0, %v5212_v0 }
 0x256   : > { %3423 = vmatmul.mubr.msk.bf16.vlgmr.msra.gmra.mxu1 %vm369_vm1, %v1410_v48  ;;  %v613_v48 = vld [vmem:[#allocation3 + $0x28] sm:$0xff] }
 0x257   : > { %3426 = vmatprep.mubr.msk.bf16.mxu1 %vm3797_vm0, %v5212_v0  ;;  %3467 = vmatpush3.bf16.xpose.msra.mxu1 %v1984_v15  ;;  %v622_v29 = vmul.f32 %v4077_v6, %v613_v48  ;;  %v729_v15 = vmul.f32 %v4112_v19, %v675_v24 }
 0x258   : > { %3468 = vmatprep.subr.bf16.mxu1 %v5212_v0 }
 0x25e   : > { %3427 = vmatmul.mubr.msk.bf16.gmra.mxu1 %vm369_vm1, %v1412_v53  ;;  %v623_v53 = vmul.f32 %v4082_v3, %v614_v51  ;;  %v726_v3 = vmul.f32 %v4122_v39, %v672_v14 }
 0x25f   : > { %3430 = vmatprep.mubr.msk.bf16.mxu1 %vm3797_vm0, %v5212_v0  ;;  %3469 = vmatpush3.bf16.xpose.msra.mxu1 %v1981_v16  ;;  %v676_v16 = vld [vmem:[#allocation4 + $0x20] sm:$0xff] }
 0x266   : > { %3431 = vmatmul.mubr.msk.bf16.gmra.mxu1 %vm369_vm1, %v1414_v56  ;;  %v624_v56 = vmul.f32 %v4091_v8, %v615_v55 }
 0x267   : > { %3434 = vmatprep.mubr.msk.bf16.mxu1 %vm3797_vm0, %v5212_v0 }
 0x26e   : > { %3435 = vmatmul.mubr.msk.bf16.gmra.mxu1 %vm369_vm1, %v1416_v58  ;;  %v625_v58 = vmul.f32 %v4088_v5, %v616_v11  ;;  %v728_v5 = vmul.f32 %v4105_v13, %v674_v2 }
 0x26f   : > { %3438 = vmatprep.mubr.msk.bf16.mxu1 %vm3797_vm0, %v5212_v0 }
 0x276   : > { %3439 = vmatmul.mubr.msk.bf16.gmra.mxu1 %vm369_vm1, %v1418_v17 }
 0x277   : > { %3470 = vmatprep.mubr.msk.bf16.mxu1 %vm3797_vm0, %v5212_v0 }
 0x27e   : > { %3471 = vmatmul.mubr.msk.bf16.vlgmr.msra.gmra.mxu1 %vm369_vm1, %v1952_v4 }
 0x27f   : > { %3474 = vmatprep.mubr.msk.bf16.mxu1 %vm3797_vm0, %v5212_v0 }
 0x286   : > { %3475 = vmatmul.mubr.msk.bf16.gmra.mxu1 %vm369_vm1, %v1954_v61  ;;  %v673_v61 = vld [vmem:[#allocation4 + $0x8] sm:$0xff] }
 0x287   : > { %3478 = vmatprep.mubr.msk.bf16.mxu1 %vm3797_vm0, %v5212_v0  ;;  %v727_v8 = vmul.f32 %v4131_v46, %v673_v61 }
 0x28a   : > { %v628_v32 = vpop.xlane.xlu1 %627 }
 0x28b   : > { %v653_v33 = vadd.f32 %v628_v32, %v617_v28  ;;  %v730_v32 = vmul.f32 %v4193_v23, %v676_v16 }
 0x28d   : > { %663 = vst.msk [vmem:[#allocation3] sm:$0xff] %vm662_vm4, %v653_v33 }
 0x28e   : > { %3479 = vmatmul.mubr.msk.bf16.gmra.mxu1 %vm369_vm1, %v1956_v62  ;;  %v631_v40 = vpop.xlane.xlu0 %630 }
 0x28f   : > { %v654_v42 = vadd.f32 %v631_v40, %v618_v38  ;;  %3482 = vmatprep.mubr.msk.bf16.mxu1 %vm3797_vm0, %v5212_v0  ;;  %v731_v40 = vmul.f32 %v4186_v18, %v677_v37 }
 0x291   : > { %664 = vst.msk [vmem:[#allocation3 + $0x8] sm:$0xff] %vm662_vm4, %v654_v42 }
 0x292   : > { %v634_v36 = vpop.xlane.xlu0 %633 }
 0x293   : > { %v655_v44 = vadd.f32 %v634_v36, %v619_v34  ;;  %v732_v36 = vmul.f32 %v4191_v30, %v678_v41 }
 0x295   : > { %665 = vst.msk [vmem:[#allocation3 + $0x10] sm:$0xff] %vm662_vm4, %v655_v44 }
 0x296   : > { %v637_v35 = vpop.xlane.xlu1 %636  ;;  %3483 = vmatmul.mubr.msk.bf16.gmra.mxu1 %vm369_vm1, %v4147_v20 }
 0x297   : > { %v656_v9 = vadd.f32 %v637_v35, %v620_v45  ;;  %3486 = vmatprep.mubr.msk.bf16.mxu1 %vm3797_vm0, %v5212_v0  ;;  %v733_v35 = vmul.f32 %v4201_v31, %v679_v43 }
 0x299   : > { %666 = vst.msk [vmem:[#allocation3 + $0x18] sm:$0xff] %vm662_vm4, %v656_v9 }
 0x29a   : > { %v640_v47 = vpop.xlane.xlu0 %639 }
 0x29b   : > { %v657_v49 = vadd.f32 %v640_v47, %v621_v21  ;;  %v734_v47 = vmul.f32 %v4195_v25, %v680_v1 }
 0x29d   : > { %667 = vst.msk [vmem:[#allocation3 + $0x20] sm:$0xff] %vm662_vm4, %v657_v49 }
 0x29e   : > { %v643_v50 = vpop.xlane.xlu1 %642  ;;  %3487 = vmatmul.mubr.msk.bf16.gmra.mxu1 %vm369_vm1, %v4154_v12 }
 0x29f   : > { %v658_v52 = vadd.f32 %v643_v50, %v622_v29 }
 0x2a1   : > { %668 = vst.msk [vmem:[#allocation3 + $0x28] sm:$0xff] %vm662_vm4, %v658_v52 }
 0x2a2   : > { %v646_v54 = vpop.xlane.xlu0 %645 }
 0x2a3   : > { %v659_v7 = vadd.f32 %v646_v54, %v623_v53 }
 0x2a5   : > { %669 = vst.msk [vmem:[#allocation3 + $0x30] sm:$0xff] %vm662_vm4, %v659_v7 }
 0x2a6   : > { %v649_v57 = vpop.xlane.xlu1 %648 }
 0x2a7   : > { %v660_v6 = vadd.f32 %v649_v57, %v624_v56 }
 0x2a9   : > { %670 = vst.msk [vmem:[#allocation3 + $0x38] sm:$0xff] %vm662_vm4, %v660_v6  ;;  %v5208_v6 = vmov 1  }
 0x2aa   : > { %v652_v59 = vpop.xlane.xlu0 %651  ;;  %3555 = vset.pattern.permute.xlu0 %v5208_v6  ;;  %3556 = vset.pattern.permute.xlu1 %v5208_v6 }
 0x2ab   : > { %v661_v60 = vadd.f32 %v652_v59, %v625_v58 }
 0x2ad   : > { %671 = vst.msk [vmem:[#allocation3 + $0x40] sm:$0xff] %vm662_vm4, %v661_v60 }
 0x2c6   : > { %v802_v17 = vpop.f32.mrf.mxu1 }
 0x2c7   : > { %v840_v62 = vadd.f32 %v802_v17, %v726_v3 }
 0x2c8   : > { %v3352_v63 = vpop.f32.mrf.mxu1 }
 0x2c9   : > { %849 = vst.msk [vmem:[#allocation4] sm:$0xff] %vm369_vm1, %v840_v62 }
 0x2ca   : > { %v805_v20 = vpop.f32.mrf.mxu1 }
 0x2cb   : > { %v841_v4 = vadd.f32 %v805_v20, %v727_v8 }
 0x2cc   : > { %v3353_v10 = vpop.f32.mrf.mxu1 }
 0x2cd   : > { %850 = vst.msk [vmem:[#allocation4 + $0x8] sm:$0xff] %vm369_vm1, %v841_v4 }
 0x2ce   : > { %v810_v12 = vpop.f32.mrf.mxu1 }
 0x2cf   : > { %v842_v27 = vadd.f32 %v810_v12, %v728_v5 }
 0x2d0   : > { %v3356_v39 = vpop.f32.mrf.mxu1 }
 0x2d1   : > { %851 = vst.msk [vmem:[#allocation4 + $0x10] sm:$0xff] %vm369_vm1, %v842_v27 }
 0x2d2   : > { %v813_v46 = vpop.f32.mrf.mxu1 }
 0x2d3   : > { %v843_v26 = vadd.f32 %v813_v46, %v729_v15 }
 0x2d4   : > { %v3357_v28 = vpop.f32.mrf.mxu1 }
 0x2d5   : > { %852 = vst.msk [vmem:[#allocation4 + $0x18] sm:$0xff] %vm369_vm1, %v843_v26 }
 0x2d6   : > { %v818_v13 = vpop.f32.mrf.mxu1 }
 0x2d7   : > { %v844_v33 = vadd.f32 %v818_v13, %v730_v32 }
 0x2d8   : > { %v3360_v38 = vpop.f32.mrf.mxu1 }
 0x2d9   : > { %853 = vst.msk [vmem:[#allocation4 + $0x20] sm:$0xff] %vm369_vm1, %v844_v33 }
 0x2da   : > { %v821_v19 = vpop.f32.mrf.mxu1 }
 0x2db   : > { %v845_v42 = vadd.f32 %v821_v19, %v731_v40 }
 0x2dc   : > { %v3361_v34 = vpop.f32.mrf.mxu1 }
 0x2dd   : > { %854 = vst.msk [vmem:[#allocation4 + $0x28] sm:$0xff] %vm369_vm1, %v845_v42 }
 0x2de   : > { %v826_v23 = vpop.f32.mrf.mxu1 }
 0x2df   : > { %v846_v44 = vadd.f32 %v826_v23, %v732_v36 }
 0x2e0   : > { %v3364_v45 = vpop.f32.mrf.mxu1 }
 0x2e1   : > { %855 = vst.msk [vmem:[#allocation4 + $0x30] sm:$0xff] %vm369_vm1, %v846_v44 }
 0x2e2   : > { %v829_v18 = vpop.f32.mrf.mxu1 }
 0x2e3   : > { %v847_v9 = vadd.f32 %v829_v18, %v733_v35 }
 0x2e4   : > { %v3365_v21 = vpop.f32.mrf.mxu1 }
 0x2e5   : > { %856 = vst.msk [vmem:[#allocation4 + $0x38] sm:$0xff] %vm369_vm1, %v847_v9 }
 0x2e6   : > { %v834_v48 = vpop.f32.mrf.mxu1 }
 0x2e7   : > { %v848_v30 = vadd.f32 %v834_v48, %v734_v47 }
 0x2e8   : > { %v3368_v49 = vpop.f32.mrf.mxu1 }
 0x2e9   : > { %857 = vst.msk [vmem:[#allocation4 + $0x40] sm:$0xff] %vm369_vm1, %v848_v30 }
 0x2ea   : > { %v837_v29 = vpop.f32.mrf.mxu1 }
 0x2ec   : > { %v3369_v50 = vpop.f32.mrf.mxu1 }
 0x2ee   : > { %v4247_v51 = vpop.f32.mrf.mxu1 }
 0x2ef   : > { %v983_v31 = vsel %vm472_vm3, %v4247_v51, -inf }
 0x2f0   : > { %984 = vmax.xlane.f32.xlu1 %v983_v31  ;;  %v3376_v52 = vpop.f32.mrf.mxu1 }
 0x2f2   : > { %v4251_v53 = vpop.f32.mrf.mxu1 }
 0x2f3   : > { %v986_v25 = vsel %vm472_vm3, %v4251_v53, -inf }
 0x2f4   : > { %987 = vmax.xlane.f32.xlu0 %v986_v25  ;;  %v3377_v54 = vpop.f32.mrf.mxu1 }
 0x2f6   : > { %v4255_v55 = vpop.f32.mrf.mxu1 }
 0x2f7   : > { %v989_v7 = vsel %vm472_vm3, %v4255_v55, -inf }
 0x2f8   : > { %990 = vmax.xlane.f32.xlu1 %v989_v7  ;;  %v3380_v56 = vpop.f32.mrf.mxu1 }
 0x2fa   : > { %v4259_v57 = vpop.f32.mrf.mxu1 }
 0x2fb   : > { %v992_v11 = vsel %vm472_vm3, %v4259_v57, -inf }
 0x2fc   : > { %993 = vmax.xlane.f32.xlu0 %v992_v11  ;;  %v3381_v58 = vpop.f32.mrf.mxu1 }
 0x2fe   : > { %v4265_v59 = vpop.f32.mrf.mxu1 }
 0x2ff   : > { %v995_v60 = vsel %vm472_vm3, %v4265_v59, -inf }
 0x300   : > { %996 = vmax.xlane.f32.xlu1 %v995_v60  ;;  %v3384_v14 = vpop.f32.mrf.mxu1 }
 0x302   : > { %v4269_v3 = vpop.f32.mrf.mxu1 }
 0x303   : > { %v998_v61 = vsel %vm472_vm3, %v4269_v3, -inf }
 0x304   : > { %999 = vmax.xlane.f32.xlu1 %v998_v61  ;;  %v3385_v17 = vpop.f32.mrf.mxu1 }
 0x306   : > { %v4273_v62 = vpop.f32.mrf.mxu1 }
 0x307   : > { %v1001_v63 = vsel %vm472_vm3, %v4273_v62, -inf }
 0x308   : > { %1002 = vmax.xlane.f32.xlu1 %v1001_v63  ;;  %v3388_v8 = vpop.f32.mrf.mxu1 }
 0x30a   : > { %v4277_v2 = vpop.f32.mrf.mxu1 }
 0x30b   : > { %v1004_v20 = vsel %vm472_vm3, %v4277_v2, -inf }
 0x30c   : > { %1005 = vmax.xlane.f32.xlu1 %v1004_v20  ;;  %v3389_v4 = vpop.f32.mrf.mxu1 }
 0x30e   : > { %v4281_v10 = vpop.f32.mrf.mxu1 }
 0x30f   : > { %v1007_v5 = vsel %vm472_vm3, %v4281_v10, -inf }
 0x310   : > { %1008 = vmax.xlane.f32.xlu1 %v1007_v5  ;;  %v3392_v24 = vpop.f32.mrf.mxu1 }
 0x312   : > { %v971_v12 = vpop.f32.mrf.mxu1 }
 0x314   : > { %v3393_v27 = vpop.f32.mrf.mxu1 }
 0x316   : > { %v4285_v39 = vpop.f32.mrf.mxu1 }
 0x317   : > { %v1525_v15 = vsel %vm472_vm3, %v4285_v39, -inf }
 0x318   : > { %1526 = vmax.xlane.f32.xlu0 %v1525_v15  ;;  %v3424_v16 = vpop.f32.mrf.mxu1 }
 0x31a   : > { %v4289_v46 = vpop.f32.mrf.mxu1 }
 0x31b   : > { %v1528_v26 = vsel %vm472_vm3, %v4289_v46, -inf }
 0x31c   : > { %1529 = vmax.xlane.f32.xlu1 %v1528_v26  ;;  %v3425_v28 = vpop.f32.mrf.mxu1 }
 0x31e   : > { %v4293_v32 = vpop.f32.mrf.mxu1 }
 0x31f   : > { %v1531_v37 = vsel %vm472_vm3, %v4293_v32, -inf }
 0x320   : > { %1532 = vmax.xlane.f32.xlu0 %v1531_v37  ;;  %v3428_v13 = vpop.f32.mrf.mxu1 }
 0x321   : > { %v974_v13 = vld [vmem:[#allocation2] sm:$0xff] }
 0x322   : > { %v4297_v33 = vpop.f32.mrf.mxu1 }
 0x323   : > { %v1534_v38 = vsel %vm472_vm3, %v4297_v33, -inf }
 0x324   : > { %1535 = vmax.xlane.f32.xlu0 %v1534_v38  ;;  %v3429_v40 = vpop.f32.mrf.mxu1 }
 0x326   : > { %v4301_v41 = vpop.f32.mrf.mxu1 }
 0x327   : > { %v1537_v19 = vsel %vm472_vm3, %v4301_v41, -inf }
 0x328   : > { %1538 = vmax.xlane.f32.xlu0 %v1537_v19  ;;  %v3432_v42 = vpop.f32.mrf.mxu1 }
 0x329   : > { %v975_v42 = vld [vmem:[#allocation2 + $0x8] sm:$0xff] }
 0x32a   : > { %v4305_v34 = vpop.f32.mrf.mxu1 }
 0x32b   : > { %v1540_v36 = vsel %vm472_vm3, %v4305_v34, -inf }
 0x32c   : > { %1541 = vmax.xlane.f32.xlu1 %v1540_v36  ;;  %v3433_v43 = vpop.f32.mrf.mxu1 }
 0x32e   : > { %v4309_v23 = vpop.f32.mrf.mxu1 }
 0x32f   : > { %v1543_v44 = vsel %vm472_vm3, %v4309_v23, -inf }
 0x330   : > { %1544 = vmax.xlane.f32.xlu0 %v1543_v44  ;;  %v3436_v45 = vpop.f32.mrf.mxu1 }
 0x331   : > { %v976_v45 = vld [vmem:[#allocation2 + $0x10] sm:$0xff] }
 0x332   : > { %v4313_v35 = vpop.f32.mrf.mxu1 }
 0x333   : > { %v1546_v1 = vsel %vm472_vm3, %v4313_v35, -inf }
 0x334   : > { %1547 = vmax.xlane.f32.xlu1 %v1546_v1  ;;  %v3437_v18 = vpop.f32.mrf.mxu1 }
 0x336   : > { %v4317_v9 = vpop.f32.mrf.mxu1 }
 0x337   : > { %v1549_v21 = vsel %vm472_vm3, %v4317_v9, -inf }
 0x338   : > { %1550 = vmax.xlane.f32.xlu0 %v1549_v21  ;;  %v3440_v47 = vpop.f32.mrf.mxu1  ;;  %v977_v21 = vld [vmem:[#allocation2 + $0x18] sm:$0xff] }
 0x33a   : > { %v1513_v48 = vpop.f32.mrf.mxu1 }
 0x33c   : > { %v3441_v30 = vpop.f32.mrf.mxu1 }
 0x33e   : > { %v4321_v49 = vpop.f32.mrf.mxu1 }
 0x33f   : > { %v2067_v29 = vsel %vm472_vm3, %v4321_v49, -inf }
 0x340   : > { %2068 = vmax.xlane.f32.xlu0 %v2067_v29  ;;  %v3472_v50 = vpop.f32.mrf.mxu1  ;;  %v978_v29 = vld [vmem:[#allocation2 + $0x20] sm:$0xff] }
 0x342   : > { %v4325_v31 = vpop.f32.mrf.mxu1 }
 0x343   : > { %v2070_v52 = vsel %vm472_vm3, %v4325_v31, -inf }
 0x344   : > { %2071 = vmax.xlane.f32.xlu0 %v2070_v52  ;;  %v3473_v25 = vpop.f32.mrf.mxu1 }
 0x346   : > { %v4329_v54 = vpop.f32.mrf.mxu1 }
 0x347   : > { %v2073_v7 = vsel %vm472_vm3, %v4329_v54, -inf }
 0x348   : > { %2074 = vmax.xlane.f32.xlu0 %v2073_v7  ;;  %v3476_v56 = vpop.f32.mrf.mxu1  ;;  %v979_v7 = vld [vmem:[#allocation2 + $0x28] sm:$0xff] }
 0x34a   : > { %v4333_v11 = vpop.f32.mrf.mxu1 }
 0x34b   : > { %v2076_v58 = vsel %vm472_vm3, %v4333_v11, -inf }
 0x34c   : > { %2077 = vmax.xlane.f32.xlu0 %v2076_v58  ;;  %v3477_v60 = vpop.f32.mrf.mxu1 }
 0x34e   : > { %v4337_v14 = vpop.f32.mrf.mxu1 }
 0x34f   : > { %v2079_v61 = vsel %vm472_vm3, %v4337_v14, -inf }
 0x350   : > { %2080 = vmax.xlane.f32.xlu1 %v2079_v61  ;;  %v3480_v17 = vpop.f32.mrf.mxu1 }
 0x351   : > { %v980_v17 = vld [vmem:[#allocation2 + $0x30] sm:$0xff] }
 0x352   : > { %v4341_v63 = vpop.f32.mrf.mxu1 }
 0x354   : > { %v3481_v8 = vpop.f32.mrf.mxu1 }
 0x356   : > { %v4343_v20 = vpop.f32.mrf.mxu1 }
 0x357   : > { %v2085_v4 = vsel %vm472_vm3, %v4343_v20, -inf }
 0x358   : > { %2086 = vmax.xlane.f32.xlu1 %v2085_v4  ;;  %v3484_v5 = vpop.f32.mrf.mxu1 }
 0x35a   : > { %v4347_v24 = vpop.f32.mrf.mxu1 }
 0x35b   : > { %v2088_v12 = vsel %vm472_vm3, %v4347_v24, -inf }
 0x35c   : > { %2089 = vmax.xlane.f32.xlu1 %v2088_v12  ;;  %v3485_v27 = vpop.f32.mrf.mxu1  ;;  %v981_v12 = vld [vmem:[#allocation2 + $0x38] sm:$0xff] }
 0x35e   : > { %v4351_v15 = vpop.f32.mrf.mxu1 }
 0x35f   : > { %v2091_v16 = vsel %vm472_vm3, %v4351_v15, -inf }
 0x360   : > { %2092 = vmax.xlane.f32.xlu1 %v2091_v16  ;;  %v3488_v26 = vpop.f32.mrf.mxu1 }
 0x362   : > { %v2055_v28 = vpop.f32.mrf.mxu1 }
 0x363   : > { %v982_v28 = vld [vmem:[#allocation2 + $0x40] sm:$0xff] }
 0x364   : > { %v3489_v37 = vpop.f32.mrf.mxu1 }
 0x379   : > { %v985_v38 = vpop.xlane.xlu1 %984 }
 0x37a   : > { %v1010_v40 = vmax.f32 %v974_v13, %v985_v38 }
 0x37c   : > { %v1019_v19 = vsub.f32 %v974_v13, %v1010_v40  ;;  %1400 = vst.msk [vmem:[#allocation2] sm:$0xff] %vm1172_vm7, %v1010_v40  ;;  %1048 = vperm.xlu0 %3555, %v1010_v40   ;;  %v2082_v40 = vsel %vm472_vm3, %v4341_v63, -inf }
 0x37d   : > { %v988_v36 = vpop.xlane.xlu0 %987 }
 0x37e   : > { %v1028_v43 = vmul.f32 1.442695, %v1019_v19  ;;  %v1011_v44 = vmax.f32 %v975_v42, %v988_v36 }
 0x380   : > { %1401 = vst.msk [vmem:[#allocation2 + $0x8] sm:$0xff] %vm1172_vm7, %v1011_v44  ;;  %1053 = vperm.xlu1 %3556, %v1011_v44   ;;  %3644 = vpow2.f32 %v1028_v43  ;;  %v1020_v36 = vsub.f32 %v975_v42, %v1011_v44 }
 0x381   : > { %v991_v1 = vpop.xlane.xlu1 %990 }
 0x382   : > { %v1012_v18 = vmax.f32 %v976_v45, %v991_v1  ;;  %v1030_v43 = vmul.f32 1.442695, %v1020_v36 }
 0x384   : > { %1402 = vst.msk [vmem:[#allocation2 + $0x10] sm:$0xff] %vm1172_vm7, %v1012_v18  ;;  %1058 = vperm.xlu1 %3556, %v1012_v18   ;;  %v1021_v48 = vsub.f32 %v976_v45, %v1012_v18  ;;  %v4372_v18 = vld [vmem:[#allocation2] sm:$0xff] }
 0x385   : > { %v994_v47 = vpop.xlane.xlu0 %993 }
 0x386   : > { %v1013_v30 = vmax.f32 %v977_v21, %v994_v47  ;;  %v1032_v52 = vmul.f32 1.442695, %v1021_v48 }
 0x388   : > { %1403 = vst.msk [vmem:[#allocation2 + $0x18] sm:$0xff] %vm1172_vm7, %v1013_v30  ;;  %1063 = vperm.xlu1 %3556, %v1013_v30   ;;  %3646 = vpow2.f32 %v1032_v52  ;;  %v1022_v58 = vsub.f32 %v977_v21, %v1013_v30 }
 0x389   : > { %v997_v50 = vpop.xlane.xlu1 %996 }
 0x38a   : > { %v1014_v25 = vmax.f32 %v978_v29, %v997_v50  ;;  %v1034_v4 = vmul.f32 1.442695, %v1022_v58  ;;  %v4382_v50 = vld [vmem:[#allocation2 + $0x8] sm:$0xff] }
 0x38c   : > { %1404 = vst.msk [vmem:[#allocation2 + $0x20] sm:$0xff] %vm1172_vm7, %v1014_v25  ;;  %1068 = vperm.xlu1 %3556, %v1014_v25   ;;  %3648 = vpow2.f32 %v1034_v4  ;;  %v1023_v16 = vsub.f32 %v978_v29, %v1014_v25 }
 0x38d   : > { %v1000_v56 = vpop.xlane.xlu1 %999  ;;  %v4360_v61 = vpop.eup %3644 }
 0x38e   : > { %v1015_v60 = vmax.f32 %v979_v7, %v1000_v56  ;;  %v1036_v13 = vmul.f32 1.442695, %v1023_v16 }
 0x390   : > { %1405 = vst.msk [vmem:[#allocation2 + $0x28] sm:$0xff] %vm1172_vm7, %v1015_v60  ;;  %1193 = vperm.xlu1 %3556, %v4360_v61   ;;  %3650 = vpow2.f32 %v1036_v13  ;;  %v1024_v45 = vsub.f32 %v979_v7, %v1015_v60  ;;  %v4389_v7 = vld [vmem:[#allocation2 + $0x10] sm:$0xff] }
 0x391   : > { %v1003_v8 = vpop.xlane.xlu1 %1002  ;;  %3652 = vpow2.f32 %v1030_v43 }
 0x392   : > { %v1016_v5 = vmax.f32 %v980_v17, %v1003_v8  ;;  %v1038_v42 = vmul.f32 1.442695, %v1024_v45 }
 0x393   : > { %v4411_v16 = vld [vmem:[#allocation2 + $0x20] sm:$0xff] }
 0x394   : > { %1406 = vst.msk [vmem:[#allocation2 + $0x30] sm:$0xff] %vm1172_vm7, %v1016_v5  ;;  %1073 = vperm.xlu1 %3556, %v1015_v60   ;;  %v1025_v1 = vsub.f32 %v980_v17, %v1016_v5  ;;  %3654 = vpow2.f32 %v1038_v42  ;;  %v4399_v17 = vld [vmem:[#allocation2 + $0x18] sm:$0xff] }
 0x395   : > { %v1006_v27 = vpop.xlane.xlu1 %1005  ;;  %v4368_v19 = vpop.eup %3646 }
 0x396   : > { %v1017_v26 = vmax.f32 %v981_v12, %v1006_v27  ;;  %v1040_v44 = vmul.f32 1.442695, %v1025_v1  ;;  %v5214_v27 = vmov 2   ;;  %v4429_v1 = vld [vmem:[%s3977_s26 + $0x8] ss:$0 sps:$4 sm:$0xff]  }
 0x398   : > { %1407 = vst.msk [vmem:[#allocation2 + $0x38] sm:$0xff] %vm1172_vm7, %v1017_v26  ;;  %1078 = vperm.xlu1 %3556, %v1016_v5   ;;  %v1026_v30 = vsub.f32 %v981_v12, %v1017_v26  ;;  %3656 = vpow2.f32 %v1040_v44 }
 0x399   : > { %v1009_v37 = vpop.xlane.xlu1 %1008  ;;  %v4377_v48 = vpop.eup %3648 }
 0x39a   : > { %v1018_v38 = vmax.f32 %v982_v28, %v1009_v37  ;;  %v1042_v25 = vmul.f32 1.442695, %v1026_v30 }
 0x39b   : > { %2083 = vmax.xlane.f32.xlu0 %v2082_v40  ;;  %v1521_v40 = vld [vmem:[#allocation2 + $0x28] sm:$0xff] }
 0x39c   : > { %1408 = vst.msk [vmem:[#allocation2 + $0x40] sm:$0xff] %vm1172_vm7, %v1018_v38  ;;  %1203 = vperm.xlu1 %3556, %v4368_v19   ;;  %3658 = vpow2.f32 %v1042_v25  ;;  %v1027_v5 = vsub.f32 %v982_v28, %v1018_v38  ;;  %v3771_v25 = vld [vmem:[%s3977_s26] sm:$0xff]  }
 0x39d   : > { %v4394_v60 = vpop.eup %3650 }
 0x39e   : > { %5224 = vst [vmem:[#allocation5_spill] sm:$0xff] %v4394_v60  ;;  %v4404_v12 = vpop.eup %3652  ;;  %v1044_v28 = vmul.f32 1.442695, %v1027_v5 }
 0x39f   : > { %v4441_v30 = vld [vmem:[#allocation2 + $0x38] sm:$0xff] }
 0x3a0   : > { %1083 = vperm.xlu1 %3556, %v1017_v26   ;;  %3660 = vpow2.f32 %v1044_v28 }
 0x3a1   : > { %v1527_v21 = vpop.xlane.xlu0 %1526  ;;  %v4416_v13 = vpop.eup %3654 }
 0x3a2   : > { %v4375_v47 = vmax.f32 %v4372_v18, %v1527_v21  ;;  %v4433_v21 = vld [vmem:[#allocation2 + $0x30] sm:$0xff] }
 0x3a4   : > { %1942 = vst.msk [vmem:[#allocation2] sm:$0xff] %vm1714_vm8, %v4375_v47  ;;  %1208 = vperm.xlu1 %3556, %v4377_v48  }
 0x3a5   : > { %v1530_v29 = vpop.xlane.xlu1 %1529 }
 0x3a6   : > { %v4385_v52 = vmax.f32 %v4382_v50, %v1530_v29 }
 0x3a8   : > { %1943 = vst.msk [vmem:[#allocation2 + $0x8] sm:$0xff] %vm1714_vm8, %v4385_v52  ;;  %1088 = vperm.xlu1 %3556, %v1018_v38   ;;  %v4420_v38 = vpop.eup %3656 }
 0x3a9   : > { %v1533_v56 = vpop.xlane.xlu0 %1532  ;;  %5225 = vst [vmem:[#allocation6_spill] sm:$0xff] %v4420_v38  ;;  %v4426_v45 = vpop.eup %3658 }
 0x3aa   : > { %v4392_v58 = vmax.f32 %v4389_v7, %v1533_v56 }
 0x3ac   : > { %1944 = vst.msk [vmem:[#allocation2 + $0x10] sm:$0xff] %vm1714_vm8, %v4392_v58  ;;  %1213 = vperm.xlu1 %3556, %v4394_v60   ;;  %v5229_v60 = vmov 3  }
 0x3ad   : > { %v1536_v8 = vpop.xlane.xlu0 %1535  ;;  %v4454_v28 = vpop.eup %3660 }
 0x3ae   : > { %v4402_v4 = vmax.f32 %v4399_v17, %v1536_v8  ;;  %v1524_v8 = vld [vmem:[#allocation2 + $0x40] sm:$0xff]  ;;  %5226 = vst [vmem:[#allocation7_spill] sm:$0xff] %v4454_v28 }
 0x3b0   : > { %1945 = vst.msk [vmem:[#allocation2 + $0x18] sm:$0xff] %vm1714_vm8, %v4402_v4  ;;  %3557 = vset.pattern.permute.xlu1 %v5214_v27 }
 0x3b1   : > { %1198 = vperm.xlu0 %3555, %v4404_v12   ;;  %1590 = vperm.xlu1 %3557, %v4375_v47   ;;  %v1539_v26 = vpop.xlane.xlu0 %1538 }
 0x3b2   : > { %v4414_v37 = vmax.f32 %v4411_v16, %v1539_v26 }
 0x3b4   : > { %1946 = vst.msk [vmem:[#allocation2 + $0x20] sm:$0xff] %vm1714_vm8, %v4414_v37 }
 0x3b5   : > { %v1542_v36 = vpop.xlane.xlu1 %1541  ;;  %1218 = vperm.xlu0 %3555, %v4416_v13   ;;  %3558 = vset.pattern.permute.xlu1 %v5208_v6 }
 0x3b6   : > { %v1557_v43 = vmax.f32 %v1521_v40, %v1542_v36  ;;  %1223 = vperm.xlu1 %3558, %v4420_v38   ;;  %v1562_v36 = vsub.f32 %v4382_v50, %v4385_v52  ;;  %v4472_v50 = vld [vmem:[#allocation2 + $0x8] sm:$0xff] }
 0x3b8   : > { %1947 = vst.msk [vmem:[#allocation2 + $0x28] sm:$0xff] %vm1714_vm8, %v1557_v43  ;;  %v1572_v6 = vmul.f32 1.442695, %v1562_v36  ;;  %v1566_v22 = vsub.f32 %v1521_v40, %v1557_v43  ;;  %v4481_v40 = vld [vmem:[#allocation2 + $0x10] sm:$0xff] }
 0x3b9   : > { %1794 = vrot.lane.b32.xlu0 %v4429_v1, %s3801_s28  ;;  %v1545_v42 = vpop.xlane.xlu0 %1544 }
 0x3ba   : > { %v4436_v44 = vmax.f32 %v4433_v21, %v1545_v42  ;;  %1228 = vperm.xlu1 %3558, %v4426_v45   ;;  %v4461_v42 = vld [vmem:[#allocation2] sm:$0xff]  ;;  %3662 = vpow2.f32 %v1572_v6 }
 0x3bc   : > { %1948 = vst.msk [vmem:[#allocation2 + $0x30] sm:$0xff] %vm1714_vm8, %v4436_v44 }
 0x3bd   : > { %v1548_v29 = vpop.xlane.xlu1 %1547  ;;  %1792 = vrot.lane.b32.xlu0 %v3771_v25, %s3801_s28 }
 0x3be   : > { %v4446_v56 = vmax.f32 %v4441_v30, %v1548_v29  ;;  %3559 = vset.pattern.permute.xlu1 %v5214_v27 }
 0x3bf   : > { %1605 = vperm.xlu1 %3559, %v4402_v4  }
 0x3c0   : > { %1949 = vst.msk [vmem:[#allocation2 + $0x38] sm:$0xff] %vm1714_vm8, %v4446_v56 }
 0x3c1   : > { %2334 = vrot.lane.b32.xlu0 %v3771_v25, %s3802_s29  ;;  %v1551_v5 = vpop.xlane.xlu0 %1550 }
 0x3c2   : > { %v1560_v26 = vmax.f32 %v1524_v8, %v1551_v5  ;;  %v5217_v5 = vmov 3  }
 0x3c3   : > { %1620 = vperm.xlu1 %3559, %v4436_v44  }
 0x3c4   : > { %1950 = vst.msk [vmem:[#allocation2 + $0x40] sm:$0xff] %vm1714_vm8, %v1560_v26 }
 0x3c5   : > { %1233 = vperm.xlu0 %3555, %v4454_v28  }
 0x3c7   : > { %1630 = vperm.xlu1 %3559, %v1560_v26  }
 0x3c9   : > { %3561 = vset.pattern.permute.xlu0 %v5214_v27  ;;  %v2069_v29 = vpop.xlane.xlu0 %2068 }
 0x3ca   : > { %v4464_v25 = vmax.f32 %v4461_v42, %v2069_v29  ;;  %1595 = vperm.xlu0 %3561, %v4385_v52   ;;  %v1580_v52 = vmul.f32 1.442695, %v1566_v22  ;;  %v1569_v29 = vsub.f32 %v1524_v8, %v1560_v26  ;;  %v4490_v22 = vld [vmem:[#allocation2 + $0x18] sm:$0xff]  ;;  %v1563_v26 = vsub.f32 %v4389_v7, %v4392_v58 }
 0x3cb   : > { %3560 = vset.pattern.permute.xlu1 %v5217_v5 }
 0x3cc   : > { %2484 = vst.msk [vmem:[#allocation2] sm:$0xff] %vm2256_vm9, %v4464_v25  ;;  %3664 = vpow2.f32 %v1580_v52  ;;  %v1574_v38 = vmul.f32 1.442695, %v1563_v26 }
 0x3cd   : > { %v2072_v27 = vpop.xlane.xlu0 %2071 }
 0x3ce   : > { %v4475_v28 = vmax.f32 %v4472_v50, %v2072_v27  ;;  %1600 = vperm.xlu0 %3561, %v4392_v58   ;;  %v1586_v27 = vmul.f32 1.442695, %v1569_v29  ;;  %v4499_v29 = vld [vmem:[#allocation2 + $0x20] sm:$0xff]  ;;  %v4532_v58 = vld [vmem:[#allocation2 + $0x38] sm:$0xff] }
 0x3d0   : > { %2485 = vst.msk [vmem:[#allocation2 + $0x8] sm:$0xff] %vm2256_vm9, %v4475_v28  ;;  %2137 = vperm.xlu1 %3560, %v4475_v28   ;;  %3666 = vpow2.f32 %v1586_v27 }
 0x3d1   : > { %v2075_v36 = vpop.xlane.xlu0 %2074 }
 0x3d2   : > { %v4484_v0 = vmax.f32 %v4481_v40, %v2075_v36  ;;  %1610 = vperm.xlu0 %3561, %v4414_v37  }
 0x3d4   : > { %2486 = vst.msk [vmem:[#allocation2 + $0x10] sm:$0xff] %vm2256_vm9, %v4484_v0  ;;  %2142 = vperm.xlu1 %3560, %v4484_v0  }
 0x3d5   : > { %v2078_v6 = vpop.xlane.xlu0 %2077 }
 0x3d6   : > { %v4493_v8 = vmax.f32 %v4490_v22, %v2078_v6  ;;  %1615 = vperm.xlu0 %3561, %v1557_v43   ;;  %v1561_v6 = vsub.f32 %v4372_v18, %v4375_v47  ;;  %v4510_v43 = vpop.eup %3662  ;;  %v4519_v18 = vld [vmem:[#allocation2 + $0x30] sm:$0xff] }
 0x3d7   : > { %5227 = vst [vmem:[#allocation8_spill] sm:$0xff] %v4510_v43 }
 0x3d8   : > { %2487 = vst.msk [vmem:[#allocation2 + $0x18] sm:$0xff] %vm2256_vm9, %v4493_v8  ;;  %v1570_v27 = vmul.f32 1.442695, %v1561_v6  ;;  %v1564_v6 = vsub.f32 %v4399_v17, %v4402_v4  ;;  %v1565_v17 = vsub.f32 %v4411_v16, %v4414_v37  ;;  %v1568_v37 = vsub.f32 %v4441_v30, %v4446_v56 }
 0x3d9   : > { %v2081_v52 = vpop.xlane.xlu1 %2080  ;;  %v2105_v30 = vsub.f32 %v4481_v40, %v4484_v0 }
 0x3da   : > { %v4502_v36 = vmax.f32 %v4499_v29, %v2081_v52  ;;  %1625 = vperm.xlu0 %3561, %v4446_v56   ;;  %v4517_v52 = vpop.eup %3664  ;;  %3668 = vpow2.f32 %v1570_v27  ;;  %v1576_v26 = vmul.f32 1.442695, %v1564_v6  ;;  %v2066_v27 = vld [vmem:[#allocation2 + $0x40] sm:$0xff]  ;;  %v5230_v6 = vmov 2  }
 0x3db   : > { %5228 = vst [vmem:[#allocation9_spill] sm:$0xff] %v4517_v52  ;;  %3670 = vpow2.f32 %v1574_v38 }
 0x3dc   : > { %2488 = vst.msk [vmem:[#allocation2 + $0x20] sm:$0xff] %vm2256_vm9, %v4502_v36  ;;  %2152 = vperm.xlu1 %3560, %v4502_v36   ;;  %3672 = vpow2.f32 %v1576_v26  ;;  %v2104_v26 = vsub.f32 %v4472_v50, %v4475_v28  ;;  %v2107_v28 = vsub.f32 %v4499_v29, %v4502_v36 }
 0x3dd   : > { %v4530_v7 = vpop.eup %3666 }
 0x3de   : > { %1740 = vperm.xlu0 %3561, %v4510_v43  }
 0x3e0   : > { %2336 = vrot.lane.b32.xlu1 %v4429_v1, %s3802_s29 }
 0x3e1   : > { %v2087_v5 = vpop.xlane.xlu1 %2086 }
 0x3e2   : > { %v4522_v47 = vmax.f32 %v4519_v18, %v2087_v5  ;;  %1760 = vperm.xlu0 %3561, %v4517_v52   ;;  %v1578_v52 = vmul.f32 1.442695, %v1565_v17  ;;  %v2114_v17 = vmul.f32 1.442695, %v2104_v26  ;;  %v2120_v26 = vmul.f32 1.442695, %v2107_v28 }
 0x3e4   : > { %2490 = vst.msk [vmem:[#allocation2 + $0x30] sm:$0xff] %vm2256_vm9, %v4522_v47  ;;  %2162 = vperm.xlu1 %3560, %v4522_v47   ;;  %3674 = vpow2.f32 %v1578_v52  ;;  %v2109_v50 = vsub.f32 %v4519_v18, %v4522_v47 }
 0x3e5   : > { %v2090_v1 = vpop.xlane.xlu1 %2089 }
 0x3e6   : > { %v4535_v5 = vmax.f32 %v4532_v58, %v2090_v1  ;;  %1775 = vperm.xlu0 %3561, %v4530_v7   ;;  %v1567_v1 = vsub.f32 %v4433_v21, %v4436_v44  ;;  %v1584_v21 = vmul.f32 1.442695, %v1568_v37  ;;  %v2124_v29 = vmul.f32 1.442695, %v2109_v50 }
 0x3e7   : > { %v4550_v38 = vpop.eup %3668 }
 0x3e8   : > { %2491 = vst.msk [vmem:[#allocation2 + $0x38] sm:$0xff] %vm2256_vm9, %v4535_v5  ;;  %v1582_v16 = vmul.f32 1.442695, %v1567_v1  ;;  %v4554_v44 = vpop.eup %3670  ;;  %v2116_v1 = vmul.f32 1.442695, %v2105_v30 }
 0x3e9   : > { %v2093_v4 = vpop.xlane.xlu1 %2092  ;;  %v4561_v52 = vpop.eup %3672 }
 0x3ea   : > { %v2102_v43 = vmax.f32 %v2066_v27, %v2093_v4  ;;  %3563 = vset.pattern.permute.xlu0 %v5229_v60  ;;  %3676 = vpow2.f32 %v1582_v16 }
 0x3eb   : > { %2132 = vperm.xlu0 %3563, %v4464_v25   ;;  %3678 = vpow2.f32 %v1584_v21 }
 0x3ec   : > { %2492 = vst.msk [vmem:[#allocation2 + $0x40] sm:$0xff] %vm2256_vm9, %v2102_v43  ;;  %2172 = vperm.xlu1 %3560, %v2102_v43   ;;  %3680 = vpow2.f32 %v2114_v17  ;;  %v2111_v17 = vsub.f32 %v2066_v27, %v2102_v43 }
 0x3ed   : > { %3682 = vpow2.f32 %v2116_v1 }
 0x3ee   : > { %v2128_v1 = vmul.f32 1.442695, %v2111_v17 }
 0x3ef   : > { %2147 = vperm.xlu0 %3563, %v4493_v8  }
 0x3f0   : > { %3562 = vset.pattern.permute.xlu1 %v5230_v6 }
 0x3f1   : > { %1735 = vperm.xlu1 %3562, %v4550_v38   ;;  %v4565_v6 = vpop.eup %3674 }
 0x3f5   : > { %1745 = vperm.xlu1 %3562, %v4554_v44  }
 0x3f7   : > { %v1049_v56 = vpop.permute.xlu0 %1048  ;;  %v4573_v21 = vpop.eup %3676 }
 0x3f8   : > { %v1091_v4 = vsub.f32 %v4247_v51, %v1049_v56  ;;  %v4577_v56 = vpop.eup %3678 }
 0x3f9   : > { %1750 = vperm.xlu1 %3562, %v4561_v52  }
 0x3fa   : > { %v1100_v16 = vmul.f32 1.442695, %v1091_v4 }
 0x3fb   : > { %v1054_v37 = vpop.permute.xlu1 %1053 }
 0x3fc   : > { %v1092_v0 = vsub.f32 %v4251_v53, %v1054_v37  ;;  %3684 = vpow2.f32 %v1100_v16 }
 0x3fd   : > { %1755 = vperm.xlu1 %3562, %v4565_v6  }
 0x3fe   : > { %v1102_v51 = vmul.f32 1.442695, %v1092_v0 }
 0x3ff   : > { %v1059_v40 = vpop.permute.xlu1 %1058 }
 0x400   : > { %3686 = vpow2.f32 %v1102_v51  ;;  %v1093_v30 = vsub.f32 %v4255_v55, %v1059_v40  ;;  %v4581_v55 = vpop.eup %3680 }
 0x401   : > { %1765 = vperm.xlu1 %3562, %v4573_v21   ;;  %3688 = vpow2.f32 %v2120_v26  ;;  %v4585_v16 = vpop.eup %3682 }
 0x402   : > { %v1104_v36 = vmul.f32 1.442695, %v1093_v30  ;;  %3690 = vpow2.f32 %v2124_v29 }
 0x403   : > { %v1064_v53 = vpop.permute.xlu1 %1063 }
 0x404   : > { %v1094_v18 = vsub.f32 %v4259_v57, %v1064_v53  ;;  %3692 = vpow2.f32 %v1104_v36 }
 0x405   : > { %1770 = vperm.xlu1 %3562, %v4577_v56  }
 0x406   : > { %v1106_v47 = vmul.f32 1.442695, %v1094_v18 }
 0x407   : > { %v1069_v4 = vpop.permute.xlu1 %1068 }
 0x408   : > { %3694 = vpow2.f32 %v1106_v47  ;;  %v1095_v43 = vsub.f32 %v4265_v59, %v1069_v4  ;;  %v5232_v59 = vmov 0.0  }
 0x409   : > { %3564 = vset.pattern.permute.xlu1 %v5229_v60  ;;  %v4590_v57 = vpop.eup %3684  ;;  %3696 = vpow2.f32 %v2128_v1 }
 0x40a   : > { %2282 = vperm.xlu1 %3564, %v4581_v55   ;;  %v1108_v0 = vmul.f32 1.442695, %v1095_v43 }
 0x40b   : > { %v4588_v27 = vpop.permute.xlu1 %1193 }
 0x40c   : > { %5231 = vst [vmem:[#allocation10_spill] sm:$0xff] %v4588_v27  ;;  %3698 = vpow2.f32 %v1108_v0 }
 0x40d   : > { %v4592_v37 = vpop.eup %3686 }
 0x40e   : > { %v1245_v28 = vpack.c.bf16 %v4592_v37, %v4590_v57  ;;  %2287 = vperm.xlu1 %3564, %v4585_v16   ;;  %v4599_v40 = vpop.eup %3688 }
 0x40f   : > { %v1074_v50 = vpop.permute.xlu1 %1073  ;;  %v4604_v30 = vpop.eup %3690 }
 0x410   : > { %v1096_v51 = vsub.f32 %v4269_v3, %v1074_v50  ;;  %3399 = vmatmul.mubr.msk.bf16.vlgmr.msra.gmra.mxu0 %vm472_vm3, %v1245_v28  ;;  %v5234_v28 = vsub.f32 %v4461_v42, %v4464_v25  ;;  %v5235_v50 = vmov 0  }
 0x411   : > { %3402 = vmatprep.mubr.msk.bf16.mxu0 %vm3797_vm0, %v5232_v59  ;;  %v4606_v36 = vpop.eup %3692 }
 0x412   : > { %v1110_v26 = vmul.f32 1.442695, %v1096_v51  ;;  %2297 = vperm.xlu1 %3564, %v4599_v40   ;;  %v2112_v0 = vmul.f32 1.442695, %v5234_v28 }
 0x413   : > { %v1079_v29 = vpop.permute.xlu1 %1078 }
 0x414   : > { %3700 = vpow2.f32 %v1110_v26  ;;  %v1097_v17 = vsub.f32 %v4273_v62, %v1079_v29 }
 0x415   : > { %v4608_v53 = vpop.eup %3694 }
 0x416   : > { %2307 = vperm.xlu1 %3564, %v4604_v30   ;;  %v1246_v3 = vpack.c.bf16 %v4608_v53, %v4606_v36  ;;  %v4617_v47 = vpop.eup %3696  ;;  %v1112_v4 = vmul.f32 1.442695, %v1097_v17 }
 0x417   : > { %v4614_v18 = vpop.permute.xlu1 %1203 }
 0x418   : > { %5233 = vst [vmem:[#allocation11_spill] sm:$0xff] %v4614_v18  ;;  %3403 = vmatmul.mubr.msk.bf16.gmra.mxu0 %vm472_vm3, %v1246_v3  ;;  %3702 = vpow2.f32 %v1112_v4  ;;  %v5237_v3 = vsub.f32 %v4490_v22, %v4493_v8  ;;  %v2063_v4 = vld [vmem:[#allocation2 + $0x28] sm:$0xff]  ;;  %v2110_v22 = vsub.f32 %v4532_v58, %v4535_v5 }
 0x419   : > { %3406 = vmatprep.mubr.msk.bf16.mxu0 %vm3797_vm0, %v5232_v59  ;;  %v4629_v26 = vpop.eup %3698 }
 0x41a   : > { %2317 = vperm.xlu1 %3564, %v4617_v47  }
 0x41b   : > { %v1084_v1 = vpop.permute.xlu1 %1083 }
 0x41c   : > { %v1098_v43 = vsub.f32 %v4277_v2, %v1084_v1  ;;  %v2118_v2 = vmul.f32 1.442695, %v5237_v3 }
 0x41e   : > { %v1114_v62 = vmul.f32 1.442695, %v1098_v43  ;;  %3565 = vset.pattern.permute.xlu1 %v5235_v50 }
 0x41f   : > { %v4627_v51 = vpop.permute.xlu1 %1208 }
 0x420   : > { %5236 = vst [vmem:[#allocation12_spill] sm:$0xff] %v4627_v51  ;;  %3704 = vpow2.f32 %v1114_v62  ;;  %v2126_v62 = vmul.f32 1.442695, %v2110_v22 }
 0x421   : > { %v4631_v29 = vpop.eup %3700  ;;  %3706 = vpow2.f32 %v2112_v0 }
 0x422   : > { %v1247_v42 = vpack.c.bf16 %v4631_v29, %v4629_v26  ;;  %3708 = vpow2.f32 %v2118_v2 }
 0x423   : > { %v1089_v25 = vpop.permute.xlu1 %1088 }
 0x424   : > { %v1099_v17 = vsub.f32 %v4281_v10, %v1089_v25  ;;  %3407 = vmatmul.mubr.msk.bf16.gmra.mxu0 %vm472_vm3, %v1247_v42  ;;  %v2084_v1 = vpop.xlane.xlu0 %2083 }
 0x425   : > { %v2099_v43 = vmax.f32 %v2063_v4, %v2084_v1  ;;  %3410 = vmatprep.mubr.msk.bf16.mxu0 %vm3797_vm0, %v5232_v59  ;;  %v4648_v3 = vpop.eup %3702 }
 0x426   : > { %v1116_v28 = vmul.f32 1.442695, %v1099_v17 }
 0x427   : > { %v2108_v8 = vsub.f32 %v2063_v4, %v2099_v43  ;;  %2489 = vst.msk [vmem:[#allocation2 + $0x28] sm:$0xff] %vm2256_vm9, %v2099_v43  ;;  %v4645_v0 = vpop.permute.xlu1 %1213  ;;  %2157 = vperm.xlu0 %3563, %v2099_v43  }
 0x428   : > { %5238 = vst [vmem:[#allocation13_spill] sm:$0xff] %v4645_v0  ;;  %3710 = vpow2.f32 %v1116_v28 }
 0x429   : > { %v2122_v10 = vmul.f32 1.442695, %v2108_v8 }
 0x42b   : > { %3712 = vpow2.f32 %v2122_v10  ;;  %2167 = vperm.xlu0 %3563, %v4535_v5  }
 0x42c   : > { %v1591_v2 = vpop.permute.xlu1 %1590  ;;  %v4650_v42 = vpop.permute.xlu0 %1198  ;;  %3714 = vpow2.f32 %v2126_v62 }
 0x42d   : > { %5239 = vst [vmem:[#allocation14_spill] sm:$0xff] %v4650_v42  ;;  %v3705_v25 = vpop.eup %3704  ;;  %v1633_v1 = vsub.f32 %v4285_v39, %v1591_v2 }
 0x42e   : > { %v4652_v17 = vpop.eup %3706  ;;  %v1248_v58 = vpack.c.bf16 %v3705_v25, %v4648_v3 }
 0x42f   : > { %2277 = vperm.xlu0 %3563, %v4652_v17   ;;  %v4664_v43 = vpop.eup %3708  ;;  %v1642_v8 = vmul.f32 1.442695, %v1633_v1 }
 0x430   : > { %3411 = vmatmul.mubr.msk.bf16.gmra.mxu0 %vm472_vm3, %v1248_v58  ;;  %v4657_v4 = vpop.permute.xlu0 %1218 }
 0x431   : > { %5240 = vst [vmem:[#allocation15_spill] sm:$0xff] %v4657_v4  ;;  %v4660_v5 = vpop.permute.xlu1 %1223  ;;  %3414 = vmatprep.mubr.msk.bf16.mxu0 %vm3797_vm0, %v5232_v59  ;;  %3716 = vpow2.f32 %v1642_v8  ;;  %v1139_v8 = vsel %vm472_vm3, %v4592_v37, 0.0  ;;  %v1157_v4 = vsel %vm472_vm3, %v3705_v25, 0.0 }
 0x432   : > { %5241 = vst [vmem:[#allocation16_spill] sm:$0xff] %v4660_v5 }
 0x433   : > { %2292 = vperm.xlu0 %3563, %v4664_v43  }
 0x434   : > { %v1795_v28 = vpop.permute.xlu0 %1794 }
 0x435   : > { %v4667_v22 = vpop.eup %3710  ;;  %v1813_v10 = vsel %vm764_vm5, %v1795_v28, 0  ;;  %v4670_v62 = vpop.permute.xlu1 %1228 }
 0x436   : > { %5242 = vst [vmem:[#allocation17_spill] sm:$0xff] %v4670_v62  ;;  %3443 = vmatpush3.bf16.msra.mxu0 %v1813_v10  ;;  %v1249_v39 = vpack.c.bf16 %v4667_v22, %v4667_v22 }
 0x437   : > { %3444 = vmatprep.subr.bf16.mxu0 %v5232_v59 }
 0x438   : > { %v4675_v2 = vpop.eup %3712  ;;  %3415 = vmatmul.mubr.msk.bf16.gmra.mxu0 %vm472_vm3, %v1249_v39  ;;  %v1793_v58 = vpop.permute.xlu0 %1792 }
 0x439   : > { %2302 = vperm.xlu0 %3563, %v4675_v2   ;;  %3446 = vmatprep.mubr.msk.bf16.mxu0 %vm3797_vm0, %v5232_v59  ;;  %v4683_v10 = vpop.eup %3714 }
 0x43a   : > { %v1606_v1 = vpop.permute.xlu1 %1605  ;;  %3445 = vmatpush3.bf16.msra.mxu0 %v1793_v58  ;;  %5243 = vst [vmem:[#allocation18_spill] sm:$0xff] %v4683_v10  ;;  %v1151_v58 = vsel %vm472_vm3, %v4631_v29, 0.0 }
 0x43b   : > { %v1636_v28 = vsub.f32 %v4297_v33, %v1606_v1  ;;  %3490 = vmatprep.subr.bf16.mxu0 %v5232_v59 }
 0x43c   : > { %v2335_v62 = vpop.permute.xlu0 %2334 }
 0x43d   : > { %v1648_v5 = vmul.f32 1.442695, %v1636_v28  ;;  %2312 = vperm.xlu0 %3563, %v4683_v10  }
 0x43e   : > { %1140 = vadd.xlane.f32.xlu1 %v1139_v8  ;;  %v1621_v33 = vpop.permute.xlu1 %1620  ;;  %v3717_v28 = vpop.eup %3716 }
 0x43f   : > { %3718 = vpow2.f32 %v1648_v5  ;;  %v1678_v5 = vsel %vm472_vm3, %v3717_v28, 0.0 }
 0x440   : > { %v4688_v39 = vpop.permute.xlu0 %1233 }
 0x441   : > { %5244 = vst [vmem:[#allocation19_spill] sm:$0xff] %v4688_v39  ;;  %3569 = vset.pattern.permute.xlu0 %v5235_v50 }
 0x442   : > { %1152 = vadd.xlane.f32.xlu1 %v1151_v58  ;;  %v1631_v37 = vpop.permute.xlu1 %1630 }
 0x445   : > { %v1596_v1 = vpop.permute.xlu0 %1595 }
 0x446   : > { %v1634_v0 = vsub.f32 %v4289_v46, %v1596_v1  ;;  %1158 = vadd.xlane.f32.xlu1 %v1157_v4 }
 0x448   : > { %v1644_v51 = vmul.f32 1.442695, %v1634_v0 }
 0x449   : > { %v1601_v8 = vpop.permute.xlu0 %1600 }
 0x44a   : > { %3720 = vpow2.f32 %v1644_v51  ;;  %v1635_v39 = vsub.f32 %v4293_v32, %v1601_v8  ;;  %1679 = vadd.xlane.f32.xlu1 %v1678_v5 }
 0x44b   : > { %v4697_v58 = vpop.permute.xlu1 %2137 }
 0x44c   : > { %v3719_v29 = vpop.eup %3718  ;;  %v1646_v42 = vmul.f32 1.442695, %v1635_v39 }
 0x44d   : > { %v1611_v18 = vpop.permute.xlu0 %1610  ;;  %v1687_v25 = vsel %vm472_vm3, %v3719_v29, 0.0 }
 0x44e   : > { %1688 = vadd.xlane.f32.xlu1 %v1687_v25  ;;  %3722 = vpow2.f32 %v1646_v42  ;;  %v1637_v46 = vsub.f32 %v4301_v41, %v1611_v18  ;;  %v1639_v41 = vsub.f32 %v4309_v23, %v1621_v33  ;;  %v1142_v23 = vsel %vm472_vm3, %v4606_v36, 0.0 }
 0x44f   : > { %v2143_v1 = vpop.permute.xlu1 %2142  ;;  %v1641_v33 = vsub.f32 %v4317_v9, %v1631_v37 }
 0x450   : > { %v1650_v51 = vmul.f32 1.442695, %v1637_v46  ;;  %v2177_v36 = vsub.f32 %v4329_v54, %v2143_v1  ;;  %v2176_v54 = vsub.f32 %v4325_v31, %v4697_v58  ;;  %v1160_v58 = vsel %vm472_vm3, %v4667_v22, 0.0 }
 0x451   : > { %v1616_v0 = vpop.permute.xlu0 %1615 }
 0x452   : > { %v1638_v4 = vsub.f32 %v4305_v34, %v1616_v0 }
 0x454   : > { %v1652_v27 = vmul.f32 1.442695, %v1638_v4  ;;  %v1145_v4 = vsel %vm472_vm3, %v4608_v53, 0.0 }
 0x455   : > { %v1626_v10 = vpop.permute.xlu0 %1625 }
 0x456   : > { %3724 = vpow2.f32 %v1652_v27  ;;  %v1640_v32 = vsub.f32 %v4313_v35, %v1626_v10  ;;  %v1136_v27 = vsel %vm472_vm3, %v4590_v57, 0.0 }
 0x457   : > { %v4703_v39 = vpop.eup %3720  ;;  %v4705_v8 = vpop.permute.xlu1 %2152  ;;  %3726 = vpow2.f32 %v1650_v51  ;;  %v1658_v51 = vmul.f32 1.442695, %v1641_v33 }
 0x458   : > { %v1787_v5 = vpack.c.bf16 %v4703_v39, %v3717_v28  ;;  %v1656_v25 = vmul.f32 1.442695, %v1640_v32  ;;  %v1654_v28 = vmul.f32 1.442695, %v1639_v41  ;;  %v2188_v41 = vmul.f32 1.442695, %v2177_v36 }
 0x459   : > { %v4708_v42 = vpop.permute.xlu0 %1740 }
 0x45a   : > { %3728 = vpow2.f32 %v1656_v25  ;;  %3447 = vmatmul.mubr.msk.bf16.vlgmr.msra.gmra.mxu0 %vm472_vm3, %v1787_v5  ;;  %v1148_v5 = vsel %vm472_vm3, %v4629_v26, 0.0  ;;  %v1154_v26 = vsel %vm472_vm3, %v4648_v3, 0.0 }
 0x45b   : > { %v2337_v34 = vpop.permute.xlu1 %2336  ;;  %3450 = vmatprep.mubr.msk.bf16.mxu0 %vm3797_vm0, %v5232_v59  ;;  %v4717_v18 = vpop.eup %3722  ;;  %3730 = vpow2.f32 %v1654_v28  ;;  %v2186_v28 = vmul.f32 1.442695, %v2176_v54 }
 0x45c   : > { %v2355_v35 = vsel %vm764_vm5, %v2337_v34, 0  ;;  %1137 = vadd.xlane.f32.xlu0 %v1136_v27  ;;  %v1788_v57 = vpack.c.bf16 %v3719_v29, %v4717_v18  ;;  %3732 = vpow2.f32 %v1658_v51  ;;  %v2179_v27 = vsub.f32 %v4337_v14, %v4705_v8 }
 0x45d   : > { %3491 = vmatpush3.bf16.msra.mxu0 %v2355_v35  ;;  %v4719_v10 = vpop.permute.xlu0 %1760 }
 0x45e   : > { %3492 = vmatprep.subr.bf16.mxu0 %v5232_v59  ;;  %v2192_v33 = vmul.f32 1.442695, %v2179_v27 }
 0x460   : > { %1143 = vadd.xlane.f32.xlu0 %v1142_v23  ;;  %v2163_v23 = vpop.permute.xlu1 %2162 }
 0x461   : > { %3493 = vmatpush3.bf16.msra.mxu0 %v2335_v62  ;;  %v4726_v46 = vpop.permute.xlu0 %1775  ;;  %v2181_v3 = vsub.f32 %v4343_v20, %v2163_v23 }
 0x462   : > { %3451 = vmatmul.mubr.msk.bf16.gmra.mxu0 %vm472_vm3, %v1788_v57  ;;  %v1681_v57 = vsel %vm472_vm3, %v4703_v39, 0.0 }
 0x463   : > { %v3725_v0 = vpop.eup %3724  ;;  %3454 = vmatprep.mubr.msk.bf16.mxu0 %vm3797_vm0, %v5232_v59  ;;  %v2196_v22 = vmul.f32 1.442695, %v2181_v3 }
 0x464   : > { %1146 = vadd.xlane.f32.xlu0 %v1145_v4  ;;  %v1693_v9 = vsel %vm472_vm3, %v3725_v0, 0.0  ;;  %v3727_v62 = vpop.eup %3726  ;;  %v1684_v4 = vsel %vm472_vm3, %v4717_v18, 0.0 }
 0x465   : > { %1694 = vadd.xlane.f32.xlu1 %v1693_v9  ;;  %v1789_v25 = vpack.c.bf16 %v3725_v0, %v3727_v62 }
 0x466   : > { %v2133_v37 = vpop.permute.xlu0 %2132 }
 0x467   : > { %v3729_v29 = vpop.eup %3728  ;;  %v2175_v32 = vsub.f32 %v4321_v49, %v2133_v37  ;;  %v2173_v14 = vpop.permute.xlu1 %2172  ;;  %v1690_v37 = vsel %vm472_vm3, %v3727_v62, 0.0 }
 0x468   : > { %1149 = vadd.xlane.f32.xlu0 %v1148_v5  ;;  %v1699_v53 = vsel %vm472_vm3, %v3729_v29, 0.0  ;;  %v3731_v31 = vpop.eup %3730  ;;  %v2183_v0 = vsub.f32 %v4351_v15, %v2173_v14 }
 0x469   : > { %v2184_v34 = vmul.f32 1.442695, %v2175_v32  ;;  %1700 = vadd.xlane.f32.xlu1 %v1699_v53  ;;  %v3733_v8 = vpop.eup %3732  ;;  %v1696_v32 = vsel %vm472_vm3, %v3731_v31, 0.0 }
 0x46a   : > { %3455 = vmatmul.mubr.msk.bf16.gmra.mxu0 %vm472_vm3, %v1789_v25  ;;  %v2148_v1 = vpop.permute.xlu0 %2147  ;;  %v1791_v9 = vpack.c.bf16 %v3733_v8, %v3733_v8  ;;  %v2200_v39 = vmul.f32 1.442695, %v2183_v0  ;;  %v1702_v62 = vsel %vm472_vm3, %v3733_v8, 0.0 }
 0x46b   : > { %3734 = vpow2.f32 %v2184_v34  ;;  %v2178_v49 = vsub.f32 %v4333_v11, %v2148_v1  ;;  %3458 = vmatprep.mubr.msk.bf16.mxu0 %vm3797_vm0, %v5232_v59  ;;  %v1790_v11 = vpack.c.bf16 %v3729_v29, %v3731_v31 }
 0x46c   : > { %1155 = vadd.xlane.f32.xlu0 %v1154_v26  ;;  %3736 = vpow2.f32 %v2188_v41  ;;  %v4773_v34 = vpop.permute.xlu1 %1735 }
 0x46d   : > { %v2190_v35 = vmul.f32 1.442695, %v2178_v49 }
 0x46f   : > { %3738 = vpow2.f32 %v2190_v35 }
 0x470   : > { %1161 = vadd.xlane.f32.xlu0 %v1160_v58  ;;  %3740 = vpow2.f32 %v2186_v28  ;;  %v4780_v35 = vpop.permute.xlu1 %1745 }
 0x471   : > { %3742 = vpow2.f32 %v2192_v33 }
 0x472   : > { %3459 = vmatmul.mubr.msk.bf16.gmra.mxu0 %vm472_vm3, %v1790_v11  ;;  %3744 = vpow2.f32 %v2196_v22 }
 0x473   : > { %3462 = vmatprep.mubr.msk.bf16.mxu0 %vm3797_vm0, %v5232_v59  ;;  %3746 = vpow2.f32 %v2200_v39 }
 0x474   : > { %1682 = vadd.xlane.f32.xlu0 %v1681_v57  ;;  %v4783_v31 = vpop.permute.xlu1 %1750 }
 0x478   : > { %v3735_v51 = vpop.eup %3734  ;;  %1685 = vadd.xlane.f32.xlu0 %v1684_v4  ;;  %v4785_v58 = vpop.permute.xlu1 %1755 }
 0x479   : > { %v2220_v20 = vsel %vm472_vm3, %v3735_v51, 0.0  ;;  %v3737_v36 = vpop.eup %3736 }
 0x47a   : > { %3463 = vmatmul.mubr.msk.bf16.gmra.mxu0 %vm472_vm3, %v1791_v9  ;;  %2221 = vadd.xlane.f32.xlu1 %v2220_v20  ;;  %v2226_v15 = vsel %vm472_vm3, %v3737_v36, 0.0 }
 0x47b   : > { %3494 = vmatprep.mubr.msk.bf16.mxu0 %vm3797_vm0, %v5232_v59 }
 0x47c   : > { %1691 = vadd.xlane.f32.xlu0 %v1690_v37  ;;  %v3739_v18 = vpop.eup %3738  ;;  %v4787_v23 = vpop.permute.xlu1 %1765 }
 0x47d   : > { %v3741_v29 = vpop.eup %3740  ;;  %v2229_v53 = vsel %vm472_vm3, %v3739_v18, 0.0  ;;  %v2330_v49 = vpack.c.bf16 %v3739_v18, %v3737_v36  ;;  %v1119_v18 = vld [vmem:[#allocation3 + $0x8] sm:$0xff] }
 0x47e   : > { %2227 = vadd.xlane.f32.xlu1 %v2226_v15  ;;  %v2329_v5 = vpack.c.bf16 %v3741_v29, %v3735_v51  ;;  %v3743_v25 = vpop.eup %3742  ;;  %v2223_v54 = vsel %vm472_vm3, %v3741_v29, 0.0 }
 0x47f   : > { %v2232_v41 = vsel %vm472_vm3, %v3743_v25, 0.0  ;;  %v3745_v1 = vpop.eup %3744 }
 0x480   : > { %1697 = vadd.xlane.f32.xlu0 %v1696_v32  ;;  %v2238_v26 = vsel %vm472_vm3, %v3745_v1, 0.0  ;;  %v3747_v27 = vpop.eup %3746  ;;  %v4790_v3 = vpop.permute.xlu1 %1770  ;;  %v1128_v32 = vmul.f32 %v4404_v12, %v1119_v18 }
 0x481   : > { %v2244_v28 = vsel %vm472_vm3, %v3747_v27, 0.0  ;;  %v2333_v29 = vpack.c.bf16 %v3747_v27, %v3747_v27 }
 0x482   : > { %3495 = vmatmul.mubr.msk.bf16.vlgmr.msra.gmra.mxu0 %vm472_vm3, %v2329_v5  ;;  %2230 = vadd.xlane.f32.xlu1 %v2229_v53 }
 0x483   : > { %3498 = vmatprep.mubr.msk.bf16.mxu0 %vm3797_vm0, %v5232_v59 }
 0x484   : > { %1703 = vadd.xlane.f32.xlu0 %v1702_v62 }
 0x485   : > { %v4793_v0 = vpop.permute.xlu1 %2282 }
 0x486   : > { %2233 = vadd.xlane.f32.xlu1 %v2232_v41 }
 0x488   : > { %2224 = vadd.xlane.f32.xlu0 %v2223_v54 }
 0x489   : > { %v4795_v4 = vpop.permute.xlu1 %2287 }
 0x48a   : > { %3499 = vmatmul.mubr.msk.bf16.gmra.mxu0 %vm472_vm3, %v2330_v49 }
 0x48b   : > { %3502 = vmatprep.mubr.msk.bf16.mxu0 %vm3797_vm0, %v5232_v59 }
 0x48c   : > { %2239 = vadd.xlane.f32.xlu0 %v2238_v26 }
 0x48d   : > { %v4798_v36 = vpop.permute.xlu1 %2297 }
 0x490   : > { %2245 = vadd.xlane.f32.xlu0 %v2244_v28 }
 0x491   : > { %v4804_v39 = vpop.permute.xlu1 %2307 }
 0x495   : > { %v4809_v15 = vpop.permute.xlu1 %2317 }
 0x4a2   : > { %v2158_v11 = vpop.permute.xlu0 %2157 }
 0x4a3   : > { %v2180_v33 = vsub.f32 %v4341_v63, %v2158_v11 }
 0x4a5   : > { %v2194_v57 = vmul.f32 1.442695, %v2180_v33 }
 0x4a6   : > { %v2168_v14 = vpop.permute.xlu0 %2167 }
 0x4a7   : > { %3748 = vpow2.f32 %v2194_v57  ;;  %v2182_v8 = vsub.f32 %v4347_v24, %v2168_v14 }
 0x4a9   : > { %v2198_v22 = vmul.f32 1.442695, %v2182_v8 }
 0x4aa   : > { %v4817_v12 = vpop.permute.xlu0 %2277 }
 0x4ab   : > { %3750 = vpow2.f32 %v2198_v22 }
 0x4ae   : > { %v4822_v33 = vpop.permute.xlu0 %2292 }
 0x4b4   : > { %v3749_v51 = vpop.eup %3748  ;;  %v4825_v14 = vpop.permute.xlu0 %2302 }
 0x4b5   : > { %v2235_v9 = vsel %vm472_vm3, %v3749_v51, 0.0  ;;  %v2331_v20 = vpack.c.bf16 %v3749_v51, %v3743_v25  ;;  %v1123_v25 = vld [vmem:[#allocation3 + $0x28] sm:$0xff] }
 0x4b6   : > { %2236 = vadd.xlane.f32.xlu1 %v2235_v9  ;;  %v1132_v62 = vmul.f32 %v4416_v13, %v1123_v25  ;;  %v1118_v9 = vld [vmem:[#allocation3] sm:$0xff] }
 0x4b7   : > { %3503 = vmatmul.mubr.msk.bf16.gmra.mxu0 %vm472_vm3, %v2331_v20 }
 0x4b8   : > { %v3751_v63 = vpop.eup %3750  ;;  %3506 = vmatprep.mubr.msk.bf16.mxu0 %vm3797_vm0, %v5232_v59  ;;  %v4828_v51 = vpop.permute.xlu0 %2312 }
 0x4b9   : > { %v2241_v24 = vsel %vm472_vm3, %v3751_v63, 0.0  ;;  %v2332_v37 = vpack.c.bf16 %v3751_v63, %v3745_v1  ;;  %v1125_v1 = vld [vmem:[#allocation3 + $0x38] sm:$0xff] }
 0x4ba   : > { %2242 = vadd.xlane.f32.xlu1 %v2241_v24  ;;  %v1127_v24 = vmul.f32 %v4360_v61, %v1118_v9 }
 0x4bf   : > { %3507 = vmatmul.mubr.msk.bf16.gmra.mxu0 %vm472_vm3, %v2332_v37 }
 0x4c0   : > { %3510 = vmatprep.mubr.msk.bf16.mxu0 %vm3797_vm0, %v5232_v59  ;;  %v1134_v59 = vmul.f32 %v4426_v45, %v1125_v1  ;;  %vm2998_vm0 = vcmask 257216  }
 0x4c7   : > { %v1141_v5 = vpop.xlane.xlu1 %1140  ;;  %3511 = vmatmul.mubr.msk.bf16.gmra.mxu0 %vm472_vm3, %v2333_v29 }
 0x4c8   : > { %v1164_v53 = vadd.f32 %v1141_v5, %v1128_v32  ;;  %v1120_v32 = vld [vmem:[#allocation3 + $0x10] sm:$0xff] }
 0x4ca   : > { %1174 = vst.msk [vmem:[#allocation3 + $0x8] sm:$0xff] %vm1172_vm7, %v1164_v53  ;;  %v1129_v53 = vmul.f32 %v4368_v19, %v1120_v32  ;;  %v1122_v19 = vld [vmem:[#allocation3 + $0x20] sm:$0xff] }
 0x4cb   : > { %v1153_v41 = vpop.xlane.xlu1 %1152 }
 0x4cc   : > { %v1168_v54 = vadd.f32 %v1153_v41, %v1132_v62 }
 0x4ce   : > { %1178 = vst.msk [vmem:[#allocation3 + $0x28] sm:$0xff] %vm1172_vm7, %v1168_v54 }
 0x4cf   : > { %v1159_v49 = vpop.xlane.xlu1 %1158 }
 0x4d0   : > { %v1170_v26 = vadd.f32 %v1159_v49, %v1134_v59  ;;  %v1307_v27 = vpop.f32.mrf.mxu0  ;;  %v1121_v59 = vld [vmem:[#allocation3 + $0x18] sm:$0xff] }
 0x4d1   : > { %1354 = vrot.lane.b32.xlu1 %v1307_v27, %s3806_s30  ;;  %v1130_v61 = vmul.f32 %v4377_v48, %v1121_v59  ;;  %v1126_v59 = vld [vmem:[#allocation3 + $0x40] sm:$0xff] }
 0x4d2   : > { %1180 = vst.msk [vmem:[#allocation3 + $0x38] sm:$0xff] %vm1172_vm7, %v1170_v26  ;;  %v3400_v28 = vpop.f32.mrf.mxu0  ;;  %v5245_v26 = vld [vmem:[#allocation9_spill] sm:$0xff] }
 0x4d3   : > { %v1680_v20 = vpop.xlane.xlu1 %1679 }
 0x4d4   : > { %v1310_v11 = vpop.f32.mrf.mxu0 }
 0x4d5   : > { %1356 = vrot.lane.b32.xlu1 %v1310_v11, %s3806_s30  ;;  %v1665_v1 = vld [vmem:[#allocation3 + $0x28] sm:$0xff] }
 0x4d6   : > { %v3401_v13 = vpop.f32.mrf.mxu0  ;;  %v1674_v27 = vmul.f32 %v5245_v26, %v1665_v1 }
 0x4d7   : > { %v1689_v62 = vpop.xlane.xlu1 %1688 }
 0x4d8   : > { %v1315_v57 = vpop.f32.mrf.mxu0 }
 0x4d9   : > { %1358 = vrot.lane.b32.xlu0 %v1315_v57, %s3806_s30  ;;  %v1667_v13 = vld [vmem:[#allocation3 + $0x38] sm:$0xff] }
 0x4da   : > { %v3404_v45 = vpop.f32.mrf.mxu0  ;;  %v1676_v48 = vmul.f32 %v4577_v56, %v1667_v13 }
 0x4dc   : > { %v1318_v8 = vpop.f32.mrf.mxu0 }
 0x4dd   : > { %1360 = vrot.lane.b32.xlu1 %v1318_v8, %s3806_s30 }
 0x4de   : > { %v3405_v22 = vpop.f32.mrf.mxu0 }
 0x4df   : > { %v5246_v22 = vld [vmem:[#allocation5_spill] sm:$0xff] }
 0x4e0   : > { %v1131_v9 = vmul.f32 %v5246_v22, %v1122_v19 }
 0x4e4   : > { %v1323_v63 = vpop.f32.mrf.mxu0 }
 0x4e5   : > { %v1138_v37 = vpop.xlane.xlu0 %1137  ;;  %1362 = vrot.lane.b32.xlu0 %v1323_v63, %s3806_s30 }
 0x4e6   : > { %v1163_v18 = vadd.f32 %v1138_v37, %v1127_v24  ;;  %v3408_v29 = vpop.f32.mrf.mxu0 }
 0x4e8   : > { %1173 = vst.msk [vmem:[#allocation3] sm:$0xff] %vm1172_vm7, %v1163_v18  ;;  %v1326_v5 = vpop.f32.mrf.mxu0 }
 0x4e9   : > { %v1144_v25 = vpop.xlane.xlu0 %1143  ;;  %1364 = vrot.lane.b32.xlu1 %v1326_v5, %s3806_s30 }
 0x4ea   : > { %v1165_v41 = vadd.f32 %v1144_v25, %v1129_v53  ;;  %v3409_v54 = vpop.f32.mrf.mxu0  ;;  %v1124_v53 = vld [vmem:[#allocation3 + $0x30] sm:$0xff] }
 0x4ec   : > { %1175 = vst.msk [vmem:[#allocation3 + $0x10] sm:$0xff] %vm1172_vm7, %v1165_v41  ;;  %v5247_v41 = vld [vmem:[#allocation6_spill] sm:$0xff] }
 0x4ed   : > { %v1147_v49 = vpop.xlane.xlu0 %1146  ;;  %v1133_v54 = vmul.f32 %v5247_v41, %v1124_v53 }
 0x4ee   : > { %v1166_v28 = vadd.f32 %v1147_v49, %v1130_v61  ;;  %v1695_v11 = vpop.xlane.xlu1 %1694  ;;  %v5248_v49 = vld [vmem:[#allocation7_spill] sm:$0xff] }
 0x4ef   : > { %v1710_v57 = vadd.f32 %v1695_v11, %v1674_v27  ;;  %v1660_v45 = vld [vmem:[#allocation3] sm:$0xff]  ;;  %v1135_v26 = vmul.f32 %v5248_v49, %v1126_v59  ;;  %v1661_v11 = vld [vmem:[#allocation3 + $0x8] sm:$0xff] }
 0x4f0   : > { %1176 = vst.msk [vmem:[#allocation3 + $0x18] sm:$0xff] %vm1172_vm7, %v1166_v28  ;;  %v1331_v8 = vpop.f32.mrf.mxu0  ;;  %v1669_v63 = vmul.f32 %v4550_v38, %v1660_v45 }
 0x4f1   : > { %1720 = vst.msk [vmem:[#allocation3 + $0x28] sm:$0xff] %vm1714_vm8, %v1710_v57  ;;  %v1150_v24 = vpop.xlane.xlu0 %1149  ;;  %1366 = vrot.lane.b32.xlu0 %v1331_v8, %s3806_s30  ;;  %v5249_v8 = vld [vmem:[#allocation8_spill] sm:$0xff] }
 0x4f2   : > { %v1167_v37 = vadd.f32 %v1150_v24, %v1131_v9  ;;  %v1701_v18 = vpop.xlane.xlu1 %1700  ;;  %v3412_v29 = vpop.f32.mrf.mxu0  ;;  %v1705_v32 = vadd.f32 %v1680_v20, %v1669_v63  ;;  %v1670_v22 = vmul.f32 %v5249_v8, %v1661_v11 }
 0x4f3   : > { %v1712_v5 = vadd.f32 %v1701_v18, %v1676_v48  ;;  %v1662_v63 = vld [vmem:[#allocation3 + $0x10] sm:$0xff] }
 0x4f4   : > { %1177 = vst.msk [vmem:[#allocation3 + $0x20] sm:$0xff] %vm1172_vm7, %v1167_v37  ;;  %v1334_v25 = vpop.f32.mrf.mxu0 }
 0x4f5   : > { %1715 = vst.msk [vmem:[#allocation3] sm:$0xff] %vm1714_vm8, %v1705_v32  ;;  %1722 = vst.msk [vmem:[#allocation3 + $0x38] sm:$0xff] %vm1714_vm8, %v1712_v5  ;;  %v1156_v38 = vpop.xlane.xlu0 %1155  ;;  %1368 = vrot.lane.b32.xlu1 %v1334_v25, %s3806_s30 }
 0x4f6   : > { %v1169_v1 = vadd.f32 %v1156_v38, %v1133_v54  ;;  %v3413_v56 = vpop.f32.mrf.mxu0 }
 0x4f7   : > { %v1663_v61 = vld [vmem:[#allocation3 + $0x18] sm:$0xff] }
 0x4f8   : > { %1179 = vst.msk [vmem:[#allocation3 + $0x30] sm:$0xff] %vm1172_vm7, %v1169_v1  ;;  %v1339_v20 = vpop.f32.mrf.mxu0  ;;  %v1672_v27 = vmul.f32 %v4561_v52, %v1663_v61  ;;  %v1671_v52 = vmul.f32 %v4554_v44, %v1662_v63 }
 0x4f9   : > { %v1162_v28 = vpop.xlane.xlu0 %1161  ;;  %1370 = vrot.lane.b32.xlu0 %v1339_v20, %s3806_s30 }
 0x4fa   : > { %v1171_v13 = vadd.f32 %v1162_v28, %v1135_v26  ;;  %v3416_v57 = vpop.f32.mrf.mxu0  ;;  %v1708_v19 = vadd.f32 %v1689_v62, %v1672_v27 }
 0x4fb   : > { %v1664_v29 = vld [vmem:[#allocation3 + $0x20] sm:$0xff] }
 0x4fc   : > { %1181 = vst.msk [vmem:[#allocation3 + $0x40] sm:$0xff] %vm1172_vm7, %v1171_v13  ;;  %v1342_v45 = vpop.f32.mrf.mxu0  ;;  %v2202_v37 = vld [vmem:[#allocation3] sm:$0xff]  ;;  %v1673_v25 = vmul.f32 %v4565_v6, %v1664_v29 }
 0x4fd   : > { %1718 = vst.msk [vmem:[#allocation3 + $0x18] sm:$0xff] %vm1714_vm8, %v1708_v19  ;;  %v1683_v9 = vpop.xlane.xlu0 %1682  ;;  %v2211_v62 = vmul.f32 %v4652_v17, %v2202_v37 }
 0x4fe   : > { %v1706_v24 = vadd.f32 %v1683_v9, %v1670_v22  ;;  %v3417_v48 = vpop.f32.mrf.mxu0 }
 0x4ff   : > { %v1666_v54 = vld [vmem:[#allocation3 + $0x30] sm:$0xff] }
 0x500   : > { %1716 = vst.msk [vmem:[#allocation3 + $0x8] sm:$0xff] %vm1714_vm8, %v1706_v24  ;;  %v1675_v44 = vmul.f32 %v4573_v21, %v1666_v54 }
 0x501   : > { %v1686_v18 = vpop.xlane.xlu0 %1685 }
 0x502   : > { %v1707_v32 = vadd.f32 %v1686_v18, %v1671_v52 }
 0x503   : > { %v2222_v5 = vpop.xlane.xlu1 %2221  ;;  %v1668_v61 = vld [vmem:[#allocation3 + $0x40] sm:$0xff] }
 0x504   : > { %1717 = vst.msk [vmem:[#allocation3 + $0x10] sm:$0xff] %vm1714_vm8, %v1707_v32  ;;  %v2247_v53 = vadd.f32 %v2222_v5, %v2211_v62  ;;  %v2205_v56 = vld [vmem:[#allocation3 + $0x18] sm:$0xff]  ;;  %v1677_v28 = vmul.f32 %v4530_v7, %v1668_v61 }
 0x505   : > { %v1692_v41 = vpop.xlane.xlu0 %1691  ;;  %v2214_v20 = vmul.f32 %v4664_v43, %v2205_v56 }
 0x506   : > { %2257 = vst.msk [vmem:[#allocation3] sm:$0xff] %vm2256_vm9, %v2247_v53  ;;  %v1709_v38 = vadd.f32 %v1692_v41, %v1673_v25  ;;  %v5250_v41 = vmov 1  }
 0x507   : > { %v2228_v1 = vpop.xlane.xlu1 %2227  ;;  %v2203_v13 = vld [vmem:[#allocation3 + $0x8] sm:$0xff] }
 0x508   : > { %1719 = vst.msk [vmem:[#allocation3 + $0x20] sm:$0xff] %vm1714_vm8, %v1709_v38 }
 0x509   : > { %v1698_v59 = vpop.xlane.xlu0 %1697 }
 0x50a   : > { %v1711_v17 = vadd.f32 %v1698_v59, %v1675_v44 }
 0x50b   : > { %v2204_v49 = vld [vmem:[#allocation3 + $0x10] sm:$0xff]  ;;  %v2231_v26 = vpop.xlane.xlu1 %2230 }
 0x50c   : > { %v2213_v6 = vmul.f32 %v4585_v16, %v2204_v49  ;;  %1721 = vst.msk [vmem:[#allocation3 + $0x30] sm:$0xff] %vm1714_vm8, %v1711_v17  ;;  %v2250_v27 = vadd.f32 %v2231_v26, %v2214_v20  ;;  %v2212_v16 = vmul.f32 %v4581_v55, %v2203_v13 }
 0x50d   : > { %v1704_v11 = vpop.xlane.xlu0 %1703  ;;  %v2505_v57 = vld [vmem:[#allocation3] sm:$0xff] }
 0x50e   : > { %v2249_v19 = vadd.f32 %v2228_v1, %v2213_v6  ;;  %2260 = vst.msk [vmem:[#allocation3 + $0x18] sm:$0xff] %vm2256_vm9, %v2250_v27  ;;  %v1713_v21 = vadd.f32 %v1704_v11, %v1677_v28  ;;  %3752 = vrcp.f32 %v2505_v57  ;;  %v5251_v1 = vmov 2   ;;  %v2207_v57 = vld [vmem:[#allocation3 + $0x28] sm:$0xff] }
 0x50f   : > { %v2206_v45 = vld [vmem:[#allocation3 + $0x20] sm:$0xff]  ;;  %v2234_v8 = vpop.xlane.xlu1 %2233 }
 0x510   : > { %2259 = vst.msk [vmem:[#allocation3 + $0x10] sm:$0xff] %vm2256_vm9, %v2249_v19  ;;  %v2215_v43 = vmul.f32 %v4599_v40, %v2206_v45 }
 0x511   : > { %1723 = vst.msk [vmem:[#allocation3 + $0x40] sm:$0xff] %vm1714_vm8, %v1713_v21  ;;  %v2225_v22 = vpop.xlane.xlu0 %2224 }
 0x512   : > { %v2251_v7 = vadd.f32 %v2234_v8, %v2215_v43  ;;  %v2248_v9 = vadd.f32 %v2225_v22, %v2212_v16  ;;  %v2216_v43 = vmul.f32 %v4675_v2, %v2207_v57  ;;  %v2209_v8 = vld [vmem:[#allocation3 + $0x38] sm:$0xff] }
 0x513   : > { %v2208_v63 = vld [vmem:[#allocation3 + $0x30] sm:$0xff] }
 0x514   : > { %2261 = vst.msk [vmem:[#allocation3 + $0x20] sm:$0xff] %vm2256_vm9, %v2251_v7  ;;  %2258 = vst.msk [vmem:[#allocation3 + $0x8] sm:$0xff] %vm2256_vm9, %v2248_v9  ;;  %v2217_v24 = vmul.f32 %v4604_v30, %v2208_v63  ;;  %v5252_v63 = vld [vmem:[#allocation18_spill] sm:$0xff] }
 0x515   : > { %v2240_v48 = vpop.xlane.xlu0 %2239  ;;  %v2508_v19 = vld [vmem:[#allocation3 + $0x18] sm:$0xff] }
 0x516   : > { %v2253_v37 = vadd.f32 %v2240_v48, %v2217_v24  ;;  %v2218_v24 = vmul.f32 %v5252_v63, %v2209_v8  ;;  %v1186_v8 = vld [vmem:[#allocation4 + $0x20] sm:$0xff] }
 0x517   : > { %v2507_v54 = vld [vmem:[#allocation3 + $0x10] sm:$0xff] }
 0x518   : > { %v2210_v52 = vld [vmem:[#allocation3 + $0x40] sm:$0xff]  ;;  %2263 = vst.msk [vmem:[#allocation3 + $0x30] sm:$0xff] %vm2256_vm9, %v2253_v37 }
 0x519   : > { %v2219_v40 = vmul.f32 %v4617_v47, %v2210_v52  ;;  %v2246_v55 = vpop.xlane.xlu0 %2245 }
 0x51a   : > { %v1849_v29 = vpop.f32.mrf.mxu0 }
 0x51b   : > { %v2255_v18 = vadd.f32 %v2246_v55, %v2219_v40  ;;  %v2506_v32 = vld [vmem:[#allocation3 + $0x8] sm:$0xff]  ;;  %1896 = vrot.lane.b32.xlu1 %v1849_v29, %s3807_s4  ;;  %v3753_v5 = vpop.eup %3752  ;;  %v2509_v27 = vld [vmem:[#allocation3 + $0x20] sm:$0xff]  ;;  %v5253_v55 = vld [vmem:[#allocation10_spill] sm:$0xff] }
 0x51c   : > { %v3448_v62 = vpop.f32.mrf.mxu0  ;;  %3754 = vrcp.f32 %v2506_v32  ;;  %v1182_v40 = vld [vmem:[#allocation4] sm:$0xff] }
 0x51d   : > { %2265 = vst.msk [vmem:[#allocation3 + $0x40] sm:$0xff] %vm2256_vm9, %v2255_v18  ;;  %3756 = vrcp.f32 %v2507_v54  ;;  %v1236_v18 = vmul.f32 %v5253_v55, %v1182_v40  ;;  %v5255_v54 = vld [vmem:[#allocation14_spill] sm:$0xff] }
 0x51e   : > { %v1852_v30 = vpop.f32.mrf.mxu0  ;;  %3758 = vrcp.f32 %v2509_v27  ;;  %v1185_v27 = vld [vmem:[#allocation4 + $0x18] sm:$0xff] }
 0x51f   : > { %2525 = vperm.xlu1 %3565, %v3753_v5   ;;  %1898 = vrot.lane.b32.xlu0 %v1852_v30, %s3807_s4  ;;  %3760 = vrcp.f32 %v2508_v19  ;;  %v1184_v30 = vld [vmem:[#allocation4 + $0x10] sm:$0xff] }
 0x520   : > { %v3449_v53 = vpop.f32.mrf.mxu0 }
 0x521   : > { %v1183_v53 = vld [vmem:[#allocation4 + $0x8] sm:$0xff] }
 0x522   : > { %v1857_v25 = vpop.f32.mrf.mxu0 }
 0x523   : > { %3566 = vset.pattern.permute.xlu1 %v5250_v41 }
 0x524   : > { %2653 = vperm.xlu1 %3566, %v3753_v5   ;;  %v3452_v47 = vpop.f32.mrf.mxu0  ;;  %v2513_v40 = vld [vmem:[#allocation3 + $0x40] sm:$0xff] }
 0x526   : > { %v1860_v38 = vpop.f32.mrf.mxu0 }
 0x528   : > { %3567 = vset.pattern.permute.xlu1 %v5251_v1  ;;  %v3453_v56 = vpop.f32.mrf.mxu0 }
 0x529   : > { %2781 = vperm.xlu1 %3567, %v3753_v5   ;;  %v3755_v44 = vpop.eup %3754 }
 0x52a   : > { %v1865_v59 = vpop.f32.mrf.mxu0  ;;  %2530 = vperm.xlu0 %3569, %v3755_v44   ;;  %v3757_v6 = vpop.eup %3756 }
 0x52b   : > { %v3759_v52 = vpop.eup %3758 }
 0x52c   : > { %v3456_v61 = vpop.f32.mrf.mxu0 }
 0x52d   : > { %3568 = vset.pattern.permute.xlu1 %v5229_v60 }
 0x52e   : > { %2909 = vperm.xlu1 %3568, %v3753_v5   ;;  %v1868_v17 = vpop.f32.mrf.mxu0  ;;  %3570 = vset.pattern.permute.xlu0 %v5250_v41 }
 0x52f   : > { %2658 = vperm.xlu0 %3570, %v3755_v44  }
 0x530   : > { %v3457_v20 = vpop.f32.mrf.mxu0 }
 0x531   : > { %v2511_v20 = vld [vmem:[#allocation3 + $0x30] sm:$0xff] }
 0x532   : > { %1900 = vrot.lane.b32.xlu1 %v1857_v25, %s3807_s4  ;;  %v4886_v49 = vpop.f32.mrf.mxu0  ;;  %v5254_v25 = vld [vmem:[#allocation11_spill] sm:$0xff]  ;;  %3762 = vrcp.f32 %v2511_v20 }
 0x533   : > { %3573 = vset.pattern.permute.xlu1 %v5235_v50  ;;  %3571 = vset.pattern.permute.xlu0 %v5251_v1  ;;  %v1238_v47 = vmul.f32 %v5254_v25, %v1184_v30  ;;  %v1189_v25 = vld [vmem:[#allocation4 + $0x38] sm:$0xff] }
 0x534   : > { %v3460_v26 = vpop.f32.mrf.mxu0  ;;  %2786 = vperm.xlu0 %3571, %v3755_v44  }
 0x536   : > { %2535 = vperm.xlu1 %3573, %v3757_v6   ;;  %v4890_v28 = vpop.f32.mrf.mxu0 }
 0x538   : > { %v3461_v11 = vpop.f32.mrf.mxu0  ;;  %3572 = vset.pattern.permute.xlu0 %v5229_v60 }
 0x539   : > { %2914 = vperm.xlu0 %3572, %v3755_v44   ;;  %v5256_v11 = vld [vmem:[#allocation12_spill] sm:$0xff] }
 0x53a   : > { %3574 = vset.pattern.permute.xlu1 %v5250_v41  ;;  %v4894_v13 = vpop.f32.mrf.mxu0  ;;  %v1239_v57 = vmul.f32 %v5256_v11, %v1185_v27 }
 0x53b   : > { %2663 = vperm.xlu1 %3574, %v3757_v6  }
 0x53c   : > { %v3464_v21 = vpop.f32.mrf.mxu0 }
 0x53d   : > { %1902 = vrot.lane.b32.xlu0 %v1860_v38, %s3807_s4  ;;  %v1237_v38 = vmul.f32 %v5255_v54, %v1183_v53  ;;  %v5260_v54 = vld [vmem:[#allocation17_spill] sm:$0xff] }
 0x53e   : > { %v1884_v45 = vpop.f32.mrf.mxu0  ;;  %3581 = vset.pattern.permute.xlu0 %v5235_v50 }
 0x53f   : > { %v2237_v16 = vpop.xlane.xlu1 %2236  ;;  %3575 = vset.pattern.permute.xlu1 %v5251_v1 }
 0x540   : > { %v2252_v22 = vadd.f32 %v2237_v16, %v2216_v43  ;;  %2791 = vperm.xlu1 %3575, %v3757_v6   ;;  %v3465_v7 = vpop.f32.mrf.mxu0 }
 0x541   : > { %1906 = vrot.lane.b32.xlu0 %v1868_v17, %s3807_s4  ;;  %v3761_v17 = vpop.eup %3760 }
 0x542   : > { %2262 = vst.msk [vmem:[#allocation3 + $0x28] sm:$0xff] %vm2256_vm9, %v2252_v22  ;;  %v4902_v9 = vpop.f32.mrf.mxu0  ;;  %v5257_v22 = vld [vmem:[#allocation13_spill] sm:$0xff]  ;;  %v4935_v55 = vpop.eup %3762 }
 0x543   : > { %v2243_v48 = vpop.xlane.xlu1 %2242  ;;  %v1240_v7 = vmul.f32 %v5257_v22, %v1186_v8 }
 0x544   : > { %v2254_v2 = vadd.f32 %v2243_v48, %v2218_v24  ;;  %3576 = vset.pattern.permute.xlu1 %v5229_v60  ;;  %v3496_v37 = vpop.f32.mrf.mxu0  ;;  %v1187_v48 = vld [vmem:[#allocation4 + $0x28] sm:$0xff] }
 0x545   : > { %2919 = vperm.xlu1 %3576, %v3757_v6   ;;  %2545 = vperm.xlu0 %3581, %v3759_v52  }
 0x546   : > { %2264 = vst.msk [vmem:[#allocation3 + $0x38] sm:$0xff] %vm2256_vm9, %v2254_v2  ;;  %v4908_v29 = vpop.f32.mrf.mxu0  ;;  %v5258_v2 = vld [vmem:[#allocation15_spill] sm:$0xff] }
 0x547   : > { %v1355_v32 = vpop.permute.xlu1 %1354  ;;  %v1241_v37 = vmul.f32 %v5258_v2, %v1187_v48 }
 0x548   : > { %v1381_v62 = vadd.f32 %v1355_v32, %v1236_v18  ;;  %v3497_v5 = vpop.f32.mrf.mxu0  ;;  %v5259_v32 = vld [vmem:[#allocation16_spill] sm:$0xff] }
 0x549   : > { %1904 = vrot.lane.b32.xlu1 %v1865_v59, %s3807_s4  ;;  %3582 = vset.pattern.permute.xlu0 %v5250_v41  ;;  %v2510_v16 = vld [vmem:[#allocation3 + $0x28] sm:$0xff] }
 0x54a   : > { %1391 = vst.msk [vmem:[#allocation4] sm:$0xff] %vm1390_vm10, %v1381_v62  ;;  %v4915_v56 = vpop.f32.mrf.mxu0  ;;  %3577 = vset.pattern.permute.xlu1 %v5235_v50  ;;  %2673 = vperm.xlu0 %3582, %v3759_v52   ;;  %3764 = vrcp.f32 %v2510_v16 }
 0x54b   : > { %v1357_v44 = vpop.permute.xlu1 %1356  ;;  %v1359_v61 = vpop.permute.xlu0 %1358  ;;  %3766 = vrcp.f32 %v2513_v40 }
 0x54c   : > { %v1382_v26 = vadd.f32 %v1357_v44, %v1237_v38  ;;  %v1383_v6 = vadd.f32 %v1359_v61, %v1238_v47  ;;  %v3500_v59 = vpop.f32.mrf.mxu0  ;;  %v1243_v38 = vmul.f32 %v5260_v54, %v1189_v25  ;;  %v1190_v61 = vld [vmem:[#allocation4 + $0x40] sm:$0xff] }
 0x54d   : > { %2540 = vperm.xlu1 %3577, %v3761_v17   ;;  %v2512_v47 = vld [vmem:[#allocation3 + $0x38] sm:$0xff] }
 0x54e   : > { %1392 = vst.msk [vmem:[#allocation4 + $0x8] sm:$0xff] %vm1390_vm10, %v1382_v26  ;;  %1393 = vst.msk [vmem:[#allocation4 + $0x10] sm:$0xff] %vm1390_vm10, %v1383_v6  ;;  %v4921_v19 = vpop.f32.mrf.mxu0  ;;  %3583 = vset.pattern.permute.xlu0 %v5251_v1  ;;  %3768 = vrcp.f32 %v2512_v47 }
 0x54f   : > { %v1361_v21 = vpop.permute.xlu1 %1360  ;;  %2801 = vperm.xlu0 %3583, %v3759_v52  }
 0x550   : > { %v1384_v45 = vadd.f32 %v1361_v21, %v1239_v57  ;;  %v3501_v43 = vpop.f32.mrf.mxu0 }
 0x551   : > { %3578 = vset.pattern.permute.xlu1 %v5250_v41 }
 0x552   : > { %1394 = vst.msk [vmem:[#allocation4 + $0x18] sm:$0xff] %vm1390_vm10, %v1384_v45  ;;  %2668 = vperm.xlu1 %3578, %v3761_v17  }
 0x553   : > { %3584 = vset.pattern.permute.xlu0 %v5229_v60 }
 0x554   : > { %2929 = vperm.xlu0 %3584, %v3759_v52  }
 0x556   : > { %3579 = vset.pattern.permute.xlu1 %v5251_v1 }
 0x557   : > { %v1363_v63 = vpop.permute.xlu0 %1362  ;;  %2796 = vperm.xlu1 %3579, %v3761_v17   ;;  %v4945_v5 = vpop.eup %3764 }
 0x558   : > { %v1385_v24 = vadd.f32 %v1363_v63, %v1240_v7  ;;  %1910 = vrot.lane.b32.xlu0 %v4890_v28, %s3807_s4  ;;  %v1188_v28 = vld [vmem:[#allocation4 + $0x30] sm:$0xff]  ;;  %v3767_v26 = vpop.eup %3766  ;;  %v1725_v7 = vld [vmem:[#allocation4 + $0x8] sm:$0xff] }
 0x559   : > { %3588 = vset.pattern.permute.xlu0 %v5235_v50  ;;  %v1242_v62 = vmul.f32 %v5259_v32, %v1188_v28 }
 0x55a   : > { %1395 = vst.msk [vmem:[#allocation4 + $0x20] sm:$0xff] %vm1390_vm10, %v1385_v24 }
 0x55b   : > { %v1365_v52 = vpop.permute.xlu1 %1364  ;;  %3580 = vset.pattern.permute.xlu1 %v5229_v60  ;;  %v3769_v27 = vpop.eup %3768 }
 0x55c   : > { %v1386_v18 = vadd.f32 %v1365_v52, %v1241_v37  ;;  %2924 = vperm.xlu1 %3580, %v3761_v17   ;;  %2555 = vperm.xlu0 %3588, %v4935_v55   ;;  %v5261_v17 = vld [vmem:[#allocation19_spill] sm:$0xff]  ;;  %v1726_v52 = vld [vmem:[#allocation4 + $0x10] sm:$0xff] }
 0x55d   : > { %v1244_v20 = vmul.f32 %v5261_v17, %v1190_v61 }
 0x55e   : > { %1396 = vst.msk [vmem:[#allocation4 + $0x28] sm:$0xff] %vm1390_vm10, %v1386_v18 }
 0x560   : > { %1908 = vrot.lane.b32.xlu1 %v4886_v49, %s3807_s4  ;;  %3589 = vset.pattern.permute.xlu0 %v5250_v41 }
 0x561   : > { %3585 = vset.pattern.permute.xlu1 %v5235_v50  ;;  %2683 = vperm.xlu0 %3589, %v4935_v55  }
 0x563   : > { %v1367_v30 = vpop.permute.xlu0 %1366 }
 0x564   : > { %v1387_v53 = vadd.f32 %v1367_v30, %v1242_v62  ;;  %2550 = vperm.xlu1 %3585, %v4945_v5   ;;  %v1727_v30 = vld [vmem:[#allocation4 + $0x18] sm:$0xff] }
 0x565   : > { %3590 = vset.pattern.permute.xlu0 %v5251_v1  ;;  %v1781_v25 = vmul.f32 %v4783_v31, %v1727_v30  ;;  %v1729_v54 = vld [vmem:[#allocation4 + $0x28] sm:$0xff] }
 0x566   : > { %1397 = vst.msk [vmem:[#allocation4 + $0x30] sm:$0xff] %vm1390_vm10, %v1387_v53  ;;  %2811 = vperm.xlu0 %3590, %v4935_v55  }
 0x567   : > { %v1369_v49 = vpop.permute.xlu1 %1368 }
 0x568   : > { %v1388_v44 = vadd.f32 %v1369_v49, %v1243_v38  ;;  %3586 = vset.pattern.permute.xlu1 %v5250_v41 }
 0x569   : > { %2678 = vperm.xlu1 %3586, %v4945_v5  }
 0x56a   : > { %1398 = vst.msk [vmem:[#allocation4 + $0x38] sm:$0xff] %vm1390_vm10, %v1388_v44  ;;  %3594 = vset.pattern.permute.xlu0 %v5235_v50 }
 0x56b   : > { %v1371_v6 = vpop.permute.xlu0 %1370  ;;  %2565 = vperm.xlu0 %3594, %v3767_v26  }
 0x56c   : > { %v1389_v59 = vadd.f32 %v1371_v6, %v1244_v20  ;;  %v1728_v20 = vld [vmem:[#allocation4 + $0x20] sm:$0xff] }
 0x56d   : > { %3587 = vset.pattern.permute.xlu1 %v5251_v1  ;;  %v1782_v31 = vmul.f32 %v4785_v58, %v1728_v20 }
 0x56e   : > { %1399 = vst.msk [vmem:[#allocation4 + $0x40] sm:$0xff] %vm1390_vm10, %v1389_v59  ;;  %2806 = vperm.xlu1 %3587, %v4945_v5  }
 0x56f   : > { %3595 = vset.pattern.permute.xlu0 %v5250_v41 }
 0x570   : > { %2693 = vperm.xlu0 %3595, %v3767_v26  }
 0x572   : > { %1912 = vrot.lane.b32.xlu1 %v4894_v13, %s3807_s4 }
 0x573   : > { %3591 = vset.pattern.permute.xlu1 %v5235_v50 }
 0x574   : > { %3596 = vset.pattern.permute.xlu0 %v5251_v1 }
 0x575   : > { %2821 = vperm.xlu0 %3596, %v3767_v26  }
 0x576   : > { %2560 = vperm.xlu1 %3591, %v3769_v27  }
 0x577   : > { %v2407_v11 = vpop.f32.mrf.mxu0 }
 0x579   : > { %v3504_v57 = vpop.f32.mrf.mxu0  ;;  %2438 = vrot.lane.b32.xlu0 %v4902_v9, %s3808_s5 }
 0x57a   : > { %3592 = vset.pattern.permute.xlu1 %v5250_v41  ;;  %3598 = vset.pattern.permute.xlu0 %v5229_v60 }
 0x57b   : > { %2688 = vperm.xlu1 %3592, %v3769_v27   ;;  %v2410_v21 = vpop.f32.mrf.mxu0 }
 0x57d   : > { %v3505_v13 = vpop.f32.mrf.mxu0  ;;  %2442 = vrot.lane.b32.xlu0 %v4915_v56, %s3808_s5 }
 0x57e   : > { %v1731_v13 = vld [vmem:[#allocation4 + $0x38] sm:$0xff] }
 0x57f   : > { %3593 = vset.pattern.permute.xlu1 %v5251_v1  ;;  %v2415_v50 = vpop.f32.mrf.mxu0  ;;  %v1724_v1 = vld [vmem:[#allocation4] sm:$0xff] }
 0x580   : > { %2816 = vperm.xlu1 %3593, %v3769_v27   ;;  %v1778_v8 = vmul.f32 %v4773_v34, %v1724_v1 }
 0x581   : > { %v3508_v45 = vpop.f32.mrf.mxu0  ;;  %2446 = vrot.lane.b32.xlu0 %v2407_v11, %s3808_s5 }
 0x582   : > { %v1785_v45 = vmul.f32 %v4790_v3, %v1731_v13 }
 0x583   : > { %v2418_v43 = vpop.f32.mrf.mxu0 }
 0x584   : > { %2440 = vrot.lane.b32.xlu1 %v4908_v29, %s3808_s5 }
 0x585   : > { %v3509_v41 = vpop.f32.mrf.mxu0  ;;  %3597 = vset.pattern.permute.xlu1 %v5229_v60  ;;  %2450 = vrot.lane.b32.xlu0 %v2415_v50, %s3808_s5 }
 0x587   : > { %v2423_v9 = vpop.f32.mrf.mxu0 }
 0x588   : > { %2444 = vrot.lane.b32.xlu1 %v4921_v19, %s3808_s5  ;;  %v1779_v19 = vmul.f32 %v4708_v42, %v1725_v7 }
 0x589   : > { %v3512_v56 = vpop.f32.mrf.mxu0  ;;  %2454 = vrot.lane.b32.xlu0 %v2423_v9, %s3808_s5  ;;  %v1730_v9 = vld [vmem:[#allocation4 + $0x30] sm:$0xff] }
 0x58a   : > { %v1784_v1 = vmul.f32 %v4787_v23, %v1730_v9 }
 0x58b   : > { %v2426_v16 = vpop.f32.mrf.mxu0 }
 0x58c   : > { %2448 = vrot.lane.b32.xlu1 %v2410_v21, %s3808_s5 }
 0x58d   : > { %v1897_v29 = vpop.permute.xlu1 %1896  ;;  %v3513_v22 = vpop.f32.mrf.mxu0  ;;  %2939 = vperm.xlu0 %3598, %v4935_v55   ;;  %v1780_v55 = vmul.f32 %v4780_v35, %v1726_v52  ;;  %v1783_v35 = vmul.f32 %v4719_v10, %v1729_v54 }
 0x58e   : > { %v1923_v60 = vadd.f32 %v1897_v29, %v1778_v8 }
 0x590   : > { %1933 = vst.msk [vmem:[#allocation4] sm:$0xff] %vm1932_vm11, %v1923_v60  ;;  %2452 = vrot.lane.b32.xlu1 %v2418_v43, %s3808_s5 }
 0x591   : > { %v1899_v63 = vpop.permute.xlu0 %1898  ;;  %2949 = vperm.xlu0 %3598, %v3767_v26  }
 0x592   : > { %v1924_v24 = vadd.f32 %v1899_v63, %v1779_v19  ;;  %v1732_v63 = vld [vmem:[#allocation4 + $0x40] sm:$0xff] }
 0x593   : > { %v1786_v23 = vmul.f32 %v4726_v46, %v1732_v63 }
 0x594   : > { %1934 = vst.msk [vmem:[#allocation4 + $0x8] sm:$0xff] %vm1932_vm11, %v1924_v24  ;;  %2934 = vperm.xlu1 %3597, %v4945_v5  }
 0x597   : > { %v2266_v30 = vld [vmem:[#allocation4] sm:$0xff] }
 0x598   : > { %2944 = vperm.xlu1 %3597, %v3769_v27  }
 0x59a   : > { %v4988_v34 = vpop.permute.xlu1 %2525 }
 0x59f   : > { %v4990_v48 = vpop.permute.xlu1 %2653 }
 0x5a4   : > { %v4992_v2 = vpop.permute.xlu1 %2781 }
 0x5a5   : > { %v4994_v37 = vpop.permute.xlu0 %2530 }
 0x5a9   : > { %v4996_v40 = vpop.permute.xlu1 %2909 }
 0x5aa   : > { %v4998_v42 = vpop.permute.xlu0 %2658 }
 0x5ad   : > { %v1901_v18 = vpop.permute.xlu1 %1900 }
 0x5ae   : > { %v1925_v28 = vadd.f32 %v1901_v18, %v1780_v55 }
 0x5af   : > { %v5002_v32 = vpop.permute.xlu0 %2786 }
 0x5b0   : > { %1935 = vst.msk [vmem:[#allocation4 + $0x10] sm:$0xff] %vm1932_vm11, %v1925_v28 }
 0x5b1   : > { %v5004_v62 = vpop.permute.xlu1 %2535 }
 0x5b4   : > { %v5006_v5 = vpop.permute.xlu0 %2914 }
 0x5b6   : > { %v5008_v53 = vpop.permute.xlu1 %2663 }
 0x5b7   : > { %v2268_v54 = vld [vmem:[#allocation4 + $0x10] sm:$0xff] }
 0x5b8   : > { %v1903_v47 = vpop.permute.xlu0 %1902  ;;  %v2322_v46 = vmul.f32 %v4795_v4, %v2268_v54 }
 0x5b9   : > { %v1926_v38 = vadd.f32 %v1903_v47, %v1781_v25  ;;  %v2320_v25 = vmul.f32 %v4817_v12, %v2266_v30 }
 0x5bb   : > { %v5011_v49 = vpop.permute.xlu1 %2791  ;;  %1936 = vst.msk [vmem:[#allocation4 + $0x18] sm:$0xff] %vm1932_vm11, %v1926_v38 }
 0x5bc   : > { %v1907_v44 = vpop.permute.xlu0 %1906 }
 0x5bd   : > { %v1928_v61 = vadd.f32 %v1907_v44, %v1783_v35 }
 0x5bf   : > { %1938 = vst.msk [vmem:[#allocation4 + $0x28] sm:$0xff] %vm1932_vm11, %v1928_v61 }
 0x5c0   : > { %v5016_v17 = vpop.permute.xlu1 %2919  ;;  %v5018_v26 = vpop.permute.xlu0 %2545 }
 0x5c4   : > { %v1905_v6 = vpop.permute.xlu1 %1904 }
 0x5c5   : > { %v1927_v59 = vadd.f32 %v1905_v6, %v1782_v31  ;;  %v5021_v27 = vpop.permute.xlu0 %2673  ;;  %v2267_v6 = vld [vmem:[#allocation4 + $0x8] sm:$0xff] }
 0x5c7   : > { %1937 = vst.msk [vmem:[#allocation4 + $0x20] sm:$0xff] %vm1932_vm11, %v1927_v59 }
 0x5c8   : > { %v5024_v11 = vpop.permute.xlu1 %2540 }
 0x5ca   : > { %v5026_v10 = vpop.permute.xlu0 %2801 }
 0x5cd   : > { %v5028_v57 = vpop.permute.xlu1 %2668 }
 0x5ce   : > { %v2270_v61 = vld [vmem:[#allocation4 + $0x20] sm:$0xff] }
 0x5cf   : > { %v5030_v21 = vpop.permute.xlu0 %2929  ;;  %v2324_v12 = vmul.f32 %v4798_v36, %v2270_v61 }
 0x5d2   : > { %v5032_v50 = vpop.permute.xlu1 %2796 }
 0x5d3   : > { %v1911_v58 = vpop.permute.xlu0 %1910 }
 0x5d4   : > { %v1930_v43 = vadd.f32 %v1911_v58, %v1785_v45 }
 0x5d6   : > { %1940 = vst.msk [vmem:[#allocation4 + $0x38] sm:$0xff] %vm1932_vm11, %v1930_v43  ;;  %v2321_v43 = vmul.f32 %v4793_v0, %v2267_v6 }
 0x5d7   : > { %v5036_v41 = vpop.permute.xlu1 %2924  ;;  %v5038_v56 = vpop.permute.xlu0 %2555 }
 0x5db   : > { %v1909_v16 = vpop.permute.xlu1 %1908 }
 0x5dc   : > { %v1929_v8 = vadd.f32 %v1909_v16, %v1784_v1  ;;  %v5041_v29 = vpop.permute.xlu0 %2683 }
 0x5de   : > { %1939 = vst.msk [vmem:[#allocation4 + $0x30] sm:$0xff] %vm1932_vm11, %v1929_v8  ;;  %v2269_v8 = vld [vmem:[#allocation4 + $0x18] sm:$0xff] }
 0x5df   : > { %v5044_v22 = vpop.permute.xlu1 %2550  ;;  %v2323_v30 = vmul.f32 %v4822_v33, %v2269_v8 }
 0x5e1   : > { %v5046_v3 = vpop.permute.xlu0 %2811 }
 0x5e4   : > { %v5048_v7 = vpop.permute.xlu1 %2678 }
 0x5e5   : > { %v2272_v45 = vld [vmem:[#allocation4 + $0x30] sm:$0xff] }
 0x5e6   : > { %v5050_v60 = vpop.permute.xlu0 %2565  ;;  %v2326_v0 = vmul.f32 %v4804_v39, %v2272_v45 }
 0x5e9   : > { %v5052_v19 = vpop.permute.xlu1 %2806 }
 0x5eb   : > { %v5054_v24 = vpop.permute.xlu0 %2693 }
 0x5ed   : > { %v1913_v52 = vpop.permute.xlu1 %1912 }
 0x5ee   : > { %v1931_v55 = vadd.f32 %v1913_v52, %v1786_v23 }
 0x5f0   : > { %1941 = vst.msk [vmem:[#allocation4 + $0x40] sm:$0xff] %vm1932_vm11, %v1931_v55  ;;  %v5058_v18 = vpop.permute.xlu0 %2821 }
 0x5f1   : > { %v5060_v28 = vpop.permute.xlu1 %2560 }
 0x5f4   : > { %v2439_v47 = vpop.permute.xlu0 %2438 }
 0x5f5   : > { %v2465_v38 = vadd.f32 %v2439_v47, %v2320_v25 }
 0x5f6   : > { %v5063_v35 = vpop.permute.xlu1 %2688 }
 0x5f7   : > { %2475 = vst.msk [vmem:[#allocation4] sm:$0xff] %vm2474_vm12, %v2465_v38  ;;  %v2271_v38 = vld [vmem:[#allocation4 + $0x28] sm:$0xff] }
 0x5f8   : > { %v2443_v44 = vpop.permute.xlu0 %2442 }
 0x5f9   : > { %v2467_v20 = vadd.f32 %v2443_v44, %v2322_v46 }
 0x5fb   : > { %v5067_v31 = vpop.permute.xlu1 %2816  ;;  %2477 = vst.msk [vmem:[#allocation4 + $0x10] sm:$0xff] %vm2474_vm12, %v2467_v20 }
 0x5fc   : > { %v2447_v59 = vpop.permute.xlu0 %2446 }
 0x5fd   : > { %v2469_v13 = vadd.f32 %v2447_v59, %v2324_v12 }
 0x5fe   : > { %v2496_v58 = vld [vmem:[#allocation4] sm:$0xff] }
 0x5ff   : > { %v2441_v9 = vpop.permute.xlu1 %2440  ;;  %v2568_v4 = vmul.f32 %v4988_v34, %v2496_v58  ;;  %v2696_v1 = vmul.f32 %v4990_v48, %v2496_v58  ;;  %v2824_v16 = vmul.f32 %v4992_v2, %v2496_v58  ;;  %2479 = vst.msk [vmem:[#allocation4 + $0x20] sm:$0xff] %vm2474_vm12, %v2469_v13  ;;  %v2952_v36 = vmul.f32 %v4996_v40, %v2496_v58  ;;  %v2274_v2 = vld [vmem:[#allocation4 + $0x40] sm:$0xff] }
 0x600   : > { %v2466_v63 = vadd.f32 %v2441_v9, %v2321_v43  ;;  %v2451_v23 = vpop.permute.xlu0 %2450  ;;  %v2328_v61 = vmul.f32 %v4809_v15, %v2274_v2  ;;  %v2273_v15 = vld [vmem:[#allocation4 + $0x38] sm:$0xff] }
 0x601   : > { %v3230_v34 = vpack.c.bf16 %v2568_v4, %v2568_v4  ;;  %v3239_v48 = vpack.c.bf16 %v2696_v1, %v2696_v1  ;;  %v2471_v55 = vadd.f32 %v2451_v23, %v2326_v0  ;;  %v3248_v40 = vpack.c.bf16 %v2824_v16, %v2824_v16 }
 0x602   : > { %v2498_v52 = vld [vmem:[#allocation4 + $0x10] sm:$0xff]  ;;  %2476 = vst.msk [vmem:[#allocation4 + $0x8] sm:$0xff] %vm2474_vm12, %v2466_v63  ;;  %v3257_v46 = vpack.c.bf16 %v2952_v36, %v2952_v36 }
 0x603   : > { %v2445_v25 = vpop.permute.xlu1 %2444  ;;  %v2570_v39 = vmul.f32 %v5004_v62, %v2498_v52  ;;  %v2698_v47 = vmul.f32 %v5008_v53, %v2498_v52  ;;  %v2826_v54 = vmul.f32 %v5011_v49, %v2498_v52  ;;  %2615 = vst.msk [vmem:[%s5081_s8] sm:$0xf] %vm2614_vm13, %v3230_v34  ;;  %v2954_v44 = vmul.f32 %v5016_v17, %v2498_v52 }
 0x604   : > { %2481 = vst.msk [vmem:[#allocation4 + $0x30] sm:$0xff] %vm2474_vm12, %v2471_v55  ;;  %v2468_v33 = vadd.f32 %v2445_v25, %v2323_v30  ;;  %v2455_v20 = vpop.permute.xlu0 %2454  ;;  %v2325_v17 = vmul.f32 %v4825_v14, %v2271_v38 }
 0x605   : > { %2743 = vst.msk [vmem:[%s5081_s8] sm:$0xf] %vm2742_vm14, %v3239_v48  ;;  %v3232_v62 = vpack.c.bf16 %v2570_v39, %v2570_v39  ;;  %v3241_v53 = vpack.c.bf16 %v2698_v47, %v2698_v47  ;;  %v2473_v12 = vadd.f32 %v2455_v20, %v2328_v61  ;;  %v3250_v59 = vpack.c.bf16 %v2826_v54, %v2826_v54 }
 0x606   : > { %2871 = vst.msk [vmem:[%s5081_s8] sm:$0xf] %vm2870_vm15, %v3248_v40  ;;  %v2500_v49 = vld [vmem:[#allocation4 + $0x20] sm:$0xff]  ;;  %v3259_v43 = vpack.c.bf16 %v2954_v44, %v2954_v44 }
 0x607   : > { %2478 = vst.msk [vmem:[#allocation4 + $0x18] sm:$0xff] %vm2474_vm12, %v2468_v33  ;;  %v2449_v6 = vpop.permute.xlu1 %2448  ;;  %v2572_v13 = vmul.f32 %v5018_v26, %v2500_v49  ;;  %v2700_v45 = vmul.f32 %v5021_v27, %v2500_v49  ;;  %v2828_v58 = vmul.f32 %v5026_v10, %v2500_v49  ;;  %v2956_v9 = vmul.f32 %v5030_v21, %v2500_v49 }
 0x608   : > { %2999 = vst.msk [vmem:[%s5081_s8] sm:$0xf] %vm2998_vm0, %v3257_v46  ;;  %v2470_v14 = vadd.f32 %v2449_v6, %v2325_v17  ;;  %v2327_v26 = vmul.f32 %v4828_v51, %v2273_v15  ;;  %v2940_v51 = vpop.permute.xlu0 %2939 }
 0x609   : > { %2617 = vst.msk [vmem:[%s5081_s8 + $0x8] sm:$0xf] %vm2614_vm13, %v3232_v62  ;;  %v3234_v4 = vpack.c.bf16 %v2572_v13, %v2572_v13  ;;  %v3243_v1 = vpack.c.bf16 %v2700_v45, %v2700_v45  ;;  %v2497_v16 = vld [vmem:[#allocation4 + $0x8] sm:$0xff]  ;;  %v3252_v36 = vpack.c.bf16 %v2828_v58, %v2828_v58 }
 0x60a   : > { %2483 = vst.msk [vmem:[#allocation4 + $0x40] sm:$0xff] %vm2474_vm12, %v2473_v12  ;;  %v2569_v27 = vmul.f32 %v4994_v37, %v2497_v16  ;;  %v2697_v10 = vmul.f32 %v4998_v42, %v2497_v16  ;;  %v2825_v21 = vmul.f32 %v5002_v32, %v2497_v16  ;;  %2480 = vst.msk [vmem:[#allocation4 + $0x28] sm:$0xff] %vm2474_vm12, %v2470_v14 }
 0x60b   : > { %2745 = vst.msk [vmem:[%s5081_s8 + $0x8] sm:$0xf] %vm2742_vm14, %v3241_v53  ;;  %v2453_v8 = vpop.permute.xlu1 %2452  ;;  %v2953_v63 = vmul.f32 %v5006_v5, %v2497_v16  ;;  %v2502_v0 = vld [vmem:[#allocation4 + $0x30] sm:$0xff]  ;;  %v3261_v37 = vpack.c.bf16 %v2956_v9, %v2956_v9 }
 0x60c   : > { %2873 = vst.msk [vmem:[%s5081_s8 + $0x8] sm:$0xf] %vm2870_vm15, %v3250_v59  ;;  %v2472_v23 = vadd.f32 %v2453_v8, %v2327_v26  ;;  %v3231_v42 = vpack.c.bf16 %v2569_v27, %v2569_v27  ;;  %v3240_v34 = vpack.c.bf16 %v2697_v10, %v2697_v10  ;;  %v2574_v48 = vmul.f32 %v5038_v56, %v2502_v0  ;;  %v2950_v61 = vpop.permute.xlu0 %2949 }
 0x60d   : > { %3001 = vst.msk [vmem:[%s5081_s8 + $0x8] sm:$0xf] %vm2998_vm0, %v3259_v43  ;;  %v2702_v2 = vmul.f32 %v5041_v29, %v2502_v0  ;;  %v2830_v5 = vmul.f32 %v5046_v3, %v2502_v0  ;;  %v2958_v52 = vmul.f32 %v2940_v51, %v2502_v0  ;;  %v3249_v55 = vpack.c.bf16 %v2825_v21, %v2825_v21 }
 0x60e   : > { %2619 = vst.msk [vmem:[%s5081_s8 + $0x10] sm:$0xf] %vm2614_vm13, %v3234_v4  ;;  %v2499_v32 = vld [vmem:[#allocation4 + $0x18] sm:$0xff]  ;;  %2616 = vst.msk [vmem:[%s5081_s8 + $0x4] sm:$0xf] %vm2614_vm13, %v3231_v42  ;;  %v3258_v56 = vpack.c.bf16 %v2953_v63, %v2953_v63  ;;  %v3236_v3 = vpack.c.bf16 %v2574_v48, %v2574_v48 }
 0x60f   : > { %2747 = vst.msk [vmem:[%s5081_s8 + $0x10] sm:$0xf] %vm2742_vm14, %v3243_v1  ;;  %v2571_v30 = vmul.f32 %v5024_v11, %v2499_v32  ;;  %v2699_v25 = vmul.f32 %v5028_v57, %v2499_v32  ;;  %v2827_v40 = vmul.f32 %v5032_v50, %v2499_v32  ;;  %v2955_v29 = vmul.f32 %v5036_v41, %v2499_v32  ;;  %v2935_v11 = vpop.permute.xlu1 %2934 }
 0x610   : > { %2875 = vst.msk [vmem:[%s5081_s8 + $0x10] sm:$0xf] %vm2870_vm15, %v3252_v36  ;;  %v3245_v39 = vpack.c.bf16 %v2702_v2, %v2702_v2  ;;  %v3254_v50 = vpack.c.bf16 %v2830_v5, %v2830_v5  ;;  %v3263_v38 = vpack.c.bf16 %v2958_v52, %v2958_v52 }
 0x611   : > { %2482 = vst.msk [vmem:[#allocation4 + $0x38] sm:$0xff] %vm2474_vm12, %v2472_v23  ;;  %v2504_v47 = vld [vmem:[#allocation4 + $0x40] sm:$0xff]  ;;  %v3233_v57 = vpack.c.bf16 %v2571_v30, %v2571_v30  ;;  %v3242_v54 = vpack.c.bf16 %v2699_v25, %v2699_v25  ;;  %v3251_v46 = vpack.c.bf16 %v2827_v40, %v2827_v40  ;;  %v2501_v20 = vld [vmem:[#allocation4 + $0x28] sm:$0xff] }
 0x612   : > { %3003 = vst.msk [vmem:[%s5081_s8 + $0x10] sm:$0xf] %vm2998_vm0, %v3261_v37  ;;  %v2576_v41 = vmul.f32 %v5050_v60, %v2504_v47  ;;  %v2704_v44 = vmul.f32 %v5054_v24, %v2504_v47  ;;  %v2832_v33 = vmul.f32 %v5058_v18, %v2504_v47  ;;  %v2960_v62 = vmul.f32 %v2950_v61, %v2504_v47 }
 0x613   : > { %2744 = vst.msk [vmem:[%s5081_s8 + $0x4] sm:$0xf] %vm2742_vm14, %v3240_v34  ;;  %v2573_v53 = vmul.f32 %v5044_v22, %v2501_v20  ;;  %v2701_v49 = vmul.f32 %v5048_v7, %v2501_v20  ;;  %v2829_v60 = vmul.f32 %v5052_v19, %v2501_v20  ;;  %v3260_v24 = vpack.c.bf16 %v2955_v29, %v2955_v29  ;;  %v2945_v45 = vpop.permute.xlu1 %2944 }
 0x614   : > { %2872 = vst.msk [vmem:[%s5081_s8 + $0x4] sm:$0xf] %vm2870_vm15, %v3249_v55  ;;  %v3238_v18 = vpack.c.bf16 %v2576_v41, %v2576_v41  ;;  %v3247_v12 = vpack.c.bf16 %v2704_v44, %v2704_v44  ;;  %v2957_v17 = vmul.f32 %v2935_v11, %v2501_v20  ;;  %v3256_v19 = vpack.c.bf16 %v2832_v33, %v2832_v33 }
 0x615   : > { %2621 = vst.msk [vmem:[%s5081_s8 + $0x18] sm:$0xf] %vm2614_vm13, %v3236_v3  ;;  %2618 = vst.msk [vmem:[%s5081_s8 + $0xc] sm:$0xf] %vm2614_vm13, %v3233_v57  ;;  %v3235_v22 = vpack.c.bf16 %v2573_v53, %v2573_v53  ;;  %v3244_v7 = vpack.c.bf16 %v2701_v49, %v2701_v49  ;;  %v3265_v58 = vpack.c.bf16 %v2960_v62, %v2960_v62 }
 0x616   : > { %3000 = vst.msk [vmem:[%s5081_s8 + $0x4] sm:$0xf] %vm2998_vm0, %v3258_v56  ;;  %v3253_v43 = vpack.c.bf16 %v2829_v60, %v2829_v60 }
 0x617   : > { %2749 = vst.msk [vmem:[%s5081_s8 + $0x18] sm:$0xf] %vm2742_vm14, %v3245_v39  ;;  %2746 = vst.msk [vmem:[%s5081_s8 + $0xc] sm:$0xf] %vm2742_vm14, %v3242_v54 }
 0x618   : > { %2877 = vst.msk [vmem:[%s5081_s8 + $0x18] sm:$0xf] %vm2870_vm15, %v3254_v50  ;;  %2874 = vst.msk [vmem:[%s5081_s8 + $0xc] sm:$0xf] %vm2870_vm15, %v3251_v46  ;;  %v2503_v6 = vld [vmem:[#allocation4 + $0x38] sm:$0xff] }
 0x619   : > { %3005 = vst.msk [vmem:[%s5081_s8 + $0x18] sm:$0xf] %vm2998_vm0, %v3263_v38  ;;  %3002 = vst.msk [vmem:[%s5081_s8 + $0xc] sm:$0xf] %vm2998_vm0, %v3260_v24  ;;  %v2575_v15 = vmul.f32 %v5060_v28, %v2503_v6  ;;  %v2703_v59 = vmul.f32 %v5063_v35, %v2503_v6  ;;  %v2831_v13 = vmul.f32 %v5067_v31, %v2503_v6 }
 0x61a   : > { %2623 = vst.msk [vmem:[%s5081_s8 + $0x20] sm:$0xf] %vm2614_vm13, %v3238_v18  ;;  %2620 = vst.msk [vmem:[%s5081_s8 + $0x14] sm:$0xf] %vm2614_vm13, %v3235_v22  ;;  %v2959_v9 = vmul.f32 %v2945_v45, %v2503_v6  ;;  %v3262_v28 = vpack.c.bf16 %v2957_v17, %v2957_v17 }
 0x61b   : > { %2751 = vst.msk [vmem:[%s5081_s8 + $0x20] sm:$0xf] %vm2742_vm14, %v3247_v12  ;;  %2748 = vst.msk [vmem:[%s5081_s8 + $0x14] sm:$0xf] %vm2742_vm14, %v3244_v7  ;;  %v3237_v35 = vpack.c.bf16 %v2575_v15, %v2575_v15  ;;  %v3246_v14 = vpack.c.bf16 %v2703_v59, %v2703_v59  ;;  %v3255_v31 = vpack.c.bf16 %v2831_v13, %v2831_v13 }
 0x61c   : > { %2879 = vst.msk [vmem:[%s5081_s8 + $0x20] sm:$0xf] %vm2870_vm15, %v3256_v19  ;;  %2876 = vst.msk [vmem:[%s5081_s8 + $0x14] sm:$0xf] %vm2870_vm15, %v3253_v43  ;;  %v3264_v4 = vpack.c.bf16 %v2959_v9, %v2959_v9 }
 0x61d   : > { %3007 = vst.msk [vmem:[%s5081_s8 + $0x20] sm:$0xf] %vm2998_vm0, %v3265_v58  ;;  %3004 = vst.msk [vmem:[%s5081_s8 + $0x14] sm:$0xf] %vm2998_vm0, %v3262_v28 }
 0x61e   : > { %2622 = vst.msk [vmem:[%s5081_s8 + $0x1c] sm:$0xf] %vm2614_vm13, %v3237_v35 }
 0x61f   : > { %2750 = vst.msk [vmem:[%s5081_s8 + $0x1c] sm:$0xf] %vm2742_vm14, %v3246_v14 }
 0x620   : > { %2878 = vst.msk [vmem:[%s5081_s8 + $0x1c] sm:$0xf] %vm2870_vm15, %v3255_v31 }
 0x621   : > { %3006 = vst.msk [vmem:[%s5081_s8 + $0x1c] sm:$0xf] %vm2998_vm0, %v3264_v4 }
 0x622 PF: > { %s13_s14 = sadd.s32 1, %s3794_s14   ;;  %s5262_s12 = smov %s3790_s13 }
 0x623   : > { %p10_p5 = scmp.ge.s32.totalorder %s13_s14, 4   ;;  %s5263_s13 = smov %s5265_s15 }
 0x625   :  { %12 = sbr.rel (!%p10_p5) target bundleno = 2 (0x2), region = 76 }

</bundles_post_ra>
